<compile_context>
chip_gen: v7x
topology: tpu7x:2x2x1
jax: 0.10.0
libtpu: 0.0.40
codegen_flags: <defaults>
</compile_context>

<pallas_src>
import functools
import math

import jax
import jax.numpy as jnp
from jax.experimental import pallas as pl
from jax.experimental.pallas import tpu as pltpu

FEATS = 512          # `feats` in the module
HID = 256            # GRU hidden (feats // 2), bidirectional -> 512 out
N_HEAD_OUT = 10      # nn.Linear(lstm_embed, 10)
HEAD_PAD = 128       # head output padded to a full lane group (lane-dense vst)
PATCH = 32           # encoder stub: stride-32 patch embed (final CoaT stage stride)
IN_CHANS = 3


def _vmem_spec():
    return pl.BlockSpec(memory_space=pltpu.MemorySpace.VMEM)


# ---------------------------------------------------------------------------
# Kernel 1: fused nan_to_num + patch-embed matmul + per-image average pool.
# Grid = (image-blocks [parallel], K-tiles [arbitrary]).  The pooled output
# block index is constant over k, so the (G, 512) output block itself is the
# f32 accumulator (no scratch, no (M, 512) dec4 intermediate in HBM).
# ---------------------------------------------------------------------------
def _embed_pool_kernel(x_ref, w_ref, b_ref, p_ref, o_ref):
    k = pl.program_id(1)

    x = x_ref[...]                                           # (tm, tk) f32
    finite = (x == x) & (jnp.abs(x) != jnp.inf)              # nan_to_num(x,0,0,0)
    xb = jnp.where(finite, x, 0.0).astype(jnp.bfloat16)

    # per-token patch embedding (encoder stub), f32 accumulation on the MXU
    part = jnp.dot(xb, w_ref[...], preferred_element_type=jnp.float32)      # (tm, 512)
    # per-image mean pool of this K-partial: (G, tm) @ (tm, 512) -> (G, 512)
    pooled = jnp.dot(p_ref[...], part, preferred_element_type=jnp.float32)

    @pl.when(k == 0)
    def _():
        o_ref[...] = pooled + b_ref[...]

    @pl.when(k > 0)
    def _():
        o_ref[...] += pooled


def _pick_img_block(n_images, t_tok, max_rows=1024):
    """Images per M-tile: divisor of n_images keeping all blocks (8,128)-legal."""
    valid = []
    for g in range(1, n_images + 1):
        if n_images % g:
            continue
        rows_ok = ((g * t_tok) % 8 == 0) or (g == n_images)   # x tile sublanes
        out_ok = (g % 8 == 0) or (g == n_images)              # pooled-out sublanes
        if rows_ok and out_ok:
            valid.append(g)
    small = [g for g in valid if g * t_tok <= max_rows]
    return max(small) if small else min(valid)


def patch_embed_pool(patches, w_bf16, b, *, n_images, t_tok):
    M, K = patches.shape
    G = _pick_img_block(n_images, t_tok)      # images per M tile
    tm = G * t_tok                            # matmul rows per tile
    tk = K
    for cand in (512, 1024, 256, 128):        # 512 keeps v5e weight DMA bursts small
        if K % cand == 0:
            tk = cand
            break

    # per-image mean-pool matrix: row g averages the t_tok token rows of image g
    row_img = jnp.arange(tm, dtype=jnp.int32) // t_tok
    pool = (row_img[None, :] == jnp.arange(G, dtype=jnp.int32)[:, None]
            ).astype(jnp.float32) / float(t_tok)

    return pl.pallas_call(
        _embed_pool_kernel,
        out_shape=jax.ShapeDtypeStruct((n_images, FEATS), jnp.float32),
        grid=(M // tm, K // tk),
        in_specs=[pl.BlockSpec((tm, tk), lambda i, k: (i, k)),
                  pl.BlockSpec((tk, FEATS), lambda i, k: (k, 0)),
                  pl.BlockSpec((1, FEATS), lambda i, k: (0, 0)),
                  pl.BlockSpec((G, tm), lambda i, k: (0, 0))],
        out_specs=pl.BlockSpec((G, FEATS), lambda i, k: (i, 0)),
        compiler_params=pltpu.CompilerParams(
            dimension_semantics=("parallel", "arbitrary"),   # megacore split on v7x
            vmem_limit_bytes=48 * 1024 * 1024),
    )(patches, w_bf16, b, pool)


# ---------------------------------------------------------------------------
# Kernel 2: fused bidirectional GRU + classification head + nan_to_num.
# Input-gate matmuls for every timestep and both directions are computed as
# two big batched matmuls BEFORE the recurrence; the unrolled serial loop only
# carries the two (B,256)@(256,768) h-recurrence matmuls + gate math.  The
# head is one batched lane-dense (T*B,512)@(512,128) matmul.
# ---------------------------------------------------------------------------
def _gru_head_kernel(feat_ref,
                     wih_f_ref, whh_f_ref, bih_f_ref, bhh_f_ref,
                     wih_b_ref, whh_b_ref, bih_b_ref, bhh_b_ref,
                     hw_ref, hb_ref,
                     o_ref, out_sc, *, seq_len, batch):
    T, B, H = seq_len, batch, HID

    feat = feat_ref[...]                                     # (T*B, 512), t-major rows
    # batched input-gate projections (both directions, all timesteps)
    gx_f = (jnp.dot(feat, wih_f_ref[...], preferred_element_type=jnp.float32)
            + bih_f_ref[...])                                # (T*B, 768)
    gx_b = (jnp.dot(feat, wih_b_ref[...], preferred_element_type=jnp.float32)
            + bih_b_ref[...])

    bhh_f = bhh_f_ref[...]
    bhh_b = bhh_b_ref[...]

    def gru_cell(gx, gh, h_prev):
        r = jax.nn.sigmoid(gx[:, 0:H] + gh[:, 0:H])
        z = jax.nn.sigmoid(gx[:, H:2 * H] + gh[:, H:2 * H])
        n = jnp.tanh(gx[:, 2 * H:3 * H] + r * gh[:, 2 * H:3 * H])
        return (1.0 - z) * n + z * h_prev

    hf = jnp.zeros((B, H), jnp.float32)
    hb = jnp.zeros((B, H), jnp.float32)
    # static unrolled recurrence (T is small & static); fwd/bwd interleaved so
    # their independent matmuls hide each other's MXU latency.
    for i in range(T):
        tf = i
        tb = T - 1 - i
        ghf = jnp.dot(hf, whh_f_ref[...], preferred_element_type=jnp.float32) + bhh_f
        ghb = jnp.dot(hb, whh_b_ref[...], preferred_element_type=jnp.float32) + bhh_b
        hf = gru_cell(gx_f[tf * B:(tf + 1) * B], ghf, hf)
        hb = gru_cell(gx_b[tb * B:(tb + 1) * B], ghb, hb)
        out_sc[tf * B:(tf + 1) * B, 0:H] = hf                # fwd half of concat
        out_sc[tb * B:(tb + 1) * B, H:2 * H] = hb            # bwd half of concat

    # Dropout(0.1) is identity at eval; Linear(512, 10) padded to 128 lanes.
    logits = (jnp.dot(out_sc[...], hw_ref[...], preferred_element_type=jnp.float32)
              + hb_ref[...])                                 # (T*B, 128)
    finite = (logits == logits) & (jnp.abs(logits) != jnp.inf)   # final nan_to_num
    o_ref[...] = jnp.where(finite, logits, 0.0)


def gru_head(feat_2d, params, *, seq_len, batch):
    kernel = functools.partial(_gru_head_kernel, seq_len=seq_len, batch=batch)
    return pl.pallas_call(
        kernel,
        out_shape=jax.ShapeDtypeStruct((seq_len * batch, HEAD_PAD), jnp.float32),
        in_specs=[_vmem_spec()] * 11,
        out_specs=_vmem_spec(),
        scratch_shapes=[pltpu.VMEM((seq_len * batch, 2 * HID), jnp.float32)],
    )(feat_2d,
      params["w_ih_f"], params["w_hh_f"], params["b_ih_f"], params["b_hh_f"],
      params["w_ih_b"], params["w_hh_b"], params["b_ih_b"], params["b_hh_b"],
      params["head_w"], params["head_b"])


# ---------------------------------------------------------------------------
# Parameters (deterministic synthetic init; shapes follow the module __init__)
# ---------------------------------------------------------------------------
def init_params(key):
    ks = jax.random.split(key, 8)

    def nrm(k, shape, fan_in):
        return jax.random.normal(k, shape, jnp.float32) * (1.0 / math.sqrt(fan_in))

    p = {}
    kpatch = IN_CHANS * PATCH * PATCH
    # encoder stub (stride-32 patch embed producing dec4 with 512 channels).
    # bf16 weight: MXU-native on v6e/v7x, halves weight DMA; accumulation is f32.
    p["enc_w"] = nrm(ks[0], (kpatch, FEATS), kpatch).astype(jnp.bfloat16)
    p["enc_b"] = jnp.zeros((1, FEATS), jnp.float32)
    # nn.GRU(512, 256, bidirectional=True, batch_first=True); gate order r,z,n
    p["w_ih_f"] = nrm(ks[1], (FEATS, 3 * HID), FEATS)     # = weight_ih_l0.T
    p["w_hh_f"] = nrm(ks[2], (HID, 3 * HID), HID)         # = weight_hh_l0.T
    p["b_ih_f"] = jnp.zeros((1, 3 * HID), jnp.float32)
    p["b_hh_f"] = jnp.zeros((1, 3 * HID), jnp.float32)
    p["w_ih_b"] = nrm(ks[3], (FEATS, 3 * HID), FEATS)     # reverse direction
    p["w_hh_b"] = nrm(ks[4], (HID, 3 * HID), HID)
    p["b_ih_b"] = jnp.zeros((1, 3 * HID), jnp.float32)
    p["b_hh_b"] = jnp.zeros((1, 3 * HID), jnp.float32)
    # head: Dropout(0.1) (eval identity) + Linear(512, 10), padded to 128 output
    # lanes so the head store is an unmasked lane-dense vst.
    head_w = nrm(ks[5], (FEATS, N_HEAD_OUT), FEATS)
    p["head_w"] = jnp.zeros((FEATS, HEAD_PAD), jnp.float32).at[:, :N_HEAD_OUT].set(head_w)
    p["head_b"] = jnp.zeros((1, HEAD_PAD), jnp.float32)
    return p


# ---------------------------------------------------------------------------
# Forward pass
# ---------------------------------------------------------------------------
@jax.jit
def model_forward(x, params):
    bs, n_slice, in_chans, image_size, _ = x.shape
    hp = image_size // PATCH
    t_tok = hp * hp
    n_images = bs * n_slice

    # patchify (pure layout plumbing; nan_to_num is fused into kernel 1)
    patches = x.reshape(n_images, in_chans, hp, PATCH, hp, PATCH)
    patches = patches.transpose(0, 2, 4, 1, 3, 5).reshape(
        n_images * t_tok, in_chans * PATCH * PATCH)

    # kernel 1: nan_to_num + encoder-stub patch embed + AdaptiveAvgPool2d(1)
    pooled = patch_embed_pool(patches, params["enc_w"], params["enc_b"],
                              n_images=n_images, t_tok=t_tok)        # (bs*n, 512)

    # kernel 2: bidirectional GRU + head + trailing nan_to_num.
    # GRU is batch_first: seq dim = n_slice, batch dim = bs; rows are t-major.
    feat_2d = jnp.transpose(pooled.reshape(bs, n_slice, FEATS), (1, 0, 2)).reshape(
        n_slice * bs, FEATS)                                         # (T*B, 512)
    logits = gru_head(feat_2d, params, seq_len=n_slice, batch=bs)    # (T*B, 128)
    feat = jnp.transpose(logits.reshape(n_slice, bs, HEAD_PAD),
                         (1, 0, 2))[:, :, :N_HEAD_OUT]               # (bs, n, 10)
    return feat


if __name__ == "__main__":
    bs, n_slice, image_size = 2, 4, 64
    key = jax.random.PRNGKey(0)
    x = jax.random.normal(key, (bs, n_slice, IN_CHANS, image_size, image_size),
                          jnp.float32)
    # exercise the fused nan_to_num
    x = x.at[0, 0, 0, 0, 0].set(jnp.nan)
    x = x.at[0, 0, 0, 0, 1].set(jnp.inf)
    x = x.at[0, 1, 1, 5, 7].set(-jnp.inf)

    params = init_params(jax.random.PRNGKey(1))

    feat = model_forward(x, params)
    feat = jax.block_until_ready(feat)

    assert feat.shape == (bs, n_slice, N_HEAD_OUT), feat.shape
    assert bool(jnp.all(jnp.isfinite(feat)))
    print("KERNEL_OK")
</pallas_src>

<mosaic_0001>
module attributes {stable_mosaic.version = 11 : i64} {
  func.func @_embed_pool_kernel(%arg0: i32, %arg1: i32, %arg2: memref<32x512xf32, #tpu.memory_space<vmem>>, %arg3: memref<512x512xbf16, #tpu.memory_space<vmem>>, %arg4: memref<1x512xf32, #tpu.memory_space<vmem>>, %arg5: memref<8x32xf32, #tpu.memory_space<vmem>>, %arg6: memref<8x512xf32, #tpu.memory_space<vmem>>) attributes {dimension_semantics = [#tpu.dimension_semantics<parallel>, #tpu.dimension_semantics<arbitrary>], iteration_bounds = array<i64: 1, 6>, scalar_prefetch = 0 : i64, scratch_operands = 0 : i64, tpu.core_type = #tpu.core_type<tc>, window_params = [{transform_indices = @transform_0, window_bounds = array<i64: 32, 512>}, {transform_indices = @transform_1, window_bounds = array<i64: 512, 512>}, {pipeline_mode = #tpu.pipeline_mode<synchronous>, transform_indices = @transform_2, window_bounds = array<i64: 1, 512>}, {pipeline_mode = #tpu.pipeline_mode<synchronous>, transform_indices = @transform_3, window_bounds = array<i64: 8, 32>}, {transform_indices = @transform_4, window_bounds = array<i64: 8, 512>}]} {
    %c0 = arith.constant 0 : index
    %c0_0 = arith.constant 0 : index
    %0 = vector.load %arg2[%c0, %c0_0] : memref<32x512xf32, #tpu.memory_space<vmem>>, vector<32x512xf32>
    %1 = arith.cmpf oeq, %0, %0 : vector<32x512xf32>
    %2 = math.absf %0 : vector<32x512xf32>
    %cst = arith.constant 0x7F800000 : f32
    %3 = vector.broadcast %cst : f32 to vector<32x512xf32>
    %4 = arith.cmpf one, %2, %3 : vector<32x512xf32>
    %5 = arith.andi %1, %4 : vector<32x512xi1>
    %cst_1 = arith.constant 0.000000e+00 : f32
    %6 = vector.broadcast %cst_1 : f32 to vector<32x512xf32>
    %7 = arith.select %5, %0, %6 : vector<32x512xi1>, vector<32x512xf32>
    %8 = arith.truncf %7 : vector<32x512xf32> to vector<32x512xbf16>
    %c0_2 = arith.constant 0 : index
    %c0_3 = arith.constant 0 : index
    %9 = vector.load %arg3[%c0_2, %c0_3] : memref<512x512xbf16, #tpu.memory_space<vmem>>, vector<512x512xbf16>
    %cst_4 = arith.constant dense<0.000000e+00> : vector<32x512xf32>
    %10 = tpu.matmul %8, %9, %cst_4 {dimension_numbers = #tpu.dot_dimension_numbers<[1], [0], [0], [1], [0, 0, 1, 1], [], []>} : vector<32x512xbf16>, vector<512x512xbf16>, vector<32x512xf32> -> vector<32x512xf32>
    %c0_5 = arith.constant 0 : index
    %c0_6 = arith.constant 0 : index
    %11 = vector.load %arg5[%c0_5, %c0_6] : memref<8x32xf32, #tpu.memory_space<vmem>>, vector<8x32xf32>
    %cst_7 = arith.constant dense<0.000000e+00> : vector<8x512xf32>
    %12 = tpu.matmul %11, %10, %cst_7 {dimension_numbers = #tpu.dot_dimension_numbers<[1], [0], [0], [1], [0, 0, 1, 1], [], []>} : vector<8x32xf32>, vector<32x512xf32>, vector<8x512xf32> -> vector<8x512xf32>
    %c0_i32 = arith.constant 0 : i32
    %13 = arith.cmpi eq, %arg1, %c0_i32 : i32
    %14 = arith.extui %13 : i1 to i32
    %c0_i32_8 = arith.constant 0 : i32
    %15 = arith.cmpi ne, %14, %c0_i32_8 : i32
    scf.if %15 {
      %c0_11 = arith.constant 0 : index
      %c0_12 = arith.constant 0 : index
      %19 = vector.load %arg4[%c0_11, %c0_12] : memref<1x512xf32, #tpu.memory_space<vmem>>, vector<1x512xf32>
      %20 = vector.broadcast %19 : vector<1x512xf32> to vector<8x512xf32>
      %21 = arith.addf %12, %20 : vector<8x512xf32>
      %c0_13 = arith.constant 0 : index
      %c0_14 = arith.constant 0 : index
      %22 = vector.load %arg6[%c0_13, %c0_14] : memref<8x512xf32, #tpu.memory_space<vmem>>, vector<8x512xf32>
      tpu.vector_store %arg6[%c0_13, %c0_14], %21 {strides = array<i32>} : memref<8x512xf32, #tpu.memory_space<vmem>>, vector<8x512xf32>,
    } else {
    }
    %c0_i32_9 = arith.constant 0 : i32
    %16 = arith.cmpi sgt, %arg1, %c0_i32_9 : i32
    %17 = arith.extui %16 : i1 to i32
    %c0_i32_10 = arith.constant 0 : i32
    %18 = arith.cmpi ne, %17, %c0_i32_10 : i32
    scf.if %18 {
      %c0_11 = arith.constant 0 : index
      %c0_12 = arith.constant 0 : index
      %19 = vector.load %arg6[%c0_11, %c0_12] : memref<8x512xf32, #tpu.memory_space<vmem>>, vector<8x512xf32>
      %20 = arith.addf %19, %12 : vector<8x512xf32>
      %c0_13 = arith.constant 0 : index
      %c0_14 = arith.constant 0 : index
      %21 = vector.load %arg6[%c0_13, %c0_14] : memref<8x512xf32, #tpu.memory_space<vmem>>, vector<8x512xf32>
      tpu.vector_store %arg6[%c0_13, %c0_14], %20 {strides = array<i32>} : memref<8x512xf32, #tpu.memory_space<vmem>>, vector<8x512xf32>,
    } else {
    }
    return
  }
  func.func @transform_0(%arg0: i32, %arg1: i32) -> (i32, i32) {
    %c0_i32 = arith.constant 0 : i32
    return %arg0, %arg1 : i32, i32
  }
  func.func @transform_1(%arg0: i32, %arg1: i32) -> (i32, i32) {
    %c0_i32 = arith.constant 0 : i32
    %c0_i32_0 = arith.constant 0 : i32
    return %arg1, %c0_i32 : i32, i32
  }
  func.func @transform_2(%arg0: i32, %arg1: i32) -> (i32, i32) {
    %c0_i32 = arith.constant 0 : i32
    %c0_i32_0 = arith.constant 0 : i32
    %c0_i32_1 = arith.constant 0 : i32
    return %c0_i32, %c0_i32_0 : i32, i32
  }
  func.func @transform_3(%arg0: i32, %arg1: i32) -> (i32, i32) {
    %c0_i32 = arith.constant 0 : i32
    %c0_i32_0 = arith.constant 0 : i32
    %c0_i32_1 = arith.constant 0 : i32
    return %c0_i32, %c0_i32_0 : i32, i32
  }
  func.func @transform_4(%arg0: i32, %arg1: i32) -> (i32, i32) {
    %c0_i32 = arith.constant 0 : i32
    %c0_i32_0 = arith.constant 0 : i32
    return %arg0, %c0_i32 : i32, i32
  }
}

module attributes {stable_mosaic.version = 11 : i64} {
  func.func @_gru_head_kernel(%arg0: memref<8x512xf32, #tpu.memory_space<vmem>>, %arg1: memref<512x768xf32, #tpu.memory_space<vmem>>, %arg2: memref<256x768xf32, #tpu.memory_space<vmem>>, %arg3: memref<1x768xf32, #tpu.memory_space<vmem>>, %arg4: memref<1x768xf32, #tpu.memory_space<vmem>>, %arg5: memref<512x768xf32, #tpu.memory_space<vmem>>, %arg6: memref<256x768xf32, #tpu.memory_space<vmem>>, %arg7: memref<1x768xf32, #tpu.memory_space<vmem>>, %arg8: memref<1x768xf32, #tpu.memory_space<vmem>>, %arg9: memref<512x128xf32, #tpu.memory_space<vmem>>, %arg10: memref<1x128xf32, #tpu.memory_space<vmem>>, %arg11: memref<8x128xf32, #tpu.memory_space<vmem>>, %arg12: memref<8x512xf32, #tpu.memory_space<vmem>>) attributes {dimension_semantics = [], scalar_prefetch = 0 : i64, scratch_operands = 1 : i64, tpu.core_type = #tpu.core_type<tc>} {
    %c0 = arith.constant 0 : index
    %c0_0 = arith.constant 0 : index
    %0 = vector.load %arg0[%c0, %c0_0] : memref<8x512xf32, #tpu.memory_space<vmem>>, vector<8x512xf32>
    %c0_1 = arith.constant 0 : index
    %c0_2 = arith.constant 0 : index
    %1 = vector.load %arg1[%c0_1, %c0_2] : memref<512x768xf32, #tpu.memory_space<vmem>>, vector<512x768xf32>
    %cst = arith.constant dense<0.000000e+00> : vector<8x768xf32>
    %2 = tpu.matmul %0, %1, %cst {dimension_numbers = #tpu.dot_dimension_numbers<[1], [0], [0], [1], [0, 0, 1, 1], [], []>} : vector<8x512xf32>, vector<512x768xf32>, vector<8x768xf32> -> vector<8x768xf32>
    %c0_3 = arith.constant 0 : index
    %c0_4 = arith.constant 0 : index
    %3 = vector.load %arg3[%c0_3, %c0_4] : memref<1x768xf32, #tpu.memory_space<vmem>>, vector<1x768xf32>
    %4 = vector.broadcast %3 : vector<1x768xf32> to vector<8x768xf32>
    %5 = arith.addf %2, %4 : vector<8x768xf32>
    %c0_5 = arith.constant 0 : index
    %c0_6 = arith.constant 0 : index
    %6 = vector.load %arg5[%c0_5, %c0_6] : memref<512x768xf32, #tpu.memory_space<vmem>>, vector<512x768xf32>
    %cst_7 = arith.constant dense<0.000000e+00> : vector<8x768xf32>
    %7 = tpu.matmul %0, %6, %cst_7 {dimension_numbers = #tpu.dot_dimension_numbers<[1], [0], [0], [1], [0, 0, 1, 1], [], []>} : vector<8x512xf32>, vector<512x768xf32>, vector<8x768xf32> -> vector<8x768xf32>
    %c0_8 = arith.constant 0 : index
    %c0_9 = arith.constant 0 : index
    %8 = vector.load %arg7[%c0_8, %c0_9] : memref<1x768xf32, #tpu.memory_space<vmem>>, vector<1x768xf32>
    %9 = vector.broadcast %8 : vector<1x768xf32> to vector<8x768xf32>
    %10 = arith.addf %7, %9 : vector<8x768xf32>
    %c0_10 = arith.constant 0 : index
    %c0_11 = arith.constant 0 : index
    %11 = vector.load %arg4[%c0_10, %c0_11] : memref<1x768xf32, #tpu.memory_space<vmem>>, vector<1x768xf32>
    %c0_12 = arith.constant 0 : index
    %c0_13 = arith.constant 0 : index
    %12 = vector.load %arg8[%c0_12, %c0_13] : memref<1x768xf32, #tpu.memory_space<vmem>>, vector<1x768xf32>
    %cst_14 = arith.constant 0.000000e+00 : f32
    %13 = vector.broadcast %cst_14 : f32 to vector<2x256xf32>
    %cst_15 = arith.constant 0.000000e+00 : f32
    %14 = vector.broadcast %cst_15 : f32 to vector<2x256xf32>
    %c0_16 = arith.constant 0 : index
    %c0_17 = arith.constant 0 : index
    %15 = vector.load %arg2[%c0_16, %c0_17] : memref<256x768xf32, #tpu.memory_space<vmem>>, vector<256x768xf32>
    %cst_18 = arith.constant dense<0.000000e+00> : vector<2x768xf32>
    %16 = tpu.matmul %13, %15, %cst_18 {dimension_numbers = #tpu.dot_dimension_numbers<[1], [0], [0], [1], [0, 0, 1, 1], [], []>} : vector<2x256xf32>, vector<256x768xf32>, vector<2x768xf32> -> vector<2x768xf32>
    %17 = vector.broadcast %11 : vector<1x768xf32> to vector<2x768xf32>
    %18 = arith.addf %16, %17 : vector<2x768xf32>
    %c0_19 = arith.constant 0 : index
    %c0_20 = arith.constant 0 : index
    %19 = vector.load %arg6[%c0_19, %c0_20] : memref<256x768xf32, #tpu.memory_space<vmem>>, vector<256x768xf32>
    %cst_21 = arith.constant dense<0.000000e+00> : vector<2x768xf32>
    %20 = tpu.matmul %14, %19, %cst_21 {dimension_numbers = #tpu.dot_dimension_numbers<[1], [0], [0], [1], [0, 0, 1, 1], [], []>} : vector<2x256xf32>, vector<256x768xf32>, vector<2x768xf32> -> vector<2x768xf32>
    %21 = vector.broadcast %12 : vector<1x768xf32> to vector<2x768xf32>
    %22 = arith.addf %20, %21 : vector<2x768xf32>
    %23 = vector.extract_strided_slice %5 {offsets = [0, 0], sizes = [2, 768], strides = [1, 1]} : vector<8x768xf32> to vector<2x768xf32>
    %24 = vector.extract_strided_slice %23 {offsets = [0, 0], sizes = [2, 256], strides = [1, 1]} : vector<2x768xf32> to vector<2x256xf32>
    %25 = vector.extract_strided_slice %18 {offsets = [0, 0], sizes = [2, 256], strides = [1, 1]} : vector<2x768xf32> to vector<2x256xf32>
    %26 = arith.addf %24, %25 : vector<2x256xf32>
    %27 = arith.negf %26 : vector<2x256xf32>
    %28 = math.exp %27 : vector<2x256xf32>
    %cst_22 = arith.constant 1.000000e+00 : f32
    %29 = vector.broadcast %cst_22 : f32 to vector<2x256xf32>
    %30 = arith.addf %29, %28 : vector<2x256xf32>
    %31 = arith.divf %29, %30 : vector<2x256xf32>
    %32 = vector.extract_strided_slice %23 {offsets = [0, 256], sizes = [2, 256], strides = [1, 1]} : vector<2x768xf32> to vector<2x256xf32>
    %33 = vector.extract_strided_slice %18 {offsets = [0, 256], sizes = [2, 256], strides = [1, 1]} : vector<2x768xf32> to vector<2x256xf32>
    %34 = arith.addf %32, %33 : vector<2x256xf32>
    %35 = arith.negf %34 : vector<2x256xf32>
    %36 = math.exp %35 : vector<2x256xf32>
    %cst_23 = arith.constant 1.000000e+00 : f32
    %37 = vector.broadcast %cst_23 : f32 to vector<2x256xf32>
    %38 = arith.addf %37, %36 : vector<2x256xf32>
    %39 = arith.divf %37, %38 : vector<2x256xf32>
    %40 = vector.extract_strided_slice %23 {offsets = [0, 512], sizes = [2, 256], strides = [1, 1]} : vector<2x768xf32> to vector<2x256xf32>
    %41 = vector.extract_strided_slice %18 {offsets = [0, 512], sizes = [2, 256], strides = [1, 1]} : vector<2x768xf32> to vector<2x256xf32>
    %42 = arith.mulf %31, %41 : vector<2x256xf32>
    %43 = arith.addf %40, %42 : vector<2x256xf32>
    %44 = math.tanh %43 : vector<2x256xf32>
    %cst_24 = arith.constant 1.000000e+00 : f32
    %45 = vector.broadcast %cst_24 : f32 to vector<2x256xf32>
    %46 = arith.subf %45, %39 : vector<2x256xf32>
    %47 = arith.mulf %46, %44 : vector<2x256xf32>
    %48 = arith.mulf %39, %13 : vector<2x256xf32>
    %49 = arith.addf %47, %48 : vector<2x256xf32>
    %50 = vector.extract_strided_slice %10 {offsets = [6, 0], sizes = [2, 768], strides = [1, 1]} : vector<8x768xf32> to vector<2x768xf32>
    %51 = vector.extract_strided_slice %50 {offsets = [0, 0], sizes = [2, 256], strides = [1, 1]} : vector<2x768xf32> to vector<2x256xf32>
    %52 = vector.extract_strided_slice %22 {offsets = [0, 0], sizes = [2, 256], strides = [1, 1]} : vector<2x768xf32> to vector<2x256xf32>
    %53 = arith.addf %51, %52 : vector<2x256xf32>
    %54 = arith.negf %53 : vector<2x256xf32>
    %55 = math.exp %54 : vector<2x256xf32>
    %cst_25 = arith.constant 1.000000e+00 : f32
    %56 = vector.broadcast %cst_25 : f32 to vector<2x256xf32>
    %57 = arith.addf %56, %55 : vector<2x256xf32>
    %58 = arith.divf %56, %57 : vector<2x256xf32>
    %59 = vector.extract_strided_slice %50 {offsets = [0, 256], sizes = [2, 256], strides = [1, 1]} : vector<2x768xf32> to vector<2x256xf32>
    %60 = vector.extract_strided_slice %22 {offsets = [0, 256], sizes = [2, 256], strides = [1, 1]} : vector<2x768xf32> to vector<2x256xf32>
    %61 = arith.addf %59, %60 : vector<2x256xf32>
    %62 = arith.negf %61 : vector<2x256xf32>
    %63 = math.exp %62 : vector<2x256xf32>
    %cst_26 = arith.constant 1.000000e+00 : f32
    %64 = vector.broadcast %cst_26 : f32 to vector<2x256xf32>
    %65 = arith.addf %64, %63 : vector<2x256xf32>
    %66 = arith.divf %64, %65 : vector<2x256xf32>
    %67 = vector.extract_strided_slice %50 {offsets = [0, 512], sizes = [2, 256], strides = [1, 1]} : vector<2x768xf32> to vector<2x256xf32>
    %68 = vector.extract_strided_slice %22 {offsets = [0, 512], sizes = [2, 256], strides = [1, 1]} : vector<2x768xf32> to vector<2x256xf32>
    %69 = arith.mulf %58, %68 : vector<2x256xf32>
    %70 = arith.addf %67, %69 : vector<2x256xf32>
    %71 = math.tanh %70 : vector<2x256xf32>
    %cst_27 = arith.constant 1.000000e+00 : f32
    %72 = vector.broadcast %cst_27 : f32 to vector<2x256xf32>
    %73 = arith.subf %72, %66 : vector<2x256xf32>
    %74 = arith.mulf %73, %71 : vector<2x256xf32>
    %75 = arith.mulf %66, %14 : vector<2x256xf32>
    %76 = arith.addf %74, %75 : vector<2x256xf32>
    %c0_28 = arith.constant 0 : index
    %c0_29 = arith.constant 0 : index
    %77 = vector.load %arg12[%c0_28, %c0_29] : memref<8x512xf32, #tpu.memory_space<vmem>>, vector<2x256xf32>
    tpu.vector_store %arg12[%c0_28, %c0_29], %49 {strides = array<i32>} : memref<8x512xf32, #tpu.memory_space<vmem>>, vector<2x256xf32>,
    %c6 = arith.constant 6 : index
    %c256 = arith.constant 256 : index
    %78 = vector.load %arg12[%c6, %c256] : memref<8x512xf32, #tpu.memory_space<vmem>>, vector<2x256xf32>
    tpu.vector_store %arg12[%c6, %c256], %76 {strides = array<i32>} : memref<8x512xf32, #tpu.memory_space<vmem>>, vector<2x256xf32>,
    %c0_30 = arith.constant 0 : index
    %c0_31 = arith.constant 0 : index
    %79 = vector.load %arg2[%c0_30, %c0_31] : memref<256x768xf32, #tpu.memory_space<vmem>>, vector<256x768xf32>
    %cst_32 = arith.constant dense<0.000000e+00> : vector<2x768xf32>
    %80 = tpu.matmul %49, %79, %cst_32 {dimension_numbers = #tpu.dot_dimension_numbers<[1], [0], [0], [1], [0, 0, 1, 1], [], []>} : vector<2x256xf32>, vector<256x768xf32>, vector<2x768xf32> -> vector<2x768xf32>
    %81 = vector.broadcast %11 : vector<1x768xf32> to vector<2x768xf32>
    %82 = arith.addf %80, %81 : vector<2x768xf32>
    %c0_33 = arith.constant 0 : index
    %c0_34 = arith.constant 0 : index
    %83 = vector.load %arg6[%c0_33, %c0_34] : memref<256x768xf32, #tpu.memory_space<vmem>>, vector<256x768xf32>
    %cst_35 = arith.constant dense<0.000000e+00> : vector<2x768xf32>
    %84 = tpu.matmul %76, %83, %cst_35 {dimension_numbers = #tpu.dot_dimension_numbers<[1], [0], [0], [1], [0, 0, 1, 1], [], []>} : vector<2x256xf32>, vector<256x768xf32>, vector<2x768xf32> -> vector<2x768xf32>
    %85 = vector.broadcast %12 : vector<1x768xf32> to vector<2x768xf32>
    %86 = arith.addf %84, %85 : vector<2x768xf32>
    %87 = vector.extract_strided_slice %5 {offsets = [2, 0], sizes = [2, 768], strides = [1, 1]} : vector<8x768xf32> to vector<2x768xf32>
    %88 = vector.extract_strided_slice %87 {offsets = [0, 0], sizes = [2, 256], strides = [1, 1]} : vector<2x768xf32> to vector<2x256xf32>
    %89 = vector.extract_strided_slice %82 {offsets = [0, 0], sizes = [2, 256], strides = [1, 1]} : vector<2x768xf32> to vector<2x256xf32>
    %90 = arith.addf %88, %89 : vector<2x256xf32>
    %91 = arith.negf %90 : vector<2x256xf32>
    %92 = math.exp %91 : vector<2x256xf32>
    %cst_36 = arith.constant 1.000000e+00 : f32
    %93 = vector.broadcast %cst_36 : f32 to vector<2x256xf32>
    %94 = arith.addf %93, %92 : vector<2x256xf32>
    %95 = arith.divf %93, %94 : vector<2x256xf32>
    %96 = vector.extract_strided_slice %87 {offsets = [0, 256], sizes = [2, 256], strides = [1, 1]} : vector<2x768xf32> to vector<2x256xf32>
    %97 = vector.extract_strided_slice %82 {offsets = [0, 256], sizes = [2, 256], strides = [1, 1]} : vector<2x768xf32> to vector<2x256xf32>
    %98 = arith.addf %96, %97 : vector<2x256xf32>
    %99 = arith.negf %98 : vector<2x256xf32>
    %100 = math.exp %99 : vector<2x256xf32>
    %cst_37 = arith.constant 1.000000e+00 : f32
    %101 = vector.broadcast %cst_37 : f32 to vector<2x256xf32>
    %102 = arith.addf %101, %100 : vector<2x256xf32>
    %103 = arith.divf %101, %102 : vector<2x256xf32>
    %104 = vector.extract_strided_slice %87 {offsets = [0, 512], sizes = [2, 256], strides = [1, 1]} : vector<2x768xf32> to vector<2x256xf32>
    %105 = vector.extract_strided_slice %82 {offsets = [0, 512], sizes = [2, 256], strides = [1, 1]} : vector<2x768xf32> to vector<2x256xf32>
    %106 = arith.mulf %95, %105 : vector<2x256xf32>
    %107 = arith.addf %104, %106 : vector<2x256xf32>
    %108 = math.tanh %107 : vector<2x256xf32>
    %cst_38 = arith.constant 1.000000e+00 : f32
    %109 = vector.broadcast %cst_38 : f32 to vector<2x256xf32>
    %110 = arith.subf %109, %103 : vector<2x256xf32>
    %111 = arith.mulf %110, %108 : vector<2x256xf32>
    %112 = arith.mulf %103, %49 : vector<2x256xf32>
    %113 = arith.addf %111, %112 : vector<2x256xf32>
    %114 = vector.extract_strided_slice %10 {offsets = [4, 0], sizes = [2, 768], strides = [1, 1]} : vector<8x768xf32> to vector<2x768xf32>
    %115 = vector.extract_strided_slice %114 {offsets = [0, 0], sizes = [2, 256], strides = [1, 1]} : vector<2x768xf32> to vector<2x256xf32>
    %116 = vector.extract_strided_slice %86 {offsets = [0, 0], sizes = [2, 256], strides = [1, 1]} : vector<2x768xf32> to vector<2x256xf32>
    %117 = arith.addf %115, %116 : vector<2x256xf32>
    %118 = arith.negf %117 : vector<2x256xf32>
    %119 = math.exp %118 : vector<2x256xf32>
    %cst_39 = arith.constant 1.000000e+00 : f32
    %120 = vector.broadcast %cst_39 : f32 to vector<2x256xf32>
    %121 = arith.addf %120, %119 : vector<2x256xf32>
    %122 = arith.divf %120, %121 : vector<2x256xf32>
    %123 = vector.extract_strided_slice %114 {offsets = [0, 256], sizes = [2, 256], strides = [1, 1]} : vector<2x768xf32> to vector<2x256xf32>
    %124 = vector.extract_strided_slice %86 {offsets = [0, 256], sizes = [2, 256], strides = [1, 1]} : vector<2x768xf32> to vector<2x256xf32>
    %125 = arith.addf %123, %124 : vector<2x256xf32>
    %126 = arith.negf %125 : vector<2x256xf32>
    %127 = math.exp %126 : vector<2x256xf32>
    %cst_40 = arith.constant 1.000000e+00 : f32
    %128 = vector.broadcast %cst_40 : f32 to vector<2x256xf32>
    %129 = arith.addf %128, %127 : vector<2x256xf32>
    %130 = arith.divf %128, %129 : vector<2x256xf32>
    %131 = vector.extract_strided_slice %114 {offsets = [0, 512], sizes = [2, 256], strides = [1, 1]} : vector<2x768xf32> to vector<2x256xf32>
    %132 = vector.extract_strided_slice %86 {offsets = [0, 512], sizes = [2, 256], strides = [1, 1]} : vector<2x768xf32> to vector<2x256xf32>
    %133 = arith.mulf %122, %132 : vector<2x256xf32>
    %134 = arith.addf %131, %133 : vector<2x256xf32>
    %135 = math.tanh %134 : vector<2x256xf32>
    %cst_41 = arith.constant 1.000000e+00 : f32
    %136 = vector.broadcast %cst_41 : f32 to vector<2x256xf32>
    %137 = arith.subf %136, %130 : vector<2x256xf32>
    %138 = arith.mulf %137, %135 : vector<2x256xf32>
    %139 = arith.mulf %130, %76 : vector<2x256xf32>
    %140 = arith.addf %138, %139 : vector<2x256xf32>
    %c2 = arith.constant 2 : index
    %c0_42 = arith.constant 0 : index
    %141 = vector.load %arg12[%c2, %c0_42] : memref<8x512xf32, #tpu.memory_space<vmem>>, vector<2x256xf32>
    tpu.vector_store %arg12[%c2, %c0_42], %113 {strides = array<i32>} : memref<8x512xf32, #tpu.memory_space<vmem>>, vector<2x256xf32>,
    %c4 = arith.constant 4 : index
    %c256_43 = arith.constant 256 : index
    %142 = vector.load %arg12[%c4, %c256_43] : memref<8x512xf32, #tpu.memory_space<vmem>>, vector<2x256xf32>
    tpu.vector_store %arg12[%c4, %c256_43], %140 {strides = array<i32>} : memref<8x512xf32, #tpu.memory_space<vmem>>, vector<2x256xf32>,
    %c0_44 = arith.constant 0 : index
    %c0_45 = arith.constant 0 : index
    %143 = vector.load %arg2[%c0_44, %c0_45] : memref<256x768xf32, #tpu.memory_space<vmem>>, vector<256x768xf32>
    %cst_46 = arith.constant dense<0.000000e+00> : vector<2x768xf32>
    %144 = tpu.matmul %113, %143, %cst_46 {dimension_numbers = #tpu.dot_dimension_numbers<[1], [0], [0], [1], [0, 0, 1, 1], [], []>} : vector<2x256xf32>, vector<256x768xf32>, vector<2x768xf32> -> vector<2x768xf32>
    %145 = vector.broadcast %11 : vector<1x768xf32> to vector<2x768xf32>
    %146 = arith.addf %144, %145 : vector<2x768xf32>
    %c0_47 = arith.constant 0 : index
    %c0_48 = arith.constant 0 : index
    %147 = vector.load %arg6[%c0_47, %c0_48] : memref<256x768xf32, #tpu.memory_space<vmem>>, vector<256x768xf32>
    %cst_49 = arith.constant dense<0.000000e+00> : vector<2x768xf32>
    %148 = tpu.matmul %140, %147, %cst_49 {dimension_numbers = #tpu.dot_dimension_numbers<[1], [0], [0], [1], [0, 0, 1, 1], [], []>} : vector<2x256xf32>, vector<256x768xf32>, vector<2x768xf32> -> vector<2x768xf32>
    %149 = vector.broadcast %12 : vector<1x768xf32> to vector<2x768xf32>
    %150 = arith.addf %148, %149 : vector<2x768xf32>
    %151 = vector.extract_strided_slice %5 {offsets = [4, 0], sizes = [2, 768], strides = [1, 1]} : vector<8x768xf32> to vector<2x768xf32>
    %152 = vector.extract_strided_slice %151 {offsets = [0, 0], sizes = [2, 256], strides = [1, 1]} : vector<2x768xf32> to vector<2x256xf32>
    %153 = vector.extract_strided_slice %146 {offsets = [0, 0], sizes = [2, 256], strides = [1, 1]} : vector<2x768xf32> to vector<2x256xf32>
    %154 = arith.addf %152, %153 : vector<2x256xf32>
    %155 = arith.negf %154 : vector<2x256xf32>
    %156 = math.exp %155 : vector<2x256xf32>
    %cst_50 = arith.constant 1.000000e+00 : f32
    %157 = vector.broadcast %cst_50 : f32 to vector<2x256xf32>
    %158 = arith.addf %157, %156 : vector<2x256xf32>
    %159 = arith.divf %157, %158 : vector<2x256xf32>
    %160 = vector.extract_strided_slice %151 {offsets = [0, 256], sizes = [2, 256], strides = [1, 1]} : vector<2x768xf32> to vector<2x256xf32>
    %161 = vector.extract_strided_slice %146 {offsets = [0, 256], sizes = [2, 256], strides = [1, 1]} : vector<2x768xf32> to vector<2x256xf32>
    %162 = arith.addf %160, %161 : vector<2x256xf32>
    %163 = arith.negf %162 : vector<2x256xf32>
    %164 = math.exp %163 : vector<2x256xf32>
    %cst_51 = arith.constant 1.000000e+00 : f32
    %165 = vector.broadcast %cst_51 : f32 to vector<2x256xf32>
    %166 = arith.addf %165, %164 : vector<2x256xf32>
    %167 = arith.divf %165, %166 : vector<2x256xf32>
    %168 = vector.extract_strided_slice %151 {offsets = [0, 512], sizes = [2, 256], strides = [1, 1]} : vector<2x768xf32> to vector<2x256xf32>
    %169 = vector.extract_strided_slice %146 {offsets = [0, 512], sizes = [2, 256], strides = [1, 1]} : vector<2x768xf32> to vector<2x256xf32>
    %170 = arith.mulf %159, %169 : vector<2x256xf32>
    %171 = arith.addf %168, %170 : vector<2x256xf32>
    %172 = math.tanh %171 : vector<2x256xf32>
    %cst_52 = arith.constant 1.000000e+00 : f32
    %173 = vector.broadcast %cst_52 : f32 to vector<2x256xf32>
    %174 = arith.subf %173, %167 : vector<2x256xf32>
    %175 = arith.mulf %174, %172 : vector<2x256xf32>
    %176 = arith.mulf %167, %113 : vector<2x256xf32>
    %177 = arith.addf %175, %176 : vector<2x256xf32>
    %178 = vector.extract_strided_slice %10 {offsets = [2, 0], sizes = [2, 768], strides = [1, 1]} : vector<8x768xf32> to vector<2x768xf32>
    %179 = vector.extract_strided_slice %178 {offsets = [0, 0], sizes = [2, 256], strides = [1, 1]} : vector<2x768xf32> to vector<2x256xf32>
    %180 = vector.extract_strided_slice %150 {offsets = [0, 0], sizes = [2, 256], strides = [1, 1]} : vector<2x768xf32> to vector<2x256xf32>
    %181 = arith.addf %179, %180 : vector<2x256xf32>
    %182 = arith.negf %181 : vector<2x256xf32>
    %183 = math.exp %182 : vector<2x256xf32>
    %cst_53 = arith.constant 1.000000e+00 : f32
    %184 = vector.broadcast %cst_53 : f32 to vector<2x256xf32>
    %185 = arith.addf %184, %183 : vector<2x256xf32>
    %186 = arith.divf %184, %185 : vector<2x256xf32>
    %187 = vector.extract_strided_slice %178 {offsets = [0, 256], sizes = [2, 256], strides = [1, 1]} : vector<2x768xf32> to vector<2x256xf32>
    %188 = vector.extract_strided_slice %150 {offsets = [0, 256], sizes = [2, 256], strides = [1, 1]} : vector<2x768xf32> to vector<2x256xf32>
    %189 = arith.addf %187, %188 : vector<2x256xf32>
    %190 = arith.negf %189 : vector<2x256xf32>
    %191 = math.exp %190 : vector<2x256xf32>
    %cst_54 = arith.constant 1.000000e+00 : f32
    %192 = vector.broadcast %cst_54 : f32 to vector<2x256xf32>
    %193 = arith.addf %192, %191 : vector<2x256xf32>
    %194 = arith.divf %192, %193 : vector<2x256xf32>
    %195 = vector.extract_strided_slice %178 {offsets = [0, 512], sizes = [2, 256], strides = [1, 1]} : vector<2x768xf32> to vector<2x256xf32>
    %196 = vector.extract_strided_slice %150 {offsets = [0, 512], sizes = [2, 256], strides = [1, 1]} : vector<2x768xf32> to vector<2x256xf32>
    %197 = arith.mulf %186, %196 : vector<2x256xf32>
    %198 = arith.addf %195, %197 : vector<2x256xf32>
    %199 = math.tanh %198 : vector<2x256xf32>
    %cst_55 = arith.constant 1.000000e+00 : f32
    %200 = vector.broadcast %cst_55 : f32 to vector<2x256xf32>
    %201 = arith.subf %200, %194 : vector<2x256xf32>
    %202 = arith.mulf %201, %199 : vector<2x256xf32>
    %203 = arith.mulf %194, %140 : vector<2x256xf32>
    %204 = arith.addf %202, %203 : vector<2x256xf32>
    %c4_56 = arith.constant 4 : index
    %c0_57 = arith.constant 0 : index
    %205 = vector.load %arg12[%c4_56, %c0_57] : memref<8x512xf32, #tpu.memory_space<vmem>>, vector<2x256xf32>
    tpu.vector_store %arg12[%c4_56, %c0_57], %177 {strides = array<i32>} : memref<8x512xf32, #tpu.memory_space<vmem>>, vector<2x256xf32>,
    %c2_58 = arith.constant 2 : index
    %c256_59 = arith.constant 256 : index
    %206 = vector.load %arg12[%c2_58, %c256_59] : memref<8x512xf32, #tpu.memory_space<vmem>>, vector<2x256xf32>
    tpu.vector_store %arg12[%c2_58, %c256_59], %204 {strides = array<i32>} : memref<8x512xf32, #tpu.memory_space<vmem>>, vector<2x256xf32>,
    %c0_60 = arith.constant 0 : index
    %c0_61 = arith.constant 0 : index
    %207 = vector.load %arg2[%c0_60, %c0_61] : memref<256x768xf32, #tpu.memory_space<vmem>>, vector<256x768xf32>
    %cst_62 = arith.constant dense<0.000000e+00> : vector<2x768xf32>
    %208 = tpu.matmul %177, %207, %cst_62 {dimension_numbers = #tpu.dot_dimension_numbers<[1], [0], [0], [1], [0, 0, 1, 1], [], []>} : vector<2x256xf32>, vector<256x768xf32>, vector<2x768xf32> -> vector<2x768xf32>
    %209 = vector.broadcast %11 : vector<1x768xf32> to vector<2x768xf32>
    %210 = arith.addf %208, %209 : vector<2x768xf32>
    %c0_63 = arith.constant 0 : index
    %c0_64 = arith.constant 0 : index
    %211 = vector.load %arg6[%c0_63, %c0_64] : memref<256x768xf32, #tpu.memory_space<vmem>>, vector<256x768xf32>
    %cst_65 = arith.constant dense<0.000000e+00> : vector<2x768xf32>
    %212 = tpu.matmul %204, %211, %cst_65 {dimension_numbers = #tpu.dot_dimension_numbers<[1], [0], [0], [1], [0, 0, 1, 1], [], []>} : vector<2x256xf32>, vector<256x768xf32>, vector<2x768xf32> -> vector<2x768xf32>
    %213 = vector.broadcast %12 : vector<1x768xf32> to vector<2x768xf32>
    %214 = arith.addf %212, %213 : vector<2x768xf32>
    %215 = vector.extract_strided_slice %5 {offsets = [6, 0], sizes = [2, 768], strides = [1, 1]} : vector<8x768xf32> to vector<2x768xf32>
    %216 = vector.extract_strided_slice %215 {offsets = [0, 0], sizes = [2, 256], strides = [1, 1]} : vector<2x768xf32> to vector<2x256xf32>
    %217 = vector.extract_strided_slice %210 {offsets = [0, 0], sizes = [2, 256], strides = [1, 1]} : vector<2x768xf32> to vector<2x256xf32>
    %218 = arith.addf %216, %217 : vector<2x256xf32>
    %219 = arith.negf %218 : vector<2x256xf32>
    %220 = math.exp %219 : vector<2x256xf32>
    %cst_66 = arith.constant 1.000000e+00 : f32
    %221 = vector.broadcast %cst_66 : f32 to vector<2x256xf32>
    %222 = arith.addf %221, %220 : vector<2x256xf32>
    %223 = arith.divf %221, %222 : vector<2x256xf32>
    %224 = vector.extract_strided_slice %215 {offsets = [0, 256], sizes = [2, 256], strides = [1, 1]} : vector<2x768xf32> to vector<2x256xf32>
    %225 = vector.extract_strided_slice %210 {offsets = [0, 256], sizes = [2, 256], strides = [1, 1]} : vector<2x768xf32> to vector<2x256xf32>
    %226 = arith.addf %224, %225 : vector<2x256xf32>
    %227 = arith.negf %226 : vector<2x256xf32>
    %228 = math.exp %227 : vector<2x256xf32>
    %cst_67 = arith.constant 1.000000e+00 : f32
    %229 = vector.broadcast %cst_67 : f32 to vector<2x256xf32>
    %230 = arith.addf %229, %228 : vector<2x256xf32>
    %231 = arith.divf %229, %230 : vector<2x256xf32>
    %232 = vector.extract_strided_slice %215 {offsets = [0, 512], sizes = [2, 256], strides = [1, 1]} : vector<2x768xf32> to vector<2x256xf32>
    %233 = vector.extract_strided_slice %210 {offsets = [0, 512], sizes = [2, 256], strides = [1, 1]} : vector<2x768xf32> to vector<2x256xf32>
    %234 = arith.mulf %223, %233 : vector<2x256xf32>
    %235 = arith.addf %232, %234 : vector<2x256xf32>
    %236 = math.tanh %235 : vector<2x256xf32>
    %cst_68 = arith.constant 1.000000e+00 : f32
    %237 = vector.broadcast %cst_68 : f32 to vector<2x256xf32>
    %238 = arith.subf %237, %231 : vector<2x256xf32>
    %239 = arith.mulf %238, %236 : vector<2x256xf32>
    %240 = arith.mulf %231, %177 : vector<2x256xf32>
    %241 = arith.addf %239, %240 : vector<2x256xf32>
    %242 = vector.extract_strided_slice %10 {offsets = [0, 0], sizes = [2, 768], strides = [1, 1]} : vector<8x768xf32> to vector<2x768xf32>
    %243 = vector.extract_strided_slice %242 {offsets = [0, 0], sizes = [2, 256], strides = [1, 1]} : vector<2x768xf32> to vector<2x256xf32>
    %244 = vector.extract_strided_slice %214 {offsets = [0, 0], sizes = [2, 256], strides = [1, 1]} : vector<2x768xf32> to vector<2x256xf32>
    %245 = arith.addf %243, %244 : vector<2x256xf32>
    %246 = arith.negf %245 : vector<2x256xf32>
    %247 = math.exp %246 : vector<2x256xf32>
    %cst_69 = arith.constant 1.000000e+00 : f32
    %248 = vector.broadcast %cst_69 : f32 to vector<2x256xf32>
    %249 = arith.addf %248, %247 : vector<2x256xf32>
    %250 = arith.divf %248, %249 : vector<2x256xf32>
    %251 = vector.extract_strided_slice %242 {offsets = [0, 256], sizes = [2, 256], strides = [1, 1]} : vector<2x768xf32> to vector<2x256xf32>
    %252 = vector.extract_strided_slice %214 {offsets = [0, 256], sizes = [2, 256], strides = [1, 1]} : vector<2x768xf32> to vector<2x256xf32>
    %253 = arith.addf %251, %252 : vector<2x256xf32>
    %254 = arith.negf %253 : vector<2x256xf32>
    %255 = math.exp %254 : vector<2x256xf32>
    %cst_70 = arith.constant 1.000000e+00 : f32
    %256 = vector.broadcast %cst_70 : f32 to vector<2x256xf32>
    %257 = arith.addf %256, %255 : vector<2x256xf32>
    %258 = arith.divf %256, %257 : vector<2x256xf32>
    %259 = vector.extract_strided_slice %242 {offsets = [0, 512], sizes = [2, 256], strides = [1, 1]} : vector<2x768xf32> to vector<2x256xf32>
    %260 = vector.extract_strided_slice %214 {offsets = [0, 512], sizes = [2, 256], strides = [1, 1]} : vector<2x768xf32> to vector<2x256xf32>
    %261 = arith.mulf %250, %260 : vector<2x256xf32>
    %262 = arith.addf %259, %261 : vector<2x256xf32>
    %263 = math.tanh %262 : vector<2x256xf32>
    %cst_71 = arith.constant 1.000000e+00 : f32
    %264 = vector.broadcast %cst_71 : f32 to vector<2x256xf32>
    %265 = arith.subf %264, %258 : vector<2x256xf32>
    %266 = arith.mulf %265, %263 : vector<2x256xf32>
    %267 = arith.mulf %258, %204 : vector<2x256xf32>
    %268 = arith.addf %266, %267 : vector<2x256xf32>
    %c6_72 = arith.constant 6 : index
    %c0_73 = arith.constant 0 : index
    %269 = vector.load %arg12[%c6_72, %c0_73] : memref<8x512xf32, #tpu.memory_space<vmem>>, vector<2x256xf32>
    tpu.vector_store %arg12[%c6_72, %c0_73], %241 {strides = array<i32>} : memref<8x512xf32, #tpu.memory_space<vmem>>, vector<2x256xf32>,
    %c0_74 = arith.constant 0 : index
    %c256_75 = arith.constant 256 : index
    %270 = vector.load %arg12[%c0_74, %c256_75] : memref<8x512xf32, #tpu.memory_space<vmem>>, vector<2x256xf32>
    tpu.vector_store %arg12[%c0_74, %c256_75], %268 {strides = array<i32>} : memref<8x512xf32, #tpu.memory_space<vmem>>, vector<2x256xf32>,
    %c0_76 = arith.constant 0 : index
    %c0_77 = arith.constant 0 : index
    %271 = vector.load %arg12[%c0_76, %c0_77] : memref<8x512xf32, #tpu.memory_space<vmem>>, vector<8x512xf32>
    %c0_78 = arith.constant 0 : index
    %c0_79 = arith.constant 0 : index
    %272 = vector.load %arg9[%c0_78, %c0_79] : memref<512x128xf32, #tpu.memory_space<vmem>>, vector<512x128xf32>
    %cst_80 = arith.constant dense<0.000000e+00> : vector<8x128xf32>
    %273 = tpu.matmul %271, %272, %cst_80 {dimension_numbers = #tpu.dot_dimension_numbers<[1], [0], [0], [1], [0, 0, 1, 1], [], []>} : vector<8x512xf32>, vector<512x128xf32>, vector<8x128xf32> -> vector<8x128xf32>
    %c0_81 = arith.constant 0 : index
    %c0_82 = arith.constant 0 : index
    %274 = vector.load %arg10[%c0_81, %c0_82] : memref<1x128xf32, #tpu.memory_space<vmem>>, vector<1x128xf32>
    %275 = vector.broadcast %274 : vector<1x128xf32> to vector<8x128xf32>
    %276 = arith.addf %273, %275 : vector<8x128xf32>
    %277 = arith.cmpf oeq, %276, %276 : vector<8x128xf32>
    %278 = math.absf %276 : vector<8x128xf32>
    %cst_83 = arith.constant 0x7F800000 : f32
    %279 = vector.broadcast %cst_83 : f32 to vector<8x128xf32>
    %280 = arith.cmpf one, %278, %279 : vector<8x128xf32>
    %281 = arith.andi %277, %280 : vector<8x128xi1>
    %cst_84 = arith.constant 0.000000e+00 : f32
    %282 = vector.broadcast %cst_84 : f32 to vector<8x128xf32>
    %283 = arith.select %281, %276, %282 : vector<8x128xi1>, vector<8x128xf32>
    %c0_85 = arith.constant 0 : index
    %c0_86 = arith.constant 0 : index
    %284 = vector.load %arg11[%c0_85, %c0_86] : memref<8x128xf32, #tpu.memory_space<vmem>>, vector<8x128xf32>
    tpu.vector_store %arg11[%c0_85, %c0_86], %283 {strides = array<i32>} : memref<8x128xf32, #tpu.memory_space<vmem>>, vector<8x128xf32>,
    return
  }
}

</mosaic_0001>

<bundles_post_ra>
// kernel: model_forward.2
= control target key start
LH: loop header
LB: loop body
LE: loop exit
PB: predicated region body
PF: predicated region fallthrough
CT: control target
= control target key end

     0   :  { %s2182_s15 = smov 0   ;;  %s2184_s16 = smov 0   ;;  %s2524_s0 = inlined_call_operand.vmem [shape: f32[32,3072], index: 0, kind: input, shape index: {}]   ;;  %s2525_s1 = inlined_call_operand.vmem [shape: bf16[3072,512], index: 1, kind: input, shape index: {}]   ;;  %s2526_s2 = inlined_call_operand.vmem [shape: f32[1,512], index: 2, kind: input, shape index: {}]   ;;  %s2527_s3 = inlined_call_operand.vmem [shape: f32[8,32], index: 3, kind: input, shape index: {}]   ;;  %s2528_s4 = inlined_call_operand.vmem [shape: f32[8,512], index: 4, kind: output, shape index: {}]  }
   0x1   :  { %s2186_s17 = smov 0   ;;  %s2188_s18 = smov 0  }
   0x2   :  { %s2190_s19 = smov 0  }
   0x3 LB: > { %s23_s20 = sadd.s32 1, %s2150_s18  ;;  %p42_p1 = scmp.ne.s32.totalorder %s2142_s16, %s2138_s15  ;;  %s2154_s19 = sphi %s2190_s19, %s14_s19   ;;  %s2150_s18 = sphi %s2188_s18, %s2554_s18   ;;  %s2146_s17 = sphi %s2186_s17, %s2553_s17   ;;  %s2142_s16 = sphi %s2184_s16, %s2552_s16   ;;  %s2138_s15 = sphi %s2182_s15, %s2551_s15  }
   0x4   : > { %p24_p0 = scmp.ge.s32.totalorder %s23_s20, 6  ;;  %p43_p2 = scmp.eq.s32.totalorder %s2154_s19, 0 }
   0x5   : > { %s35_s22 = sadd.s32 1, %s2142_s16  ;;  %p1657_p5 = scmp.ge.s32.totalorder %s2154_s19, 6 }
   0x6   : > { %s2556_s20 = smov (%p24_p0, %s23_s20), 0  ;;  %p44_p3 = por %p43_p2, %p42_p1 }
   0x7   : > { %s31_s21 = ssub.s32 %s2150_s18, %s2556_s20  ;;  %168 = sbr.rel (%p1657_p5) target bundleno = 26 (0x1a), region = 24 }
   0x8   : > { %p33_p4 = scmp.eq.s32.totalorder %s31_s21, 0 }
   0xa   : > { %s2217_s23 = scalar_select %p33_p4, %s2142_s16, %s35_s22  }
   0xe   : > { %171 = sbr.rel (!%p44_p3) target bundleno = 26 (0x1a), region = 28  ;;  %s173_s24 = sand.u32 (%p44_p3), 1, %s2142_s16  }
   0xf   : > { %s1849_s25 = sshll.u32 (%p44_p3), %s2150_s18, 5  ;;  %s1658_s26 = sshll.u32 (%p44_p3), %s173_s24, 7 }
  0x10   : > { %s2225_s29 = scalar_lea.vmem (%p44_p3), %s2524_s0, %s1849_s25  ;;  %s175_s30 = scalar_lea.vmem (%p44_p3), [#allocation2], %s1658_s26 }
  0x11   : > { %v194_v0 = vld [vmem:[%s2225_s29] sm:$0xff] (%p44_p3)  ;;  %v196_v1 = vld [vmem:[%s2225_s29 + $0x8] sm:$0xff] (%p44_p3)  ;;  %v198_v2 = vld [vmem:[%s2225_s29 + $0x10] sm:$0xff] (%p44_p3) }
  0x12   : > { %195 = vst [vmem:[%s175_s30] sm:$0xff] (%p44_p3), %v194_v0  ;;  %197 = vst [vmem:[%s175_s30 + $0x8] sm:$0xff] (%p44_p3), %v196_v1  ;;  %v200_v3 = vld [vmem:[%s2225_s29 + $0x18] sm:$0xff] (%p44_p3)  ;;  %v202_v4 = vld [vmem:[%s2225_s29 + $0xc0] sm:$0xff] (%p44_p3) }
  0x13   : > { %199 = vst [vmem:[%s175_s30 + $0x10] sm:$0xff] (%p44_p3), %v198_v2  ;;  %v204_v5 = vld [vmem:[%s2225_s29 + $0xc8] sm:$0xff] (%p44_p3)  ;;  %201 = vst [vmem:[%s175_s30 + $0x18] sm:$0xff] (%p44_p3), %v200_v3  ;;  %v206_v6 = vld [vmem:[%s2225_s29 + $0xd0] sm:$0xff] (%p44_p3) }
  0x14   : > { %203 = vst [vmem:[%s175_s30 + $0x20] sm:$0xff] (%p44_p3), %v202_v4  ;;  %205 = vst [vmem:[%s175_s30 + $0x28] sm:$0xff] (%p44_p3), %v204_v5  ;;  %v208_v7 = vld [vmem:[%s2225_s29 + $0xd8] sm:$0xff] (%p44_p3)  ;;  %v210_v8 = vld [vmem:[%s2225_s29 + $0x180] sm:$0xff] (%p44_p3) }
  0x15   : > { %207 = vst [vmem:[%s175_s30 + $0x30] sm:$0xff] %v206_v6  ;;  %209 = vst [vmem:[%s175_s30 + $0x38] sm:$0xff] %v208_v7  ;;  %v212_v9 = vld [vmem:[%s2225_s29 + $0x188] sm:$0xff]  ;;  %v214_v10 = vld [vmem:[%s2225_s29 + $0x190] sm:$0xff] }
  0x16   : > { %211 = vst [vmem:[%s175_s30 + $0x40] sm:$0xff] %v210_v8  ;;  %v216_v11 = vld [vmem:[%s2225_s29 + $0x198] sm:$0xff]  ;;  %213 = vst [vmem:[%s175_s30 + $0x48] sm:$0xff] %v212_v9  ;;  %v218_v12 = vld [vmem:[%s2225_s29 + $0x240] sm:$0xff] }
  0x17   : > { %215 = vst [vmem:[%s175_s30 + $0x50] sm:$0xff] %v214_v10  ;;  %217 = vst [vmem:[%s175_s30 + $0x58] sm:$0xff] %v216_v11  ;;  %v220_v13 = vld [vmem:[%s2225_s29 + $0x248] sm:$0xff]  ;;  %v222_v14 = vld [vmem:[%s2225_s29 + $0x250] sm:$0xff] }
  0x18   : > { %219 = vst [vmem:[%s175_s30 + $0x60] sm:$0xff] %v218_v12  ;;  %221 = vst [vmem:[%s175_s30 + $0x68] sm:$0xff] %v220_v13  ;;  %v224_v15 = vld [vmem:[%s2225_s29 + $0x258] sm:$0xff] }
  0x19   : > { %223 = vst [vmem:[%s175_s30 + $0x70] sm:$0xff] %v222_v14  ;;  %225 = vst [vmem:[%s175_s30 + $0x78] sm:$0xff] %v224_v15 }
  0x1a PF: > { %p1661_p6 = scmp.ge.s32.totalorder %s2154_s19, 1  ;;  %p240_p7 = scmp.lt.s32.totalorder %s2154_s19, 7 }
  0x1c   : > { %p241_p8 = pnand %p1661_p6, %p240_p7 }
  0x1d   : > { %s1663_s5 = sshll.u32 (!%p241_p8), %s2146_s17, 6  ;;  %s247_s10 = sand.u32 (!%p241_p8), 1, %s2138_s15  }
  0x1e   : > { %244 = sbr.rel (%p241_p8) target bundleno = 624 (0x270), region = 55  ;;  %p281_p9 = scmp.lt.s32.totalorder (!%p241_p8), %s1663_s5, 383 }
  0x1f   : > { %s1662_s11 = sshll.u32 (!%p241_p8), %s247_s10, 7  ;;  %p1844_p10 = scmp.ne.s32.totalorder (!%p241_p8), %s2146_s17, 0 }
  0x20   : > { %s2286_s12 = scalar_lea.vmem (!%p241_p8), [#allocation2], %s1662_s11 }
  0x21   : > { %v293_v50 = vld [vmem:[%s2286_s12 + $0x8] sm:$0xff] (!%p241_p8)  ;;  %v292_v7 = vld [vmem:[%s2286_s12] sm:$0xff] (!%p241_p8) }
  0x22   : > { %v297_v53 = vld [vmem:[%s2286_s12 + $0x28] sm:$0xff] (!%p241_p8)  ;;  %v325_v56 = vand.u32 (!%p241_p8), 2147483647, %v293_v50  ;;  %vm309_vm0 = vcmp.eq.f32.partialorder (!%p241_p8), %v293_v50, %v293_v50  ;;  %v296_v12 = vld [vmem:[%s2286_s12 + $0x20] sm:$0xff] (!%p241_p8)  ;;  %v324_v13 = vand.u32 (!%p241_p8), 2147483647, %v292_v7  ;;  %vm308_vm7 = vcmp.eq.f32.partialorder (!%p241_p8), %v292_v7, %v292_v7 }
  0x23   : > { %v329_v58 = vand.u32 (!%p241_p8), 2147483647, %v297_v53  ;;  %vm313_vm2 = vcmp.eq.f32.partialorder (!%p241_p8), %v297_v53, %v297_v53  ;;  %v1795_v3 = vpack.c.bf16 (!%p241_p8), %v297_v53, %v293_v50  ;;  %vm312_vm9 = vcmp.eq.f32.partialorder (!%p241_p8), %v296_v12, %v296_v12 }
  0x24   : > { %vm341_vm1 = vcmp.ne.f32.partialorder (!%p241_p8), %v325_v56, inf  ;;  %vm340_vm8 = vcmp.ne.f32.partialorder (!%p241_p8), %v324_v13, inf }
  0x25   : > { %s2558_s5 = smov (!%p281_p9, %s1663_s5), 383  ;;  %vm345_vm3 = vcmp.ne.f32.partialorder %v329_v58, inf  ;;  %vm357_vm4 = vmand %vm309_vm0, %vm341_vm1 }
  0x26   : > { %s1850_s6 = sshll.u32 %s2558_s5, 4  ;;  %vm361_vm5 = vmand %vm313_vm2, %vm345_vm3 }
  0x27   : > { %s2249_s9 = scalar_lea.vmem %s2525_s1, %s1850_s6  ;;  %vm1794_vm6 = vmpackc.low %vm361_vm5, %vm357_vm4 }
  0x28   : > { %v1924_v16 = vld [vmem:[%s2249_s9 + $0x4] ss:$16 sps:$4 sm:$0xff]   ;;  %v1926_v17 = vld [vmem:[%s2249_s9 + $0xc] ss:$16 sps:$4 sm:$0xff]   ;;  %v1928_v18 = vld [vmem:[%s2249_s9] ss:$16 sps:$4 sm:$0xff]   ;;  %1796 = vmatprep.mubr.msk.bf16.mxu0 %vm1794_vm6, %v1795_v3  ;;  %1820 = vmatprep.mubr.msk.bf16.mxu1 %vm1794_vm6, %v1795_v3 }
  0x29   : > { %1164 = vmatprep.subr.bf16.mxu0 %v1924_v16  ;;  %v1929_v19 = vld [vmem:[%s2249_s9 + $0x8] ss:$16 sps:$4 sm:$0xff]   ;;  %1270 = vmatprep.subr.bf16.mxu1 %v1926_v17  ;;  %v1930_v20 = vld [vmem:[%s2249_s9 + $0x24] ss:$16 sps:$4 sm:$0xff]   ;;  %v1932_v21 = vld [vmem:[%s2249_s9 + $0x2c] ss:$16 sps:$4 sm:$0xff]  }
  0x2a   : > { %1165 = vmatpush1.bf16.msra.mxu0 %v1928_v18  ;;  %1271 = vmatpush1.bf16.msra.mxu1 %v1929_v19  ;;  %v1934_v22 = vld [vmem:[%s2249_s9 + $0x20] ss:$16 sps:$4 sm:$0xff]   ;;  %v1935_v23 = vld [vmem:[%s2249_s9 + $0x28] ss:$16 sps:$4 sm:$0xff]   ;;  %v1936_v24 = vld [vmem:[%s2249_s9 + $0x44] ss:$16 sps:$4 sm:$0xff]  }
  0x2b   : > { %1166 = vmatprep.subr.bf16.mxu0 %v1930_v20  ;;  %1272 = vmatprep.subr.bf16.mxu1 %v1932_v21  ;;  %v1938_v25 = vld [vmem:[%s2249_s9 + $0x4c] ss:$16 sps:$4 sm:$0xff]   ;;  %v1940_v26 = vld [vmem:[%s2249_s9 + $0x40] ss:$16 sps:$4 sm:$0xff]   ;;  %v1941_v27 = vld [vmem:[%s2249_s9 + $0x48] ss:$16 sps:$4 sm:$0xff]  }
  0x2c   : > { %v1942_v28 = vld [vmem:[%s2249_s9 + $0x64] ss:$16 sps:$4 sm:$0xff]   ;;  %v1944_v29 = vld [vmem:[%s2249_s9 + $0x6c] ss:$16 sps:$4 sm:$0xff]   ;;  %v1946_v30 = vld [vmem:[%s2249_s9 + $0x60] ss:$16 sps:$4 sm:$0xff]  }
  0x2d   : > { %v1947_v31 = vld [vmem:[%s2249_s9 + $0x68] ss:$16 sps:$4 sm:$0xff]   ;;  %v1948_v32 = vld [vmem:[%s2249_s9 + $0x84] ss:$16 sps:$4 sm:$0xff]   ;;  %v1950_v33 = vld [vmem:[%s2249_s9 + $0x8c] ss:$16 sps:$4 sm:$0xff]  }
  0x2e   : > { %1167 = vmatpush1.bf16.msra.mxu0 %v1934_v22  ;;  %1273 = vmatpush1.bf16.msra.mxu1 %v1935_v23  ;;  %v1952_v34 = vld [vmem:[%s2249_s9 + $0x80] ss:$16 sps:$4 sm:$0xff]   ;;  %v1953_v35 = vld [vmem:[%s2249_s9 + $0x88] ss:$16 sps:$4 sm:$0xff]   ;;  %v1954_v36 = vld [vmem:[%s2249_s9 + $0xa4] ss:$16 sps:$4 sm:$0xff]  }
  0x2f   : > { %1168 = vmatprep.subr.bf16.mxu0 %v1936_v24  ;;  %1274 = vmatprep.subr.bf16.mxu1 %v1938_v25  ;;  %v1956_v37 = vld [vmem:[%s2249_s9 + $0xac] ss:$16 sps:$4 sm:$0xff]   ;;  %v1958_v38 = vld [vmem:[%s2249_s9 + $0xa0] ss:$16 sps:$4 sm:$0xff]   ;;  %v1959_v39 = vld [vmem:[%s2249_s9 + $0xa8] ss:$16 sps:$4 sm:$0xff]  }
  0x30   : > { %v1960_v40 = vld [vmem:[%s2249_s9 + $0xc4] ss:$16 sps:$4 sm:$0xff]   ;;  %v1962_v41 = vld [vmem:[%s2249_s9 + $0xcc] ss:$16 sps:$4 sm:$0xff]   ;;  %v1964_v42 = vld [vmem:[%s2249_s9 + $0xc0] ss:$16 sps:$4 sm:$0xff]  }
  0x31   : > { %v1965_v43 = vld [vmem:[%s2249_s9 + $0xc8] ss:$16 sps:$4 sm:$0xff]   ;;  %v1966_v44 = vld [vmem:[%s2249_s9 + $0xe4] ss:$16 sps:$4 sm:$0xff]   ;;  %v1968_v45 = vld [vmem:[%s2249_s9 + $0xec] ss:$16 sps:$4 sm:$0xff]  }
  0x32   : > { %1169 = vmatpush1.bf16.msra.mxu0 %v1940_v26  ;;  %1275 = vmatpush1.bf16.msra.mxu1 %v1941_v27  ;;  %v1970_v46 = vld [vmem:[%s2249_s9 + $0xe0] ss:$16 sps:$4 sm:$0xff]   ;;  %v1971_v47 = vld [vmem:[%s2249_s9 + $0xe8] ss:$16 sps:$4 sm:$0xff]   ;;  %v1972_v48 = vld [vmem:[%s2249_s9 + $0x104] ss:$16 sps:$4 sm:$0xff]  }
  0x33   : > { %1170 = vmatprep.subr.bf16.mxu0 %v1942_v28  ;;  %1276 = vmatprep.subr.bf16.mxu1 %v1944_v29  ;;  %v1974_v49 = vld [vmem:[%s2249_s9 + $0x10c] ss:$16 sps:$4 sm:$0xff]   ;;  %v1976_v51 = vld [vmem:[%s2249_s9 + $0x100] ss:$16 sps:$4 sm:$0xff]   ;;  %v1977_v52 = vld [vmem:[%s2249_s9 + $0x108] ss:$16 sps:$4 sm:$0xff]   ;;  %v1798_v29 = vpack.c.bf16 %v296_v12, %v292_v7 }
  0x34   : > { %v1978_v54 = vld [vmem:[%s2249_s9 + $0x124] ss:$16 sps:$4 sm:$0xff]   ;;  %v1980_v55 = vld [vmem:[%s2249_s9 + $0x12c] ss:$16 sps:$4 sm:$0xff]   ;;  %v1982_v57 = vld [vmem:[%s2249_s9 + $0x120] ss:$16 sps:$4 sm:$0xff]  }
  0x35   : > { %v1983_v59 = vld [vmem:[%s2249_s9 + $0x128] ss:$16 sps:$4 sm:$0xff]   ;;  %v1984_v60 = vld [vmem:[%s2249_s9 + $0x144] ss:$16 sps:$4 sm:$0xff]   ;;  %v1986_v61 = vld [vmem:[%s2249_s9 + $0x14c] ss:$16 sps:$4 sm:$0xff]  }
  0x36   : > { %1171 = vmatpush1.bf16.msra.mxu0 %v1946_v30  ;;  %1277 = vmatpush1.bf16.msra.mxu1 %v1947_v31  ;;  %v1988_v62 = vld [vmem:[%s2249_s9 + $0x140] ss:$16 sps:$4 sm:$0xff]   ;;  %v1989_v63 = vld [vmem:[%s2249_s9 + $0x148] ss:$16 sps:$4 sm:$0xff]   ;;  %v1990_v0 = vld [vmem:[%s2249_s9 + $0x164] ss:$16 sps:$4 sm:$0xff]  }
  0x37   : > { %1172 = vmatprep.subr.bf16.mxu0 %v1948_v32  ;;  %1278 = vmatprep.subr.bf16.mxu1 %v1950_v33  ;;  %v1992_v1 = vld [vmem:[%s2249_s9 + $0x16c] ss:$16 sps:$4 sm:$0xff]   ;;  %v1994_v2 = vld [vmem:[%s2249_s9 + $0x160] ss:$16 sps:$4 sm:$0xff]   ;;  %v1995_v4 = vld [vmem:[%s2249_s9 + $0x168] ss:$16 sps:$4 sm:$0xff]  }
  0x38   : > { %v1996_v5 = vld [vmem:[%s2249_s9 + $0x184] ss:$16 sps:$4 sm:$0xff]   ;;  %v1998_v6 = vld [vmem:[%s2249_s9 + $0x18c] ss:$16 sps:$4 sm:$0xff]   ;;  %v2000_v8 = vld [vmem:[%s2249_s9 + $0x180] ss:$16 sps:$4 sm:$0xff]  }
  0x39   : > { %v2001_v9 = vld [vmem:[%s2249_s9 + $0x188] ss:$16 sps:$4 sm:$0xff]   ;;  %v2002_v10 = vld [vmem:[%s2249_s9 + $0x1a4] ss:$16 sps:$4 sm:$0xff]   ;;  %v2004_v11 = vld [vmem:[%s2249_s9 + $0x1ac] ss:$16 sps:$4 sm:$0xff]  }
  0x3a   : > { %1173 = vmatpush1.bf16.msra.mxu0 %v1952_v34  ;;  %1279 = vmatpush1.bf16.msra.mxu1 %v1953_v35  ;;  %v2006_v14 = vld [vmem:[%s2249_s9 + $0x1a0] ss:$16 sps:$4 sm:$0xff]   ;;  %v2007_v15 = vld [vmem:[%s2249_s9 + $0x1a8] ss:$16 sps:$4 sm:$0xff]   ;;  %v2008_v16 = vld [vmem:[%s2249_s9 + $0x1c4] ss:$16 sps:$4 sm:$0xff]  }
  0x3b   : > { %1174 = vmatprep.subr.bf16.mxu0 %v1954_v36  ;;  %1280 = vmatprep.subr.bf16.mxu1 %v1956_v37  ;;  %v2010_v17 = vld [vmem:[%s2249_s9 + $0x1cc] ss:$16 sps:$4 sm:$0xff]   ;;  %v328_v18 = vand.u32 2147483647, %v296_v12  ;;  %v2012_v19 = vld [vmem:[%s2249_s9 + $0x1c0] ss:$16 sps:$4 sm:$0xff]   ;;  %vm2323_vm11 = vmand %vm308_vm7, %vm340_vm8 }
  0x3c   : > { %v2013_v20 = vld [vmem:[%s2249_s9 + $0x1c8] ss:$16 sps:$4 sm:$0xff]   ;;  %v2014_v21 = vld [vmem:[%s2249_s9 + $0x1e4] ss:$16 sps:$4 sm:$0xff]   ;;  %v2016_v22 = vld [vmem:[%s2249_s9 + $0x1ec] ss:$16 sps:$4 sm:$0xff]  }
  0x3d   : > { %v2018_v23 = vld [vmem:[%s2249_s9 + $0x1e0] ss:$16 sps:$4 sm:$0xff]   ;;  %vm344_vm10 = vcmp.ne.f32.partialorder %v328_v18, inf  ;;  %v2019_v24 = vld [vmem:[%s2249_s9 + $0x1e8] ss:$16 sps:$4 sm:$0xff]  }
  0x3e   : > { %1175 = vmatpush1.bf16.msra.mxu0 %v1958_v38  ;;  %1281 = vmatpush1.bf16.msra.mxu1 %v1959_v39  ;;  %v2022_v25 = vld [vmem:[%s2249_s9 + $0x204] ss:$16 sps:$4 sm:$0xff]   ;;  %v2025_v27 = vld [vmem:[%s2249_s9 + $0x20c] ss:$16 sps:$4 sm:$0xff]   ;;  %vm360_vm12 = vmand %vm312_vm9, %vm344_vm10 }
  0x3f   : > { %1176 = vmatprep.subr.bf16.mxu0 %v1960_v40  ;;  %1282 = vmatprep.subr.bf16.mxu1 %v1962_v41  ;;  %v2020_v28 = vld [vmem:[%s2249_s9 + $0x200] ss:$16 sps:$4 sm:$0xff]   ;;  %v2023_v30 = vld [vmem:[%s2249_s9 + $0x208] ss:$16 sps:$4 sm:$0xff]   ;;  %vm1797_vm13 = vmpackc.low %vm360_vm12, %vm2323_vm11 }
  0x40   : > { %v2028_v31 = vld [vmem:[%s2249_s9 + $0x224] ss:$16 sps:$4 sm:$0xff]   ;;  %v2031_v32 = vld [vmem:[%s2249_s9 + $0x22c] ss:$16 sps:$4 sm:$0xff]   ;;  %v2026_v33 = vld [vmem:[%s2249_s9 + $0x220] ss:$16 sps:$4 sm:$0xff]  }
  0x41   : > { %v2029_v34 = vld [vmem:[%s2249_s9 + $0x228] ss:$16 sps:$4 sm:$0xff]   ;;  %v2034_v35 = vld [vmem:[%s2249_s9 + $0x244] ss:$16 sps:$4 sm:$0xff]   ;;  %v2037_v36 = vld [vmem:[%s2249_s9 + $0x24c] ss:$16 sps:$4 sm:$0xff]  }
  0x42   : > { %1177 = vmatpush1.bf16.msra.mxu0 %v1964_v42  ;;  %1283 = vmatpush1.bf16.msra.mxu1 %v1965_v43  ;;  %v301_v37 = vld [vmem:[%s2286_s12 + $0x48] sm:$0xff]  ;;  %v2032_v39 = vld [vmem:[%s2249_s9 + $0x240] ss:$16 sps:$4 sm:$0xff]   ;;  %v2040_v41 = vld [vmem:[%s2249_s9 + $0x264] ss:$16 sps:$4 sm:$0xff]  }
  0x43   : > { %1178 = vmatprep.subr.bf16.mxu0 %v1966_v44  ;;  %1284 = vmatprep.subr.bf16.mxu1 %v1968_v45  ;;  %v305_v38 = vld [vmem:[%s2286_s12 + $0x68] sm:$0xff]  ;;  %v300_v43 = vld [vmem:[%s2286_s12 + $0x40] sm:$0xff]  ;;  %v333_v45 = vand.u32 2147483647, %v301_v37  ;;  %vm317_vm14 = vcmp.eq.f32.partialorder %v301_v37, %v301_v37 }
  0x44   : > { %v2035_v40 = vld [vmem:[%s2249_s9 + $0x248] ss:$16 sps:$4 sm:$0xff]   ;;  %v2043_v42 = vld [vmem:[%s2249_s9 + $0x26c] ss:$16 sps:$4 sm:$0xff]   ;;  %v304_v44 = vld [vmem:[%s2286_s12 + $0x60] sm:$0xff]  ;;  %vm321_vm0 = vcmp.eq.f32.partialorder %v305_v38, %v305_v38  ;;  %vm316_vm3 = vcmp.eq.f32.partialorder %v300_v43, %v300_v43 }
  0x45   : > { %v2049_v50 = vld [vmem:[%s2249_s9 + $0x28c] ss:$16 sps:$4 sm:$0xff]   ;;  %v336_v53 = vand.u32 2147483647, %v304_v44  ;;  %vm349_vm15 = vcmp.ne.f32.partialorder %v333_v45, inf  ;;  %vm320_vm7 = vcmp.eq.f32.partialorder %v304_v44, %v304_v44  ;;  %v1804_v7 = vpack.c.bf16 %v304_v44, %v300_v43 }
  0x46   : > { %1179 = vmatpush1.bf16.msra.mxu0 %v1970_v46  ;;  %1285 = vmatpush1.bf16.msra.mxu1 %v1971_v47  ;;  %v337_v46 = vand.u32 2147483647, %v305_v38  ;;  %v2038_v47 = vld [vmem:[%s2249_s9 + $0x260] ss:$16 sps:$4 sm:$0xff]   ;;  %v2047_v56 = vld [vmem:[%s2249_s9 + $0x288] ss:$16 sps:$4 sm:$0xff]   ;;  %vm2356_vm2 = vmand %vm317_vm14, %vm349_vm15 }
  0x47   : > { %1180 = vmatprep.subr.bf16.mxu0 %v1972_v48  ;;  %1286 = vmatprep.subr.bf16.mxu1 %v1974_v49  ;;  %v2041_v48 = vld [vmem:[%s2249_s9 + $0x268] ss:$16 sps:$4 sm:$0xff]   ;;  %v2046_v49 = vld [vmem:[%s2249_s9 + $0x284] ss:$16 sps:$4 sm:$0xff]   ;;  %v2055_v58 = vld [vmem:[%s2249_s9 + $0x2ac] ss:$16 sps:$4 sm:$0xff]  }
  0x48   : > { %vm353_vm1 = vcmp.ne.f32.partialorder %v337_v46, inf  ;;  %vm2364_vm5 = vcmp.ne.f32.partialorder %v336_v53, inf  ;;  %v2058_v3 = vld [vmem:[%s2249_s9 + $0x2c4] ss:$16 sps:$4 sm:$0xff]   ;;  %v2068_v18 = vld [vmem:[%s2249_s9 + $0x300] ss:$16 sps:$4 sm:$0xff]  }
  0x49   : > { %vm369_vm6 = vmand %vm321_vm0, %vm353_vm1  ;;  %v2080_v26 = vld [vmem:[%s2249_s9 + $0x340] ss:$16 sps:$4 sm:$0xff]   ;;  %v307_v44 = vld [vmem:[%s2286_s12 + $0x78] sm:$0xff] }
  0x4a   : > { %1181 = vmatpush1.bf16.msra.mxu0 %v1976_v51  ;;  %1287 = vmatpush1.bf16.msra.mxu1 %v1977_v52  ;;  %v295_v51 = vld [vmem:[%s2286_s12 + $0x18] sm:$0xff]  ;;  %v332_v52 = vand.u32 2147483647, %v300_v43  ;;  %vm1800_vm8 = vmpackc.low %vm369_vm6, %vm2356_vm2  ;;  %v2106_v45 = vld [vmem:[%s2249_s9 + $0x3c4] ss:$16 sps:$4 sm:$0xff]  }
  0x4b   : > { %1182 = vmatprep.subr.bf16.mxu0 %v1978_v54  ;;  %1288 = vmatprep.subr.bf16.mxu1 %v1980_v55  ;;  %v299_v54 = vld [vmem:[%s2286_s12 + $0x38] sm:$0xff]  ;;  %v2044_v55 = vld [vmem:[%s2249_s9 + $0x280] ss:$16 sps:$4 sm:$0xff]   ;;  %vm2383_vm10 = vmand %vm320_vm7, %vm2364_vm5  ;;  %vm311_vm11 = vcmp.eq.f32.partialorder %v295_v51, %v295_v51 }
  0x4c   : > { %vm2360_vm4 = vcmp.ne.f32.partialorder %v332_v52, inf  ;;  %vm315_vm14 = vcmp.eq.f32.partialorder %v299_v54, %v299_v54  ;;  %v1807_v13 = vpack.c.bf16 %v299_v54, %v295_v51  ;;  %v2109_v46 = vld [vmem:[%s2249_s9 + $0x3cc] ss:$16 sps:$4 sm:$0xff]   ;;  %v2112_v52 = vld [vmem:[%s2249_s9 + $0x3e4] ss:$16 sps:$4 sm:$0xff]  }
  0x4d   : > { %vm2377_vm9 = vmand %vm316_vm3, %vm2360_vm4  ;;  %v2115_v53 = vld [vmem:[%s2249_s9 + $0x3ec] ss:$16 sps:$4 sm:$0xff]  }
  0x4e   : > { %1183 = vmatpush1.bf16.msra.mxu0 %v1982_v57  ;;  %1289 = vmatpush1.bf16.msra.mxu1 %v1983_v59  ;;  %v2052_v57 = vld [vmem:[%s2249_s9 + $0x2a4] ss:$16 sps:$4 sm:$0xff]   ;;  %v1801_v59 = vpack.c.bf16 %v305_v38, %v301_v37  ;;  %v2103_v37 = vld [vmem:[%s2249_s9 + $0x3ac] ss:$16 sps:$4 sm:$0xff]  }
  0x4f   : > { %1184 = vmatprep.subr.bf16.mxu0 %v1984_v60  ;;  %1290 = vmatprep.subr.bf16.mxu1 %v1986_v61  ;;  %v294_v38 = vld [vmem:[%s2286_s12 + $0x10] sm:$0xff] }
  0x50   : > { %v326_v43 = vand.u32 2147483647, %v294_v38  ;;  %vm310_vm3 = vcmp.eq.f32.partialorder %v294_v38, %v294_v38 }
  0x52   : > { %1185 = vmatpush1.bf16.msra.mxu0 %v1988_v62  ;;  %1291 = vmatpush1.bf16.msra.mxu1 %v1989_v63  ;;  %v327_v63 = vand.u32 2147483647, %v295_v51  ;;  %v2107_v51 = vld [vmem:[%s2249_s9 + $0x3c8] ss:$16 sps:$4 sm:$0xff]   ;;  %vm342_vm4 = vcmp.ne.f32.partialorder %v326_v43, inf }
  0x53   : > { %1186 = vmatprep.subr.bf16.mxu0 %v1990_v0  ;;  %1292 = vmatprep.subr.bf16.mxu1 %v1992_v1  ;;  %v2050_v0 = vld [vmem:[%s2249_s9 + $0x2a0] ss:$16 sps:$4 sm:$0xff]   ;;  %v2053_v1 = vld [vmem:[%s2249_s9 + $0x2a8] ss:$16 sps:$4 sm:$0xff]  }
  0x54   : > { %vm343_vm12 = vcmp.ne.f32.partialorder %v327_v63, inf }
  0x55   : > { %vm2395_vm0 = vmand %vm311_vm11, %vm343_vm12 }
  0x56   : > { %1187 = vmatpush1.bf16.msra.mxu0 %v1994_v2  ;;  %1293 = vmatpush1.bf16.msra.mxu1 %v1995_v4  ;;  %v331_v2 = vand.u32 2147483647, %v299_v54  ;;  %v2061_v4 = vld [vmem:[%s2249_s9 + $0x2cc] ss:$16 sps:$4 sm:$0xff]   ;;  %v302_v54 = vld [vmem:[%s2286_s12 + $0x50] sm:$0xff] }
  0x57   : > { %1188 = vmatprep.subr.bf16.mxu0 %v1996_v5  ;;  %1294 = vmatprep.subr.bf16.mxu1 %v1998_v6  ;;  %v334_v61 = vand.u32 2147483647, %v302_v54 }
  0x58   : > { %vm347_vm15 = vcmp.ne.f32.partialorder %v331_v2, inf }
  0x59   : > { %vm363_vm1 = vmand %vm315_vm14, %vm347_vm15 }
  0x5a   : > { %1189 = vmatpush1.bf16.msra.mxu0 %v2000_v8  ;;  %1295 = vmatpush1.bf16.msra.mxu1 %v2001_v9  ;;  %v2056_v8 = vld [vmem:[%s2249_s9 + $0x2c0] ss:$16 sps:$4 sm:$0xff]   ;;  %v2059_v9 = vld [vmem:[%s2249_s9 + $0x2c8] ss:$16 sps:$4 sm:$0xff]   ;;  %vm1806_vm2 = vmpackc.low %vm363_vm1, %vm2395_vm0  ;;  %vm318_vm1 = vcmp.eq.f32.partialorder %v302_v54, %v302_v54 }
  0x5b   : > { %1190 = vmatprep.subr.bf16.mxu0 %v2002_v10  ;;  %1296 = vmatprep.subr.bf16.mxu1 %v2004_v11  ;;  %v2064_v10 = vld [vmem:[%s2249_s9 + $0x2e4] ss:$16 sps:$4 sm:$0xff]   ;;  %v2067_v11 = vld [vmem:[%s2249_s9 + $0x2ec] ss:$16 sps:$4 sm:$0xff]  }
  0x5e   : > { %1191 = vmatpush1.bf16.msra.mxu0 %v2006_v14  ;;  %1297 = vmatpush1.bf16.msra.mxu1 %v2007_v15  ;;  %v2062_v14 = vld [vmem:[%s2249_s9 + $0x2e0] ss:$16 sps:$4 sm:$0xff]   ;;  %v2065_v15 = vld [vmem:[%s2249_s9 + $0x2e8] ss:$16 sps:$4 sm:$0xff]  }
  0x5f   : > { %1192 = vmatprep.subr.bf16.mxu0 %v2008_v16  ;;  %1298 = vmatprep.subr.bf16.mxu1 %v2010_v17  ;;  %v2070_v16 = vld [vmem:[%s2249_s9 + $0x304] ss:$16 sps:$4 sm:$0xff]   ;;  %v2073_v17 = vld [vmem:[%s2249_s9 + $0x30c] ss:$16 sps:$4 sm:$0xff]  }
  0x62   : > { %1193 = vmatpush1.bf16.msra.mxu0 %v2012_v19  ;;  %1299 = vmatpush1.bf16.msra.mxu1 %v2013_v20  ;;  %v2071_v19 = vld [vmem:[%s2249_s9 + $0x308] ss:$16 sps:$4 sm:$0xff]   ;;  %v2076_v20 = vld [vmem:[%s2249_s9 + $0x324] ss:$16 sps:$4 sm:$0xff]  }
  0x63   : > { %1194 = vmatprep.subr.bf16.mxu0 %v2014_v21  ;;  %1300 = vmatprep.subr.bf16.mxu1 %v2016_v22  ;;  %v2079_v21 = vld [vmem:[%s2249_s9 + $0x32c] ss:$16 sps:$4 sm:$0xff]   ;;  %v2074_v22 = vld [vmem:[%s2249_s9 + $0x320] ss:$16 sps:$4 sm:$0xff]  }
  0x66   : > { %1195 = vmatpush1.bf16.msra.mxu0 %v2018_v23  ;;  %1301 = vmatpush1.bf16.msra.mxu1 %v2019_v24  ;;  %v2077_v23 = vld [vmem:[%s2249_s9 + $0x328] ss:$16 sps:$4 sm:$0xff]   ;;  %v2082_v24 = vld [vmem:[%s2249_s9 + $0x344] ss:$16 sps:$4 sm:$0xff]  }
  0x67   : > { %1217 = vmatprep.subr.bf16.mxu0 %v2022_v25  ;;  %1323 = vmatprep.subr.bf16.mxu1 %v2025_v27  ;;  %v2085_v25 = vld [vmem:[%s2249_s9 + $0x34c] ss:$16 sps:$4 sm:$0xff]   ;;  %v2083_v27 = vld [vmem:[%s2249_s9 + $0x348] ss:$16 sps:$4 sm:$0xff]  }
  0x69   : > { %1799 = vmatmul.mubr.msk.bf16.vlgmr.msra.gmra.mrb[0].mxu0 %vm1797_vm13, %v1798_v29  ;;  %1823 = vmatmul.mubr.msk.bf16.vlgmr.msra.gmra.mrb[0].mxu1 %vm1797_vm13, %v1798_v29  ;;  %vm1803_vm13 = vmpackc.low %vm2383_vm10, %vm2377_vm9  ;;  %v2091_v29 = vld [vmem:[%s2249_s9 + $0x36c] ss:$16 sps:$4 sm:$0xff]   ;;  %vm323_vm10 = vcmp.eq.f32.partialorder %v307_v44, %v307_v44 }
  0x6a   : > { %1218 = vmatpush1.bf16.msra.mxu0 %v2020_v28  ;;  %1324 = vmatpush1.bf16.msra.mxu1 %v2023_v30  ;;  %v2088_v28 = vld [vmem:[%s2249_s9 + $0x364] ss:$16 sps:$4 sm:$0xff]   ;;  %v2086_v30 = vld [vmem:[%s2249_s9 + $0x360] ss:$16 sps:$4 sm:$0xff]   ;;  %vm2438_vm9 = vmand %vm310_vm3, %vm342_vm4 }
  0x6b   : > { %1219 = vmatprep.subr.bf16.mxu0 %v2028_v31  ;;  %1325 = vmatprep.subr.bf16.mxu1 %v2031_v32  ;;  %v2089_v31 = vld [vmem:[%s2249_s9 + $0x368] ss:$16 sps:$4 sm:$0xff]   ;;  %v2094_v32 = vld [vmem:[%s2249_s9 + $0x384] ss:$16 sps:$4 sm:$0xff]  }
  0x6c   : > { %1802 = vmatprep.mubr.msk.bf16.mxu0 %vm1800_vm8, %v1801_v59  ;;  %1826 = vmatprep.mubr.msk.bf16.mxu1 %vm1800_vm8, %v1801_v59 }
  0x6e   : > { %1220 = vmatpush1.bf16.msra.mxu0 %v2026_v33  ;;  %1326 = vmatpush1.bf16.msra.mxu1 %v2029_v34  ;;  %v2097_v33 = vld [vmem:[%s2249_s9 + $0x38c] ss:$16 sps:$4 sm:$0xff]   ;;  %v2092_v34 = vld [vmem:[%s2249_s9 + $0x380] ss:$16 sps:$4 sm:$0xff]  }
  0x6f   : > { %1221 = vmatprep.subr.bf16.mxu0 %v2034_v35  ;;  %1327 = vmatprep.subr.bf16.mxu1 %v2037_v36  ;;  %v2095_v35 = vld [vmem:[%s2249_s9 + $0x388] ss:$16 sps:$4 sm:$0xff]   ;;  %v2100_v36 = vld [vmem:[%s2249_s9 + $0x3a4] ss:$16 sps:$4 sm:$0xff]  }
  0x71   : > { %1805 = vmatmul.mubr.msk.bf16.gmra.mrb[4].mxu0 %vm1803_vm13, %v1804_v7  ;;  %1829 = vmatmul.mubr.msk.bf16.gmra.mrb[4].mxu1 %vm1803_vm13, %v1804_v7 }
  0x72   : > { %1222 = vmatpush1.bf16.msra.mxu0 %v2032_v39  ;;  %1328 = vmatpush1.bf16.msra.mxu1 %v2035_v40  ;;  %v298_v39 = vld [vmem:[%s2286_s12 + $0x30] sm:$0xff] }
  0x73   : > { %1223 = vmatprep.subr.bf16.mxu0 %v2040_v41  ;;  %1329 = vmatprep.subr.bf16.mxu1 %v2043_v42  ;;  %v2098_v40 = vld [vmem:[%s2249_s9 + $0x3a0] ss:$16 sps:$4 sm:$0xff]   ;;  %v303_v41 = vld [vmem:[%s2286_s12 + $0x58] sm:$0xff]  ;;  %vm314_vm5 = vcmp.eq.f32.partialorder %v298_v39, %v298_v39 }
  0x74   : > { %1808 = vmatprep.mubr.msk.bf16.mxu0 %vm1806_vm2, %v1807_v13  ;;  %1832 = vmatprep.mubr.msk.bf16.mxu1 %vm1806_vm2, %v1807_v13  ;;  %v2101_v42 = vld [vmem:[%s2249_s9 + $0x3a8] ss:$16 sps:$4 sm:$0xff]   ;;  %vm319_vm7 = vcmp.eq.f32.partialorder %v303_v41, %v303_v41  ;;  %vm350_vm2 = vcmp.ne.f32.partialorder %v334_v61, inf }
  0x76   : > { %1224 = vmatpush1.bf16.msra.mxu0 %v2038_v47  ;;  %1330 = vmatpush1.bf16.msra.mxu1 %v2041_v48  ;;  %v330_v47 = vand.u32 2147483647, %v298_v39  ;;  %v335_v48 = vand.u32 2147483647, %v303_v41 }
  0x77   : > { %1225 = vmatprep.subr.bf16.mxu0 %v2046_v49  ;;  %1331 = vmatprep.subr.bf16.mxu1 %v2049_v50  ;;  %v339_v49 = vand.u32 2147483647, %v307_v44  ;;  %v2104_v50 = vld [vmem:[%s2249_s9 + $0x3c0] ss:$16 sps:$4 sm:$0xff]  }
  0x78   : > { %vm346_vm6 = vcmp.ne.f32.partialorder %v330_v47, inf  ;;  %vm351_vm8 = vcmp.ne.f32.partialorder %v335_v48, inf }
  0x79   : > { %vm355_vm11 = vcmp.ne.f32.partialorder %v339_v49, inf  ;;  %vm2445_vm12 = vmand %vm314_vm5, %vm346_vm6 }
  0x7a   : > { %1226 = vmatpush1.bf16.msra.mxu0 %v2044_v55  ;;  %1332 = vmatpush1.bf16.msra.mxu1 %v2047_v56  ;;  %v306_v56 = vld [vmem:[%s2286_s12 + $0x70] sm:$0xff]  ;;  %vm2449_vm13 = vmand %vm319_vm7, %vm351_vm8  ;;  %vm1377_vm8 = vcmask 261120  }
  0x7b   : > { %1227 = vmatprep.subr.bf16.mxu0 %v2052_v57  ;;  %1333 = vmatprep.subr.bf16.mxu1 %v2055_v58  ;;  %v2110_v57 = vld [vmem:[%s2249_s9 + $0x3e0] ss:$16 sps:$4 sm:$0xff]   ;;  %v2113_v58 = vld [vmem:[%s2249_s9 + $0x3e8] ss:$16 sps:$4 sm:$0xff]   ;;  %vm2453_vm14 = vmand %vm323_vm10, %vm355_vm11  ;;  %v338_v63 = vand.u32 2147483647, %v306_v56  ;;  %vm322_vm3 = vcmp.eq.f32.partialorder %v306_v56, %v306_v56  ;;  %v1816_v2 = vpack.c.bf16 %v306_v56, %v302_v54 }
  0x7c   : > { %vm1809_vm15 = vmpackc.low %vm2445_vm12, %vm2438_vm9 }
  0x7d   : > { %vm1812_vm0 = vmpackc.low %vm2453_vm14, %vm2449_vm13  ;;  %vm354_vm4 = vcmp.ne.f32.partialorder %v338_v63, inf }
  0x7e   : > { %1228 = vmatpush1.bf16.msra.mxu0 %v2050_v0  ;;  %1334 = vmatpush1.bf16.msra.mxu1 %v2053_v1  ;;  %v1810_v0 = vpack.c.bf16 %v298_v39, %v294_v38  ;;  %v1813_v1 = vpack.c.bf16 %v307_v44, %v303_v41  ;;  %vm366_vm5 = vmand %vm318_vm1, %vm350_vm2 }
  0x7f   : > { %1229 = vmatprep.subr.bf16.mxu0 %v2058_v3  ;;  %1335 = vmatprep.subr.bf16.mxu1 %v2061_v4  ;;  %vm370_vm6 = vmand %vm322_vm3, %vm354_vm4  ;;  %v2156_v3 = vmov 0.0  }
  0x80   : > { %vm1815_vm7 = vmpackc.low %vm370_vm6, %vm366_vm5 }
  0x82   : > { %1230 = vmatpush1.bf16.msra.mxu0 %v2056_v8  ;;  %1336 = vmatpush1.bf16.msra.mxu1 %v2059_v9 }
  0x83   : > { %1231 = vmatprep.subr.bf16.mxu0 %v2064_v10  ;;  %1337 = vmatprep.subr.bf16.mxu1 %v2067_v11 }
  0x86   : > { %1232 = vmatpush1.bf16.msra.mxu0 %v2062_v14  ;;  %1338 = vmatpush1.bf16.msra.mxu1 %v2065_v15 }
  0x87   : > { %1233 = vmatprep.subr.bf16.mxu0 %v2070_v16  ;;  %1339 = vmatprep.subr.bf16.mxu1 %v2073_v17 }
  0x8a   : > { %1234 = vmatpush1.bf16.msra.mxu0 %v2068_v18  ;;  %1340 = vmatpush1.bf16.msra.mxu1 %v2071_v19 }
  0x8b   : > { %1235 = vmatprep.subr.bf16.mxu0 %v2076_v20  ;;  %1341 = vmatprep.subr.bf16.mxu1 %v2079_v21 }
  0x8e   : > { %1236 = vmatpush1.bf16.msra.mxu0 %v2074_v22  ;;  %1342 = vmatpush1.bf16.msra.mxu1 %v2077_v23 }
  0x8f   : > { %1237 = vmatprep.subr.bf16.mxu0 %v2082_v24  ;;  %1343 = vmatprep.subr.bf16.mxu1 %v2085_v25 }
  0x92   : > { %1238 = vmatpush1.bf16.msra.mxu0 %v2080_v26  ;;  %1344 = vmatpush1.bf16.msra.mxu1 %v2083_v27 }
  0x93   : > { %1239 = vmatprep.subr.bf16.mxu0 %v2088_v28  ;;  %1345 = vmatprep.subr.bf16.mxu1 %v2091_v29  ;;  %v1376_v28 = vld [vmem:[%s2527_s3] sm:$0xff] }
  0x96   : > { %1240 = vmatpush1.bf16.msra.mxu0 %v2086_v30  ;;  %1346 = vmatpush1.bf16.msra.mxu1 %v2089_v31 }
  0x97   : > { %1241 = vmatprep.subr.bf16.mxu0 %v2094_v32  ;;  %1347 = vmatprep.subr.bf16.mxu1 %v2097_v33  ;;  %v1529_v33 = vlaneseq (!%p1844_p10) }
  0x9a   : > { %1242 = vmatpush1.bf16.msra.mxu0 %v2092_v34  ;;  %1348 = vmatpush1.bf16.msra.mxu1 %v2095_v35  ;;  %v1530_v34 = vshrl.u32 (!%p1844_p10), %v1529_v33, 7  ;;  %v1527_v35 = vld [vmem:[%s2526_s2] sm:$0xf] (!%p1844_p10) }
  0x9b   : > { %1243 = vmatprep.subr.bf16.mxu0 %v2100_v36  ;;  %1349 = vmatprep.subr.bf16.mxu1 %v2103_v37 }
  0x9c   : > { %v1531_v36 = vsub.s32 (!%p1844_p10), 0, %v1530_v34  ;;  %v1535_v37 = vsub.s32 (!%p1844_p10), 1, %v1530_v34  ;;  %v1539_v38 = vsub.s32 (!%p1844_p10), 2, %v1530_v34  ;;  %v1543_v39 = vsub.s32 (!%p1844_p10), 3, %v1530_v34 }
  0x9e   : > { %1244 = vmatpush1.bf16.msra.mxu0 %v2098_v40  ;;  %1350 = vmatpush1.bf16.msra.mxu1 %v2101_v42  ;;  %v1532_v40 = vrot.slane (!%p1844_p10), %v1527_v35, %v1531_v36  ;;  %v1536_v41 = vrot.slane (!%p1844_p10), %v1527_v35, %v1535_v37  ;;  %v1540_v42 = vrot.slane (!%p1844_p10), %v1527_v35, %v1539_v38 }
  0x9f   : > { %1245 = vmatprep.subr.bf16.mxu0 %v2106_v45  ;;  %1351 = vmatprep.subr.bf16.mxu1 %v2109_v46  ;;  %v1544_v43 = vrot.slane (!%p1844_p10), %v1527_v35, %v1543_v39 }
  0xa2   : > { %1246 = vmatpush1.bf16.msra.mxu0 %v2104_v50  ;;  %1352 = vmatpush1.bf16.msra.mxu1 %v2107_v51 }
  0xa3   : > { %1247 = vmatprep.subr.bf16.mxu0 %v2112_v52  ;;  %1353 = vmatprep.subr.bf16.mxu1 %v2115_v53 }
  0xa6   : > { %1248 = vmatpush1.bf16.msra.mxu0 %v2110_v57  ;;  %1354 = vmatpush1.bf16.msra.mxu1 %v2113_v58 }
  0xa9   : > { %1811 = vmatmul.mubr.msk.bf16.vlgmr.msra.gmra.mrb[0].mxu0 %vm1809_vm15, %v1810_v0  ;;  %1835 = vmatmul.mubr.msk.bf16.vlgmr.msra.gmra.mrb[0].mxu1 %vm1809_vm15, %v1810_v0 }
  0xaa   : > { %1814 = vmatprep.mubr.msk.bf16.mxu0 %vm1812_vm0, %v1813_v1  ;;  %1838 = vmatprep.mubr.msk.bf16.mxu1 %vm1812_vm0, %v1813_v1 }
  0xb1   : > { %1817 = vmatmul.mubr.msk.bf16.gmra.mrb[4].mxu0 %vm1815_vm7, %v1816_v2  ;;  %1841 = vmatmul.mubr.msk.bf16.gmra.mrb[4].mxu1 %vm1815_vm7, %v1816_v2 }
  0xb2   : > { %1445 = vmatprep.mubr.f32.mxu0 %v2156_v3  ;;  %1516 = vmatprep.mubr.f32.mxu1 %v2156_v3 }
 0x17c   : > { %v1251_v4 = vpop.f32.mrb[0].mxu0  ;;  %v1357_v5 = vpop.f32.mrb[0].mxu1 }
 0x17d   : > { %v1253_v6 = vpop.f32.mrb[1].mxu0  ;;  %v1359_v7 = vpop.f32.mrb[1].mxu1 }
 0x17e   : > { %v1255_v8 = vpop.f32.mrb[2].mxu0  ;;  %v1361_v9 = vpop.f32.mrb[2].mxu1 }
 0x17f   : > { %v1853_v10 = vpack.c.bf16 %v1255_v8, %v1251_v4  ;;  %v1861_v11 = vpack.c.bf16 %v1361_v9, %v1357_v5  ;;  %v1257_v12 = vpop.f32.mrb[3].mxu0  ;;  %v1363_v13 = vpop.f32.mrb[3].mxu1 }
 0x180   : > { %v1851_v14 = vpack.c.bf16 %v1257_v12, %v1253_v6  ;;  %v1859_v15 = vpack.c.bf16 %v1363_v13, %v1359_v7 }
 0x182   : > { %1852 = vmatprep.subr.bf16.mxu0 %v1851_v14  ;;  %1860 = vmatprep.subr.bf16.mxu1 %v1859_v15 }
 0x183   : > { %1854 = vmatpush1.bf16.msra.mxu0 %v1853_v10  ;;  %1862 = vmatpush1.bf16.msra.mxu1 %v1861_v11 }
 0x184   : > { %v1261_v16 = vpop.f32.mrb[4].mxu0  ;;  %v1367_v17 = vpop.f32.mrb[4].mxu1 }
 0x185   : > { %v1263_v18 = vpop.f32.mrb[5].mxu0  ;;  %v1369_v19 = vpop.f32.mrb[5].mxu1 }
 0x186   : > { %v1265_v20 = vpop.f32.mrb[6].mxu0  ;;  %v1371_v21 = vpop.f32.mrb[6].mxu1 }
 0x187   : > { %v1857_v22 = vpack.c.bf16 %v1265_v20, %v1261_v16  ;;  %v1865_v23 = vpack.c.bf16 %v1371_v21, %v1367_v17  ;;  %v1267_v24 = vpop.f32.mrb[7].mxu0  ;;  %v1373_v25 = vpop.f32.mrb[7].mxu1 }
 0x188   : > { %v1855_v26 = vpack.c.bf16 %v1267_v24, %v1263_v18  ;;  %v1863_v27 = vpack.c.bf16 %v1373_v25, %v1369_v19 }
 0x18a   : > { %1856 = vmatprep.subr.bf16.mxu0 %v1855_v26  ;;  %1864 = vmatprep.subr.bf16.mxu1 %v1863_v27 }
 0x18b   : > { %1858 = vmatpush1.bf16.msra.mxu0 %v1857_v22  ;;  %1866 = vmatpush1.bf16.msra.mxu1 %v1865_v23 }
 0x18e   : > { %1842 = vmatmul.mubr.msk.f32.vlgmr.msra.gmra.mrb[8].mxu0 %vm1377_vm8, %v1376_v28  ;;  %1843 = vmatmul.mubr.msk.f32.vlgmr.msra.gmra.mrb[8].mxu1 %vm1377_vm8, %v1376_v28 }
 0x25c   : > { %1526 = sbr.rel (%p1844_p10) target bundleno = 614 (0x266), region = 63 }
 0x261   : > { %v1447_v29 = vpop.f32.mrb[8].mxu0  ;;  %v1518_v30 = vpop.f32.mrb[8].mxu1 }
 0x262   : > { %v1449_v31 = vpop.f32.mrb[9].mxu0  ;;  %v1520_v32 = vpop.f32.mrb[9].mxu1  ;;  %v1549_v44 = vadd.f32 (!%p1844_p10), %v1532_v40, %v1447_v29  ;;  %v1551_v46 = vadd.f32 (!%p1844_p10), %v1540_v42, %v1518_v30 }
 0x263   : > { %v1550_v45 = vadd.f32 %v1536_v41, %v1449_v31  ;;  %v1552_v47 = vadd.f32 %v1544_v43, %v1520_v32 }
 0x264   : > { %1553 = vst [vmem:[%s2528_s4] sm:$0xff] %v1549_v44  ;;  %1555 = vst [vmem:[%s2528_s4 + $0x10] sm:$0xff] %v1551_v46 }
 0x265   : > { %1554 = vst [vmem:[%s2528_s4 + $0x8] sm:$0xff] %v1550_v45  ;;  %1556 = vst [vmem:[%s2528_s4 + $0x18] sm:$0xff] %v1552_v47 }
 0x266 PF: > { %p1845_p11 = scmp.le.s32.totalorder %s2146_s17, 0 }
 0x268   : > { %1560 = sbr.rel (%p1845_p11) target bundleno = 624 (0x270), region = 67 }
 0x26b   : > { %v1561_v48 = vld [vmem:[%s2528_s4] sm:$0xff] (!%p1845_p11)  ;;  %v1563_v50 = vld [vmem:[%s2528_s4 + $0x10] sm:$0xff] (!%p1845_p11) }
 0x26c   : > { %v1562_v49 = vld [vmem:[%s2528_s4 + $0x8] sm:$0xff] (!%p1845_p11)  ;;  %v1565_v51 = vadd.f32 (!%p1845_p11), %v1561_v48, %v1447_v29  ;;  %v1567_v53 = vadd.f32 (!%p1845_p11), %v1563_v50, %v1518_v30  ;;  %v1564_v54 = vld [vmem:[%s2528_s4 + $0x18] sm:$0xff] (!%p1845_p11) }
 0x26d   : > { %v1566_v52 = vadd.f32 (!%p1845_p11), %v1562_v49, %v1449_v31  ;;  %v1568_v55 = vadd.f32 (!%p1845_p11), %v1564_v54, %v1520_v32 }
 0x26e   : > { %1569 = vst [vmem:[%s2528_s4] sm:$0xff] (!%p1845_p11), %v1565_v51  ;;  %1571 = vst [vmem:[%s2528_s4 + $0x10] sm:$0xff] (!%p1845_p11), %v1567_v53 }
 0x26f   : > { %1570 = vst [vmem:[%s2528_s4 + $0x8] sm:$0xff] %v1566_v52  ;;  %1572 = vst [vmem:[%s2528_s4 + $0x18] sm:$0xff] %v1568_v55 }
 0x270 PF: > { %s14_s19 = sadd.s32 1, %s2154_s19   ;;  %s2551_s15 = smov %s2142_s16 }
 0x271   : > { %p11_p12 = scmp.ge.s32.totalorder %s14_s19, 8   ;;  %s2552_s16 = smov %s2217_s23 }
 0x272   : > { %s2553_s17 = smov %s2150_s18  ;;  %s2554_s18 = smov %s2556_s20 }
 0x273   :  { %13 = sbr.rel (!%p11_p12) target bundleno = 3 (0x3), region = 105 }

// kernel: model_forward.3
= control target key start
LH: loop header
LB: loop body
LE: loop exit
PB: predicated region body
PF: predicated region fallthrough
CT: control target
= control target key end

     0   :  { %s16015_s1 = inlined_call_operand.vmem [shape: f32[512,768], index: 1, kind: input, shape index: {}]   ;;  %s16016_s0 = inlined_call_operand.vmem [shape: f32[8,512], index: 0, kind: input, shape index: {}]   ;;  %s16017_s5 = inlined_call_operand.vmem [shape: f32[512,768], index: 5, kind: input, shape index: {}]   ;;  %s16018_s2 = inlined_call_operand.vmem [shape: f32[256,768], index: 2, kind: input, shape index: {}]   ;;  %s16019_s6 = inlined_call_operand.vmem [shape: f32[256,768], index: 6, kind: input, shape index: {}]   ;;  %s16020_s4 = inlined_call_operand.vmem [shape: f32[1,768], index: 4, kind: input, shape index: {}]   ;;  %s16021_s3 = inlined_call_operand.vmem [shape: f32[1,768], index: 3, kind: input, shape index: {}]   ;;  %s16022_s8 = inlined_call_operand.vmem [shape: f32[1,768], index: 8, kind: input, shape index: {}]   ;;  %s16023_s7 = inlined_call_operand.vmem [shape: f32[1,768], index: 7, kind: input, shape index: {}]   ;;  %s16024_s9 = inlined_call_operand.vmem [shape: f32[512,128], index: 9, kind: input, shape index: {}]   ;;  %s16025_s10 = inlined_call_operand.vmem [shape: f32[1,128], index: 10, kind: input, shape index: {}]   ;;  %s16026_s11 = inlined_call_operand.vmem [shape: f32[8,128], index: 11, kind: output, shape index: {}]  }
   0x1   :  { %v43_v0 = vld [vmem:[%s16015_s1 + $0x8] sm:$0xff]  ;;  %v49_v1 = vld [vmem:[%s16015_s1 + $0x38] sm:$0xff]  ;;  %v42_v5 = vld [vmem:[%s16015_s1] sm:$0xff] }
   0x2   :  { %v45_v2 = vld [vmem:[%s16015_s1 + $0x18] sm:$0xff]  ;;  %v5870_v3 = vpack.c.bf16 %v49_v1, %v43_v0  ;;  %v51_v4 = vld [vmem:[%s16015_s1 + $0x48] sm:$0xff]  ;;  %v48_v6 = vld [vmem:[%s16015_s1 + $0x30] sm:$0xff] }
   0x3   :  { %v5998_v7 = vpack.c.bf16 %v51_v4, %v45_v2  ;;  %v5872_v8 = vpack.c.bf16 %v48_v6, %v42_v5  ;;  %v44_v9 = vld [vmem:[%s16015_s1 + $0x10] sm:$0xff]  ;;  %v50_v10 = vld [vmem:[%s16015_s1 + $0x40] sm:$0xff]  ;;  %v55_v11 = vld [vmem:[%s16015_s1 + $0x68] sm:$0xff] }
   0x4   :  { %5871 = vmatprep.subr.bf16.mxu0 %v5870_v3  ;;  %v6000_v12 = vpack.c.bf16 %v50_v10, %v44_v9  ;;  %v61_v13 = vld [vmem:[%s16015_s1 + $0x98] sm:$0xff]  ;;  %v63_v15 = vld [vmem:[%s16015_s1 + $0xa8] sm:$0xff]  ;;  %v54_v18 = vld [vmem:[%s16015_s1 + $0x60] sm:$0xff] }
   0x5   :  { %v57_v14 = vld [vmem:[%s16015_s1 + $0x78] sm:$0xff]  ;;  %5999 = vmatprep.subr.bf16.mxu1 %v5998_v7  ;;  %5873 = vmatpush1.bf16.msra.mxu0 %v5872_v8  ;;  %v5874_v16 = vpack.c.bf16 %v61_v13, %v55_v11  ;;  %v60_v19 = vld [vmem:[%s16015_s1 + $0x90] sm:$0xff]  ;;  %v62_v22 = vld [vmem:[%s16015_s1 + $0xa0] sm:$0xff] }
   0x6   :  { %v6002_v17 = vpack.c.bf16 %v63_v15, %v57_v14  ;;  %v56_v20 = vld [vmem:[%s16015_s1 + $0x70] sm:$0xff]  ;;  %6001 = vmatpush1.bf16.msra.mxu1 %v6000_v12  ;;  %v5876_v21 = vpack.c.bf16 %v60_v19, %v54_v18  ;;  %v67_v23 = vld [vmem:[%s16015_s1 + $0xc8] sm:$0xff]  ;;  %v73_v24 = vld [vmem:[%s16015_s1 + $0xf8] sm:$0xff] }
   0x7   :  { %5875 = vmatprep.subr.bf16.mxu0 %v5874_v16  ;;  %v6004_v25 = vpack.c.bf16 %v62_v22, %v56_v20  ;;  %v5878_v26 = vpack.c.bf16 %v73_v24, %v67_v23  ;;  %v69_v27 = vld [vmem:[%s16015_s1 + $0xd8] sm:$0xff]  ;;  %v75_v28 = vld [vmem:[%s16015_s1 + $0x108] sm:$0xff]  ;;  %v66_v29 = vld [vmem:[%s16015_s1 + $0xc0] sm:$0xff] }
   0x8   :  { %6003 = vmatprep.subr.bf16.mxu1 %v6002_v17  ;;  %v6006_v30 = vpack.c.bf16 %v75_v28, %v69_v27  ;;  %v72_v31 = vld [vmem:[%s16015_s1 + $0xf0] sm:$0xff]  ;;  %v74_v33 = vld [vmem:[%s16015_s1 + $0x100] sm:$0xff]  ;;  %v79_v35 = vld [vmem:[%s16015_s1 + $0x128] sm:$0xff] }
   0x9   :  { %v68_v32 = vld [vmem:[%s16015_s1 + $0xd0] sm:$0xff]  ;;  %5877 = vmatpush1.bf16.msra.mxu0 %v5876_v21  ;;  %v5880_v34 = vpack.c.bf16 %v72_v31, %v66_v29  ;;  %v85_v36 = vld [vmem:[%s16015_s1 + $0x158] sm:$0xff]  ;;  %v87_v40 = vld [vmem:[%s16015_s1 + $0x168] sm:$0xff] }
   0xa   :  { %v81_v37 = vld [vmem:[%s16015_s1 + $0x138] sm:$0xff]  ;;  %6005 = vmatpush1.bf16.msra.mxu1 %v6004_v25  ;;  %5879 = vmatprep.subr.bf16.mxu0 %v5878_v26  ;;  %v6008_v38 = vpack.c.bf16 %v74_v33, %v68_v32  ;;  %v5882_v39 = vpack.c.bf16 %v85_v36, %v79_v35  ;;  %v78_v41 = vld [vmem:[%s16015_s1 + $0x120] sm:$0xff]  ;;  %v84_v42 = vld [vmem:[%s16015_s1 + $0x150] sm:$0xff] }
   0xb   :  { %6007 = vmatprep.subr.bf16.mxu1 %v6006_v30  ;;  %v6010_v43 = vpack.c.bf16 %v87_v40, %v81_v37  ;;  %v80_v44 = vld [vmem:[%s16015_s1 + $0x130] sm:$0xff]  ;;  %v86_v45 = vld [vmem:[%s16015_s1 + $0x160] sm:$0xff]  ;;  %v91_v46 = vld [vmem:[%s16015_s1 + $0x188] sm:$0xff]  ;;  %v5884_v50 = vpack.c.bf16 %v84_v42, %v78_v41 }
   0xc   :  { %v97_v47 = vld [vmem:[%s16015_s1 + $0x1b8] sm:$0xff]  ;;  %v99_v49 = vld [vmem:[%s16015_s1 + $0x1c8] sm:$0xff]  ;;  %v6012_v51 = vpack.c.bf16 %v86_v45, %v80_v44  ;;  %v90_v53 = vld [vmem:[%s16015_s1 + $0x180] sm:$0xff] }
   0xd   :  { %v93_v48 = vld [vmem:[%s16015_s1 + $0x198] sm:$0xff]  ;;  %5881 = vmatpush1.bf16.msra.mxu0 %v5880_v34  ;;  %v5886_v52 = vpack.c.bf16 %v97_v47, %v91_v46  ;;  %v96_v54 = vld [vmem:[%s16015_s1 + $0x1b0] sm:$0xff]  ;;  %v98_v57 = vld [vmem:[%s16015_s1 + $0x1c0] sm:$0xff] }
   0xe   :  { %6009 = vmatpush1.bf16.msra.mxu1 %v6008_v38  ;;  %5883 = vmatprep.subr.bf16.mxu0 %v5882_v39  ;;  %v92_v55 = vld [vmem:[%s16015_s1 + $0x190] sm:$0xff]  ;;  %v6014_v56 = vpack.c.bf16 %v99_v49, %v93_v48  ;;  %v103_v58 = vld [vmem:[%s16015_s1 + $0x1e8] sm:$0xff]  ;;  %v109_v59 = vld [vmem:[%s16015_s1 + $0x218] sm:$0xff]  ;;  %v5888_v62 = vpack.c.bf16 %v96_v54, %v90_v53 }
   0xf   :  { %6011 = vmatprep.subr.bf16.mxu1 %v6010_v43  ;;  %v105_v60 = vld [vmem:[%s16015_s1 + $0x1f8] sm:$0xff]  ;;  %v111_v61 = vld [vmem:[%s16015_s1 + $0x228] sm:$0xff]  ;;  %v6016_v63 = vpack.c.bf16 %v98_v57, %v92_v55  ;;  %v5890_v0 = vpack.c.bf16 %v109_v59, %v103_v58  ;;  %v102_v1 = vld [vmem:[%s16015_s1 + $0x1e0] sm:$0xff] }
  0x10   :  { %v108_v2 = vld [vmem:[%s16015_s1 + $0x210] sm:$0xff]  ;;  %v6018_v4 = vpack.c.bf16 %v111_v61, %v105_v60  ;;  %v110_v5 = vld [vmem:[%s16015_s1 + $0x220] sm:$0xff]  ;;  %v115_v6 = vld [vmem:[%s16015_s1 + $0x248] sm:$0xff] }
  0x11   :  { %5885 = vmatpush1.bf16.msra.mxu0 %v5884_v50  ;;  %v104_v3 = vld [vmem:[%s16015_s1 + $0x1f0] sm:$0xff]  ;;  %v121_v7 = vld [vmem:[%s16015_s1 + $0x278] sm:$0xff]  ;;  %v123_v9 = vld [vmem:[%s16015_s1 + $0x288] sm:$0xff]  ;;  %v5892_v10 = vpack.c.bf16 %v108_v2, %v102_v1 }
  0x12   :  { %6013 = vmatpush1.bf16.msra.mxu1 %v6012_v51  ;;  %5887 = vmatprep.subr.bf16.mxu0 %v5886_v52  ;;  %v117_v8 = vld [vmem:[%s16015_s1 + $0x258] sm:$0xff]  ;;  %v6020_v11 = vpack.c.bf16 %v110_v5, %v104_v3  ;;  %v5894_v12 = vpack.c.bf16 %v121_v7, %v115_v6  ;;  %v114_v13 = vld [vmem:[%s16015_s1 + $0x240] sm:$0xff]  ;;  %v120_v14 = vld [vmem:[%s16015_s1 + $0x270] sm:$0xff] }
  0x13   :  { %6015 = vmatprep.subr.bf16.mxu1 %v6014_v56  ;;  %v116_v15 = vld [vmem:[%s16015_s1 + $0x250] sm:$0xff]  ;;  %v6022_v16 = vpack.c.bf16 %v123_v9, %v117_v8  ;;  %v122_v17 = vld [vmem:[%s16015_s1 + $0x280] sm:$0xff]  ;;  %v127_v18 = vld [vmem:[%s16015_s1 + $0x2a8] sm:$0xff]  ;;  %v5896_v22 = vpack.c.bf16 %v120_v14, %v114_v13 }
  0x14   :  { %v133_v19 = vld [vmem:[%s16015_s1 + $0x2d8] sm:$0xff]  ;;  %v135_v21 = vld [vmem:[%s16015_s1 + $0x2e8] sm:$0xff]  ;;  %v6024_v23 = vpack.c.bf16 %v122_v17, %v116_v15  ;;  %v126_v25 = vld [vmem:[%s16015_s1 + $0x2a0] sm:$0xff] }
  0x15   :  { %5889 = vmatpush1.bf16.msra.mxu0 %v5888_v62  ;;  %v129_v20 = vld [vmem:[%s16015_s1 + $0x2b8] sm:$0xff]  ;;  %v5898_v24 = vpack.c.bf16 %v133_v19, %v127_v18  ;;  %v132_v26 = vld [vmem:[%s16015_s1 + $0x2d0] sm:$0xff]  ;;  %v134_v29 = vld [vmem:[%s16015_s1 + $0x2e0] sm:$0xff] }
  0x16   :  { %6017 = vmatpush1.bf16.msra.mxu1 %v6016_v63  ;;  %5891 = vmatprep.subr.bf16.mxu0 %v5890_v0  ;;  %v128_v27 = vld [vmem:[%s16015_s1 + $0x2b0] sm:$0xff]  ;;  %v6026_v28 = vpack.c.bf16 %v135_v21, %v129_v20  ;;  %v139_v30 = vld [vmem:[%s16015_s1 + $0x308] sm:$0xff]  ;;  %v145_v31 = vld [vmem:[%s16015_s1 + $0x338] sm:$0xff]  ;;  %v5900_v34 = vpack.c.bf16 %v132_v26, %v126_v25 }
  0x17   :  { %6019 = vmatprep.subr.bf16.mxu1 %v6018_v4  ;;  %v141_v32 = vld [vmem:[%s16015_s1 + $0x318] sm:$0xff]  ;;  %v147_v33 = vld [vmem:[%s16015_s1 + $0x348] sm:$0xff]  ;;  %v6028_v35 = vpack.c.bf16 %v134_v29, %v128_v27  ;;  %v5902_v36 = vpack.c.bf16 %v145_v31, %v139_v30  ;;  %v138_v37 = vld [vmem:[%s16015_s1 + $0x300] sm:$0xff] }
  0x18   :  { %v144_v38 = vld [vmem:[%s16015_s1 + $0x330] sm:$0xff]  ;;  %v6030_v40 = vpack.c.bf16 %v147_v33, %v141_v32  ;;  %v146_v41 = vld [vmem:[%s16015_s1 + $0x340] sm:$0xff]  ;;  %v151_v42 = vld [vmem:[%s16015_s1 + $0x368] sm:$0xff] }
  0x19   :  { %5893 = vmatpush1.bf16.msra.mxu0 %v5892_v10  ;;  %v140_v39 = vld [vmem:[%s16015_s1 + $0x310] sm:$0xff]  ;;  %v157_v43 = vld [vmem:[%s16015_s1 + $0x398] sm:$0xff]  ;;  %v159_v45 = vld [vmem:[%s16015_s1 + $0x3a8] sm:$0xff]  ;;  %v5904_v46 = vpack.c.bf16 %v144_v38, %v138_v37 }
  0x1a   :  { %6021 = vmatpush1.bf16.msra.mxu1 %v6020_v11  ;;  %5895 = vmatprep.subr.bf16.mxu0 %v5894_v12  ;;  %v153_v44 = vld [vmem:[%s16015_s1 + $0x378] sm:$0xff]  ;;  %v6032_v47 = vpack.c.bf16 %v146_v41, %v140_v39  ;;  %v5906_v48 = vpack.c.bf16 %v157_v43, %v151_v42  ;;  %v150_v49 = vld [vmem:[%s16015_s1 + $0x360] sm:$0xff]  ;;  %v156_v50 = vld [vmem:[%s16015_s1 + $0x390] sm:$0xff] }
  0x1b   :  { %6023 = vmatprep.subr.bf16.mxu1 %v6022_v16  ;;  %v152_v51 = vld [vmem:[%s16015_s1 + $0x370] sm:$0xff]  ;;  %v6034_v52 = vpack.c.bf16 %v159_v45, %v153_v44  ;;  %v158_v53 = vld [vmem:[%s16015_s1 + $0x3a0] sm:$0xff]  ;;  %v163_v54 = vld [vmem:[%s16015_s1 + $0x3c8] sm:$0xff]  ;;  %v5908_v58 = vpack.c.bf16 %v156_v50, %v150_v49 }
  0x1c   :  { %v169_v55 = vld [vmem:[%s16015_s1 + $0x3f8] sm:$0xff]  ;;  %v171_v57 = vld [vmem:[%s16015_s1 + $0x408] sm:$0xff]  ;;  %v6036_v59 = vpack.c.bf16 %v158_v53, %v152_v51  ;;  %v162_v61 = vld [vmem:[%s16015_s1 + $0x3c0] sm:$0xff] }
  0x1d   :  { %5897 = vmatpush1.bf16.msra.mxu0 %v5896_v22  ;;  %v165_v56 = vld [vmem:[%s16015_s1 + $0x3d8] sm:$0xff]  ;;  %v5910_v60 = vpack.c.bf16 %v169_v55, %v163_v54  ;;  %v168_v62 = vld [vmem:[%s16015_s1 + $0x3f0] sm:$0xff]  ;;  %v170_v1 = vld [vmem:[%s16015_s1 + $0x400] sm:$0xff] }
  0x1e   :  { %6025 = vmatpush1.bf16.msra.mxu1 %v6024_v23  ;;  %5899 = vmatprep.subr.bf16.mxu0 %v5898_v24  ;;  %v164_v63 = vld [vmem:[%s16015_s1 + $0x3d0] sm:$0xff]  ;;  %v6038_v0 = vpack.c.bf16 %v171_v57, %v165_v56  ;;  %v175_v2 = vld [vmem:[%s16015_s1 + $0x428] sm:$0xff]  ;;  %v181_v3 = vld [vmem:[%s16015_s1 + $0x458] sm:$0xff]  ;;  %v5912_v6 = vpack.c.bf16 %v168_v62, %v162_v61 }
  0x1f   :  { %6027 = vmatprep.subr.bf16.mxu1 %v6026_v28  ;;  %v177_v4 = vld [vmem:[%s16015_s1 + $0x438] sm:$0xff]  ;;  %v183_v5 = vld [vmem:[%s16015_s1 + $0x468] sm:$0xff]  ;;  %v174_v7 = vld [vmem:[%s16015_s1 + $0x420] sm:$0xff]  ;;  %v6040_v8 = vpack.c.bf16 %v170_v1, %v164_v63  ;;  %v5914_v9 = vpack.c.bf16 %v181_v3, %v175_v2 }
  0x20   :  { %v180_v10 = vld [vmem:[%s16015_s1 + $0x450] sm:$0xff]  ;;  %v182_v12 = vld [vmem:[%s16015_s1 + $0x460] sm:$0xff]  ;;  %v6042_v13 = vpack.c.bf16 %v183_v5, %v177_v4  ;;  %v187_v14 = vld [vmem:[%s16015_s1 + $0x488] sm:$0xff] }
  0x21   :  { %5901 = vmatpush1.bf16.msra.mxu0 %v5900_v34  ;;  %v176_v11 = vld [vmem:[%s16015_s1 + $0x430] sm:$0xff]  ;;  %v193_v15 = vld [vmem:[%s16015_s1 + $0x4b8] sm:$0xff]  ;;  %v8787_v16 = vld [vmem:[%s16016_s0 + $0x8] sm:$0xff]  ;;  %v5916_v19 = vpack.c.bf16 %v180_v10, %v174_v7 }
  0x22   :  { %6029 = vmatpush1.bf16.msra.mxu1 %v6028_v35  ;;  %5903 = vmatprep.subr.bf16.mxu0 %v5902_v36  ;;  %v189_v17 = vld [vmem:[%s16015_s1 + $0x498] sm:$0xff]  ;;  %v195_v18 = vld [vmem:[%s16015_s1 + $0x4c8] sm:$0xff]  ;;  %v6044_v20 = vpack.c.bf16 %v182_v12, %v176_v11  ;;  %v5918_v21 = vpack.c.bf16 %v193_v15, %v187_v14  ;;  %v186_v22 = vld [vmem:[%s16015_s1 + $0x480] sm:$0xff] }
  0x23   :  { %6031 = vmatprep.subr.bf16.mxu1 %v6030_v40  ;;  %522 = vmatprep.mubr.f32.mxu0 %v8787_v16  ;;  %v192_v23 = vld [vmem:[%s16015_s1 + $0x4b0] sm:$0xff]  ;;  %v6046_v25 = vpack.c.bf16 %v195_v18, %v189_v17  ;;  %v194_v26 = vld [vmem:[%s16015_s1 + $0x4c0] sm:$0xff]  ;;  %v199_v27 = vld [vmem:[%s16015_s1 + $0x4e8] sm:$0xff] }
  0x24   :  { %664 = vmatprep.mubr.f32.mxu1 %v8787_v16  ;;  %v188_v24 = vld [vmem:[%s16015_s1 + $0x490] sm:$0xff]  ;;  %v205_v28 = vld [vmem:[%s16015_s1 + $0x518] sm:$0xff]  ;;  %v207_v30 = vld [vmem:[%s16015_s1 + $0x528] sm:$0xff]  ;;  %v5920_v31 = vpack.c.bf16 %v192_v23, %v186_v22 }
  0x25   :  { %5905 = vmatpush1.bf16.msra.mxu0 %v5904_v46  ;;  %v201_v29 = vld [vmem:[%s16015_s1 + $0x4f8] sm:$0xff]  ;;  %v6048_v32 = vpack.c.bf16 %v194_v26, %v188_v24  ;;  %v5922_v33 = vpack.c.bf16 %v205_v28, %v199_v27  ;;  %v198_v34 = vld [vmem:[%s16015_s1 + $0x4e0] sm:$0xff]  ;;  %v204_v35 = vld [vmem:[%s16015_s1 + $0x510] sm:$0xff] }
  0x26   :  { %6033 = vmatpush1.bf16.msra.mxu1 %v6032_v47  ;;  %5907 = vmatprep.subr.bf16.mxu0 %v5906_v48  ;;  %v200_v36 = vld [vmem:[%s16015_s1 + $0x4f0] sm:$0xff]  ;;  %v6050_v37 = vpack.c.bf16 %v207_v30, %v201_v29  ;;  %v206_v38 = vld [vmem:[%s16015_s1 + $0x520] sm:$0xff]  ;;  %v211_v39 = vld [vmem:[%s16015_s1 + $0x548] sm:$0xff]  ;;  %v5924_v43 = vpack.c.bf16 %v204_v35, %v198_v34 }
  0x27   :  { %6035 = vmatprep.subr.bf16.mxu1 %v6034_v52  ;;  %v217_v40 = vld [vmem:[%s16015_s1 + $0x578] sm:$0xff]  ;;  %v219_v42 = vld [vmem:[%s16015_s1 + $0x588] sm:$0xff]  ;;  %v6052_v44 = vpack.c.bf16 %v206_v38, %v200_v36  ;;  %v210_v46 = vld [vmem:[%s16015_s1 + $0x540] sm:$0xff] }
  0x28   :  { %v213_v41 = vld [vmem:[%s16015_s1 + $0x558] sm:$0xff]  ;;  %v5926_v45 = vpack.c.bf16 %v217_v40, %v211_v39  ;;  %v216_v47 = vld [vmem:[%s16015_s1 + $0x570] sm:$0xff]  ;;  %v218_v50 = vld [vmem:[%s16015_s1 + $0x580] sm:$0xff] }
  0x29   :  { %5909 = vmatpush1.bf16.msra.mxu0 %v5908_v58  ;;  %v212_v48 = vld [vmem:[%s16015_s1 + $0x550] sm:$0xff]  ;;  %v6054_v49 = vpack.c.bf16 %v219_v42, %v213_v41  ;;  %v223_v51 = vld [vmem:[%s16015_s1 + $0x5a8] sm:$0xff]  ;;  %v229_v52 = vld [vmem:[%s16015_s1 + $0x5d8] sm:$0xff]  ;;  %v5928_v55 = vpack.c.bf16 %v216_v47, %v210_v46 }
  0x2a   :  { %6037 = vmatpush1.bf16.msra.mxu1 %v6036_v59  ;;  %5911 = vmatprep.subr.bf16.mxu0 %v5910_v60  ;;  %v225_v53 = vld [vmem:[%s16015_s1 + $0x5b8] sm:$0xff]  ;;  %v231_v54 = vld [vmem:[%s16015_s1 + $0x5e8] sm:$0xff]  ;;  %v6056_v56 = vpack.c.bf16 %v218_v50, %v212_v48  ;;  %v5930_v57 = vpack.c.bf16 %v229_v52, %v223_v51  ;;  %v222_v58 = vld [vmem:[%s16015_s1 + $0x5a0] sm:$0xff] }
  0x2b   :  { %6039 = vmatprep.subr.bf16.mxu1 %v6038_v0  ;;  %v228_v59 = vld [vmem:[%s16015_s1 + $0x5d0] sm:$0xff]  ;;  %v6058_v61 = vpack.c.bf16 %v231_v54, %v225_v53  ;;  %v230_v62 = vld [vmem:[%s16015_s1 + $0x5e0] sm:$0xff]  ;;  %v235_v63 = vld [vmem:[%s16015_s1 + $0x608] sm:$0xff] }
  0x2c   :  { %v224_v60 = vld [vmem:[%s16015_s1 + $0x5b0] sm:$0xff]  ;;  %v241_v0 = vld [vmem:[%s16015_s1 + $0x638] sm:$0xff]  ;;  %v243_v2 = vld [vmem:[%s16015_s1 + $0x648] sm:$0xff]  ;;  %v5932_v3 = vpack.c.bf16 %v228_v59, %v222_v58 }
  0x2d   :  { %5913 = vmatpush1.bf16.msra.mxu0 %v5912_v6  ;;  %v237_v1 = vld [vmem:[%s16015_s1 + $0x618] sm:$0xff]  ;;  %v6060_v4 = vpack.c.bf16 %v230_v62, %v224_v60  ;;  %v5934_v5 = vpack.c.bf16 %v241_v0, %v235_v63  ;;  %v234_v6 = vld [vmem:[%s16015_s1 + $0x600] sm:$0xff]  ;;  %v240_v7 = vld [vmem:[%s16015_s1 + $0x630] sm:$0xff] }
  0x2e   :  { %6041 = vmatpush1.bf16.msra.mxu1 %v6040_v8  ;;  %5915 = vmatprep.subr.bf16.mxu0 %v5914_v9  ;;  %v236_v8 = vld [vmem:[%s16015_s1 + $0x610] sm:$0xff]  ;;  %v6062_v9 = vpack.c.bf16 %v243_v2, %v237_v1  ;;  %v242_v10 = vld [vmem:[%s16015_s1 + $0x640] sm:$0xff]  ;;  %v247_v11 = vld [vmem:[%s16015_s1 + $0x668] sm:$0xff]  ;;  %v5936_v17 = vpack.c.bf16 %v240_v7, %v234_v6 }
  0x2f   :  { %6043 = vmatprep.subr.bf16.mxu1 %v6042_v13  ;;  %v253_v12 = vld [vmem:[%s16015_s1 + $0x698] sm:$0xff]  ;;  %v255_v14 = vld [vmem:[%s16015_s1 + $0x6a8] sm:$0xff]  ;;  %v38_v15 = vld [vmem:[%s16016_s0] sm:$0xff]  ;;  %v6064_v18 = vpack.c.bf16 %v242_v10, %v236_v8 }
  0x30   :  { %v249_v13 = vld [vmem:[%s16015_s1 + $0x678] sm:$0xff]  ;;  %v248_v22 = vld [vmem:[%s16015_s1 + $0x670] sm:$0xff]  ;;  %v254_v24 = vld [vmem:[%s16015_s1 + $0x6a0] sm:$0xff] }
  0x31   :  { %5917 = vmatpush1.bf16.msra.mxu0 %v5916_v19  ;;  %v5938_v19 = vpack.c.bf16 %v253_v12, %v247_v11  ;;  %v6066_v23 = vpack.c.bf16 %v255_v14, %v249_v13  ;;  %v265_v26 = vld [vmem:[%s16015_s1 + $0x6f8] sm:$0xff]  ;;  %v267_v28 = vld [vmem:[%s16015_s1 + $0x708] sm:$0xff]  ;;  %v6068_v30 = vpack.c.bf16 %v254_v24, %v248_v22  ;;  %v260_v34 = vld [vmem:[%s16015_s1 + $0x6d0] sm:$0xff] }
  0x32   :  { %6045 = vmatpush1.bf16.msra.mxu1 %v6044_v20  ;;  %5919 = vmatprep.subr.bf16.mxu0 %v5918_v21  ;;  %v246_v20 = vld [vmem:[%s16015_s1 + $0x660] sm:$0xff]  ;;  %v252_v21 = vld [vmem:[%s16015_s1 + $0x690] sm:$0xff]  ;;  %v261_v27 = vld [vmem:[%s16015_s1 + $0x6d8] sm:$0xff] }
  0x33   :  { %6047 = vmatprep.subr.bf16.mxu1 %v6046_v25  ;;  %v259_v25 = vld [vmem:[%s16015_s1 + $0x6c8] sm:$0xff]  ;;  %v5940_v29 = vpack.c.bf16 %v252_v21, %v246_v20  ;;  %v6070_v35 = vpack.c.bf16 %v267_v28, %v261_v27  ;;  %v266_v36 = vld [vmem:[%s16015_s1 + $0x700] sm:$0xff]  ;;  %v277_v38 = vld [vmem:[%s16015_s1 + $0x758] sm:$0xff] }
  0x34   :  { %v273_v39 = vld [vmem:[%s16015_s1 + $0x738] sm:$0xff]  ;;  %v279_v40 = vld [vmem:[%s16015_s1 + $0x768] sm:$0xff]  ;;  %v6072_v42 = vpack.c.bf16 %v266_v36, %v260_v34  ;;  %v272_v46 = vld [vmem:[%s16015_s1 + $0x730] sm:$0xff] }
  0x35   :  { %5921 = vmatpush1.bf16.msra.mxu0 %v5920_v31  ;;  %v5942_v31 = vpack.c.bf16 %v265_v26, %v259_v25  ;;  %v6074_v47 = vpack.c.bf16 %v279_v40, %v273_v39  ;;  %v278_v48 = vld [vmem:[%s16015_s1 + $0x760] sm:$0xff]  ;;  %v289_v50 = vld [vmem:[%s16015_s1 + $0x7b8] sm:$0xff]  ;;  %v291_v52 = vld [vmem:[%s16015_s1 + $0x7c8] sm:$0xff] }
  0x36   :  { %6049 = vmatpush1.bf16.msra.mxu1 %v6048_v32  ;;  %5923 = vmatprep.subr.bf16.mxu0 %v5922_v33  ;;  %v258_v32 = vld [vmem:[%s16015_s1 + $0x6c0] sm:$0xff]  ;;  %v264_v33 = vld [vmem:[%s16015_s1 + $0x6f0] sm:$0xff]  ;;  %v285_v51 = vld [vmem:[%s16015_s1 + $0x798] sm:$0xff]  ;;  %v6076_v54 = vpack.c.bf16 %v278_v48, %v272_v46 }
  0x37   :  { %6051 = vmatprep.subr.bf16.mxu1 %v6050_v37  ;;  %v271_v37 = vld [vmem:[%s16015_s1 + $0x728] sm:$0xff]  ;;  %v5944_v41 = vpack.c.bf16 %v264_v33, %v258_v32  ;;  %v284_v58 = vld [vmem:[%s16015_s1 + $0x790] sm:$0xff]  ;;  %v6078_v59 = vpack.c.bf16 %v291_v52, %v285_v51  ;;  %v290_v60 = vld [vmem:[%s16015_s1 + $0x7c0] sm:$0xff] }
  0x38   :  { %v301_v62 = vld [vmem:[%s16015_s1 + $0x818] sm:$0xff]  ;;  %v303_v0 = vld [vmem:[%s16015_s1 + $0x828] sm:$0xff]  ;;  %v6080_v2 = vpack.c.bf16 %v290_v60, %v284_v58  ;;  %v296_v6 = vld [vmem:[%s16015_s1 + $0x7f0] sm:$0xff] }
  0x39   :  { %5925 = vmatpush1.bf16.msra.mxu0 %v5924_v43  ;;  %v5946_v43 = vpack.c.bf16 %v277_v38, %v271_v37  ;;  %v297_v63 = vld [vmem:[%s16015_s1 + $0x7f8] sm:$0xff]  ;;  %v302_v8 = vld [vmem:[%s16015_s1 + $0x820] sm:$0xff]  ;;  %v315_v12 = vld [vmem:[%s16015_s1 + $0x888] sm:$0xff] }
  0x3a   :  { %6053 = vmatpush1.bf16.msra.mxu1 %v6052_v44  ;;  %5927 = vmatprep.subr.bf16.mxu0 %v5926_v45  ;;  %v270_v44 = vld [vmem:[%s16015_s1 + $0x720] sm:$0xff]  ;;  %v276_v45 = vld [vmem:[%s16015_s1 + $0x750] sm:$0xff]  ;;  %v6082_v7 = vpack.c.bf16 %v303_v0, %v297_v63  ;;  %v313_v10 = vld [vmem:[%s16015_s1 + $0x878] sm:$0xff] }
  0x3b   :  { %6055 = vmatprep.subr.bf16.mxu1 %v6054_v49  ;;  %v283_v49 = vld [vmem:[%s16015_s1 + $0x788] sm:$0xff]  ;;  %v5948_v53 = vpack.c.bf16 %v276_v45, %v270_v44  ;;  %v309_v11 = vld [vmem:[%s16015_s1 + $0x858] sm:$0xff]  ;;  %v306_v14 = vld [vmem:[%s16015_s1 + $0x840] sm:$0xff] }
  0x3c   :  { %v314_v20 = vld [vmem:[%s16015_s1 + $0x880] sm:$0xff]  ;;  %v6086_v21 = vpack.c.bf16 %v315_v12, %v309_v11  ;;  %v319_v22 = vld [vmem:[%s16015_s1 + $0x8a8] sm:$0xff]  ;;  %v9061_v24 = vld [vmem:[%s16016_s0 + $0x18] sm:$0xff] }
  0x3d   :  { %5929 = vmatpush1.bf16.msra.mxu0 %v5928_v55  ;;  %v5950_v55 = vpack.c.bf16 %v289_v50, %v283_v49  ;;  %v321_v25 = vld [vmem:[%s16015_s1 + $0x8b8] sm:$0xff]  ;;  %v327_v26 = vld [vmem:[%s16015_s1 + $0x8e8] sm:$0xff]  ;;  %v320_v32 = vld [vmem:[%s16015_s1 + $0x8b0] sm:$0xff] }
  0x3e   :  { %6057 = vmatpush1.bf16.msra.mxu1 %v6056_v56  ;;  %5931 = vmatprep.subr.bf16.mxu0 %v5930_v57  ;;  %v282_v56 = vld [vmem:[%s16015_s1 + $0x780] sm:$0xff]  ;;  %v288_v57 = vld [vmem:[%s16015_s1 + $0x7b0] sm:$0xff]  ;;  %v6090_v33 = vpack.c.bf16 %v327_v26, %v321_v25  ;;  %v337_v36 = vld [vmem:[%s16015_s1 + $0x938] sm:$0xff] }
  0x3f   :  { %6059 = vmatprep.subr.bf16.mxu1 %v6058_v61  ;;  %v295_v61 = vld [vmem:[%s16015_s1 + $0x7e8] sm:$0xff]  ;;  %v5952_v1 = vpack.c.bf16 %v288_v57, %v282_v56  ;;  %v326_v34 = vld [vmem:[%s16015_s1 + $0x8e0] sm:$0xff]  ;;  %v333_v37 = vld [vmem:[%s16015_s1 + $0x918] sm:$0xff] }
  0x40   :  { %v339_v38 = vld [vmem:[%s16015_s1 + $0x948] sm:$0xff]  ;;  %v6092_v40 = vpack.c.bf16 %v326_v34, %v320_v32  ;;  %v332_v44 = vld [vmem:[%s16015_s1 + $0x910] sm:$0xff]  ;;  %v338_v46 = vld [vmem:[%s16015_s1 + $0x940] sm:$0xff] }
  0x41   :  { %5933 = vmatpush1.bf16.msra.mxu0 %v5932_v3  ;;  %v5954_v3 = vpack.c.bf16 %v301_v62, %v295_v61  ;;  %v6094_v45 = vpack.c.bf16 %v339_v38, %v333_v37  ;;  %v349_v48 = vld [vmem:[%s16015_s1 + $0x998] sm:$0xff]  ;;  %v351_v50 = vld [vmem:[%s16015_s1 + $0x9a8] sm:$0xff]  ;;  %v6096_v52 = vpack.c.bf16 %v338_v46, %v332_v44  ;;  %v344_v56 = vld [vmem:[%s16015_s1 + $0x970] sm:$0xff] }
  0x42   :  { %6061 = vmatpush1.bf16.msra.mxu1 %v6060_v4  ;;  %5935 = vmatprep.subr.bf16.mxu0 %v5934_v5  ;;  %v294_v4 = vld [vmem:[%s16015_s1 + $0x7e0] sm:$0xff]  ;;  %v300_v5 = vld [vmem:[%s16015_s1 + $0x810] sm:$0xff]  ;;  %v345_v49 = vld [vmem:[%s16015_s1 + $0x978] sm:$0xff] }
  0x43   :  { %6063 = vmatprep.subr.bf16.mxu1 %v6062_v9  ;;  %v307_v9 = vld [vmem:[%s16015_s1 + $0x848] sm:$0xff]  ;;  %v5956_v13 = vpack.c.bf16 %v300_v5, %v294_v4  ;;  %v6098_v57 = vpack.c.bf16 %v351_v50, %v345_v49  ;;  %v350_v58 = vld [vmem:[%s16015_s1 + $0x9a0] sm:$0xff]  ;;  %v361_v60 = vld [vmem:[%s16015_s1 + $0x9f8] sm:$0xff] }
  0x44   :  { %523 = vmatmul.mubr.f32.vlgmr.msra.gmra.mrb[0].mxu0 %v38_v15  ;;  %v357_v61 = vld [vmem:[%s16015_s1 + $0x9d8] sm:$0xff]  ;;  %v363_v62 = vld [vmem:[%s16015_s1 + $0xa08] sm:$0xff]  ;;  %v6100_v0 = vpack.c.bf16 %v350_v58, %v344_v56  ;;  %v356_v4 = vld [vmem:[%s16015_s1 + $0x9d0] sm:$0xff] }
  0x45   :  { %5937 = vmatpush1.bf16.msra.mxu0 %v5936_v17  ;;  %665 = vmatmul.mubr.f32.vlgmr.msra.gmra.mrb[0].mxu1 %v38_v15  ;;  %v6084_v15 = vpack.c.bf16 %v302_v8, %v296_v6  ;;  %v5958_v17 = vpack.c.bf16 %v313_v10, %v307_v9  ;;  %v6102_v5 = vpack.c.bf16 %v363_v62, %v357_v61  ;;  %v362_v6 = vld [vmem:[%s16015_s1 + $0xa00] sm:$0xff]  ;;  %v373_v8 = vld [vmem:[%s16015_s1 + $0xa58] sm:$0xff]  ;;  %v375_v10 = vld [vmem:[%s16015_s1 + $0xa68] sm:$0xff] }
  0x46   :  { %6065 = vmatpush1.bf16.msra.mxu1 %v6064_v18  ;;  %5939 = vmatprep.subr.bf16.mxu0 %v5938_v19  ;;  %v312_v18 = vld [vmem:[%s16015_s1 + $0x870] sm:$0xff]  ;;  %v369_v9 = vld [vmem:[%s16015_s1 + $0xa38] sm:$0xff]  ;;  %v6104_v12 = vpack.c.bf16 %v362_v6, %v356_v4  ;;  %v386_v32 = vld [vmem:[%s16015_s1 + $0xac0] sm:$0xff] }
  0x47   :  { %6067 = vmatprep.subr.bf16.mxu1 %v6066_v23  ;;  %v308_v19 = vld [vmem:[%s16015_s1 + $0x850] sm:$0xff]  ;;  %v325_v23 = vld [vmem:[%s16015_s1 + $0x8d8] sm:$0xff]  ;;  %593 = vmatprep.mubr.f32.mxu0 %v9061_v24  ;;  %v5960_v27 = vpack.c.bf16 %v312_v18, %v306_v14  ;;  %v366_v14 = vld [vmem:[%s16015_s1 + $0xa20] sm:$0xff]  ;;  %v6106_v18 = vpack.c.bf16 %v375_v10, %v369_v9 }
  0x48   :  { %735 = vmatprep.mubr.f32.mxu1 %v9061_v24  ;;  %v6088_v28 = vpack.c.bf16 %v314_v20, %v308_v19  ;;  %v374_v19 = vld [vmem:[%s16015_s1 + $0xa60] sm:$0xff]  ;;  %v379_v20 = vld [vmem:[%s16015_s1 + $0xa88] sm:$0xff]  ;;  %v397_v34 = vld [vmem:[%s16015_s1 + $0xb18] sm:$0xff] }
  0x49   :  { %5941 = vmatpush1.bf16.msra.mxu0 %v5940_v29  ;;  %v5962_v29 = vpack.c.bf16 %v325_v23, %v319_v22  ;;  %v381_v22 = vld [vmem:[%s16015_s1 + $0xa98] sm:$0xff]  ;;  %v387_v23 = vld [vmem:[%s16015_s1 + $0xac8] sm:$0xff]  ;;  %v398_v44 = vld [vmem:[%s16015_s1 + $0xb20] sm:$0xff] }
  0x4a   :  { %6069 = vmatpush1.bf16.msra.mxu1 %v6068_v30  ;;  %5943 = vmatprep.subr.bf16.mxu0 %v5942_v31  ;;  %v318_v30 = vld [vmem:[%s16015_s1 + $0x8a0] sm:$0xff]  ;;  %v324_v31 = vld [vmem:[%s16015_s1 + $0x8d0] sm:$0xff]  ;;  %v409_v46 = vld [vmem:[%s16015_s1 + $0xb78] sm:$0xff] }
  0x4b   :  { %6071 = vmatprep.subr.bf16.mxu1 %v6070_v35  ;;  %v331_v35 = vld [vmem:[%s16015_s1 + $0x908] sm:$0xff]  ;;  %v5964_v39 = vpack.c.bf16 %v324_v31, %v318_v30  ;;  %v380_v30 = vld [vmem:[%s16015_s1 + $0xa90] sm:$0xff]  ;;  %v6110_v31 = vpack.c.bf16 %v387_v23, %v381_v22  ;;  %v410_v56 = vld [vmem:[%s16015_s1 + $0xb80] sm:$0xff] }
  0x4c   :  { %v6112_v38 = vpack.c.bf16 %v386_v32, %v380_v30  ;;  %v421_v58 = vld [vmem:[%s16015_s1 + $0xbd8] sm:$0xff]  ;;  %v422_v4 = vld [vmem:[%s16015_s1 + $0xbe0] sm:$0xff]  ;;  %v40_v22 = vld [vmem:[%s16016_s0 + $0x10] sm:$0xff] }
  0x4d   :  { %5945 = vmatpush1.bf16.msra.mxu0 %v5944_v41  ;;  %v5966_v41 = vpack.c.bf16 %v337_v36, %v331_v35  ;;  %v393_v35 = vld [vmem:[%s16015_s1 + $0xaf8] sm:$0xff]  ;;  %v399_v36 = vld [vmem:[%s16015_s1 + $0xb28] sm:$0xff] }
  0x4e   :  { %6073 = vmatpush1.bf16.msra.mxu1 %v6072_v42  ;;  %5947 = vmatprep.subr.bf16.mxu0 %v5946_v43  ;;  %v330_v42 = vld [vmem:[%s16015_s1 + $0x900] sm:$0xff]  ;;  %v336_v43 = vld [vmem:[%s16015_s1 + $0x930] sm:$0xff]  ;;  %v53_v6 = vld [vmem:[%s16015_s1 + $0x58] sm:$0xff] }
  0x4f   :  { %6075 = vmatprep.subr.bf16.mxu1 %v6074_v47  ;;  %v343_v47 = vld [vmem:[%s16015_s1 + $0x968] sm:$0xff]  ;;  %v5968_v51 = vpack.c.bf16 %v336_v43, %v330_v42  ;;  %v392_v42 = vld [vmem:[%s16015_s1 + $0xaf0] sm:$0xff]  ;;  %v6114_v43 = vpack.c.bf16 %v399_v36, %v393_v35  ;;  %v915_v35 = vld [vmem:[%s16017_s5 + $0xf8] sm:$0xff] }
  0x50   :  { %v6116_v50 = vpack.c.bf16 %v398_v44, %v392_v42  ;;  %v71_v32 = vld [vmem:[%s16015_s1 + $0xe8] sm:$0xff] }
  0x51   :  { %5949 = vmatpush1.bf16.msra.mxu0 %v5948_v53  ;;  %v5970_v53 = vpack.c.bf16 %v349_v48, %v343_v47  ;;  %v405_v47 = vld [vmem:[%s16015_s1 + $0xb58] sm:$0xff]  ;;  %v411_v48 = vld [vmem:[%s16015_s1 + $0xb88] sm:$0xff] }
  0x52   :  { %6077 = vmatpush1.bf16.msra.mxu1 %v6076_v54  ;;  %5951 = vmatprep.subr.bf16.mxu0 %v5950_v55  ;;  %v342_v54 = vld [vmem:[%s16015_s1 + $0x960] sm:$0xff]  ;;  %v348_v55 = vld [vmem:[%s16015_s1 + $0x990] sm:$0xff]  ;;  %v83_v44 = vld [vmem:[%s16015_s1 + $0x148] sm:$0xff] }
  0x53   :  { %6079 = vmatprep.subr.bf16.mxu1 %v6078_v59  ;;  %v355_v59 = vld [vmem:[%s16015_s1 + $0x9c8] sm:$0xff]  ;;  %v5972_v63 = vpack.c.bf16 %v348_v55, %v342_v54  ;;  %v404_v54 = vld [vmem:[%s16015_s1 + $0xb50] sm:$0xff]  ;;  %v6118_v55 = vpack.c.bf16 %v411_v48, %v405_v47  ;;  %v927_v47 = vld [vmem:[%s16017_s5 + $0x158] sm:$0xff] }
  0x54   :  { %v6120_v62 = vpack.c.bf16 %v410_v56, %v404_v54  ;;  %v926_v54 = vld [vmem:[%s16017_s5 + $0x150] sm:$0xff]  ;;  %v101_v56 = vld [vmem:[%s16015_s1 + $0x1d8] sm:$0xff] }
  0x55   :  { %5953 = vmatpush1.bf16.msra.mxu0 %v5952_v1  ;;  %v5974_v1 = vpack.c.bf16 %v361_v60, %v355_v59  ;;  %v417_v59 = vld [vmem:[%s16015_s1 + $0xbb8] sm:$0xff]  ;;  %v423_v60 = vld [vmem:[%s16015_s1 + $0xbe8] sm:$0xff] }
  0x56   :  { %6081 = vmatpush1.bf16.msra.mxu1 %v6080_v2  ;;  %5955 = vmatprep.subr.bf16.mxu0 %v5954_v3  ;;  %v354_v2 = vld [vmem:[%s16015_s1 + $0x9c0] sm:$0xff]  ;;  %v360_v3 = vld [vmem:[%s16015_s1 + $0x9f0] sm:$0xff] }
  0x57   :  { %6083 = vmatprep.subr.bf16.mxu1 %v6082_v7  ;;  %v367_v7 = vld [vmem:[%s16015_s1 + $0xa28] sm:$0xff]  ;;  %v5976_v11 = vpack.c.bf16 %v360_v3, %v354_v2  ;;  %v416_v2 = vld [vmem:[%s16015_s1 + $0xbb0] sm:$0xff]  ;;  %v6122_v3 = vpack.c.bf16 %v423_v60, %v417_v59 }
  0x58   :  { %v6124_v10 = vpack.c.bf16 %v422_v4, %v416_v2  ;;  %v938_v2 = vld [vmem:[%s16017_s5 + $0x1b0] sm:$0xff]  ;;  %v113_v4 = vld [vmem:[%s16015_s1 + $0x238] sm:$0xff] }
  0x59   :  { %5957 = vmatpush1.bf16.msra.mxu0 %v5956_v13  ;;  %v5978_v13 = vpack.c.bf16 %v373_v8, %v367_v7  ;;  %v885_v7 = vld [vmem:[%s16017_s5 + $0x8] sm:$0xff]  ;;  %v891_v8 = vld [vmem:[%s16017_s5 + $0x38] sm:$0xff] }
  0x5a   :  { %6085 = vmatpush1.bf16.msra.mxu1 %v6084_v15  ;;  %5959 = vmatprep.subr.bf16.mxu0 %v5958_v17  ;;  %v372_v15 = vld [vmem:[%s16015_s1 + $0xa50] sm:$0xff] }
  0x5b   :  { %6087 = vmatprep.subr.bf16.mxu1 %v6086_v21  ;;  %v368_v17 = vld [vmem:[%s16015_s1 + $0xa30] sm:$0xff]  ;;  %v385_v21 = vld [vmem:[%s16015_s1 + $0xab8] sm:$0xff]  ;;  %v5980_v25 = vpack.c.bf16 %v372_v15, %v366_v14  ;;  %v884_v14 = vld [vmem:[%s16017_s5] sm:$0xff]  ;;  %v6254_v15 = vpack.c.bf16 %v891_v8, %v885_v7 }
  0x5c   :  { %v6108_v26 = vpack.c.bf16 %v374_v19, %v368_v17  ;;  %v890_v17 = vld [vmem:[%s16017_s5 + $0x30] sm:$0xff]  ;;  %v65_v19 = vld [vmem:[%s16015_s1 + $0xb8] sm:$0xff] }
  0x5d   :  { %5961 = vmatpush1.bf16.msra.mxu0 %v5960_v27  ;;  %v5982_v27 = vpack.c.bf16 %v385_v21, %v379_v20  ;;  %v897_v20 = vld [vmem:[%s16017_s5 + $0x68] sm:$0xff]  ;;  %v903_v21 = vld [vmem:[%s16017_s5 + $0x98] sm:$0xff] }
  0x5e   :  { %6089 = vmatpush1.bf16.msra.mxu1 %v6088_v28  ;;  %5963 = vmatprep.subr.bf16.mxu0 %v5962_v29  ;;  %v378_v28 = vld [vmem:[%s16015_s1 + $0xa80] sm:$0xff]  ;;  %v384_v29 = vld [vmem:[%s16015_s1 + $0xab0] sm:$0xff]  ;;  %v6258_v30 = vpack.c.bf16 %v903_v21, %v897_v20 }
  0x5f   :  { %6091 = vmatprep.subr.bf16.mxu1 %v6090_v33  ;;  %v391_v33 = vld [vmem:[%s16015_s1 + $0xae8] sm:$0xff]  ;;  %v5984_v37 = vpack.c.bf16 %v384_v29, %v378_v28  ;;  %v64_v28 = vld [vmem:[%s16015_s1 + $0xb0] sm:$0xff]  ;;  %v896_v29 = vld [vmem:[%s16017_s5 + $0x60] sm:$0xff] }
  0x61   :  { %5965 = vmatpush1.bf16.msra.mxu0 %v5964_v39  ;;  %v5986_v39 = vpack.c.bf16 %v397_v34, %v391_v33  ;;  %v77_v33 = vld [vmem:[%s16015_s1 + $0x118] sm:$0xff]  ;;  %v909_v34 = vld [vmem:[%s16017_s5 + $0xc8] sm:$0xff] }
  0x62   :  { %6093 = vmatpush1.bf16.msra.mxu1 %v6092_v40  ;;  %5967 = vmatprep.subr.bf16.mxu0 %v5966_v41  ;;  %v390_v40 = vld [vmem:[%s16015_s1 + $0xae0] sm:$0xff]  ;;  %v396_v41 = vld [vmem:[%s16015_s1 + $0xb10] sm:$0xff]  ;;  %v6262_v42 = vpack.c.bf16 %v915_v35, %v909_v34 }
  0x63   :  { %6095 = vmatprep.subr.bf16.mxu1 %v6094_v45  ;;  %v403_v45 = vld [vmem:[%s16015_s1 + $0xb48] sm:$0xff]  ;;  %v5988_v49 = vpack.c.bf16 %v396_v41, %v390_v40  ;;  %v76_v40 = vld [vmem:[%s16015_s1 + $0x110] sm:$0xff]  ;;  %v908_v41 = vld [vmem:[%s16017_s5 + $0xc0] sm:$0xff] }
  0x65   :  { %5969 = vmatpush1.bf16.msra.mxu0 %v5968_v51  ;;  %v5990_v51 = vpack.c.bf16 %v409_v46, %v403_v45  ;;  %v89_v45 = vld [vmem:[%s16015_s1 + $0x178] sm:$0xff]  ;;  %v921_v46 = vld [vmem:[%s16017_s5 + $0x128] sm:$0xff] }
  0x66   :  { %6097 = vmatpush1.bf16.msra.mxu1 %v6096_v52  ;;  %5971 = vmatprep.subr.bf16.mxu0 %v5970_v53  ;;  %v402_v52 = vld [vmem:[%s16015_s1 + $0xb40] sm:$0xff]  ;;  %v408_v53 = vld [vmem:[%s16015_s1 + $0xb70] sm:$0xff] }
  0x67   :  { %6099 = vmatprep.subr.bf16.mxu1 %v6098_v57  ;;  %v415_v57 = vld [vmem:[%s16015_s1 + $0xba8] sm:$0xff]  ;;  %v5992_v61 = vpack.c.bf16 %v408_v53, %v402_v52  ;;  %v88_v52 = vld [vmem:[%s16015_s1 + $0x170] sm:$0xff]  ;;  %v920_v53 = vld [vmem:[%s16017_s5 + $0x120] sm:$0xff] }
  0x68   :  { %v6268_v60 = vpack.c.bf16 %v926_v54, %v920_v53  ;;  %v155_v53 = vld [vmem:[%s16015_s1 + $0x388] sm:$0xff] }
  0x69   :  { %5973 = vmatpush1.bf16.msra.mxu0 %v5972_v63  ;;  %v5994_v63 = vpack.c.bf16 %v421_v58, %v415_v57  ;;  %v933_v57 = vld [vmem:[%s16017_s5 + $0x188] sm:$0xff]  ;;  %v939_v58 = vld [vmem:[%s16017_s5 + $0x1b8] sm:$0xff] }
  0x6a   :  { %6101 = vmatpush1.bf16.msra.mxu1 %v6100_v0  ;;  %5975 = vmatprep.subr.bf16.mxu0 %v5974_v1  ;;  %v414_v0 = vld [vmem:[%s16015_s1 + $0xba0] sm:$0xff]  ;;  %v420_v1 = vld [vmem:[%s16015_s1 + $0xbd0] sm:$0xff]  ;;  %v993_v54 = vld [vmem:[%s16017_s5 + $0x368] sm:$0xff] }
  0x6b   :  { %6103 = vmatprep.subr.bf16.mxu1 %v6102_v5  ;;  %v47_v5 = vld [vmem:[%s16015_s1 + $0x28] sm:$0xff]  ;;  %v5996_v9 = vpack.c.bf16 %v420_v1, %v414_v0  ;;  %v932_v0 = vld [vmem:[%s16017_s5 + $0x180] sm:$0xff]  ;;  %v6270_v1 = vpack.c.bf16 %v939_v58, %v933_v57 }
  0x6c   :  { %v6272_v8 = vpack.c.bf16 %v938_v2, %v932_v0  ;;  %v167_v0 = vld [vmem:[%s16015_s1 + $0x3e8] sm:$0xff] }
  0x6d   :  { %5977 = vmatpush1.bf16.msra.mxu0 %v5976_v11  ;;  %v6126_v11 = vpack.c.bf16 %v53_v6, %v47_v5  ;;  %v945_v5 = vld [vmem:[%s16017_s5 + $0x1e8] sm:$0xff]  ;;  %v951_v6 = vld [vmem:[%s16017_s5 + $0x218] sm:$0xff] }
  0x6e   :  { %6105 = vmatpush1.bf16.msra.mxu1 %v6104_v12  ;;  %5979 = vmatprep.subr.bf16.mxu0 %v5978_v13  ;;  %v46_v12 = vld [vmem:[%s16015_s1 + $0x20] sm:$0xff]  ;;  %v52_v13 = vld [vmem:[%s16015_s1 + $0x50] sm:$0xff]  ;;  %v1005_v2 = vld [vmem:[%s16017_s5 + $0x3c8] sm:$0xff] }
  0x6f   :  { %6107 = vmatprep.subr.bf16.mxu1 %v6106_v18  ;;  %v59_v18 = vld [vmem:[%s16015_s1 + $0x88] sm:$0xff]  ;;  %v6128_v23 = vpack.c.bf16 %v52_v13, %v46_v12  ;;  %v944_v12 = vld [vmem:[%s16017_s5 + $0x1e0] sm:$0xff]  ;;  %v6274_v13 = vpack.c.bf16 %v951_v6, %v945_v5 }
  0x71   :  { %5981 = vmatpush1.bf16.msra.mxu0 %v5980_v25  ;;  %v6256_v25 = vpack.c.bf16 %v890_v17, %v884_v14  ;;  %v950_v14 = vld [vmem:[%s16017_s5 + $0x210] sm:$0xff]  ;;  %v125_v17 = vld [vmem:[%s16015_s1 + $0x298] sm:$0xff] }
  0x72   :  { %6109 = vmatpush1.bf16.msra.mxu1 %v6108_v26  ;;  %5983 = vmatprep.subr.bf16.mxu0 %v5982_v27  ;;  %v6130_v26 = vpack.c.bf16 %v65_v19, %v59_v18  ;;  %v58_v27 = vld [vmem:[%s16015_s1 + $0x80] sm:$0xff]  ;;  %v957_v18 = vld [vmem:[%s16017_s5 + $0x248] sm:$0xff]  ;;  %v963_v19 = vld [vmem:[%s16017_s5 + $0x278] sm:$0xff]  ;;  %v6276_v21 = vpack.c.bf16 %v950_v14, %v944_v12 }
  0x73   :  { %6111 = vmatprep.subr.bf16.mxu1 %v6110_v31  ;;  %v902_v31 = vld [vmem:[%s16017_s5 + $0x90] sm:$0xff]  ;;  %v6132_v36 = vpack.c.bf16 %v64_v28, %v58_v27  ;;  %v6278_v27 = vpack.c.bf16 %v963_v19, %v957_v18  ;;  %v179_v12 = vld [vmem:[%s16015_s1 + $0x448] sm:$0xff] }
  0x74   :  { %v962_v28 = vld [vmem:[%s16017_s5 + $0x270] sm:$0xff]  ;;  %v1017_v14 = vld [vmem:[%s16017_s5 + $0x428] sm:$0xff] }
  0x75   :  { %5985 = vmatpush1.bf16.msra.mxu0 %v5984_v37  ;;  %v6260_v37 = vpack.c.bf16 %v902_v31, %v896_v29  ;;  %v131_v29 = vld [vmem:[%s16015_s1 + $0x2c8] sm:$0xff] }
  0x76   :  { %6113 = vmatpush1.bf16.msra.mxu1 %v6112_v38  ;;  %5987 = vmatprep.subr.bf16.mxu0 %v5986_v39  ;;  %v6134_v38 = vpack.c.bf16 %v77_v33, %v71_v32  ;;  %v70_v39 = vld [vmem:[%s16015_s1 + $0xe0] sm:$0xff]  ;;  %v969_v31 = vld [vmem:[%s16017_s5 + $0x2a8] sm:$0xff]  ;;  %v975_v32 = vld [vmem:[%s16017_s5 + $0x2d8] sm:$0xff] }
  0x77   :  { %6115 = vmatprep.subr.bf16.mxu1 %v6114_v43  ;;  %v914_v43 = vld [vmem:[%s16017_s5 + $0xf0] sm:$0xff]  ;;  %v6136_v48 = vpack.c.bf16 %v76_v40, %v70_v39  ;;  %v6282_v39 = vpack.c.bf16 %v975_v32, %v969_v31 }
  0x78   :  { %v974_v40 = vld [vmem:[%s16017_s5 + $0x2d0] sm:$0xff] }
  0x79   :  { %5989 = vmatpush1.bf16.msra.mxu0 %v5988_v49  ;;  %v6264_v49 = vpack.c.bf16 %v914_v43, %v908_v41  ;;  %v143_v41 = vld [vmem:[%s16015_s1 + $0x328] sm:$0xff] }
  0x7a   :  { %6117 = vmatpush1.bf16.msra.mxu1 %v6116_v50  ;;  %5991 = vmatprep.subr.bf16.mxu0 %v5990_v51  ;;  %v6138_v50 = vpack.c.bf16 %v89_v45, %v83_v44  ;;  %v82_v51 = vld [vmem:[%s16015_s1 + $0x140] sm:$0xff]  ;;  %v981_v43 = vld [vmem:[%s16017_s5 + $0x308] sm:$0xff]  ;;  %v987_v44 = vld [vmem:[%s16017_s5 + $0x338] sm:$0xff] }
  0x7b   :  { %6119 = vmatprep.subr.bf16.mxu1 %v6118_v55  ;;  %v95_v55 = vld [vmem:[%s16015_s1 + $0x1a8] sm:$0xff]  ;;  %v6140_v59 = vpack.c.bf16 %v88_v52, %v82_v51  ;;  %v6286_v51 = vpack.c.bf16 %v987_v44, %v981_v43  ;;  %v986_v52 = vld [vmem:[%s16017_s5 + $0x330] sm:$0xff] }
  0x7d   :  { %5993 = vmatpush1.bf16.msra.mxu0 %v5992_v61  ;;  %v6142_v61 = vpack.c.bf16 %v101_v56, %v95_v55  ;;  %v999_v55 = vld [vmem:[%s16017_s5 + $0x398] sm:$0xff] }
  0x7e   :  { %6121 = vmatpush1.bf16.msra.mxu1 %v6120_v62  ;;  %5995 = vmatprep.subr.bf16.mxu0 %v5994_v63  ;;  %v94_v62 = vld [vmem:[%s16015_s1 + $0x1a0] sm:$0xff]  ;;  %v100_v63 = vld [vmem:[%s16015_s1 + $0x1d0] sm:$0xff] }
  0x7f   :  { %6123 = vmatprep.subr.bf16.mxu1 %v6122_v3  ;;  %v107_v3 = vld [vmem:[%s16015_s1 + $0x208] sm:$0xff]  ;;  %v6144_v7 = vpack.c.bf16 %v100_v63, %v94_v62  ;;  %v6290_v62 = vpack.c.bf16 %v999_v55, %v993_v54  ;;  %v998_v63 = vld [vmem:[%s16017_s5 + $0x390] sm:$0xff] }
  0x81   :  { %5997 = vmatpush1.bf16.msra.mxu0 %v5996_v9  ;;  %v6146_v9 = vpack.c.bf16 %v113_v4, %v107_v3  ;;  %v1011_v3 = vld [vmem:[%s16017_s5 + $0x3f8] sm:$0xff] }
  0x82   :  { %6125 = vmatpush1.bf16.msra.mxu1 %v6124_v10  ;;  %6127 = vmatprep.subr.bf16.mxu0 %v6126_v11  ;;  %v106_v10 = vld [vmem:[%s16015_s1 + $0x200] sm:$0xff]  ;;  %v112_v11 = vld [vmem:[%s16015_s1 + $0x230] sm:$0xff] }
  0x83   :  { %6255 = vmatprep.subr.bf16.mxu1 %v6254_v15  ;;  %v119_v15 = vld [vmem:[%s16015_s1 + $0x268] sm:$0xff]  ;;  %v6148_v20 = vpack.c.bf16 %v112_v11, %v106_v10  ;;  %v6294_v10 = vpack.c.bf16 %v1011_v3, %v1005_v2  ;;  %v1010_v11 = vld [vmem:[%s16017_s5 + $0x3f0] sm:$0xff] }
  0x84   :  { %594 = vmatmul.mubr.f32.vlgmr.msra.gmra.mrb[0].mxu0 %v40_v22 }
  0x85   :  { %736 = vmatmul.mubr.f32.vlgmr.msra.gmra.mrb[0].mxu1 %v40_v22  ;;  %6129 = vmatpush1.bf16.msra.mxu0 %v6128_v23  ;;  %v6150_v22 = vpack.c.bf16 %v125_v17, %v119_v15  ;;  %v118_v23 = vld [vmem:[%s16015_s1 + $0x260] sm:$0xff]  ;;  %v1023_v15 = vld [vmem:[%s16017_s5 + $0x458] sm:$0xff] }
  0x86   :  { %6257 = vmatpush1.bf16.msra.mxu1 %v6256_v25  ;;  %6131 = vmatprep.subr.bf16.mxu0 %v6130_v26  ;;  %v124_v25 = vld [vmem:[%s16015_s1 + $0x290] sm:$0xff]  ;;  %v956_v26 = vld [vmem:[%s16017_s5 + $0x240] sm:$0xff] }
  0x87   :  { %6259 = vmatprep.subr.bf16.mxu1 %v6258_v30  ;;  %806 = vmatprep.mubr.f32.mxu0 %v8787_v16  ;;  %v137_v30 = vld [vmem:[%s16015_s1 + $0x2f8] sm:$0xff]  ;;  %v6152_v33 = vpack.c.bf16 %v124_v25, %v118_v23  ;;  %v6280_v34 = vpack.c.bf16 %v962_v28, %v956_v26  ;;  %v6298_v23 = vpack.c.bf16 %v1023_v15, %v1017_v14  ;;  %v1022_v25 = vld [vmem:[%s16017_s5 + $0x450] sm:$0xff]  ;;  %v191_v26 = vld [vmem:[%s16015_s1 + $0x4a8] sm:$0xff] }
  0x88   :  { %1364 = vmatprep.mubr.f32.mxu1 %v8787_v16  ;;  %v6266_v16 = vpack.c.bf16 %v927_v47, %v921_v46  ;;  %v6154_v35 = vpack.c.bf16 %v137_v30, %v131_v29  ;;  %v1029_v28 = vld [vmem:[%s16017_s5 + $0x488] sm:$0xff]  ;;  %v1035_v29 = vld [vmem:[%s16017_s5 + $0x4b8] sm:$0xff] }
  0x89   :  { %6133 = vmatpush1.bf16.msra.mxu0 %v6132_v36  ;;  %v130_v36 = vld [vmem:[%s16015_s1 + $0x2c0] sm:$0xff] }
  0x8a   :  { %6261 = vmatpush1.bf16.msra.mxu1 %v6260_v37  ;;  %6135 = vmatprep.subr.bf16.mxu0 %v6134_v38  ;;  %v136_v37 = vld [vmem:[%s16015_s1 + $0x2f0] sm:$0xff]  ;;  %v968_v38 = vld [vmem:[%s16017_s5 + $0x2a0] sm:$0xff] }
  0x8b   :  { %6263 = vmatprep.subr.bf16.mxu1 %v6262_v42  ;;  %v149_v42 = vld [vmem:[%s16015_s1 + $0x358] sm:$0xff]  ;;  %v6156_v45 = vpack.c.bf16 %v136_v37, %v130_v36  ;;  %v6284_v46 = vpack.c.bf16 %v974_v40, %v968_v38  ;;  %v6302_v36 = vpack.c.bf16 %v1035_v29, %v1029_v28  ;;  %v1034_v37 = vld [vmem:[%s16017_s5 + $0x4b0] sm:$0xff]  ;;  %v203_v38 = vld [vmem:[%s16015_s1 + $0x508] sm:$0xff] }
  0x8c   :  { %v6158_v47 = vpack.c.bf16 %v149_v42, %v143_v41  ;;  %v1041_v40 = vld [vmem:[%s16017_s5 + $0x4e8] sm:$0xff]  ;;  %v1047_v41 = vld [vmem:[%s16017_s5 + $0x518] sm:$0xff] }
  0x8d   :  { %6137 = vmatpush1.bf16.msra.mxu0 %v6136_v48  ;;  %v142_v48 = vld [vmem:[%s16015_s1 + $0x320] sm:$0xff] }
  0x8e   :  { %6265 = vmatpush1.bf16.msra.mxu1 %v6264_v49  ;;  %6139 = vmatprep.subr.bf16.mxu0 %v6138_v50  ;;  %v148_v49 = vld [vmem:[%s16015_s1 + $0x350] sm:$0xff]  ;;  %v980_v50 = vld [vmem:[%s16017_s5 + $0x300] sm:$0xff] }
  0x8f   :  { %6267 = vmatprep.subr.bf16.mxu1 %v6266_v16  ;;  %v161_v16 = vld [vmem:[%s16015_s1 + $0x3b8] sm:$0xff]  ;;  %v6160_v56 = vpack.c.bf16 %v148_v49, %v142_v48  ;;  %v6288_v57 = vpack.c.bf16 %v986_v52, %v980_v50  ;;  %v6306_v48 = vpack.c.bf16 %v1047_v41, %v1041_v40  ;;  %v1046_v49 = vld [vmem:[%s16017_s5 + $0x510] sm:$0xff]  ;;  %v215_v50 = vld [vmem:[%s16015_s1 + $0x568] sm:$0xff] }
  0x90   :  { %v6162_v58 = vpack.c.bf16 %v161_v16, %v155_v53  ;;  %v1053_v52 = vld [vmem:[%s16017_s5 + $0x548] sm:$0xff]  ;;  %v1059_v53 = vld [vmem:[%s16017_s5 + $0x578] sm:$0xff] }
  0x91   :  { %6141 = vmatpush1.bf16.msra.mxu0 %v6140_v59  ;;  %v154_v59 = vld [vmem:[%s16015_s1 + $0x380] sm:$0xff] }
  0x92   :  { %6269 = vmatpush1.bf16.msra.mxu1 %v6268_v60  ;;  %6143 = vmatprep.subr.bf16.mxu0 %v6142_v61  ;;  %v160_v60 = vld [vmem:[%s16015_s1 + $0x3b0] sm:$0xff]  ;;  %v992_v61 = vld [vmem:[%s16017_s5 + $0x360] sm:$0xff] }
  0x93   :  { %6271 = vmatprep.subr.bf16.mxu1 %v6270_v1  ;;  %v173_v1 = vld [vmem:[%s16015_s1 + $0x418] sm:$0xff]  ;;  %v6164_v4 = vpack.c.bf16 %v160_v60, %v154_v59  ;;  %v6292_v5 = vpack.c.bf16 %v998_v63, %v992_v61  ;;  %v6310_v59 = vpack.c.bf16 %v1059_v53, %v1053_v52  ;;  %v1058_v60 = vld [vmem:[%s16017_s5 + $0x570] sm:$0xff]  ;;  %v227_v61 = vld [vmem:[%s16015_s1 + $0x5c8] sm:$0xff] }
  0x94   :  { %v6166_v6 = vpack.c.bf16 %v173_v1, %v167_v0  ;;  %v1065_v63 = vld [vmem:[%s16017_s5 + $0x5a8] sm:$0xff]  ;;  %v1071_v0 = vld [vmem:[%s16017_s5 + $0x5d8] sm:$0xff] }
  0x95   :  { %6145 = vmatpush1.bf16.msra.mxu0 %v6144_v7  ;;  %v166_v7 = vld [vmem:[%s16015_s1 + $0x3e0] sm:$0xff] }
  0x96   :  { %6273 = vmatpush1.bf16.msra.mxu1 %v6272_v8  ;;  %6147 = vmatprep.subr.bf16.mxu0 %v6146_v9  ;;  %v172_v8 = vld [vmem:[%s16015_s1 + $0x410] sm:$0xff]  ;;  %v1004_v9 = vld [vmem:[%s16017_s5 + $0x3c0] sm:$0xff] }
  0x97   :  { %6275 = vmatprep.subr.bf16.mxu1 %v6274_v13  ;;  %v185_v13 = vld [vmem:[%s16015_s1 + $0x478] sm:$0xff]  ;;  %v6168_v17 = vpack.c.bf16 %v172_v8, %v166_v7  ;;  %v6296_v18 = vpack.c.bf16 %v1010_v11, %v1004_v9  ;;  %v6314_v7 = vpack.c.bf16 %v1071_v0, %v1065_v63  ;;  %v1070_v8 = vld [vmem:[%s16017_s5 + $0x5d0] sm:$0xff]  ;;  %v239_v9 = vld [vmem:[%s16015_s1 + $0x628] sm:$0xff] }
  0x98   :  { %v6170_v19 = vpack.c.bf16 %v185_v13, %v179_v12  ;;  %v1077_v11 = vld [vmem:[%s16017_s5 + $0x608] sm:$0xff]  ;;  %v1083_v12 = vld [vmem:[%s16017_s5 + $0x638] sm:$0xff] }
  0x99   :  { %6149 = vmatpush1.bf16.msra.mxu0 %v6148_v20  ;;  %v178_v20 = vld [vmem:[%s16015_s1 + $0x440] sm:$0xff] }
  0x9a   :  { %6277 = vmatpush1.bf16.msra.mxu1 %v6276_v21  ;;  %6151 = vmatprep.subr.bf16.mxu0 %v6150_v22  ;;  %v184_v21 = vld [vmem:[%s16015_s1 + $0x470] sm:$0xff]  ;;  %v1016_v22 = vld [vmem:[%s16017_s5 + $0x420] sm:$0xff] }
  0x9b   :  { %6279 = vmatprep.subr.bf16.mxu1 %v6278_v27  ;;  %v197_v27 = vld [vmem:[%s16015_s1 + $0x4d8] sm:$0xff]  ;;  %v6172_v30 = vpack.c.bf16 %v184_v21, %v178_v20  ;;  %v6300_v31 = vpack.c.bf16 %v1022_v25, %v1016_v22  ;;  %v6318_v20 = vpack.c.bf16 %v1083_v12, %v1077_v11  ;;  %v1082_v21 = vld [vmem:[%s16017_s5 + $0x630] sm:$0xff]  ;;  %v251_v22 = vld [vmem:[%s16015_s1 + $0x688] sm:$0xff] }
  0x9c   :  { %v6174_v32 = vpack.c.bf16 %v197_v27, %v191_v26  ;;  %v1089_v25 = vld [vmem:[%s16017_s5 + $0x668] sm:$0xff]  ;;  %v1095_v26 = vld [vmem:[%s16017_s5 + $0x698] sm:$0xff] }
  0x9d   :  { %6153 = vmatpush1.bf16.msra.mxu0 %v6152_v33  ;;  %v190_v33 = vld [vmem:[%s16015_s1 + $0x4a0] sm:$0xff] }
  0x9e   :  { %6281 = vmatpush1.bf16.msra.mxu1 %v6280_v34  ;;  %6155 = vmatprep.subr.bf16.mxu0 %v6154_v35  ;;  %v196_v34 = vld [vmem:[%s16015_s1 + $0x4d0] sm:$0xff]  ;;  %v1028_v35 = vld [vmem:[%s16017_s5 + $0x480] sm:$0xff] }
  0x9f   :  { %6283 = vmatprep.subr.bf16.mxu1 %v6282_v39  ;;  %v209_v39 = vld [vmem:[%s16015_s1 + $0x538] sm:$0xff]  ;;  %v6176_v42 = vpack.c.bf16 %v196_v34, %v190_v33  ;;  %v6304_v43 = vpack.c.bf16 %v1034_v37, %v1028_v35  ;;  %v6322_v33 = vpack.c.bf16 %v1095_v26, %v1089_v25  ;;  %v1094_v34 = vld [vmem:[%s16017_s5 + $0x690] sm:$0xff]  ;;  %v263_v35 = vld [vmem:[%s16015_s1 + $0x6e8] sm:$0xff] }
  0xa0   :  { %v6178_v44 = vpack.c.bf16 %v209_v39, %v203_v38  ;;  %v8423_v37 = vld [vmem:[%s16016_s0] sm:$0xff]  ;;  %v1101_v38 = vld [vmem:[%s16017_s5 + $0x6c8] sm:$0xff]  ;;  %v1107_v39 = vld [vmem:[%s16017_s5 + $0x6f8] sm:$0xff] }
  0xa1   :  { %6157 = vmatpush1.bf16.msra.mxu0 %v6156_v45  ;;  %v202_v45 = vld [vmem:[%s16015_s1 + $0x500] sm:$0xff] }
  0xa2   :  { %6285 = vmatpush1.bf16.msra.mxu1 %v6284_v46  ;;  %6159 = vmatprep.subr.bf16.mxu0 %v6158_v47  ;;  %v208_v46 = vld [vmem:[%s16015_s1 + $0x530] sm:$0xff]  ;;  %v1040_v47 = vld [vmem:[%s16017_s5 + $0x4e0] sm:$0xff] }
  0xa3   :  { %6287 = vmatprep.subr.bf16.mxu1 %v6286_v51  ;;  %v221_v51 = vld [vmem:[%s16015_s1 + $0x598] sm:$0xff]  ;;  %v6180_v16 = vpack.c.bf16 %v208_v46, %v202_v45  ;;  %v6308_v54 = vpack.c.bf16 %v1046_v49, %v1040_v47  ;;  %v1100_v45 = vld [vmem:[%s16017_s5 + $0x6c0] sm:$0xff]  ;;  %v6326_v46 = vpack.c.bf16 %v1107_v39, %v1101_v38  ;;  %v1106_v47 = vld [vmem:[%s16017_s5 + $0x6f0] sm:$0xff] }
  0xa4   :  { %v6182_v55 = vpack.c.bf16 %v221_v51, %v215_v50  ;;  %v281_v49 = vld [vmem:[%s16015_s1 + $0x778] sm:$0xff]  ;;  %v1113_v50 = vld [vmem:[%s16017_s5 + $0x728] sm:$0xff]  ;;  %v6328_v53 = vpack.c.bf16 %v1106_v47, %v1100_v45  ;;  %v322_v39 = vld [vmem:[%s16015_s1 + $0x8c0] sm:$0xff] }
  0xa5   :  { %6161 = vmatpush1.bf16.msra.mxu0 %v6160_v56  ;;  %v214_v56 = vld [vmem:[%s16015_s1 + $0x560] sm:$0xff]  ;;  %v1119_v51 = vld [vmem:[%s16017_s5 + $0x758] sm:$0xff] }
  0xa6   :  { %6289 = vmatpush1.bf16.msra.mxu1 %v6288_v57  ;;  %6163 = vmatprep.subr.bf16.mxu0 %v6162_v58  ;;  %v220_v57 = vld [vmem:[%s16015_s1 + $0x590] sm:$0xff]  ;;  %v1052_v58 = vld [vmem:[%s16017_s5 + $0x540] sm:$0xff]  ;;  %v341_v45 = vld [vmem:[%s16015_s1 + $0x958] sm:$0xff] }
  0xa7   :  { %6291 = vmatprep.subr.bf16.mxu1 %v6290_v62  ;;  %v233_v62 = vld [vmem:[%s16015_s1 + $0x5f8] sm:$0xff]  ;;  %v6184_v1 = vpack.c.bf16 %v220_v57, %v214_v56  ;;  %v6312_v2 = vpack.c.bf16 %v1058_v60, %v1052_v58  ;;  %v1112_v56 = vld [vmem:[%s16017_s5 + $0x720] sm:$0xff]  ;;  %v1118_v57 = vld [vmem:[%s16017_s5 + $0x750] sm:$0xff] }
  0xa8   :  { %v6186_v3 = vpack.c.bf16 %v233_v62, %v227_v61  ;;  %v287_v58 = vld [vmem:[%s16015_s1 + $0x7a8] sm:$0xff]  ;;  %v1131_v61 = vld [vmem:[%s16017_s5 + $0x7b8] sm:$0xff]  ;;  %v6332_v63 = vpack.c.bf16 %v1118_v57, %v1112_v56 }
  0xa9   :  { %6165 = vmatpush1.bf16.msra.mxu0 %v6164_v4  ;;  %v226_v4 = vld [vmem:[%s16015_s1 + $0x5c0] sm:$0xff]  ;;  %v1125_v60 = vld [vmem:[%s16017_s5 + $0x788] sm:$0xff]  ;;  %v1179_v47 = vld [vmem:[%s16017_s5 + $0x938] sm:$0xff] }
  0xaa   :  { %6293 = vmatpush1.bf16.msra.mxu1 %v6292_v5  ;;  %6167 = vmatprep.subr.bf16.mxu0 %v6166_v6  ;;  %v232_v5 = vld [vmem:[%s16015_s1 + $0x5f0] sm:$0xff]  ;;  %v1064_v6 = vld [vmem:[%s16017_s5 + $0x5a0] sm:$0xff]  ;;  %v353_v56 = vld [vmem:[%s16015_s1 + $0x9b8] sm:$0xff] }
  0xab   :  { %6295 = vmatprep.subr.bf16.mxu1 %v6294_v10  ;;  %v245_v10 = vld [vmem:[%s16015_s1 + $0x658] sm:$0xff]  ;;  %v6188_v13 = vpack.c.bf16 %v232_v5, %v226_v4  ;;  %v6316_v14 = vpack.c.bf16 %v1070_v8, %v1064_v6  ;;  %v6334_v4 = vpack.c.bf16 %v1131_v61, %v1125_v60  ;;  %v1130_v5 = vld [vmem:[%s16017_s5 + $0x7b0] sm:$0xff]  ;;  %v299_v6 = vld [vmem:[%s16015_s1 + $0x808] sm:$0xff] }
  0xac   :  { %v6190_v15 = vpack.c.bf16 %v245_v10, %v239_v9  ;;  %v1137_v8 = vld [vmem:[%s16017_s5 + $0x7e8] sm:$0xff]  ;;  %v1143_v9 = vld [vmem:[%s16017_s5 + $0x818] sm:$0xff]  ;;  %v346_v61 = vld [vmem:[%s16015_s1 + $0x980] sm:$0xff] }
  0xad   :  { %6169 = vmatpush1.bf16.msra.mxu0 %v6168_v17  ;;  %v238_v17 = vld [vmem:[%s16015_s1 + $0x620] sm:$0xff]  ;;  %v1191_v57 = vld [vmem:[%s16017_s5 + $0x998] sm:$0xff] }
  0xae   :  { %6297 = vmatpush1.bf16.msra.mxu1 %v6296_v18  ;;  %6171 = vmatprep.subr.bf16.mxu0 %v6170_v19  ;;  %v244_v18 = vld [vmem:[%s16015_s1 + $0x650] sm:$0xff]  ;;  %v1076_v19 = vld [vmem:[%s16017_s5 + $0x600] sm:$0xff] }
  0xaf   :  { %6299 = vmatprep.subr.bf16.mxu1 %v6298_v23  ;;  %v257_v23 = vld [vmem:[%s16015_s1 + $0x6b8] sm:$0xff]  ;;  %v6192_v27 = vpack.c.bf16 %v244_v18, %v238_v17  ;;  %v6320_v28 = vpack.c.bf16 %v1082_v21, %v1076_v19  ;;  %v6338_v17 = vpack.c.bf16 %v1143_v9, %v1137_v8  ;;  %v1142_v18 = vld [vmem:[%s16017_s5 + $0x810] sm:$0xff]  ;;  %v311_v19 = vld [vmem:[%s16015_s1 + $0x868] sm:$0xff] }
  0xb0   :  { %v6194_v29 = vpack.c.bf16 %v257_v23, %v251_v22  ;;  %v1149_v21 = vld [vmem:[%s16017_s5 + $0x848] sm:$0xff]  ;;  %v1155_v22 = vld [vmem:[%s16017_s5 + $0x878] sm:$0xff]  ;;  %v358_v9 = vld [vmem:[%s16015_s1 + $0x9e0] sm:$0xff] }
  0xb1   :  { %6173 = vmatpush1.bf16.msra.mxu0 %v6172_v30  ;;  %v250_v30 = vld [vmem:[%s16015_s1 + $0x680] sm:$0xff] }
  0xb2   :  { %6301 = vmatpush1.bf16.msra.mxu1 %v6300_v31  ;;  %6175 = vmatprep.subr.bf16.mxu0 %v6174_v32  ;;  %v256_v31 = vld [vmem:[%s16015_s1 + $0x6b0] sm:$0xff]  ;;  %v1088_v32 = vld [vmem:[%s16017_s5 + $0x660] sm:$0xff] }
  0xb3   :  { %6303 = vmatprep.subr.bf16.mxu1 %v6302_v36  ;;  %v269_v36 = vld [vmem:[%s16015_s1 + $0x718] sm:$0xff]  ;;  %v6196_v40 = vpack.c.bf16 %v256_v31, %v250_v30  ;;  %v6324_v41 = vpack.c.bf16 %v1094_v34, %v1088_v32  ;;  %v6342_v30 = vpack.c.bf16 %v1155_v22, %v1149_v21  ;;  %v1154_v31 = vld [vmem:[%s16017_s5 + $0x870] sm:$0xff]  ;;  %v323_v32 = vld [vmem:[%s16015_s1 + $0x8c8] sm:$0xff] }
  0xb4   :  { %v1161_v34 = vld [vmem:[%s16017_s5 + $0x8a8] sm:$0xff]  ;;  %v370_v22 = vld [vmem:[%s16015_s1 + $0xa40] sm:$0xff] }
  0xb5   :  { %6177 = vmatpush1.bf16.msra.mxu0 %v6176_v42  ;;  %v6198_v42 = vpack.c.bf16 %v269_v36, %v263_v35  ;;  %v1167_v35 = vld [vmem:[%s16017_s5 + $0x8d8] sm:$0xff] }
  0xb6   :  { %6305 = vmatpush1.bf16.msra.mxu1 %v6304_v43  ;;  %6179 = vmatprep.subr.bf16.mxu0 %v6178_v44  ;;  %v262_v43 = vld [vmem:[%s16015_s1 + $0x6e0] sm:$0xff]  ;;  %v268_v44 = vld [vmem:[%s16015_s1 + $0x710] sm:$0xff] }
  0xb7   :  { %6307 = vmatprep.subr.bf16.mxu1 %v6306_v48  ;;  %v275_v48 = vld [vmem:[%s16015_s1 + $0x748] sm:$0xff]  ;;  %v6200_v52 = vpack.c.bf16 %v268_v44, %v262_v43  ;;  %v1166_v43 = vld [vmem:[%s16017_s5 + $0x8d0] sm:$0xff] }
  0xb8   :  { %v335_v44 = vld [vmem:[%s16015_s1 + $0x928] sm:$0xff] }
  0xb9   :  { %6181 = vmatpush1.bf16.msra.mxu0 %v6180_v16  ;;  %v6202_v16 = vpack.c.bf16 %v281_v49, %v275_v48 }
  0xba   :  { %6309 = vmatpush1.bf16.msra.mxu1 %v6308_v54  ;;  %6183 = vmatprep.subr.bf16.mxu0 %v6182_v55  ;;  %v274_v54 = vld [vmem:[%s16015_s1 + $0x740] sm:$0xff]  ;;  %v280_v55 = vld [vmem:[%s16015_s1 + $0x770] sm:$0xff] }
  0xbb   :  { %6311 = vmatprep.subr.bf16.mxu1 %v6310_v59  ;;  %v293_v59 = vld [vmem:[%s16015_s1 + $0x7d8] sm:$0xff]  ;;  %v6204_v62 = vpack.c.bf16 %v280_v55, %v274_v54  ;;  %v1178_v54 = vld [vmem:[%s16017_s5 + $0x930] sm:$0xff]  ;;  %v347_v55 = vld [vmem:[%s16015_s1 + $0x988] sm:$0xff] }
  0xbc   :  { %v6206_v0 = vpack.c.bf16 %v293_v59, %v287_v58  ;;  %v6226_v60 = vpack.c.bf16 %v353_v56, %v347_v55 }
  0xbd   :  { %6185 = vmatpush1.bf16.msra.mxu0 %v6184_v1  ;;  %v286_v1 = vld [vmem:[%s16015_s1 + $0x7a0] sm:$0xff] }
  0xbe   :  { %6313 = vmatpush1.bf16.msra.mxu1 %v6312_v2  ;;  %6187 = vmatprep.subr.bf16.mxu0 %v6186_v3  ;;  %v292_v2 = vld [vmem:[%s16015_s1 + $0x7d0] sm:$0xff]  ;;  %v1124_v3 = vld [vmem:[%s16017_s5 + $0x780] sm:$0xff] }
  0xbf   :  { %6315 = vmatprep.subr.bf16.mxu1 %v6314_v7  ;;  %v305_v7 = vld [vmem:[%s16015_s1 + $0x838] sm:$0xff]  ;;  %v6208_v10 = vpack.c.bf16 %v292_v2, %v286_v1  ;;  %v6336_v11 = vpack.c.bf16 %v1130_v5, %v1124_v3  ;;  %v1190_v1 = vld [vmem:[%s16017_s5 + $0x990] sm:$0xff]  ;;  %v359_v2 = vld [vmem:[%s16015_s1 + $0x9e8] sm:$0xff] }
  0xc0   :  { %v6210_v12 = vpack.c.bf16 %v305_v7, %v299_v6  ;;  %v365_v3 = vld [vmem:[%s16015_s1 + $0xa18] sm:$0xff] }
  0xc1   :  { %6189 = vmatpush1.bf16.msra.mxu0 %v6188_v13  ;;  %v298_v13 = vld [vmem:[%s16015_s1 + $0x800] sm:$0xff]  ;;  %v1203_v5 = vld [vmem:[%s16017_s5 + $0x9f8] sm:$0xff]  ;;  %v6230_v8 = vpack.c.bf16 %v365_v3, %v359_v2 }
  0xc2   :  { %6317 = vmatpush1.bf16.msra.mxu1 %v6316_v14  ;;  %6191 = vmatprep.subr.bf16.mxu0 %v6190_v15  ;;  %v304_v14 = vld [vmem:[%s16015_s1 + $0x830] sm:$0xff]  ;;  %v1136_v15 = vld [vmem:[%s16017_s5 + $0x7e0] sm:$0xff] }
  0xc3   :  { %6319 = vmatprep.subr.bf16.mxu1 %v6318_v20  ;;  %v317_v20 = vld [vmem:[%s16015_s1 + $0x898] sm:$0xff]  ;;  %v6212_v23 = vpack.c.bf16 %v304_v14, %v298_v13  ;;  %v6340_v25 = vpack.c.bf16 %v1142_v18, %v1136_v15  ;;  %v1202_v13 = vld [vmem:[%s16017_s5 + $0x9f0] sm:$0xff]  ;;  %v371_v14 = vld [vmem:[%s16015_s1 + $0xa48] sm:$0xff] }
  0xc4   :  { %807 = vmatmul.mubr.f32.vlgmr.msra.gmra.mrb[2].mxu0 %v8423_v37  ;;  %v6214_v26 = vpack.c.bf16 %v317_v20, %v311_v19  ;;  %v377_v15 = vld [vmem:[%s16015_s1 + $0xa78] sm:$0xff] }
  0xc5   :  { %6193 = vmatpush1.bf16.msra.mxu0 %v6192_v27  ;;  %1365 = vmatmul.mubr.f32.vlgmr.msra.gmra.mrb[2].mxu1 %v8423_v37  ;;  %v310_v27 = vld [vmem:[%s16015_s1 + $0x860] sm:$0xff]  ;;  %v1215_v18 = vld [vmem:[%s16017_s5 + $0xa58] sm:$0xff]  ;;  %v6234_v21 = vpack.c.bf16 %v377_v15, %v371_v14 }
  0xc6   :  { %6321 = vmatpush1.bf16.msra.mxu1 %v6320_v28  ;;  %6195 = vmatprep.subr.bf16.mxu0 %v6194_v29  ;;  %v316_v28 = vld [vmem:[%s16015_s1 + $0x890] sm:$0xff]  ;;  %v1148_v29 = vld [vmem:[%s16017_s5 + $0x840] sm:$0xff] }
  0xc7   :  { %6323 = vmatprep.subr.bf16.mxu1 %v6322_v33  ;;  %877 = vmatprep.mubr.f32.mxu0 %v9061_v24  ;;  %v329_v33 = vld [vmem:[%s16015_s1 + $0x8f8] sm:$0xff]  ;;  %v6216_v36 = vpack.c.bf16 %v316_v28, %v310_v27  ;;  %v6344_v37 = vpack.c.bf16 %v1154_v31, %v1148_v29  ;;  %v1214_v27 = vld [vmem:[%s16017_s5 + $0xa50] sm:$0xff]  ;;  %v383_v28 = vld [vmem:[%s16015_s1 + $0xaa8] sm:$0xff] }
  0xc8   :  { %1435 = vmatprep.mubr.f32.mxu1 %v9061_v24  ;;  %v6330_v24 = vpack.c.bf16 %v1119_v51, %v1113_v50  ;;  %v6218_v38 = vpack.c.bf16 %v329_v33, %v323_v32  ;;  %v6222_v50 = vpack.c.bf16 %v341_v45, %v335_v44  ;;  %v334_v51 = vld [vmem:[%s16015_s1 + $0x920] sm:$0xff]  ;;  %v389_v29 = vld [vmem:[%s16015_s1 + $0xad8] sm:$0xff] }
  0xc9   :  { %6197 = vmatpush1.bf16.msra.mxu0 %v6196_v40  ;;  %v328_v40 = vld [vmem:[%s16015_s1 + $0x8f0] sm:$0xff]  ;;  %v1227_v31 = vld [vmem:[%s16017_s5 + $0xab8] sm:$0xff] }
  0xca   :  { %6325 = vmatpush1.bf16.msra.mxu1 %v6324_v41  ;;  %6199 = vmatprep.subr.bf16.mxu0 %v6198_v42  ;;  %v1160_v41 = vld [vmem:[%s16017_s5 + $0x8a0] sm:$0xff]  ;;  %v6346_v42 = vpack.c.bf16 %v1167_v35, %v1161_v34  ;;  %v6220_v48 = vpack.c.bf16 %v328_v40, %v322_v39  ;;  %v6238_v34 = vpack.c.bf16 %v389_v29, %v383_v28  ;;  %v1226_v39 = vld [vmem:[%s16017_s5 + $0xab0] sm:$0xff]  ;;  %v395_v40 = vld [vmem:[%s16015_s1 + $0xb08] sm:$0xff] }
  0xcb   :  { %6327 = vmatprep.subr.bf16.mxu1 %v6326_v46  ;;  %v1173_v46 = vld [vmem:[%s16017_s5 + $0x908] sm:$0xff]  ;;  %v6348_v49 = vpack.c.bf16 %v1166_v43, %v1160_v41  ;;  %v382_v35 = vld [vmem:[%s16015_s1 + $0xaa0] sm:$0xff]  ;;  %v401_v41 = vld [vmem:[%s16015_s1 + $0xb38] sm:$0xff] }
  0xcc   :  { %v1239_v43 = vld [vmem:[%s16017_s5 + $0xb18] sm:$0xff] }
  0xcd   :  { %6201 = vmatpush1.bf16.msra.mxu0 %v6200_v52  ;;  %v340_v52 = vld [vmem:[%s16015_s1 + $0x950] sm:$0xff] }
  0xce   :  { %6329 = vmatpush1.bf16.msra.mxu1 %v6328_v53  ;;  %6203 = vmatprep.subr.bf16.mxu0 %v6202_v16  ;;  %v1172_v53 = vld [vmem:[%s16017_s5 + $0x900] sm:$0xff]  ;;  %v6350_v16 = vpack.c.bf16 %v1179_v47, %v1173_v46  ;;  %v6224_v58 = vpack.c.bf16 %v340_v52, %v334_v51  ;;  %v6242_v46 = vpack.c.bf16 %v401_v41, %v395_v40  ;;  %v1238_v51 = vld [vmem:[%s16017_s5 + $0xb10] sm:$0xff]  ;;  %v407_v52 = vld [vmem:[%s16015_s1 + $0xb68] sm:$0xff] }
  0xcf   :  { %6331 = vmatprep.subr.bf16.mxu1 %v6330_v24  ;;  %v1185_v24 = vld [vmem:[%s16017_s5 + $0x968] sm:$0xff]  ;;  %v6352_v59 = vpack.c.bf16 %v1178_v54, %v1172_v53  ;;  %v394_v47 = vld [vmem:[%s16015_s1 + $0xb00] sm:$0xff]  ;;  %v413_v53 = vld [vmem:[%s16015_s1 + $0xb98] sm:$0xff] }
  0xd0   :  { %v1251_v54 = vld [vmem:[%s16017_s5 + $0xb78] sm:$0xff] }
  0xd1   :  { %6205 = vmatpush1.bf16.msra.mxu0 %v6204_v62  ;;  %v352_v62 = vld [vmem:[%s16015_s1 + $0x9b0] sm:$0xff]  ;;  %v919_v40 = vld [vmem:[%s16017_s5 + $0x118] sm:$0xff] }
  0xd2   :  { %6333 = vmatpush1.bf16.msra.mxu1 %v6332_v63  ;;  %6207 = vmatprep.subr.bf16.mxu0 %v6206_v0  ;;  %v1184_v63 = vld [vmem:[%s16017_s5 + $0x960] sm:$0xff]  ;;  %v6354_v0 = vpack.c.bf16 %v1191_v57, %v1185_v24  ;;  %v6228_v6 = vpack.c.bf16 %v352_v62, %v346_v61  ;;  %v6246_v24 = vpack.c.bf16 %v413_v53, %v407_v52  ;;  %v1250_v61 = vld [vmem:[%s16017_s5 + $0xb70] sm:$0xff]  ;;  %v419_v62 = vld [vmem:[%s16015_s1 + $0xbc8] sm:$0xff] }
  0xd3   :  { %6335 = vmatprep.subr.bf16.mxu1 %v6334_v4  ;;  %v1197_v4 = vld [vmem:[%s16017_s5 + $0x9c8] sm:$0xff]  ;;  %v6356_v7 = vpack.c.bf16 %v1190_v1, %v1184_v63  ;;  %v406_v57 = vld [vmem:[%s16015_s1 + $0xb60] sm:$0xff]  ;;  %v425_v63 = vld [vmem:[%s16015_s1 + $0xbf8] sm:$0xff] }
  0xd4   :  { %v1263_v1 = vld [vmem:[%s16017_s5 + $0xbd8] sm:$0xff]  ;;  %v925_v52 = vld [vmem:[%s16017_s5 + $0x148] sm:$0xff] }
  0xd5   :  { %6209 = vmatpush1.bf16.msra.mxu0 %v6208_v10  ;;  %v364_v10 = vld [vmem:[%s16015_s1 + $0xa10] sm:$0xff]  ;;  %v931_v53 = vld [vmem:[%s16017_s5 + $0x178] sm:$0xff] }
  0xd6   :  { %6337 = vmatpush1.bf16.msra.mxu1 %v6336_v11  ;;  %6211 = vmatprep.subr.bf16.mxu0 %v6210_v12  ;;  %v1196_v11 = vld [vmem:[%s16017_s5 + $0x9c0] sm:$0xff]  ;;  %v6358_v12 = vpack.c.bf16 %v1203_v5, %v1197_v4  ;;  %v6232_v19 = vpack.c.bf16 %v364_v10, %v358_v9  ;;  %v6250_v4 = vpack.c.bf16 %v425_v63, %v419_v62  ;;  %v1262_v9 = vld [vmem:[%s16017_s5 + $0xbd0] sm:$0xff]  ;;  %v887_v10 = vld [vmem:[%s16017_s5 + $0x18] sm:$0xff] }
  0xd7   :  { %6339 = vmatprep.subr.bf16.mxu1 %v6338_v17  ;;  %v1209_v17 = vld [vmem:[%s16017_s5 + $0xa28] sm:$0xff]  ;;  %v6360_v20 = vpack.c.bf16 %v1202_v13, %v1196_v11  ;;  %v418_v5 = vld [vmem:[%s16015_s1 + $0xbc0] sm:$0xff]  ;;  %v895_v13 = vld [vmem:[%s16017_s5 + $0x58] sm:$0xff] }
  0xd8   :  { %v893_v11 = vld [vmem:[%s16017_s5 + $0x48] sm:$0xff]  ;;  %v943_v63 = vld [vmem:[%s16017_s5 + $0x1d8] sm:$0xff] }
  0xd9   :  { %6213 = vmatpush1.bf16.msra.mxu0 %v6212_v23  ;;  %v376_v23 = vld [vmem:[%s16015_s1 + $0xa70] sm:$0xff]  ;;  %v937_v62 = vld [vmem:[%s16017_s5 + $0x1a8] sm:$0xff] }
  0xda   :  { %6341 = vmatpush1.bf16.msra.mxu1 %v6340_v25  ;;  %6215 = vmatprep.subr.bf16.mxu0 %v6214_v26  ;;  %v1208_v25 = vld [vmem:[%s16017_s5 + $0xa20] sm:$0xff]  ;;  %v6362_v26 = vpack.c.bf16 %v1215_v18, %v1209_v17  ;;  %v6236_v32 = vpack.c.bf16 %v376_v23, %v370_v22  ;;  %v6382_v17 = vpack.c.bf16 %v893_v11, %v887_v10  ;;  %v886_v18 = vld [vmem:[%s16017_s5 + $0x10] sm:$0xff]  ;;  %v899_v23 = vld [vmem:[%s16017_s5 + $0x78] sm:$0xff] }
  0xdb   :  { %6343 = vmatprep.subr.bf16.mxu1 %v6342_v30  ;;  %v1221_v30 = vld [vmem:[%s16017_s5 + $0xa88] sm:$0xff]  ;;  %v6364_v33 = vpack.c.bf16 %v1214_v27, %v1208_v25  ;;  %v894_v22 = vld [vmem:[%s16017_s5 + $0x50] sm:$0xff]  ;;  %v907_v27 = vld [vmem:[%s16017_s5 + $0xb8] sm:$0xff] }
  0xdc   :  { %v905_v25 = vld [vmem:[%s16017_s5 + $0xa8] sm:$0xff]  ;;  %v955_v11 = vld [vmem:[%s16017_s5 + $0x238] sm:$0xff] }
  0xdd   :  { %6217 = vmatpush1.bf16.msra.mxu0 %v6216_v36  ;;  %v388_v36 = vld [vmem:[%s16015_s1 + $0xad0] sm:$0xff]  ;;  %v949_v10 = vld [vmem:[%s16017_s5 + $0x208] sm:$0xff] }
  0xde   :  { %6345 = vmatpush1.bf16.msra.mxu1 %v6344_v37  ;;  %6219 = vmatprep.subr.bf16.mxu0 %v6218_v38  ;;  %v1220_v37 = vld [vmem:[%s16017_s5 + $0xa80] sm:$0xff]  ;;  %v6366_v38 = vpack.c.bf16 %v1227_v31, %v1221_v30  ;;  %v6240_v44 = vpack.c.bf16 %v388_v36, %v382_v35  ;;  %v6386_v30 = vpack.c.bf16 %v905_v25, %v899_v23  ;;  %v898_v31 = vld [vmem:[%s16017_s5 + $0x70] sm:$0xff]  ;;  %v911_v36 = vld [vmem:[%s16017_s5 + $0xd8] sm:$0xff] }
  0xdf   :  { %6347 = vmatprep.subr.bf16.mxu1 %v6346_v42  ;;  %v1233_v42 = vld [vmem:[%s16017_s5 + $0xae8] sm:$0xff]  ;;  %v6368_v45 = vpack.c.bf16 %v1226_v39, %v1220_v37  ;;  %v906_v35 = vld [vmem:[%s16017_s5 + $0xb0] sm:$0xff]  ;;  %v967_v25 = vld [vmem:[%s16017_s5 + $0x298] sm:$0xff] }
  0xe0   :  { %v917_v37 = vld [vmem:[%s16017_s5 + $0x108] sm:$0xff] }
  0xe1   :  { %6221 = vmatpush1.bf16.msra.mxu0 %v6220_v48  ;;  %v400_v48 = vld [vmem:[%s16015_s1 + $0xb30] sm:$0xff]  ;;  %v913_v39 = vld [vmem:[%s16017_s5 + $0xe8] sm:$0xff] }
  0xe2   :  { %6349 = vmatpush1.bf16.msra.mxu1 %v6348_v49  ;;  %6223 = vmatprep.subr.bf16.mxu0 %v6222_v50  ;;  %v1232_v49 = vld [vmem:[%s16017_s5 + $0xae0] sm:$0xff]  ;;  %v6370_v50 = vpack.c.bf16 %v1239_v43, %v1233_v42  ;;  %v6244_v55 = vpack.c.bf16 %v400_v48, %v394_v47  ;;  %v6390_v43 = vpack.c.bf16 %v917_v37, %v911_v36  ;;  %v918_v48 = vld [vmem:[%s16017_s5 + $0x110] sm:$0xff]  ;;  %v961_v23 = vld [vmem:[%s16017_s5 + $0x268] sm:$0xff] }
  0xe3   :  { %6351 = vmatprep.subr.bf16.mxu1 %v6350_v16  ;;  %v1245_v16 = vld [vmem:[%s16017_s5 + $0xb48] sm:$0xff]  ;;  %v6372_v56 = vpack.c.bf16 %v1238_v51, %v1232_v49  ;;  %v6518_v47 = vpack.c.bf16 %v919_v40, %v913_v39  ;;  %v923_v49 = vld [vmem:[%s16017_s5 + $0x138] sm:$0xff] }
  0xe4   :  { %v8425_v51 = vld [vmem:[%s16016_s0 + $0x8] sm:$0xff]  ;;  %v979_v37 = vld [vmem:[%s16017_s5 + $0x2f8] sm:$0xff] }
  0xe5   :  { %6225 = vmatpush1.bf16.msra.mxu0 %v6224_v58  ;;  %v412_v58 = vld [vmem:[%s16015_s1 + $0xb90] sm:$0xff]  ;;  %v973_v36 = vld [vmem:[%s16017_s5 + $0x2c8] sm:$0xff] }
  0xe6   :  { %6353 = vmatpush1.bf16.msra.mxu1 %v6352_v59  ;;  %6227 = vmatprep.subr.bf16.mxu0 %v6226_v60  ;;  %v1244_v59 = vld [vmem:[%s16017_s5 + $0xb40] sm:$0xff]  ;;  %v6374_v60 = vpack.c.bf16 %v1251_v54, %v1245_v16  ;;  %v6248_v2 = vpack.c.bf16 %v412_v58, %v406_v57  ;;  %v6522_v58 = vpack.c.bf16 %v931_v53, %v925_v52  ;;  %v982_v53 = vld [vmem:[%s16017_s5 + $0x310] sm:$0xff] }
  0xe7   :  { %6355 = vmatprep.subr.bf16.mxu1 %v6354_v0  ;;  %v1257_v0 = vld [vmem:[%s16017_s5 + $0xba8] sm:$0xff]  ;;  %v6376_v3 = vpack.c.bf16 %v1250_v61, %v1244_v59  ;;  %v924_v57 = vld [vmem:[%s16017_s5 + $0x140] sm:$0xff]  ;;  %v930_v59 = vld [vmem:[%s16017_s5 + $0x170] sm:$0xff] }
  0xe8   :  { %v941_v61 = vld [vmem:[%s16017_s5 + $0x1c8] sm:$0xff] }
  0xe9   :  { %6229 = vmatpush1.bf16.msra.mxu0 %v6228_v6  ;;  %v424_v6 = vld [vmem:[%s16015_s1 + $0xbf0] sm:$0xff] }
  0xea   :  { %6357 = vmatpush1.bf16.msra.mxu1 %v6356_v7  ;;  %6231 = vmatprep.subr.bf16.mxu0 %v6230_v8  ;;  %v1256_v7 = vld [vmem:[%s16017_s5 + $0xba0] sm:$0xff]  ;;  %v6378_v8 = vpack.c.bf16 %v1263_v1, %v1257_v0  ;;  %v6252_v14 = vpack.c.bf16 %v424_v6, %v418_v5  ;;  %v6524_v1 = vpack.c.bf16 %v930_v59, %v924_v57  ;;  %v1001_v57 = vld [vmem:[%s16017_s5 + $0x3a8] sm:$0xff]  ;;  %v1003_v59 = vld [vmem:[%s16017_s5 + $0x3b8] sm:$0xff] }
  0xeb   :  { %6359 = vmatprep.subr.bf16.mxu1 %v6358_v12  ;;  %v889_v12 = vld [vmem:[%s16017_s5 + $0x28] sm:$0xff]  ;;  %v6380_v15 = vpack.c.bf16 %v1262_v9, %v1256_v7  ;;  %v936_v5 = vld [vmem:[%s16017_s5 + $0x1a0] sm:$0xff]  ;;  %v6526_v6 = vpack.c.bf16 %v943_v63, %v937_v62  ;;  %v942_v7 = vld [vmem:[%s16017_s5 + $0x1d0] sm:$0xff] }
  0xec   :  { %v953_v9 = vld [vmem:[%s16017_s5 + $0x228] sm:$0xff]  ;;  %v994_v63 = vld [vmem:[%s16017_s5 + $0x370] sm:$0xff] }
  0xed   :  { %6233 = vmatpush1.bf16.msra.mxu0 %v6232_v19  ;;  %v892_v19 = vld [vmem:[%s16017_s5 + $0x40] sm:$0xff] }
  0xee   :  { %6361 = vmatpush1.bf16.msra.mxu1 %v6360_v20  ;;  %6235 = vmatprep.subr.bf16.mxu0 %v6234_v21  ;;  %v888_v20 = vld [vmem:[%s16017_s5 + $0x20] sm:$0xff]  ;;  %v6510_v21 = vpack.c.bf16 %v895_v13, %v889_v12  ;;  %v6384_v28 = vpack.c.bf16 %v892_v19, %v886_v18  ;;  %v6528_v13 = vpack.c.bf16 %v942_v7, %v936_v5  ;;  %v1013_v5 = vld [vmem:[%s16017_s5 + $0x408] sm:$0xff]  ;;  %v1015_v7 = vld [vmem:[%s16017_s5 + $0x418] sm:$0xff] }
  0xef   :  { %6363 = vmatprep.subr.bf16.mxu1 %v6362_v26  ;;  %v901_v26 = vld [vmem:[%s16017_s5 + $0x88] sm:$0xff]  ;;  %v6512_v29 = vpack.c.bf16 %v894_v22, %v888_v20  ;;  %v948_v18 = vld [vmem:[%s16017_s5 + $0x200] sm:$0xff]  ;;  %v6530_v19 = vpack.c.bf16 %v955_v11, %v949_v10  ;;  %v954_v20 = vld [vmem:[%s16017_s5 + $0x230] sm:$0xff] }
  0xf0   :  { %v965_v22 = vld [vmem:[%s16017_s5 + $0x288] sm:$0xff]  ;;  %v1006_v11 = vld [vmem:[%s16017_s5 + $0x3d0] sm:$0xff] }
  0xf1   :  { %6237 = vmatpush1.bf16.msra.mxu0 %v6236_v32  ;;  %v904_v32 = vld [vmem:[%s16017_s5 + $0xa0] sm:$0xff] }
  0xf2   :  { %6365 = vmatpush1.bf16.msra.mxu1 %v6364_v33  ;;  %6239 = vmatprep.subr.bf16.mxu0 %v6238_v34  ;;  %v900_v33 = vld [vmem:[%s16017_s5 + $0x80] sm:$0xff]  ;;  %v6514_v34 = vpack.c.bf16 %v907_v27, %v901_v26  ;;  %v6388_v41 = vpack.c.bf16 %v904_v32, %v898_v31  ;;  %v6532_v27 = vpack.c.bf16 %v954_v20, %v948_v18  ;;  %v1025_v18 = vld [vmem:[%s16017_s5 + $0x468] sm:$0xff]  ;;  %v1027_v20 = vld [vmem:[%s16017_s5 + $0x478] sm:$0xff] }
  0xf3   :  { %6367 = vmatprep.subr.bf16.mxu1 %v6366_v38  ;;  %v8424_v38 = vld [vmem:[%s16016_s0 + $0x10] sm:$0xff]  ;;  %v6516_v42 = vpack.c.bf16 %v906_v35, %v900_v33  ;;  %v960_v31 = vld [vmem:[%s16017_s5 + $0x260] sm:$0xff]  ;;  %v6534_v32 = vpack.c.bf16 %v967_v25, %v961_v23  ;;  %v977_v35 = vld [vmem:[%s16017_s5 + $0x2e8] sm:$0xff] }
  0xf4   :  { %v966_v33 = vld [vmem:[%s16017_s5 + $0x290] sm:$0xff] }
  0xf5   :  { %6241 = vmatpush1.bf16.msra.mxu0 %v6240_v44  ;;  %v910_v44 = vld [vmem:[%s16017_s5 + $0xd0] sm:$0xff]  ;;  %v6536_v39 = vpack.c.bf16 %v966_v33, %v960_v31  ;;  %v1037_v31 = vld [vmem:[%s16017_s5 + $0x4c8] sm:$0xff]  ;;  %v1039_v33 = vld [vmem:[%s16017_s5 + $0x4d8] sm:$0xff] }
  0xf6   :  { %6369 = vmatpush1.bf16.msra.mxu1 %v6368_v45  ;;  %6243 = vmatprep.subr.bf16.mxu0 %v6242_v46  ;;  %v916_v45 = vld [vmem:[%s16017_s5 + $0x100] sm:$0xff]  ;;  %v1018_v25 = vld [vmem:[%s16017_s5 + $0x430] sm:$0xff] }
  0xf7   :  { %6371 = vmatprep.subr.bf16.mxu1 %v6370_v50  ;;  %v912_v46 = vld [vmem:[%s16017_s5 + $0xe0] sm:$0xff]  ;;  %v929_v50 = vld [vmem:[%s16017_s5 + $0x168] sm:$0xff]  ;;  %v6392_v16 = vpack.c.bf16 %v916_v45, %v910_v44  ;;  %v6538_v44 = vpack.c.bf16 %v979_v37, %v973_v36  ;;  %v978_v45 = vld [vmem:[%s16017_s5 + $0x2f0] sm:$0xff] }
  0xf8   :  { %v6520_v54 = vpack.c.bf16 %v918_v48, %v912_v46  ;;  %v983_v46 = vld [vmem:[%s16017_s5 + $0x318] sm:$0xff]  ;;  %v985_v48 = vld [vmem:[%s16017_s5 + $0x328] sm:$0xff]  ;;  %v1030_v37 = vld [vmem:[%s16017_s5 + $0x490] sm:$0xff] }
  0xf9   :  { %6245 = vmatpush1.bf16.msra.mxu0 %v6244_v55  ;;  %v6394_v55 = vpack.c.bf16 %v929_v50, %v923_v49  ;;  %v991_v49 = vld [vmem:[%s16017_s5 + $0x358] sm:$0xff] }
  0xfa   :  { %6373 = vmatpush1.bf16.msra.mxu1 %v6372_v56  ;;  %6247 = vmatprep.subr.bf16.mxu0 %v6246_v24  ;;  %v922_v56 = vld [vmem:[%s16017_s5 + $0x130] sm:$0xff]  ;;  %v928_v24 = vld [vmem:[%s16017_s5 + $0x160] sm:$0xff] }
  0xfb   :  { %6375 = vmatprep.subr.bf16.mxu1 %v6374_v60  ;;  %v935_v60 = vld [vmem:[%s16017_s5 + $0x198] sm:$0xff]  ;;  %v6396_v0 = vpack.c.bf16 %v928_v24, %v922_v56  ;;  %v990_v56 = vld [vmem:[%s16017_s5 + $0x350] sm:$0xff] }
  0xfc   :  { %v995_v24 = vld [vmem:[%s16017_s5 + $0x378] sm:$0xff] }
  0xfd   :  { %6249 = vmatpush1.bf16.msra.mxu0 %v6248_v2  ;;  %v6398_v2 = vpack.c.bf16 %v941_v61, %v935_v60  ;;  %v6418_v62 = vpack.c.bf16 %v1001_v57, %v995_v24 }
  0xfe   :  { %6377 = vmatpush1.bf16.msra.mxu1 %v6376_v3  ;;  %6251 = vmatprep.subr.bf16.mxu0 %v6250_v4  ;;  %v934_v3 = vld [vmem:[%s16017_s5 + $0x190] sm:$0xff]  ;;  %v940_v4 = vld [vmem:[%s16017_s5 + $0x1c0] sm:$0xff] }
  0xff   :  { %6379 = vmatprep.subr.bf16.mxu1 %v6378_v8  ;;  %v947_v8 = vld [vmem:[%s16017_s5 + $0x1f8] sm:$0xff]  ;;  %v6400_v12 = vpack.c.bf16 %v940_v4, %v934_v3  ;;  %v1002_v3 = vld [vmem:[%s16017_s5 + $0x3b0] sm:$0xff] }
 0x100   :  { %v1007_v4 = vld [vmem:[%s16017_s5 + $0x3d8] sm:$0xff] }
 0x101   :  { %6253 = vmatpush1.bf16.msra.mxu0 %v6252_v14  ;;  %v6402_v14 = vpack.c.bf16 %v953_v9, %v947_v8  ;;  %v6422_v10 = vpack.c.bf16 %v1013_v5, %v1007_v4 }
 0x102   :  { %6381 = vmatpush1.bf16.msra.mxu1 %v6380_v15  ;;  %6383 = vmatprep.subr.bf16.mxu0 %v6382_v17  ;;  %v946_v15 = vld [vmem:[%s16017_s5 + $0x1f0] sm:$0xff]  ;;  %v952_v17 = vld [vmem:[%s16017_s5 + $0x220] sm:$0xff] }
 0x103   :  { %6511 = vmatprep.subr.bf16.mxu1 %v6510_v21  ;;  %v959_v21 = vld [vmem:[%s16017_s5 + $0x258] sm:$0xff]  ;;  %v6404_v26 = vpack.c.bf16 %v952_v17, %v946_v15  ;;  %v1014_v15 = vld [vmem:[%s16017_s5 + $0x410] sm:$0xff] }
 0x104   :  { %878 = vmatmul.mubr.f32.vlgmr.msra.gmra.mrb[2].mxu0 %v8424_v38  ;;  %v1019_v17 = vld [vmem:[%s16017_s5 + $0x438] sm:$0xff] }
 0x105   :  { %1436 = vmatmul.mubr.f32.vlgmr.msra.gmra.mrb[2].mxu1 %v8424_v38  ;;  %6385 = vmatpush1.bf16.msra.mxu0 %v6384_v28  ;;  %v6406_v28 = vpack.c.bf16 %v965_v22, %v959_v21  ;;  %v6426_v23 = vpack.c.bf16 %v1025_v18, %v1019_v17 }
 0x106   :  { %6513 = vmatpush1.bf16.msra.mxu1 %v6512_v29  ;;  %6387 = vmatprep.subr.bf16.mxu0 %v6386_v30  ;;  %v958_v29 = vld [vmem:[%s16017_s5 + $0x250] sm:$0xff]  ;;  %v964_v30 = vld [vmem:[%s16017_s5 + $0x280] sm:$0xff] }
 0x107   :  { %6515 = vmatprep.subr.bf16.mxu1 %v6514_v34  ;;  %1506 = vmatprep.mubr.f32.mxu0 %v8425_v51  ;;  %v971_v34 = vld [vmem:[%s16017_s5 + $0x2b8] sm:$0xff]  ;;  %v6408_v38 = vpack.c.bf16 %v964_v30, %v958_v29  ;;  %v1026_v29 = vld [vmem:[%s16017_s5 + $0x470] sm:$0xff] }
 0x108   :  { %1648 = vmatprep.mubr.f32.mxu1 %v8425_v51  ;;  %v6410_v40 = vpack.c.bf16 %v977_v35, %v971_v34  ;;  %v1031_v30 = vld [vmem:[%s16017_s5 + $0x498] sm:$0xff] }
 0x109   :  { %6389 = vmatpush1.bf16.msra.mxu0 %v6388_v41  ;;  %v970_v41 = vld [vmem:[%s16017_s5 + $0x2b0] sm:$0xff]  ;;  %v6430_v36 = vpack.c.bf16 %v1037_v31, %v1031_v30 }
 0x10a   :  { %6517 = vmatpush1.bf16.msra.mxu1 %v6516_v42  ;;  %6391 = vmatprep.subr.bf16.mxu0 %v6390_v43  ;;  %v976_v42 = vld [vmem:[%s16017_s5 + $0x2e0] sm:$0xff] }
 0x10b   :  { %6519 = vmatprep.subr.bf16.mxu1 %v6518_v47  ;;  %v972_v43 = vld [vmem:[%s16017_s5 + $0x2c0] sm:$0xff]  ;;  %v989_v47 = vld [vmem:[%s16017_s5 + $0x348] sm:$0xff]  ;;  %v6412_v50 = vpack.c.bf16 %v976_v42, %v970_v41  ;;  %v1038_v41 = vld [vmem:[%s16017_s5 + $0x4d0] sm:$0xff] }
 0x10c   :  { %v6540_v51 = vpack.c.bf16 %v978_v45, %v972_v43  ;;  %v6414_v52 = vpack.c.bf16 %v989_v47, %v983_v46  ;;  %v1043_v42 = vld [vmem:[%s16017_s5 + $0x4f8] sm:$0xff]  ;;  %v1049_v43 = vld [vmem:[%s16017_s5 + $0x528] sm:$0xff] }
 0x10d   :  { %6393 = vmatpush1.bf16.msra.mxu0 %v6392_v16  ;;  %v988_v16 = vld [vmem:[%s16017_s5 + $0x340] sm:$0xff]  ;;  %v1051_v45 = vld [vmem:[%s16017_s5 + $0x538] sm:$0xff] }
 0x10e   :  { %6521 = vmatpush1.bf16.msra.mxu1 %v6520_v54  ;;  %6395 = vmatprep.subr.bf16.mxu0 %v6394_v55  ;;  %v984_v54 = vld [vmem:[%s16017_s5 + $0x320] sm:$0xff]  ;;  %v6542_v55 = vpack.c.bf16 %v991_v49, %v985_v48  ;;  %v6416_v60 = vpack.c.bf16 %v988_v16, %v982_v53  ;;  %v6434_v48 = vpack.c.bf16 %v1049_v43, %v1043_v42  ;;  %v1042_v49 = vld [vmem:[%s16017_s5 + $0x4f0] sm:$0xff]  ;;  %v1055_v16 = vld [vmem:[%s16017_s5 + $0x558] sm:$0xff] }
 0x10f   :  { %6523 = vmatprep.subr.bf16.mxu1 %v6522_v58  ;;  %v997_v58 = vld [vmem:[%s16017_s5 + $0x388] sm:$0xff]  ;;  %v6544_v61 = vpack.c.bf16 %v990_v56, %v984_v54  ;;  %v1050_v53 = vld [vmem:[%s16017_s5 + $0x530] sm:$0xff]  ;;  %v1063_v56 = vld [vmem:[%s16017_s5 + $0x598] sm:$0xff] }
 0x110   :  { %v1061_v54 = vld [vmem:[%s16017_s5 + $0x588] sm:$0xff]  ;;  %v1111_v42 = vld [vmem:[%s16017_s5 + $0x718] sm:$0xff] }
 0x111   :  { %6397 = vmatpush1.bf16.msra.mxu0 %v6396_v0  ;;  %v1000_v0 = vld [vmem:[%s16017_s5 + $0x3a0] sm:$0xff] }
 0x112   :  { %6525 = vmatpush1.bf16.msra.mxu1 %v6524_v1  ;;  %6399 = vmatprep.subr.bf16.mxu0 %v6398_v2  ;;  %v996_v1 = vld [vmem:[%s16017_s5 + $0x380] sm:$0xff]  ;;  %v6546_v2 = vpack.c.bf16 %v1003_v59, %v997_v58  ;;  %v6420_v8 = vpack.c.bf16 %v1000_v0, %v994_v63  ;;  %v6438_v58 = vpack.c.bf16 %v1061_v54, %v1055_v16  ;;  %v1054_v59 = vld [vmem:[%s16017_s5 + $0x550] sm:$0xff]  ;;  %v1067_v0 = vld [vmem:[%s16017_s5 + $0x5b8] sm:$0xff] }
 0x113   :  { %6527 = vmatprep.subr.bf16.mxu1 %v6526_v6  ;;  %v1009_v6 = vld [vmem:[%s16017_s5 + $0x3e8] sm:$0xff]  ;;  %v6548_v9 = vpack.c.bf16 %v1002_v3, %v996_v1  ;;  %v1062_v63 = vld [vmem:[%s16017_s5 + $0x590] sm:$0xff]  ;;  %v1075_v3 = vld [vmem:[%s16017_s5 + $0x5f8] sm:$0xff] }
 0x114   :  { %v1073_v1 = vld [vmem:[%s16017_s5 + $0x5e8] sm:$0xff]  ;;  %v1123_v54 = vld [vmem:[%s16017_s5 + $0x778] sm:$0xff] }
 0x115   :  { %6401 = vmatpush1.bf16.msra.mxu0 %v6400_v12  ;;  %v1012_v12 = vld [vmem:[%s16017_s5 + $0x400] sm:$0xff]  ;;  %v1117_v16 = vld [vmem:[%s16017_s5 + $0x748] sm:$0xff] }
 0x116   :  { %6529 = vmatpush1.bf16.msra.mxu1 %v6528_v13  ;;  %6403 = vmatprep.subr.bf16.mxu0 %v6402_v14  ;;  %v1008_v13 = vld [vmem:[%s16017_s5 + $0x3e0] sm:$0xff]  ;;  %v6550_v14 = vpack.c.bf16 %v1015_v7, %v1009_v6  ;;  %v6424_v21 = vpack.c.bf16 %v1012_v12, %v1006_v11  ;;  %v6442_v6 = vpack.c.bf16 %v1073_v1, %v1067_v0  ;;  %v1066_v7 = vld [vmem:[%s16017_s5 + $0x5b0] sm:$0xff]  ;;  %v1079_v12 = vld [vmem:[%s16017_s5 + $0x618] sm:$0xff] }
 0x117   :  { %6531 = vmatprep.subr.bf16.mxu1 %v6530_v19  ;;  %v1021_v19 = vld [vmem:[%s16017_s5 + $0x448] sm:$0xff]  ;;  %v6552_v22 = vpack.c.bf16 %v1014_v15, %v1008_v13  ;;  %v1074_v11 = vld [vmem:[%s16017_s5 + $0x5f0] sm:$0xff]  ;;  %v1087_v15 = vld [vmem:[%s16017_s5 + $0x658] sm:$0xff] }
 0x118   :  { %v1085_v13 = vld [vmem:[%s16017_s5 + $0x648] sm:$0xff]  ;;  %v1135_v1 = vld [vmem:[%s16017_s5 + $0x7d8] sm:$0xff] }
 0x119   :  { %6405 = vmatpush1.bf16.msra.mxu0 %v6404_v26  ;;  %v1024_v26 = vld [vmem:[%s16017_s5 + $0x460] sm:$0xff]  ;;  %v1129_v0 = vld [vmem:[%s16017_s5 + $0x7a8] sm:$0xff] }
 0x11a   :  { %6533 = vmatpush1.bf16.msra.mxu1 %v6532_v27  ;;  %6407 = vmatprep.subr.bf16.mxu0 %v6406_v28  ;;  %v1020_v27 = vld [vmem:[%s16017_s5 + $0x440] sm:$0xff]  ;;  %v6554_v28 = vpack.c.bf16 %v1027_v20, %v1021_v19  ;;  %v6428_v34 = vpack.c.bf16 %v1024_v26, %v1018_v25  ;;  %v6446_v19 = vpack.c.bf16 %v1085_v13, %v1079_v12  ;;  %v1078_v20 = vld [vmem:[%s16017_s5 + $0x610] sm:$0xff]  ;;  %v1091_v26 = vld [vmem:[%s16017_s5 + $0x678] sm:$0xff] }
 0x11b   :  { %6535 = vmatprep.subr.bf16.mxu1 %v6534_v32  ;;  %v1033_v32 = vld [vmem:[%s16017_s5 + $0x4a8] sm:$0xff]  ;;  %v6556_v35 = vpack.c.bf16 %v1026_v29, %v1020_v27  ;;  %v1086_v25 = vld [vmem:[%s16017_s5 + $0x650] sm:$0xff]  ;;  %v1099_v29 = vld [vmem:[%s16017_s5 + $0x6b8] sm:$0xff] }
 0x11c   :  { %v1097_v27 = vld [vmem:[%s16017_s5 + $0x6a8] sm:$0xff]  ;;  %v1147_v13 = vld [vmem:[%s16017_s5 + $0x838] sm:$0xff] }
 0x11d   :  { %6409 = vmatpush1.bf16.msra.mxu0 %v6408_v38  ;;  %v1036_v38 = vld [vmem:[%s16017_s5 + $0x4c0] sm:$0xff]  ;;  %v1141_v12 = vld [vmem:[%s16017_s5 + $0x808] sm:$0xff] }
 0x11e   :  { %6537 = vmatpush1.bf16.msra.mxu1 %v6536_v39  ;;  %6411 = vmatprep.subr.bf16.mxu0 %v6410_v40  ;;  %v1032_v39 = vld [vmem:[%s16017_s5 + $0x4a0] sm:$0xff]  ;;  %v6558_v40 = vpack.c.bf16 %v1039_v33, %v1033_v32  ;;  %v6432_v46 = vpack.c.bf16 %v1036_v38, %v1030_v37  ;;  %v6450_v32 = vpack.c.bf16 %v1097_v27, %v1091_v26  ;;  %v1090_v33 = vld [vmem:[%s16017_s5 + $0x670] sm:$0xff]  ;;  %v1103_v38 = vld [vmem:[%s16017_s5 + $0x6d8] sm:$0xff] }
 0x11f   :  { %6539 = vmatprep.subr.bf16.mxu1 %v6538_v44  ;;  %v1045_v44 = vld [vmem:[%s16017_s5 + $0x508] sm:$0xff]  ;;  %v6560_v47 = vpack.c.bf16 %v1038_v41, %v1032_v39  ;;  %v1098_v37 = vld [vmem:[%s16017_s5 + $0x6b0] sm:$0xff]  ;;  %v1159_v27 = vld [vmem:[%s16017_s5 + $0x898] sm:$0xff] }
 0x120   :  { %v1109_v39 = vld [vmem:[%s16017_s5 + $0x708] sm:$0xff] }
 0x121   :  { %6413 = vmatpush1.bf16.msra.mxu0 %v6412_v50  ;;  %v1048_v50 = vld [vmem:[%s16017_s5 + $0x520] sm:$0xff]  ;;  %v1105_v41 = vld [vmem:[%s16017_s5 + $0x6e8] sm:$0xff] }
 0x122   :  { %6541 = vmatpush1.bf16.msra.mxu1 %v6540_v51  ;;  %6415 = vmatprep.subr.bf16.mxu0 %v6414_v52  ;;  %v1044_v51 = vld [vmem:[%s16017_s5 + $0x500] sm:$0xff]  ;;  %v6562_v52 = vpack.c.bf16 %v1051_v45, %v1045_v44  ;;  %v6436_v24 = vpack.c.bf16 %v1048_v50, %v1042_v49  ;;  %v6454_v45 = vpack.c.bf16 %v1109_v39, %v1103_v38  ;;  %v1110_v50 = vld [vmem:[%s16017_s5 + $0x710] sm:$0xff]  ;;  %v1153_v26 = vld [vmem:[%s16017_s5 + $0x868] sm:$0xff] }
 0x123   :  { %6543 = vmatprep.subr.bf16.mxu1 %v6542_v55  ;;  %v1057_v55 = vld [vmem:[%s16017_s5 + $0x568] sm:$0xff]  ;;  %v6564_v57 = vpack.c.bf16 %v1050_v53, %v1044_v51  ;;  %v6582_v49 = vpack.c.bf16 %v1111_v42, %v1105_v41  ;;  %v1115_v51 = vld [vmem:[%s16017_s5 + $0x738] sm:$0xff] }
 0x124   :  { %v8427_v53 = vld [vmem:[%s16016_s0 + $0x18] sm:$0xff]  ;;  %v1169_v38 = vld [vmem:[%s16017_s5 + $0x8e8] sm:$0xff] }
 0x125   :  { %6417 = vmatpush1.bf16.msra.mxu0 %v6416_v60  ;;  %v1060_v60 = vld [vmem:[%s16017_s5 + $0x580] sm:$0xff]  ;;  %v1165_v41 = vld [vmem:[%s16017_s5 + $0x8c8] sm:$0xff]  ;;  %v1171_v42 = vld [vmem:[%s16017_s5 + $0x8f8] sm:$0xff] }
 0x126   :  { %6545 = vmatpush1.bf16.msra.mxu1 %v6544_v61  ;;  %6419 = vmatprep.subr.bf16.mxu0 %v6418_v62  ;;  %v1056_v61 = vld [vmem:[%s16017_s5 + $0x560] sm:$0xff]  ;;  %v6566_v62 = vpack.c.bf16 %v1063_v56, %v1057_v55  ;;  %v6440_v4 = vpack.c.bf16 %v1060_v60, %v1054_v59  ;;  %v6586_v60 = vpack.c.bf16 %v1123_v54, %v1117_v16  ;;  %v1177_v16 = vld [vmem:[%s16017_s5 + $0x928] sm:$0xff]  ;;  %v1183_v54 = vld [vmem:[%s16017_s5 + $0x958] sm:$0xff] }
 0x127   :  { %6547 = vmatprep.subr.bf16.mxu1 %v6546_v2  ;;  %v1069_v2 = vld [vmem:[%s16017_s5 + $0x5c8] sm:$0xff]  ;;  %v6568_v5 = vpack.c.bf16 %v1062_v63, %v1056_v61  ;;  %v1116_v59 = vld [vmem:[%s16017_s5 + $0x740] sm:$0xff]  ;;  %v1122_v61 = vld [vmem:[%s16017_s5 + $0x770] sm:$0xff] }
 0x128   :  { %v1133_v63 = vld [vmem:[%s16017_s5 + $0x7c8] sm:$0xff] }
 0x129   :  { %6421 = vmatpush1.bf16.msra.mxu0 %v6420_v8  ;;  %v1072_v8 = vld [vmem:[%s16017_s5 + $0x5e0] sm:$0xff] }
 0x12a   :  { %6549 = vmatpush1.bf16.msra.mxu1 %v6548_v9  ;;  %6423 = vmatprep.subr.bf16.mxu0 %v6422_v10  ;;  %v1068_v9 = vld [vmem:[%s16017_s5 + $0x5c0] sm:$0xff]  ;;  %v6570_v10 = vpack.c.bf16 %v1075_v3, %v1069_v2  ;;  %v6444_v17 = vpack.c.bf16 %v1072_v8, %v1066_v7  ;;  %v6588_v3 = vpack.c.bf16 %v1122_v61, %v1116_v59  ;;  %v1182_v61 = vld [vmem:[%s16017_s5 + $0x950] sm:$0xff] }
 0x12b   :  { %6551 = vmatprep.subr.bf16.mxu1 %v6550_v14  ;;  %v1081_v14 = vld [vmem:[%s16017_s5 + $0x628] sm:$0xff]  ;;  %v6572_v18 = vpack.c.bf16 %v1074_v11, %v1068_v9  ;;  %v1128_v7 = vld [vmem:[%s16017_s5 + $0x7a0] sm:$0xff]  ;;  %v6590_v8 = vpack.c.bf16 %v1135_v1, %v1129_v0  ;;  %v1134_v9 = vld [vmem:[%s16017_s5 + $0x7d0] sm:$0xff] }
 0x12c   :  { %v1145_v11 = vld [vmem:[%s16017_s5 + $0x828] sm:$0xff]  ;;  %v1176_v59 = vld [vmem:[%s16017_s5 + $0x920] sm:$0xff]  ;;  %v1195_v1 = vld [vmem:[%s16017_s5 + $0x9b8] sm:$0xff] }
 0x12d   :  { %6425 = vmatpush1.bf16.msra.mxu0 %v6424_v21  ;;  %v1084_v21 = vld [vmem:[%s16017_s5 + $0x640] sm:$0xff]  ;;  %v1189_v0 = vld [vmem:[%s16017_s5 + $0x988] sm:$0xff] }
 0x12e   :  { %6553 = vmatpush1.bf16.msra.mxu1 %v6552_v22  ;;  %6427 = vmatprep.subr.bf16.mxu0 %v6426_v23  ;;  %v1080_v22 = vld [vmem:[%s16017_s5 + $0x620] sm:$0xff]  ;;  %v6574_v23 = vpack.c.bf16 %v1087_v15, %v1081_v14  ;;  %v6448_v30 = vpack.c.bf16 %v1084_v21, %v1078_v20  ;;  %v6592_v15 = vpack.c.bf16 %v1134_v9, %v1128_v7  ;;  %v1194_v9 = vld [vmem:[%s16017_s5 + $0x9b0] sm:$0xff] }
 0x12f   :  { %6555 = vmatprep.subr.bf16.mxu1 %v6554_v28  ;;  %v1093_v28 = vld [vmem:[%s16017_s5 + $0x688] sm:$0xff]  ;;  %v6576_v31 = vpack.c.bf16 %v1086_v25, %v1080_v22  ;;  %v1140_v20 = vld [vmem:[%s16017_s5 + $0x800] sm:$0xff]  ;;  %v6594_v21 = vpack.c.bf16 %v1147_v13, %v1141_v12  ;;  %v1146_v22 = vld [vmem:[%s16017_s5 + $0x830] sm:$0xff] }
 0x130   :  { %v1157_v25 = vld [vmem:[%s16017_s5 + $0x888] sm:$0xff]  ;;  %v1188_v7 = vld [vmem:[%s16017_s5 + $0x980] sm:$0xff]  ;;  %v1207_v13 = vld [vmem:[%s16017_s5 + $0xa18] sm:$0xff] }
 0x131   :  { %6429 = vmatpush1.bf16.msra.mxu0 %v6428_v34  ;;  %v1096_v34 = vld [vmem:[%s16017_s5 + $0x6a0] sm:$0xff]  ;;  %v1201_v12 = vld [vmem:[%s16017_s5 + $0x9e8] sm:$0xff] }
 0x132   :  { %6557 = vmatpush1.bf16.msra.mxu1 %v6556_v35  ;;  %6431 = vmatprep.subr.bf16.mxu0 %v6430_v36  ;;  %v1092_v35 = vld [vmem:[%s16017_s5 + $0x680] sm:$0xff]  ;;  %v6578_v36 = vpack.c.bf16 %v1099_v29, %v1093_v28  ;;  %v6452_v43 = vpack.c.bf16 %v1096_v34, %v1090_v33  ;;  %v6596_v29 = vpack.c.bf16 %v1146_v22, %v1140_v20  ;;  %v1206_v22 = vld [vmem:[%s16017_s5 + $0xa10] sm:$0xff] }
 0x133   :  { %6559 = vmatprep.subr.bf16.mxu1 %v6558_v40  ;;  %v8426_v40 = vld [vmem:[%s16016_s0] sm:$0xff]  ;;  %v6580_v44 = vpack.c.bf16 %v1098_v37, %v1092_v35  ;;  %v6598_v35 = vpack.c.bf16 %v1159_v27, %v1153_v26  ;;  %v1163_v37 = vld [vmem:[%s16017_s5 + $0x8b8] sm:$0xff]  ;;  %v1213_v26 = vld [vmem:[%s16017_s5 + $0xa48] sm:$0xff] }
 0x134   :  { %v1152_v33 = vld [vmem:[%s16017_s5 + $0x860] sm:$0xff]  ;;  %v1219_v27 = vld [vmem:[%s16017_s5 + $0xa78] sm:$0xff] }
 0x135   :  { %6433 = vmatpush1.bf16.msra.mxu0 %v6432_v46  ;;  %v1102_v46 = vld [vmem:[%s16017_s5 + $0x6d0] sm:$0xff]  ;;  %v1200_v20 = vld [vmem:[%s16017_s5 + $0x9e0] sm:$0xff] }
 0x136   :  { %6561 = vmatpush1.bf16.msra.mxu1 %v6560_v47  ;;  %6435 = vmatprep.subr.bf16.mxu0 %v6434_v48  ;;  %v1108_v47 = vld [vmem:[%s16017_s5 + $0x700] sm:$0xff] }
 0x137   :  { %6563 = vmatprep.subr.bf16.mxu1 %v6562_v52  ;;  %v1104_v48 = vld [vmem:[%s16017_s5 + $0x6e0] sm:$0xff]  ;;  %v1121_v52 = vld [vmem:[%s16017_s5 + $0x768] sm:$0xff]  ;;  %v6456_v55 = vpack.c.bf16 %v1108_v47, %v1102_v46  ;;  %v6474_v46 = vpack.c.bf16 %v1169_v38, %v1163_v37  ;;  %v1162_v47 = vld [vmem:[%s16017_s5 + $0x8b0] sm:$0xff] }
 0x138   :  { %v6584_v56 = vpack.c.bf16 %v1110_v50, %v1104_v48  ;;  %v1168_v48 = vld [vmem:[%s16017_s5 + $0x8e0] sm:$0xff]  ;;  %v6602_v50 = vpack.c.bf16 %v1171_v42, %v1165_v41  ;;  %v1223_v37 = vld [vmem:[%s16017_s5 + $0xa98] sm:$0xff]  ;;  %v1229_v38 = vld [vmem:[%s16017_s5 + $0xac8] sm:$0xff] }
 0x139   :  { %6437 = vmatpush1.bf16.msra.mxu0 %v6436_v24  ;;  %v6458_v24 = vpack.c.bf16 %v1121_v52, %v1115_v51  ;;  %v1170_v51 = vld [vmem:[%s16017_s5 + $0x8f0] sm:$0xff]  ;;  %v1175_v52 = vld [vmem:[%s16017_s5 + $0x918] sm:$0xff]  ;;  %v1225_v41 = vld [vmem:[%s16017_s5 + $0xaa8] sm:$0xff] }
 0x13a   :  { %6565 = vmatpush1.bf16.msra.mxu1 %v6564_v57  ;;  %6439 = vmatprep.subr.bf16.mxu0 %v6438_v58  ;;  %v1114_v57 = vld [vmem:[%s16017_s5 + $0x730] sm:$0xff]  ;;  %v1120_v58 = vld [vmem:[%s16017_s5 + $0x760] sm:$0xff]  ;;  %v1231_v42 = vld [vmem:[%s16017_s5 + $0xad8] sm:$0xff] }
 0x13b   :  { %6567 = vmatprep.subr.bf16.mxu1 %v6566_v62  ;;  %v1127_v62 = vld [vmem:[%s16017_s5 + $0x798] sm:$0xff]  ;;  %v6460_v2 = vpack.c.bf16 %v1120_v58, %v1114_v57  ;;  %v1174_v57 = vld [vmem:[%s16017_s5 + $0x910] sm:$0xff]  ;;  %v1180_v58 = vld [vmem:[%s16017_s5 + $0x940] sm:$0xff] }
 0x13d   :  { %6441 = vmatpush1.bf16.msra.mxu0 %v6440_v4  ;;  %v6462_v4 = vpack.c.bf16 %v1133_v63, %v1127_v62  ;;  %v1187_v62 = vld [vmem:[%s16017_s5 + $0x978] sm:$0xff]  ;;  %v1193_v63 = vld [vmem:[%s16017_s5 + $0x9a8] sm:$0xff] }
 0x13e   :  { %6569 = vmatpush1.bf16.msra.mxu1 %v6568_v5  ;;  %6443 = vmatprep.subr.bf16.mxu0 %v6442_v6  ;;  %v1126_v5 = vld [vmem:[%s16017_s5 + $0x790] sm:$0xff]  ;;  %v1132_v6 = vld [vmem:[%s16017_s5 + $0x7c0] sm:$0xff] }
 0x13f   :  { %6571 = vmatprep.subr.bf16.mxu1 %v6570_v10  ;;  %v1139_v10 = vld [vmem:[%s16017_s5 + $0x7f8] sm:$0xff]  ;;  %v6464_v14 = vpack.c.bf16 %v1132_v6, %v1126_v5  ;;  %v1186_v5 = vld [vmem:[%s16017_s5 + $0x970] sm:$0xff]  ;;  %v1192_v6 = vld [vmem:[%s16017_s5 + $0x9a0] sm:$0xff] }
 0x141   :  { %6445 = vmatpush1.bf16.msra.mxu0 %v6444_v17  ;;  %v6466_v17 = vpack.c.bf16 %v1145_v11, %v1139_v10  ;;  %v1199_v10 = vld [vmem:[%s16017_s5 + $0x9d8] sm:$0xff]  ;;  %v1205_v11 = vld [vmem:[%s16017_s5 + $0xa08] sm:$0xff] }
 0x142   :  { %6573 = vmatpush1.bf16.msra.mxu1 %v6572_v18  ;;  %6447 = vmatprep.subr.bf16.mxu0 %v6446_v19  ;;  %v1138_v18 = vld [vmem:[%s16017_s5 + $0x7f0] sm:$0xff]  ;;  %v1144_v19 = vld [vmem:[%s16017_s5 + $0x820] sm:$0xff] }
 0x143   :  { %6575 = vmatprep.subr.bf16.mxu1 %v6574_v23  ;;  %v1151_v23 = vld [vmem:[%s16017_s5 + $0x858] sm:$0xff]  ;;  %v6468_v28 = vpack.c.bf16 %v1144_v19, %v1138_v18  ;;  %v1198_v18 = vld [vmem:[%s16017_s5 + $0x9d0] sm:$0xff]  ;;  %v1204_v19 = vld [vmem:[%s16017_s5 + $0xa00] sm:$0xff] }
 0x144   :  { %1507 = vmatmul.mubr.f32.vlgmr.msra.gmra.mrb[4].mxu0 %v8426_v40 }
 0x145   :  { %6449 = vmatpush1.bf16.msra.mxu0 %v6448_v30  ;;  %1649 = vmatmul.mubr.f32.vlgmr.msra.gmra.mrb[4].mxu1 %v8426_v40  ;;  %v6470_v30 = vpack.c.bf16 %v1157_v25, %v1151_v23  ;;  %v1211_v23 = vld [vmem:[%s16017_s5 + $0xa38] sm:$0xff]  ;;  %v1217_v25 = vld [vmem:[%s16017_s5 + $0xa68] sm:$0xff] }
 0x146   :  { %6577 = vmatpush1.bf16.msra.mxu1 %v6576_v31  ;;  %6451 = vmatprep.subr.bf16.mxu0 %v6450_v32  ;;  %v1150_v31 = vld [vmem:[%s16017_s5 + $0x850] sm:$0xff]  ;;  %v1156_v32 = vld [vmem:[%s16017_s5 + $0x880] sm:$0xff] }
 0x147   :  { %6579 = vmatprep.subr.bf16.mxu1 %v6578_v36  ;;  %1577 = vmatprep.mubr.f32.mxu0 %v8427_v53  ;;  %v1158_v36 = vld [vmem:[%s16017_s5 + $0x890] sm:$0xff] }
 0x148   :  { %1719 = vmatprep.mubr.f32.mxu1 %v8427_v53  ;;  %v1181_v53 = vld [vmem:[%s16017_s5 + $0x948] sm:$0xff] }
 0x149   :  { %6453 = vmatpush1.bf16.msra.mxu0 %v6452_v43 }
 0x14a   :  { %6581 = vmatpush1.bf16.msra.mxu1 %v6580_v44  ;;  %6455 = vmatprep.subr.bf16.mxu0 %v6454_v45  ;;  %v6472_v44 = vpack.c.bf16 %v1156_v32, %v1150_v31  ;;  %v6600_v45 = vpack.c.bf16 %v1158_v36, %v1152_v33  ;;  %v1210_v31 = vld [vmem:[%s16017_s5 + $0xa30] sm:$0xff]  ;;  %v1216_v32 = vld [vmem:[%s16017_s5 + $0xa60] sm:$0xff] }
 0x14b   :  { %6583 = vmatprep.subr.bf16.mxu1 %v6582_v49  ;;  %v1164_v49 = vld [vmem:[%s16017_s5 + $0x8c0] sm:$0xff]  ;;  %v1218_v36 = vld [vmem:[%s16017_s5 + $0xa70] sm:$0xff] }
 0x14c   :  { %v1212_v33 = vld [vmem:[%s16017_s5 + $0xa40] sm:$0xff] }
 0x14d   :  { %6457 = vmatpush1.bf16.msra.mxu0 %v6456_v55  ;;  %v6476_v55 = vpack.c.bf16 %v1168_v48, %v1162_v47  ;;  %v1222_v47 = vld [vmem:[%s16017_s5 + $0xa90] sm:$0xff]  ;;  %v1228_v48 = vld [vmem:[%s16017_s5 + $0xac0] sm:$0xff] }
 0x14e   :  { %6585 = vmatpush1.bf16.msra.mxu1 %v6584_v56  ;;  %6459 = vmatprep.subr.bf16.mxu0 %v6458_v24  ;;  %v6604_v56 = vpack.c.bf16 %v1170_v51, %v1164_v49  ;;  %v6478_v24 = vpack.c.bf16 %v1181_v53, %v1175_v52  ;;  %v1224_v49 = vld [vmem:[%s16017_s5 + $0xaa0] sm:$0xff]  ;;  %v1230_v51 = vld [vmem:[%s16017_s5 + $0xad0] sm:$0xff]  ;;  %v1235_v52 = vld [vmem:[%s16017_s5 + $0xaf8] sm:$0xff] }
 0x14f   :  { %6587 = vmatprep.subr.bf16.mxu1 %v6586_v60  ;;  %v6606_v60 = vpack.c.bf16 %v1183_v54, %v1177_v16  ;;  %v1241_v53 = vld [vmem:[%s16017_s5 + $0xb28] sm:$0xff]  ;;  %v1243_v54 = vld [vmem:[%s16017_s5 + $0xb38] sm:$0xff] }
 0x150   :  { %v1237_v16 = vld [vmem:[%s16017_s5 + $0xb08] sm:$0xff] }
 0x151   :  { %6461 = vmatpush1.bf16.msra.mxu0 %v6460_v2  ;;  %v6480_v2 = vpack.c.bf16 %v1180_v58, %v1174_v57  ;;  %v1234_v57 = vld [vmem:[%s16017_s5 + $0xaf0] sm:$0xff]  ;;  %v1240_v58 = vld [vmem:[%s16017_s5 + $0xb20] sm:$0xff] }
 0x152   :  { %6589 = vmatpush1.bf16.msra.mxu1 %v6588_v3  ;;  %6463 = vmatprep.subr.bf16.mxu0 %v6462_v4  ;;  %v6608_v3 = vpack.c.bf16 %v1182_v61, %v1176_v59  ;;  %v6482_v4 = vpack.c.bf16 %v1193_v63, %v1187_v62  ;;  %v1236_v59 = vld [vmem:[%s16017_s5 + $0xb00] sm:$0xff]  ;;  %v1242_v61 = vld [vmem:[%s16017_s5 + $0xb30] sm:$0xff]  ;;  %v1247_v62 = vld [vmem:[%s16017_s5 + $0xb58] sm:$0xff] }
 0x153   :  { %6591 = vmatprep.subr.bf16.mxu1 %v6590_v8  ;;  %v6610_v8 = vpack.c.bf16 %v1195_v1, %v1189_v0  ;;  %v1253_v63 = vld [vmem:[%s16017_s5 + $0xb88] sm:$0xff]  ;;  %v1255_v1 = vld [vmem:[%s16017_s5 + $0xb98] sm:$0xff] }
 0x154   :  { %v1249_v0 = vld [vmem:[%s16017_s5 + $0xb68] sm:$0xff] }
 0x155   :  { %6465 = vmatpush1.bf16.msra.mxu0 %v6464_v14  ;;  %v6484_v14 = vpack.c.bf16 %v1192_v6, %v1186_v5  ;;  %v1246_v5 = vld [vmem:[%s16017_s5 + $0xb50] sm:$0xff]  ;;  %v1252_v6 = vld [vmem:[%s16017_s5 + $0xb80] sm:$0xff] }
 0x156   :  { %6593 = vmatpush1.bf16.msra.mxu1 %v6592_v15  ;;  %6467 = vmatprep.subr.bf16.mxu0 %v6466_v17  ;;  %v6612_v15 = vpack.c.bf16 %v1194_v9, %v1188_v7  ;;  %v6486_v17 = vpack.c.bf16 %v1205_v11, %v1199_v10  ;;  %v1248_v7 = vld [vmem:[%s16017_s5 + $0xb60] sm:$0xff]  ;;  %v1254_v9 = vld [vmem:[%s16017_s5 + $0xb90] sm:$0xff]  ;;  %v1259_v10 = vld [vmem:[%s16017_s5 + $0xbb8] sm:$0xff] }
 0x157   :  { %v10614_v34 = vpop.f32.mrb[0].mxu0  ;;  %6595 = vmatprep.subr.bf16.mxu1 %v6594_v21  ;;  %v6614_v21 = vpack.c.bf16 %v1207_v13, %v1201_v12  ;;  %v1265_v11 = vld [vmem:[%s16017_s5 + $0xbe8] sm:$0xff]  ;;  %v1267_v13 = vld [vmem:[%s16017_s5 + $0xbf8] sm:$0xff] }
 0x158   :  { %v10625_v39 = vpop.f32.mrb[0].mxu1  ;;  %v10627_v40 = vpop.f32.mrb[1].mxu0  ;;  %v1261_v12 = vld [vmem:[%s16017_s5 + $0xbc8] sm:$0xff] }
 0x159   :  { %v10635_v43 = vpop.f32.mrb[1].mxu1  ;;  %6469 = vmatpush1.bf16.msra.mxu0 %v6468_v28  ;;  %v6488_v28 = vpack.c.bf16 %v1204_v19, %v1198_v18  ;;  %v1258_v18 = vld [vmem:[%s16017_s5 + $0xbb0] sm:$0xff]  ;;  %v1264_v19 = vld [vmem:[%s16017_s5 + $0xbe0] sm:$0xff] }
 0x15a   :  { %6597 = vmatpush1.bf16.msra.mxu1 %v6596_v29  ;;  %6471 = vmatprep.subr.bf16.mxu0 %v6470_v30  ;;  %v6616_v29 = vpack.c.bf16 %v1206_v22, %v1200_v20  ;;  %v6490_v30 = vpack.c.bf16 %v1217_v25, %v1211_v23  ;;  %v1260_v20 = vld [vmem:[%s16017_s5 + $0xbc0] sm:$0xff]  ;;  %v1266_v22 = vld [vmem:[%s16017_s5 + $0xbf0] sm:$0xff]  ;;  %v1729_v23 = vld [vmem:[%s16018_s2 + $0x8] sm:$0xff] }
 0x15b   :  { %6599 = vmatprep.subr.bf16.mxu1 %v6598_v35  ;;  %v6618_v35 = vpack.c.bf16 %v1219_v27, %v1213_v26  ;;  %v1735_v25 = vld [vmem:[%s16018_s2 + $0x38] sm:$0xff]  ;;  %v1737_v27 = vld [vmem:[%s16018_s2 + $0x48] sm:$0xff] }
 0x15c   :  { %v1731_v26 = vld [vmem:[%s16018_s2 + $0x18] sm:$0xff] }
 0x15d   :  { %6473 = vmatpush1.bf16.msra.mxu0 %v6472_v44  ;;  %v6492_v44 = vpack.c.bf16 %v1216_v32, %v1210_v31  ;;  %v1728_v31 = vld [vmem:[%s16018_s2] sm:$0xff]  ;;  %v1734_v32 = vld [vmem:[%s16018_s2 + $0x30] sm:$0xff] }
 0x15e   :  { %6601 = vmatpush1.bf16.msra.mxu1 %v6600_v45  ;;  %6475 = vmatprep.subr.bf16.mxu0 %v6474_v46  ;;  %v6620_v45 = vpack.c.bf16 %v1218_v36, %v1212_v33  ;;  %v6494_v46 = vpack.c.bf16 %v1229_v38, %v1223_v37  ;;  %v1730_v33 = vld [vmem:[%s16018_s2 + $0x10] sm:$0xff]  ;;  %v1736_v36 = vld [vmem:[%s16018_s2 + $0x40] sm:$0xff]  ;;  %v1741_v37 = vld [vmem:[%s16018_s2 + $0x68] sm:$0xff] }
 0x15f   :  { %6603 = vmatprep.subr.bf16.mxu1 %v6602_v50  ;;  %v6622_v50 = vpack.c.bf16 %v1231_v42, %v1225_v41  ;;  %v1747_v38 = vld [vmem:[%s16018_s2 + $0x98] sm:$0xff]  ;;  %v1749_v42 = vld [vmem:[%s16018_s2 + $0xa8] sm:$0xff] }
 0x160   :  { %v1743_v41 = vld [vmem:[%s16018_s2 + $0x78] sm:$0xff] }
 0x161   :  { %6477 = vmatpush1.bf16.msra.mxu0 %v6476_v55  ;;  %v6496_v55 = vpack.c.bf16 %v1228_v48, %v1222_v47  ;;  %v1740_v47 = vld [vmem:[%s16018_s2 + $0x60] sm:$0xff]  ;;  %v1746_v48 = vld [vmem:[%s16018_s2 + $0x90] sm:$0xff] }
 0x162   :  { %6605 = vmatpush1.bf16.msra.mxu1 %v6604_v56  ;;  %6479 = vmatprep.subr.bf16.mxu0 %v6478_v24  ;;  %v6624_v56 = vpack.c.bf16 %v1230_v51, %v1224_v49  ;;  %v6498_v24 = vpack.c.bf16 %v1241_v53, %v1235_v52  ;;  %v1742_v49 = vld [vmem:[%s16018_s2 + $0x70] sm:$0xff]  ;;  %v1748_v51 = vld [vmem:[%s16018_s2 + $0xa0] sm:$0xff]  ;;  %v1753_v52 = vld [vmem:[%s16018_s2 + $0xc8] sm:$0xff] }
 0x163   :  { %6607 = vmatprep.subr.bf16.mxu1 %v6606_v60  ;;  %v6626_v60 = vpack.c.bf16 %v1243_v54, %v1237_v16  ;;  %v1759_v53 = vld [vmem:[%s16018_s2 + $0xf8] sm:$0xff]  ;;  %v8428_v16 = vld [vmem:[%s16016_s0 + $0x10] sm:$0xff] }
 0x164   :  { %v1755_v54 = vld [vmem:[%s16018_s2 + $0xd8] sm:$0xff] }
 0x165   :  { %6481 = vmatpush1.bf16.msra.mxu0 %v6480_v2  ;;  %v6500_v2 = vpack.c.bf16 %v1240_v58, %v1234_v57  ;;  %v6646_v57 = vpack.c.bf16 %v1759_v53, %v1753_v52  ;;  %v1752_v58 = vld [vmem:[%s16018_s2 + $0xc0] sm:$0xff] }
 0x166   :  { %6609 = vmatpush1.bf16.msra.mxu1 %v6608_v3  ;;  %6483 = vmatprep.subr.bf16.mxu0 %v6482_v4  ;;  %v6628_v3 = vpack.c.bf16 %v1242_v61, %v1236_v59  ;;  %v6502_v4 = vpack.c.bf16 %v1253_v63, %v1247_v62  ;;  %v1758_v59 = vld [vmem:[%s16018_s2 + $0xf0] sm:$0xff]  ;;  %v1760_v62 = vld [vmem:[%s16018_s2 + $0x100] sm:$0xff]  ;;  %v1765_v63 = vld [vmem:[%s16018_s2 + $0x128] sm:$0xff] }
 0x167   :  { %6611 = vmatprep.subr.bf16.mxu1 %v6610_v8  ;;  %v6630_v8 = vpack.c.bf16 %v1255_v1, %v1249_v0  ;;  %v1771_v0 = vld [vmem:[%s16018_s2 + $0x158] sm:$0xff]  ;;  %v8429_v1 = vmov 0.0   ;;  %v1808_v53 = vld [vmem:[%s16018_s2 + $0x280] sm:$0xff] }
 0x169   :  { %6485 = vmatpush1.bf16.msra.mxu0 %v6484_v14  ;;  %v6504_v14 = vpack.c.bf16 %v1252_v6, %v1246_v5  ;;  %v6650_v6 = vpack.c.bf16 %v1771_v0, %v1765_v63  ;;  %v1820_v63 = vld [vmem:[%s16018_s2 + $0x2e0] sm:$0xff]  ;;  %v1825_v0 = vld [vmem:[%s16018_s2 + $0x308] sm:$0xff] }
 0x16a   :  { %6613 = vmatpush1.bf16.msra.mxu1 %v6612_v15  ;;  %6487 = vmatprep.subr.bf16.mxu0 %v6486_v17  ;;  %v6632_v15 = vpack.c.bf16 %v1254_v9, %v1248_v7  ;;  %v6506_v17 = vpack.c.bf16 %v1265_v11, %v1259_v10  ;;  %v1764_v7 = vld [vmem:[%s16018_s2 + $0x120] sm:$0xff]  ;;  %v1766_v9 = vld [vmem:[%s16018_s2 + $0x130] sm:$0xff] }
 0x16b   :  { %6615 = vmatprep.subr.bf16.mxu1 %v6614_v21  ;;  %v6634_v21 = vpack.c.bf16 %v1267_v13, %v1261_v12  ;;  %v1772_v11 = vld [vmem:[%s16018_s2 + $0x160] sm:$0xff]  ;;  %v1777_v12 = vld [vmem:[%s16018_s2 + $0x188] sm:$0xff]  ;;  %v1783_v13 = vld [vmem:[%s16018_s2 + $0x1b8] sm:$0xff] }
 0x16d   :  { %6489 = vmatpush1.bf16.msra.mxu0 %v6488_v28  ;;  %v6508_v28 = vpack.c.bf16 %v1264_v19, %v1258_v18  ;;  %v6716_v18 = vpack.c.bf16 %v1772_v11, %v1766_v9  ;;  %v6654_v19 = vpack.c.bf16 %v1783_v13, %v1777_v12  ;;  %v1830_v9 = vld [vmem:[%s16018_s2 + $0x330] sm:$0xff]  ;;  %v1832_v12 = vld [vmem:[%s16018_s2 + $0x340] sm:$0xff]  ;;  %v1837_v13 = vld [vmem:[%s16018_s2 + $0x368] sm:$0xff] }
 0x16e   :  { %6617 = vmatpush1.bf16.msra.mxu1 %v6616_v29  ;;  %6491 = vmatprep.subr.bf16.mxu0 %v6490_v30  ;;  %v6636_v29 = vpack.c.bf16 %v1266_v22, %v1260_v20  ;;  %v6638_v30 = vpack.c.bf16 %v1735_v25, %v1729_v23  ;;  %v1776_v20 = vld [vmem:[%s16018_s2 + $0x180] sm:$0xff]  ;;  %v1778_v22 = vld [vmem:[%s16018_s2 + $0x190] sm:$0xff] }
 0x16f   :  { %6619 = vmatprep.subr.bf16.mxu1 %v6618_v35  ;;  %v6702_v35 = vpack.c.bf16 %v1737_v27, %v1731_v26  ;;  %v1784_v25 = vld [vmem:[%s16018_s2 + $0x1c0] sm:$0xff]  ;;  %v1789_v26 = vld [vmem:[%s16018_s2 + $0x1e8] sm:$0xff]  ;;  %v1795_v27 = vld [vmem:[%s16018_s2 + $0x218] sm:$0xff] }
 0x171   :  { %6493 = vmatpush1.bf16.msra.mxu0 %v6492_v44  ;;  %v6640_v44 = vpack.c.bf16 %v1734_v32, %v1728_v31  ;;  %v6720_v31 = vpack.c.bf16 %v1784_v25, %v1778_v22  ;;  %v6658_v32 = vpack.c.bf16 %v1795_v27, %v1789_v26  ;;  %v1842_v22 = vld [vmem:[%s16018_s2 + $0x390] sm:$0xff]  ;;  %v1844_v26 = vld [vmem:[%s16018_s2 + $0x3a0] sm:$0xff]  ;;  %v1849_v27 = vld [vmem:[%s16018_s2 + $0x3c8] sm:$0xff] }
 0x172   :  { %6621 = vmatpush1.bf16.msra.mxu1 %v6620_v45  ;;  %6495 = vmatprep.subr.bf16.mxu0 %v6494_v46  ;;  %v6704_v45 = vpack.c.bf16 %v1736_v36, %v1730_v33  ;;  %v6642_v46 = vpack.c.bf16 %v1747_v38, %v1741_v37  ;;  %v1788_v33 = vld [vmem:[%s16018_s2 + $0x1e0] sm:$0xff]  ;;  %v1790_v36 = vld [vmem:[%s16018_s2 + $0x1f0] sm:$0xff] }
 0x173   :  { %6623 = vmatprep.subr.bf16.mxu1 %v6622_v50  ;;  %v6706_v50 = vpack.c.bf16 %v1749_v42, %v1743_v41  ;;  %v1796_v38 = vld [vmem:[%s16018_s2 + $0x220] sm:$0xff]  ;;  %v1801_v41 = vld [vmem:[%s16018_s2 + $0x248] sm:$0xff]  ;;  %v1807_v42 = vld [vmem:[%s16018_s2 + $0x278] sm:$0xff] }
 0x175   :  { %6497 = vmatpush1.bf16.msra.mxu0 %v6496_v55  ;;  %v1761_v55 = vld [vmem:[%s16018_s2 + $0x108] sm:$0xff] }
 0x176   :  { %6625 = vmatpush1.bf16.msra.mxu1 %v6624_v56  ;;  %6499 = vmatprep.subr.bf16.mxu0 %v6498_v24  ;;  %v6644_v56 = vpack.c.bf16 %v1746_v48, %v1740_v47  ;;  %v6708_v24 = vpack.c.bf16 %v1748_v51, %v1742_v49  ;;  %v6710_v61 = vpack.c.bf16 %v1761_v55, %v1755_v54  ;;  %v1800_v49 = vld [vmem:[%s16018_s2 + $0x240] sm:$0xff]  ;;  %v1802_v51 = vld [vmem:[%s16018_s2 + $0x250] sm:$0xff]  ;;  %v1819_v54 = vld [vmem:[%s16018_s2 + $0x2d8] sm:$0xff] }
 0x177   :  { %6627 = vmatprep.subr.bf16.mxu1 %v6626_v60  ;;  %v1754_v60 = vld [vmem:[%s16018_s2 + $0xd0] sm:$0xff]  ;;  %v6724_v47 = vpack.c.bf16 %v1796_v38, %v1790_v36  ;;  %v6662_v48 = vpack.c.bf16 %v1807_v42, %v1801_v41  ;;  %v1815_v55 = vld [vmem:[%s16018_s2 + $0x2b8] sm:$0xff]  ;;  %v1856_v41 = vld [vmem:[%s16018_s2 + $0x400] sm:$0xff] }
 0x178   :  { %v6712_v5 = vpack.c.bf16 %v1760_v62, %v1754_v60  ;;  %v1818_v60 = vld [vmem:[%s16018_s2 + $0x2d0] sm:$0xff]  ;;  %v1861_v42 = vld [vmem:[%s16018_s2 + $0x428] sm:$0xff] }
 0x179   :  { %6501 = vmatpush1.bf16.msra.mxu0 %v6500_v2  ;;  %v1767_v2 = vld [vmem:[%s16018_s2 + $0x138] sm:$0xff]  ;;  %v1854_v36 = vld [vmem:[%s16018_s2 + $0x3f0] sm:$0xff] }
 0x17a   :  { %6629 = vmatpush1.bf16.msra.mxu1 %v6628_v3  ;;  %6503 = vmatprep.subr.bf16.mxu0 %v6502_v4  ;;  %v1773_v3 = vld [vmem:[%s16018_s2 + $0x168] sm:$0xff]  ;;  %v6648_v4 = vpack.c.bf16 %v1758_v59, %v1752_v58  ;;  %v1812_v59 = vld [vmem:[%s16018_s2 + $0x2a0] sm:$0xff] }
 0x17b   :  { %6631 = vmatprep.subr.bf16.mxu1 %v6630_v8  ;;  %v1770_v8 = vld [vmem:[%s16018_s2 + $0x150] sm:$0xff]  ;;  %v6714_v10 = vpack.c.bf16 %v1773_v3, %v1767_v2  ;;  %v1831_v2 = vld [vmem:[%s16018_s2 + $0x338] sm:$0xff] }
 0x17c   :  { %v1827_v3 = vld [vmem:[%s16018_s2 + $0x318] sm:$0xff] }
 0x17d   :  { %6505 = vmatpush1.bf16.msra.mxu0 %v6504_v14  ;;  %v1779_v14 = vld [vmem:[%s16018_s2 + $0x198] sm:$0xff] }
 0x17e   :  { %6633 = vmatpush1.bf16.msra.mxu1 %v6632_v15  ;;  %6507 = vmatprep.subr.bf16.mxu0 %v6506_v17  ;;  %v1785_v15 = vld [vmem:[%s16018_s2 + $0x1c8] sm:$0xff]  ;;  %v6652_v17 = vpack.c.bf16 %v1770_v8, %v1764_v7  ;;  %v6670_v7 = vpack.c.bf16 %v1831_v2, %v1825_v0  ;;  %v1824_v8 = vld [vmem:[%s16018_s2 + $0x300] sm:$0xff] }
 0x17f   :  { %6635 = vmatprep.subr.bf16.mxu1 %v6634_v21  ;;  %v1782_v21 = vld [vmem:[%s16018_s2 + $0x1b0] sm:$0xff]  ;;  %v6718_v23 = vpack.c.bf16 %v1785_v15, %v1779_v14  ;;  %v1843_v14 = vld [vmem:[%s16018_s2 + $0x398] sm:$0xff]  ;;  %v1880_v0 = vld [vmem:[%s16018_s2 + $0x4c0] sm:$0xff] }
 0x180   :  { %v1839_v15 = vld [vmem:[%s16018_s2 + $0x378] sm:$0xff]  ;;  %v1885_v2 = vld [vmem:[%s16018_s2 + $0x4e8] sm:$0xff] }
 0x181   :  { %6509 = vmatpush1.bf16.msra.mxu0 %v6508_v28  ;;  %v1791_v28 = vld [vmem:[%s16018_s2 + $0x1f8] sm:$0xff] }
 0x182   :  { %6637 = vmatpush1.bf16.msra.mxu1 %v6636_v29  ;;  %6639 = vmatprep.subr.bf16.mxu0 %v6638_v30  ;;  %v1797_v29 = vld [vmem:[%s16018_s2 + $0x228] sm:$0xff]  ;;  %v6656_v30 = vpack.c.bf16 %v1782_v21, %v1776_v20  ;;  %v6674_v20 = vpack.c.bf16 %v1843_v14, %v1837_v13  ;;  %v1836_v21 = vld [vmem:[%s16018_s2 + $0x360] sm:$0xff] }
 0x183   :  { %6703 = vmatprep.subr.bf16.mxu1 %v6702_v35  ;;  %v1794_v35 = vld [vmem:[%s16018_s2 + $0x210] sm:$0xff]  ;;  %v6722_v37 = vpack.c.bf16 %v1797_v29, %v1791_v28  ;;  %v1855_v28 = vld [vmem:[%s16018_s2 + $0x3f8] sm:$0xff]  ;;  %v1892_v13 = vld [vmem:[%s16018_s2 + $0x520] sm:$0xff] }
 0x184   :  { %1578 = vmatmul.mubr.f32.vlgmr.msra.gmra.mrb[4].mxu0 %v8428_v16  ;;  %v1851_v29 = vld [vmem:[%s16018_s2 + $0x3d8] sm:$0xff]  ;;  %v1897_v14 = vld [vmem:[%s16018_s2 + $0x548] sm:$0xff] }
 0x185   :  { %1720 = vmatmul.mubr.f32.vlgmr.msra.gmra.mrb[4].mxu1 %v8428_v16  ;;  %6641 = vmatpush1.bf16.msra.mxu0 %v6640_v44  ;;  %v1803_v44 = vld [vmem:[%s16018_s2 + $0x258] sm:$0xff]  ;;  %v1813_v16 = vld [vmem:[%s16018_s2 + $0x2a8] sm:$0xff] }
 0x186   :  { %6705 = vmatpush1.bf16.msra.mxu1 %v6704_v45  ;;  %6643 = vmatprep.subr.bf16.mxu0 %v6642_v46  ;;  %v1809_v45 = vld [vmem:[%s16018_s2 + $0x288] sm:$0xff]  ;;  %v6660_v46 = vpack.c.bf16 %v1794_v35, %v1788_v33  ;;  %v6666_v58 = vpack.c.bf16 %v1819_v54, %v1813_v16  ;;  %v6678_v33 = vpack.c.bf16 %v1855_v28, %v1849_v27  ;;  %v1848_v35 = vld [vmem:[%s16018_s2 + $0x3c0] sm:$0xff] }
 0x187   :  { %6707 = vmatprep.subr.bf16.mxu1 %v6706_v50  ;;  %2015 = vmatprep.mubr.f32.mxu0 %v8429_v1  ;;  %v1806_v50 = vld [vmem:[%s16018_s2 + $0x270] sm:$0xff]  ;;  %v6726_v52 = vpack.c.bf16 %v1809_v45, %v1803_v44  ;;  %v1867_v44 = vld [vmem:[%s16018_s2 + $0x458] sm:$0xff]  ;;  %v1868_v16 = vld [vmem:[%s16018_s2 + $0x460] sm:$0xff] }
 0x188   :  { %2086 = vmatprep.mubr.f32.mxu1 %v8429_v1  ;;  %v1863_v45 = vld [vmem:[%s16018_s2 + $0x438] sm:$0xff]  ;;  %v1873_v54 = vld [vmem:[%s16018_s2 + $0x488] sm:$0xff]  ;;  %v1904_v27 = vld [vmem:[%s16018_s2 + $0x580] sm:$0xff] }
 0x189   :  { %6645 = vmatpush1.bf16.msra.mxu0 %v6644_v56  ;;  %v1821_v56 = vld [vmem:[%s16018_s2 + $0x2e8] sm:$0xff] }
 0x18a   :  { %6709 = vmatpush1.bf16.msra.mxu1 %v6708_v24  ;;  %6647 = vmatprep.subr.bf16.mxu0 %v6646_v57  ;;  %v6664_v24 = vpack.c.bf16 %v1806_v50, %v1800_v49  ;;  %v6728_v57 = vpack.c.bf16 %v1808_v53, %v1802_v51  ;;  %v6730_v62 = vpack.c.bf16 %v1821_v56, %v1815_v55  ;;  %v1860_v50 = vld [vmem:[%s16018_s2 + $0x420] sm:$0xff]  ;;  %v1866_v51 = vld [vmem:[%s16018_s2 + $0x450] sm:$0xff]  ;;  %v1879_v55 = vld [vmem:[%s16018_s2 + $0x4b8] sm:$0xff] }
 0x18b   :  { %6711 = vmatprep.subr.bf16.mxu1 %v6710_v61  ;;  %v1814_v61 = vld [vmem:[%s16018_s2 + $0x2b0] sm:$0xff]  ;;  %v6682_v49 = vpack.c.bf16 %v1867_v44, %v1861_v42  ;;  %v1875_v56 = vld [vmem:[%s16018_s2 + $0x498] sm:$0xff]  ;;  %v1909_v28 = vld [vmem:[%s16018_s2 + $0x5a8] sm:$0xff] }
 0x18c   :  { %v1916_v42 = vld [vmem:[%s16018_s2 + $0x5e0] sm:$0xff]  ;;  %v1733_v44 = vld [vmem:[%s16018_s2 + $0x28] sm:$0xff] }
 0x18d   :  { %6649 = vmatpush1.bf16.msra.mxu0 %v6648_v4  ;;  %v1833_v4 = vld [vmem:[%s16018_s2 + $0x348] sm:$0xff] }
 0x18e   :  { %6713 = vmatpush1.bf16.msra.mxu1 %v6712_v5  ;;  %6651 = vmatprep.subr.bf16.mxu0 %v6650_v6  ;;  %v6668_v5 = vpack.c.bf16 %v1818_v60, %v1812_v59  ;;  %v6732_v6 = vpack.c.bf16 %v1820_v63, %v1814_v61  ;;  %v6734_v11 = vpack.c.bf16 %v1833_v4, %v1827_v3  ;;  %v1872_v60 = vld [vmem:[%s16018_s2 + $0x480] sm:$0xff]  ;;  %v1878_v61 = vld [vmem:[%s16018_s2 + $0x4b0] sm:$0xff]  ;;  %v1891_v3 = vld [vmem:[%s16018_s2 + $0x518] sm:$0xff] }
 0x18f   :  { %6715 = vmatprep.subr.bf16.mxu1 %v6714_v10  ;;  %v1826_v10 = vld [vmem:[%s16018_s2 + $0x310] sm:$0xff]  ;;  %v6686_v59 = vpack.c.bf16 %v1879_v55, %v1873_v54  ;;  %v1887_v4 = vld [vmem:[%s16018_s2 + $0x4f8] sm:$0xff]  ;;  %v1745_v55 = vld [vmem:[%s16018_s2 + $0x88] sm:$0xff] }
 0x190   :  { %v2170_v54 = vld [vmem:[%s16019_s6 + $0x30] sm:$0xff] }
 0x191   :  { %6653 = vmatpush1.bf16.msra.mxu0 %v6652_v17  ;;  %v1845_v17 = vld [vmem:[%s16018_s2 + $0x3a8] sm:$0xff] }
 0x192   :  { %6717 = vmatpush1.bf16.msra.mxu1 %v6716_v18  ;;  %6655 = vmatprep.subr.bf16.mxu0 %v6654_v19  ;;  %v6672_v18 = vpack.c.bf16 %v1830_v9, %v1824_v8  ;;  %v6736_v19 = vpack.c.bf16 %v1832_v12, %v1826_v10  ;;  %v6738_v25 = vpack.c.bf16 %v1845_v17, %v1839_v15  ;;  %v1884_v9 = vld [vmem:[%s16018_s2 + $0x4e0] sm:$0xff]  ;;  %v1890_v10 = vld [vmem:[%s16018_s2 + $0x510] sm:$0xff]  ;;  %v1903_v15 = vld [vmem:[%s16018_s2 + $0x578] sm:$0xff] }
 0x193   :  { %6719 = vmatprep.subr.bf16.mxu1 %v6718_v23  ;;  %v1838_v23 = vld [vmem:[%s16018_s2 + $0x370] sm:$0xff]  ;;  %v6690_v8 = vpack.c.bf16 %v1891_v3, %v1885_v2  ;;  %v1899_v17 = vld [vmem:[%s16018_s2 + $0x558] sm:$0xff]  ;;  %v1757_v3 = vld [vmem:[%s16018_s2 + $0xe8] sm:$0xff] }
 0x194   :  { %v2182_v2 = vld [vmem:[%s16019_s6 + $0x90] sm:$0xff] }
 0x195   :  { %6657 = vmatpush1.bf16.msra.mxu0 %v6656_v30  ;;  %v1857_v30 = vld [vmem:[%s16018_s2 + $0x408] sm:$0xff] }
 0x196   :  { %6721 = vmatpush1.bf16.msra.mxu1 %v6720_v31  ;;  %6659 = vmatprep.subr.bf16.mxu0 %v6658_v32  ;;  %v6676_v31 = vpack.c.bf16 %v1842_v22, %v1836_v21  ;;  %v6740_v32 = vpack.c.bf16 %v1844_v26, %v1838_v23  ;;  %v6742_v38 = vpack.c.bf16 %v1857_v30, %v1851_v29  ;;  %v1896_v22 = vld [vmem:[%s16018_s2 + $0x540] sm:$0xff]  ;;  %v1902_v23 = vld [vmem:[%s16018_s2 + $0x570] sm:$0xff]  ;;  %v1915_v29 = vld [vmem:[%s16018_s2 + $0x5d8] sm:$0xff] }
 0x197   :  { %6723 = vmatprep.subr.bf16.mxu1 %v6722_v37  ;;  %v1850_v37 = vld [vmem:[%s16018_s2 + $0x3d0] sm:$0xff]  ;;  %v6694_v21 = vpack.c.bf16 %v1903_v15, %v1897_v14  ;;  %v1911_v30 = vld [vmem:[%s16018_s2 + $0x5b8] sm:$0xff]  ;;  %v1769_v15 = vld [vmem:[%s16018_s2 + $0x148] sm:$0xff] }
 0x198   :  { %v2194_v14 = vld [vmem:[%s16019_s6 + $0xf0] sm:$0xff] }
 0x199   :  { %6661 = vmatpush1.bf16.msra.mxu0 %v6660_v46  ;;  %v1869_v46 = vld [vmem:[%s16018_s2 + $0x468] sm:$0xff] }
 0x19a   :  { %6725 = vmatpush1.bf16.msra.mxu1 %v6724_v47  ;;  %6663 = vmatprep.subr.bf16.mxu0 %v6662_v48  ;;  %v6680_v47 = vpack.c.bf16 %v1854_v36, %v1848_v35  ;;  %v6744_v48 = vpack.c.bf16 %v1856_v41, %v1850_v37  ;;  %v6746_v53 = vpack.c.bf16 %v1869_v46, %v1863_v45  ;;  %v1908_v36 = vld [vmem:[%s16018_s2 + $0x5a0] sm:$0xff]  ;;  %v1914_v37 = vld [vmem:[%s16018_s2 + $0x5d0] sm:$0xff]  ;;  %v1739_v45 = vld [vmem:[%s16018_s2 + $0x58] sm:$0xff] }
 0x19b   :  { %6727 = vmatprep.subr.bf16.mxu1 %v6726_v52  ;;  %v1862_v52 = vld [vmem:[%s16018_s2 + $0x430] sm:$0xff]  ;;  %v6698_v35 = vpack.c.bf16 %v1915_v29, %v1909_v28  ;;  %v2165_v46 = vld [vmem:[%s16019_s6 + $0x8] sm:$0xff] }
 0x19c   :  { %v2206_v28 = vld [vmem:[%s16019_s6 + $0x150] sm:$0xff]  ;;  %v1781_v29 = vld [vmem:[%s16018_s2 + $0x1a8] sm:$0xff] }
 0x19d   :  { %6665 = vmatpush1.bf16.msra.mxu0 %v6664_v24  ;;  %v1881_v24 = vld [vmem:[%s16018_s2 + $0x4c8] sm:$0xff] }
 0x19e   :  { %6729 = vmatpush1.bf16.msra.mxu1 %v6728_v57  ;;  %6667 = vmatprep.subr.bf16.mxu0 %v6666_v58  ;;  %v6684_v57 = vpack.c.bf16 %v1866_v51, %v1860_v50  ;;  %v6748_v58 = vpack.c.bf16 %v1868_v16, %v1862_v52  ;;  %v6750_v63 = vpack.c.bf16 %v1881_v24, %v1875_v56  ;;  %v1732_v51 = vld [vmem:[%s16018_s2 + $0x20] sm:$0xff]  ;;  %v1738_v52 = vld [vmem:[%s16018_s2 + $0x50] sm:$0xff]  ;;  %v1751_v56 = vld [vmem:[%s16018_s2 + $0xb8] sm:$0xff] }
 0x19f   :  { %6731 = vmatprep.subr.bf16.mxu1 %v6730_v62  ;;  %v1874_v62 = vld [vmem:[%s16018_s2 + $0x490] sm:$0xff]  ;;  %v6766_v50 = vpack.c.bf16 %v1739_v45, %v1733_v44  ;;  %v2177_v24 = vld [vmem:[%s16019_s6 + $0x68] sm:$0xff] }
 0x1a0   :  { %v2218_v44 = vld [vmem:[%s16019_s6 + $0x1b0] sm:$0xff]  ;;  %v1793_v45 = vld [vmem:[%s16018_s2 + $0x208] sm:$0xff] }
 0x1a1   :  { %6669 = vmatpush1.bf16.msra.mxu0 %v6668_v5  ;;  %v1893_v5 = vld [vmem:[%s16018_s2 + $0x528] sm:$0xff] }
 0x1a2   :  { %6733 = vmatpush1.bf16.msra.mxu1 %v6732_v6  ;;  %6671 = vmatprep.subr.bf16.mxu0 %v6670_v7  ;;  %v6688_v6 = vpack.c.bf16 %v1878_v61, %v1872_v60  ;;  %v6752_v7 = vpack.c.bf16 %v1880_v0, %v1874_v62  ;;  %v6754_v12 = vpack.c.bf16 %v1893_v5, %v1887_v4  ;;  %v1744_v61 = vld [vmem:[%s16018_s2 + $0x80] sm:$0xff]  ;;  %v1750_v62 = vld [vmem:[%s16018_s2 + $0xb0] sm:$0xff]  ;;  %v1763_v4 = vld [vmem:[%s16018_s2 + $0x118] sm:$0xff] }
 0x1a3   :  { %6735 = vmatprep.subr.bf16.mxu1 %v6734_v11  ;;  %v1886_v11 = vld [vmem:[%s16018_s2 + $0x4f0] sm:$0xff]  ;;  %v6770_v60 = vpack.c.bf16 %v1751_v56, %v1745_v55  ;;  %v2189_v5 = vld [vmem:[%s16019_s6 + $0xc8] sm:$0xff] }
 0x1a4   :  { %v2230_v55 = vld [vmem:[%s16019_s6 + $0x210] sm:$0xff]  ;;  %v1805_v56 = vld [vmem:[%s16018_s2 + $0x268] sm:$0xff] }
 0x1a5   :  { %6673 = vmatpush1.bf16.msra.mxu0 %v6672_v18  ;;  %v1905_v18 = vld [vmem:[%s16018_s2 + $0x588] sm:$0xff] }
 0x1a6   :  { %6737 = vmatpush1.bf16.msra.mxu1 %v6736_v19  ;;  %6675 = vmatprep.subr.bf16.mxu0 %v6674_v20  ;;  %v6692_v19 = vpack.c.bf16 %v1890_v10, %v1884_v9  ;;  %v6756_v20 = vpack.c.bf16 %v1892_v13, %v1886_v11  ;;  %v6758_v26 = vpack.c.bf16 %v1905_v18, %v1899_v17  ;;  %v1756_v10 = vld [vmem:[%s16018_s2 + $0xe0] sm:$0xff]  ;;  %v1762_v11 = vld [vmem:[%s16018_s2 + $0x110] sm:$0xff]  ;;  %v1775_v17 = vld [vmem:[%s16018_s2 + $0x178] sm:$0xff] }
 0x1a7   :  { %6739 = vmatprep.subr.bf16.mxu1 %v6738_v25  ;;  %v1898_v25 = vld [vmem:[%s16018_s2 + $0x550] sm:$0xff]  ;;  %v6774_v9 = vpack.c.bf16 %v1763_v4, %v1757_v3  ;;  %v2201_v18 = vld [vmem:[%s16019_s6 + $0x128] sm:$0xff] }
 0x1a8   :  { %v2242_v4 = vld [vmem:[%s16019_s6 + $0x270] sm:$0xff] }
 0x1a9   :  { %6677 = vmatpush1.bf16.msra.mxu0 %v6676_v31  ;;  %v1917_v31 = vld [vmem:[%s16018_s2 + $0x5e8] sm:$0xff] }
 0x1aa   :  { %6741 = vmatpush1.bf16.msra.mxu1 %v6740_v32  ;;  %6679 = vmatprep.subr.bf16.mxu0 %v6678_v33  ;;  %v6696_v32 = vpack.c.bf16 %v1902_v23, %v1896_v22  ;;  %v6760_v33 = vpack.c.bf16 %v1904_v27, %v1898_v25  ;;  %v6762_v41 = vpack.c.bf16 %v1917_v31, %v1911_v30  ;;  %v1768_v23 = vld [vmem:[%s16018_s2 + $0x140] sm:$0xff]  ;;  %v1774_v25 = vld [vmem:[%s16018_s2 + $0x170] sm:$0xff]  ;;  %v1787_v30 = vld [vmem:[%s16018_s2 + $0x1d8] sm:$0xff] }
 0x1ab   :  { %6743 = vmatprep.subr.bf16.mxu1 %v6742_v38  ;;  %v1910_v38 = vld [vmem:[%s16018_s2 + $0x5b0] sm:$0xff]  ;;  %v6778_v22 = vpack.c.bf16 %v1775_v17, %v1769_v15  ;;  %v2213_v31 = vld [vmem:[%s16019_s6 + $0x188] sm:$0xff]  ;;  %v1816_v15 = vld [vmem:[%s16018_s2 + $0x2c0] sm:$0xff] }
 0x1ac   :  { %v1822_v17 = vld [vmem:[%s16018_s2 + $0x2f0] sm:$0xff] }
 0x1ad   :  { %6681 = vmatpush1.bf16.msra.mxu0 %v6680_v47  ;;  %v2171_v47 = vld [vmem:[%s16019_s6 + $0x38] sm:$0xff] }
 0x1ae   :  { %6745 = vmatpush1.bf16.msra.mxu1 %v6744_v48  ;;  %6683 = vmatprep.subr.bf16.mxu0 %v6682_v49  ;;  %v6700_v48 = vpack.c.bf16 %v1914_v37, %v1908_v36  ;;  %v6764_v49 = vpack.c.bf16 %v1916_v42, %v1910_v38  ;;  %v6830_v16 = vpack.c.bf16 %v2171_v47, %v2165_v46  ;;  %v1780_v37 = vld [vmem:[%s16018_s2 + $0x1a0] sm:$0xff]  ;;  %v1786_v38 = vld [vmem:[%s16018_s2 + $0x1d0] sm:$0xff]  ;;  %v1799_v46 = vld [vmem:[%s16018_s2 + $0x238] sm:$0xff] }
 0x1af   :  { %6747 = vmatprep.subr.bf16.mxu1 %v6746_v53  ;;  %v2164_v53 = vld [vmem:[%s16019_s6] sm:$0xff]  ;;  %v6782_v36 = vpack.c.bf16 %v1787_v30, %v1781_v29  ;;  %v2225_v47 = vld [vmem:[%s16019_s6 + $0x1e8] sm:$0xff]  ;;  %v1834_v30 = vld [vmem:[%s16018_s2 + $0x350] sm:$0xff] }
 0x1b0   :  { %v1828_v29 = vld [vmem:[%s16018_s2 + $0x320] sm:$0xff] }
 0x1b1   :  { %6685 = vmatpush1.bf16.msra.mxu0 %v6684_v57  ;;  %v2183_v57 = vld [vmem:[%s16019_s6 + $0x98] sm:$0xff] }
 0x1b2   :  { %6749 = vmatpush1.bf16.msra.mxu1 %v6748_v58  ;;  %6687 = vmatprep.subr.bf16.mxu0 %v6686_v59  ;;  %v6768_v58 = vpack.c.bf16 %v1738_v52, %v1732_v51  ;;  %v6832_v59 = vpack.c.bf16 %v2170_v54, %v2164_v53  ;;  %v6834_v0 = vpack.c.bf16 %v2183_v57, %v2177_v24  ;;  %v1792_v52 = vld [vmem:[%s16018_s2 + $0x200] sm:$0xff]  ;;  %v1798_v53 = vld [vmem:[%s16018_s2 + $0x230] sm:$0xff]  ;;  %v1811_v24 = vld [vmem:[%s16018_s2 + $0x298] sm:$0xff] }
 0x1b3   :  { %6751 = vmatprep.subr.bf16.mxu1 %v6750_v63  ;;  %v2176_v63 = vld [vmem:[%s16019_s6 + $0x60] sm:$0xff]  ;;  %v6786_v51 = vpack.c.bf16 %v1799_v46, %v1793_v45  ;;  %v2237_v57 = vld [vmem:[%s16019_s6 + $0x248] sm:$0xff]  ;;  %v1846_v46 = vld [vmem:[%s16018_s2 + $0x3b0] sm:$0xff] }
 0x1b4   :  { %v1840_v45 = vld [vmem:[%s16018_s2 + $0x380] sm:$0xff] }
 0x1b5   :  { %6689 = vmatpush1.bf16.msra.mxu0 %v6688_v6  ;;  %v2195_v6 = vld [vmem:[%s16019_s6 + $0xf8] sm:$0xff] }
 0x1b6   :  { %6753 = vmatpush1.bf16.msra.mxu1 %v6752_v7  ;;  %6691 = vmatprep.subr.bf16.mxu0 %v6690_v8  ;;  %v6772_v7 = vpack.c.bf16 %v1750_v62, %v1744_v61  ;;  %v6836_v8 = vpack.c.bf16 %v2182_v2, %v2176_v63  ;;  %v6838_v13 = vpack.c.bf16 %v2195_v6, %v2189_v5  ;;  %v1804_v62 = vld [vmem:[%s16018_s2 + $0x260] sm:$0xff]  ;;  %v1810_v63 = vld [vmem:[%s16018_s2 + $0x290] sm:$0xff]  ;;  %v1817_v5 = vld [vmem:[%s16018_s2 + $0x2c8] sm:$0xff] }
 0x1b7   :  { %6755 = vmatprep.subr.bf16.mxu1 %v6754_v12  ;;  %v2188_v12 = vld [vmem:[%s16019_s6 + $0xc0] sm:$0xff]  ;;  %v6790_v61 = vpack.c.bf16 %v1811_v24, %v1805_v56  ;;  %v1823_v6 = vld [vmem:[%s16018_s2 + $0x2f8] sm:$0xff]  ;;  %v1858_v24 = vld [vmem:[%s16018_s2 + $0x410] sm:$0xff] }
 0x1b8   :  { %v1852_v56 = vld [vmem:[%s16018_s2 + $0x3e0] sm:$0xff] }
 0x1b9   :  { %6693 = vmatpush1.bf16.msra.mxu0 %v6692_v19  ;;  %v2207_v19 = vld [vmem:[%s16019_s6 + $0x158] sm:$0xff] }
 0x1ba   :  { %6757 = vmatpush1.bf16.msra.mxu1 %v6756_v20  ;;  %6695 = vmatprep.subr.bf16.mxu0 %v6694_v21  ;;  %v6776_v20 = vpack.c.bf16 %v1762_v11, %v1756_v10  ;;  %v6840_v21 = vpack.c.bf16 %v2194_v14, %v2188_v12  ;;  %v6842_v27 = vpack.c.bf16 %v2207_v19, %v2201_v18  ;;  %v2255_v10 = vld [vmem:[%s16019_s6 + $0x2d8] sm:$0xff]  ;;  %v2248_v18 = vld [vmem:[%s16019_s6 + $0x2a0] sm:$0xff] }
 0x1bb   :  { %6759 = vmatprep.subr.bf16.mxu1 %v6758_v26  ;;  %v2200_v26 = vld [vmem:[%s16019_s6 + $0x120] sm:$0xff]  ;;  %v6792_v12 = vpack.c.bf16 %v1810_v63, %v1804_v62  ;;  %v6794_v14 = vpack.c.bf16 %v1823_v6, %v1817_v5  ;;  %v2297_v62 = vld [vmem:[%s16019_s6 + $0x428] sm:$0xff]  ;;  %v2303_v63 = vld [vmem:[%s16019_s6 + $0x458] sm:$0xff] }
 0x1bc   :  { %v1864_v5 = vld [vmem:[%s16018_s2 + $0x440] sm:$0xff]  ;;  %v1870_v6 = vld [vmem:[%s16018_s2 + $0x470] sm:$0xff] }
 0x1bd   :  { %6697 = vmatpush1.bf16.msra.mxu0 %v6696_v32  ;;  %v2219_v32 = vld [vmem:[%s16019_s6 + $0x1b8] sm:$0xff] }
 0x1be   :  { %6761 = vmatpush1.bf16.msra.mxu1 %v6760_v33  ;;  %6699 = vmatprep.subr.bf16.mxu0 %v6698_v35  ;;  %v6780_v33 = vpack.c.bf16 %v1774_v25, %v1768_v23  ;;  %v6844_v35 = vpack.c.bf16 %v2206_v28, %v2200_v26  ;;  %v6846_v42 = vpack.c.bf16 %v2219_v32, %v2213_v31  ;;  %v2261_v23 = vld [vmem:[%s16019_s6 + $0x308] sm:$0xff]  ;;  %v2267_v25 = vld [vmem:[%s16019_s6 + $0x338] sm:$0xff]  ;;  %v2260_v31 = vld [vmem:[%s16019_s6 + $0x300] sm:$0xff] }
 0x1bf   :  { %6763 = vmatprep.subr.bf16.mxu1 %v6762_v41  ;;  %v2212_v41 = vld [vmem:[%s16019_s6 + $0x180] sm:$0xff]  ;;  %v6796_v26 = vpack.c.bf16 %v1822_v17, %v1816_v15  ;;  %v6862_v32 = vpack.c.bf16 %v2267_v25, %v2261_v23  ;;  %v2309_v15 = vld [vmem:[%s16019_s6 + $0x488] sm:$0xff]  ;;  %v2315_v17 = vld [vmem:[%s16019_s6 + $0x4b8] sm:$0xff] }
 0x1c0   :  { %v2308_v23 = vld [vmem:[%s16019_s6 + $0x480] sm:$0xff]  ;;  %v6878_v25 = vpack.c.bf16 %v2315_v17, %v2309_v15 }
 0x1c1   :  { %6701 = vmatpush1.bf16.msra.mxu0 %v6700_v48  ;;  %v2231_v48 = vld [vmem:[%s16019_s6 + $0x218] sm:$0xff]  ;;  %v2168_v15 = vld [vmem:[%s16019_s6 + $0x20] sm:$0xff] }
 0x1c2   :  { %6765 = vmatpush1.bf16.msra.mxu1 %v6764_v49  ;;  %6767 = vmatprep.subr.bf16.mxu0 %v6766_v50  ;;  %v6784_v49 = vpack.c.bf16 %v1786_v38, %v1780_v37  ;;  %v6848_v50 = vpack.c.bf16 %v2218_v44, %v2212_v41  ;;  %v6850_v54 = vpack.c.bf16 %v2231_v48, %v2225_v47  ;;  %v2273_v37 = vld [vmem:[%s16019_s6 + $0x368] sm:$0xff]  ;;  %v2279_v38 = vld [vmem:[%s16019_s6 + $0x398] sm:$0xff]  ;;  %v2272_v47 = vld [vmem:[%s16019_s6 + $0x360] sm:$0xff] }
 0x1c3   :  { %6831 = vmatprep.subr.bf16.mxu1 %v6830_v16  ;;  %v2224_v16 = vld [vmem:[%s16019_s6 + $0x1e0] sm:$0xff]  ;;  %v6800_v41 = vpack.c.bf16 %v1834_v30, %v1828_v29  ;;  %v6866_v48 = vpack.c.bf16 %v2279_v38, %v2273_v37  ;;  %v2321_v29 = vld [vmem:[%s16019_s6 + $0x4e8] sm:$0xff]  ;;  %v2327_v30 = vld [vmem:[%s16019_s6 + $0x518] sm:$0xff] }
 0x1c4   :  { %2016 = vmatmul.mubr.f32.vlgmr.msra.gmra.mrb[6].mxu0 %v8429_v1  ;;  %v2320_v37 = vld [vmem:[%s16019_s6 + $0x4e0] sm:$0xff]  ;;  %v6882_v38 = vpack.c.bf16 %v2327_v30, %v2321_v29 }
 0x1c5   :  { %2087 = vmatmul.mubr.f32.vlgmr.msra.gmra.mrb[6].mxu1 %v8429_v1  ;;  %6769 = vmatpush1.bf16.msra.mxu0 %v6768_v58  ;;  %v2243_v58 = vld [vmem:[%s16019_s6 + $0x278] sm:$0xff]  ;;  %v2180_v29 = vld [vmem:[%s16019_s6 + $0x80] sm:$0xff] }
 0x1c6   :  { %6833 = vmatpush1.bf16.msra.mxu1 %v6832_v59  ;;  %6771 = vmatprep.subr.bf16.mxu0 %v6770_v60  ;;  %v6788_v59 = vpack.c.bf16 %v1798_v53, %v1792_v52  ;;  %v6852_v60 = vpack.c.bf16 %v2230_v55, %v2224_v16  ;;  %v6854_v3 = vpack.c.bf16 %v2243_v58, %v2237_v57  ;;  %v2285_v52 = vld [vmem:[%s16019_s6 + $0x3c8] sm:$0xff]  ;;  %v2291_v53 = vld [vmem:[%s16019_s6 + $0x3f8] sm:$0xff]  ;;  %v2284_v57 = vld [vmem:[%s16019_s6 + $0x3c0] sm:$0xff] }
 0x1c7   :  { %6835 = vmatprep.subr.bf16.mxu1 %v6834_v0  ;;  %2157 = vmatprep.mubr.f32.mxu0 %v8429_v1  ;;  %v2236_v0 = vld [vmem:[%s16019_s6 + $0x240] sm:$0xff]  ;;  %v6804_v16 = vpack.c.bf16 %v1846_v46, %v1840_v45  ;;  %v6870_v58 = vpack.c.bf16 %v2291_v53, %v2285_v52  ;;  %v2333_v45 = vld [vmem:[%s16019_s6 + $0x548] sm:$0xff]  ;;  %v2339_v46 = vld [vmem:[%s16019_s6 + $0x578] sm:$0xff] }
 0x1c8   :  { %2451 = vmatprep.mubr.f32.mxu1 %v8429_v1  ;;  %v2332_v52 = vld [vmem:[%s16019_s6 + $0x540] sm:$0xff]  ;;  %v6886_v53 = vpack.c.bf16 %v2339_v46, %v2333_v45 }
 0x1c9   :  { %6773 = vmatpush1.bf16.msra.mxu0 %v6772_v7  ;;  %v2192_v45 = vld [vmem:[%s16019_s6 + $0xe0] sm:$0xff] }
 0x1ca   :  { %6837 = vmatpush1.bf16.msra.mxu1 %v6836_v8  ;;  %6775 = vmatprep.subr.bf16.mxu0 %v6774_v9  ;;  %v2249_v9 = vld [vmem:[%s16019_s6 + $0x2a8] sm:$0xff] }
 0x1cb   :  { %6839 = vmatprep.subr.bf16.mxu1 %v6838_v13  ;;  %v6856_v13 = vpack.c.bf16 %v2242_v4, %v2236_v0  ;;  %v6858_v19 = vpack.c.bf16 %v2255_v10, %v2249_v9  ;;  %v6808_v0 = vpack.c.bf16 %v1858_v24, %v1852_v56  ;;  %v2296_v9 = vld [vmem:[%s16019_s6 + $0x420] sm:$0xff]  ;;  %v6874_v10 = vpack.c.bf16 %v2303_v63, %v2297_v62  ;;  %v2345_v56 = vld [vmem:[%s16019_s6 + $0x5a8] sm:$0xff]  ;;  %v2351_v24 = vld [vmem:[%s16019_s6 + $0x5d8] sm:$0xff] }
 0x1cc   :  { %v2344_v62 = vld [vmem:[%s16019_s6 + $0x5a0] sm:$0xff]  ;;  %v6890_v63 = vpack.c.bf16 %v2351_v24, %v2345_v56 }
 0x1cd   :  { %6777 = vmatpush1.bf16.msra.mxu0 %v6776_v20  ;;  %v2254_v20 = vld [vmem:[%s16019_s6 + $0x2d0] sm:$0xff]  ;;  %v2204_v56 = vld [vmem:[%s16019_s6 + $0x140] sm:$0xff] }
 0x1ce   :  { %6841 = vmatpush1.bf16.msra.mxu1 %v6840_v21  ;;  %6779 = vmatprep.subr.bf16.mxu0 %v6778_v22  ;;  %v1829_v21 = vld [vmem:[%s16018_s2 + $0x328] sm:$0xff]  ;;  %v1835_v22 = vld [vmem:[%s16018_s2 + $0x358] sm:$0xff] }
 0x1cf   :  { %6843 = vmatprep.subr.bf16.mxu1 %v6842_v27  ;;  %v6860_v27 = vpack.c.bf16 %v2254_v20, %v2248_v18  ;;  %v6798_v28 = vpack.c.bf16 %v1835_v22, %v1829_v21  ;;  %v6812_v18 = vpack.c.bf16 %v1870_v6, %v1864_v5  ;;  %v1876_v21 = vld [vmem:[%s16018_s2 + $0x4a0] sm:$0xff]  ;;  %v1882_v22 = vld [vmem:[%s16018_s2 + $0x4d0] sm:$0xff]  ;;  %v2169_v5 = vld [vmem:[%s16019_s6 + $0x28] sm:$0xff] }
 0x1d0   :  { %v2175_v6 = vld [vmem:[%s16019_s6 + $0x58] sm:$0xff] }
 0x1d1   :  { %6781 = vmatpush1.bf16.msra.mxu0 %v6780_v33  ;;  %v2266_v33 = vld [vmem:[%s16019_s6 + $0x330] sm:$0xff]  ;;  %v6958_v17 = vpack.c.bf16 %v2175_v6, %v2169_v5  ;;  %v2216_v5 = vld [vmem:[%s16019_s6 + $0x1a0] sm:$0xff] }
 0x1d2   :  { %6845 = vmatpush1.bf16.msra.mxu1 %v6844_v35  ;;  %6783 = vmatprep.subr.bf16.mxu0 %v6782_v36  ;;  %v1841_v35 = vld [vmem:[%s16018_s2 + $0x388] sm:$0xff]  ;;  %v1847_v36 = vld [vmem:[%s16018_s2 + $0x3b8] sm:$0xff] }
 0x1d3   :  { %6847 = vmatprep.subr.bf16.mxu1 %v6846_v42  ;;  %v6864_v42 = vpack.c.bf16 %v2266_v33, %v2260_v31  ;;  %v6802_v44 = vpack.c.bf16 %v1847_v36, %v1841_v35  ;;  %v6816_v31 = vpack.c.bf16 %v1882_v22, %v1876_v21  ;;  %v1888_v35 = vld [vmem:[%s16018_s2 + $0x500] sm:$0xff]  ;;  %v1894_v36 = vld [vmem:[%s16018_s2 + $0x530] sm:$0xff]  ;;  %v2181_v21 = vld [vmem:[%s16019_s6 + $0x88] sm:$0xff] }
 0x1d4   :  { %v2187_v22 = vld [vmem:[%s16019_s6 + $0xb8] sm:$0xff] }
 0x1d5   :  { %6785 = vmatpush1.bf16.msra.mxu0 %v6784_v49  ;;  %v2278_v49 = vld [vmem:[%s16019_s6 + $0x390] sm:$0xff]  ;;  %v6962_v30 = vpack.c.bf16 %v2187_v22, %v2181_v21  ;;  %v2228_v21 = vld [vmem:[%s16019_s6 + $0x200] sm:$0xff] }
 0x1d6   :  { %6849 = vmatpush1.bf16.msra.mxu1 %v6848_v50  ;;  %6787 = vmatprep.subr.bf16.mxu0 %v6786_v51  ;;  %v1853_v50 = vld [vmem:[%s16018_s2 + $0x3e8] sm:$0xff]  ;;  %v1859_v51 = vld [vmem:[%s16018_s2 + $0x418] sm:$0xff] }
 0x1d7   :  { %v11399_v2 = vpop.f32.mrb[2].mxu0  ;;  %6851 = vmatprep.subr.bf16.mxu1 %v6850_v54  ;;  %v6868_v54 = vpack.c.bf16 %v2278_v49, %v2272_v47  ;;  %v6806_v55 = vpack.c.bf16 %v1859_v51, %v1853_v50  ;;  %v6820_v47 = vpack.c.bf16 %v1894_v36, %v1888_v35  ;;  %v1900_v50 = vld [vmem:[%s16018_s2 + $0x560] sm:$0xff]  ;;  %v1906_v51 = vld [vmem:[%s16018_s2 + $0x590] sm:$0xff]  ;;  %v2193_v35 = vld [vmem:[%s16019_s6 + $0xe8] sm:$0xff] }
 0x1d8   :  { %v11410_v7 = vpop.f32.mrb[2].mxu1  ;;  %v11412_v8 = vpop.f32.mrb[3].mxu0  ;;  %v2199_v36 = vld [vmem:[%s16019_s6 + $0x118] sm:$0xff] }
 0x1d9   :  { %v11420_v11 = vpop.f32.mrb[3].mxu1  ;;  %6789 = vmatpush1.bf16.msra.mxu0 %v6788_v59  ;;  %v2290_v59 = vld [vmem:[%s16019_s6 + $0x3f0] sm:$0xff]  ;;  %v6966_v46 = vpack.c.bf16 %v2199_v36, %v2193_v35  ;;  %v2240_v35 = vld [vmem:[%s16019_s6 + $0x260] sm:$0xff] }
 0x1da   :  { %6853 = vmatpush1.bf16.msra.mxu1 %v6852_v60  ;;  %6791 = vmatprep.subr.bf16.mxu0 %v6790_v61  ;;  %v1865_v60 = vld [vmem:[%s16018_s2 + $0x448] sm:$0xff]  ;;  %v1871_v61 = vld [vmem:[%s16018_s2 + $0x478] sm:$0xff] }
 0x1db   :  { %6855 = vmatprep.subr.bf16.mxu1 %v6854_v3  ;;  %v6872_v3 = vpack.c.bf16 %v2290_v59, %v2284_v57  ;;  %v6810_v4 = vpack.c.bf16 %v1871_v61, %v1865_v60  ;;  %v6824_v57 = vpack.c.bf16 %v1906_v51, %v1900_v50  ;;  %v1912_v60 = vld [vmem:[%s16018_s2 + $0x5c0] sm:$0xff]  ;;  %v1918_v61 = vld [vmem:[%s16018_s2 + $0x5f0] sm:$0xff]  ;;  %v2205_v50 = vld [vmem:[%s16019_s6 + $0x148] sm:$0xff] }
 0x1dc   :  { %v2211_v51 = vld [vmem:[%s16019_s6 + $0x178] sm:$0xff] }
 0x1dd   :  { %6793 = vmatpush1.bf16.msra.mxu0 %v6792_v12  ;;  %v2302_v12 = vld [vmem:[%s16019_s6 + $0x450] sm:$0xff]  ;;  %v6970_v24 = vpack.c.bf16 %v2211_v51, %v2205_v50  ;;  %v2252_v50 = vld [vmem:[%s16019_s6 + $0x2c0] sm:$0xff] }
 0x1de   :  { %6857 = vmatpush1.bf16.msra.mxu1 %v6856_v13  ;;  %6795 = vmatprep.subr.bf16.mxu0 %v6794_v14  ;;  %v1877_v13 = vld [vmem:[%s16018_s2 + $0x4a8] sm:$0xff]  ;;  %v1883_v14 = vld [vmem:[%s16018_s2 + $0x4d8] sm:$0xff] }
 0x1df   :  { %6859 = vmatprep.subr.bf16.mxu1 %v6858_v19  ;;  %v6876_v19 = vpack.c.bf16 %v2302_v12, %v2296_v9  ;;  %v6814_v20 = vpack.c.bf16 %v1883_v14, %v1877_v13  ;;  %v6828_v9 = vpack.c.bf16 %v1918_v61, %v1912_v60  ;;  %v2166_v13 = vld [vmem:[%s16019_s6 + $0x10] sm:$0xff]  ;;  %v2172_v14 = vld [vmem:[%s16019_s6 + $0x40] sm:$0xff]  ;;  %v2217_v60 = vld [vmem:[%s16019_s6 + $0x1a8] sm:$0xff] }
 0x1e0   :  { %v2223_v61 = vld [vmem:[%s16019_s6 + $0x1d8] sm:$0xff] }
 0x1e1   :  { %6797 = vmatpush1.bf16.msra.mxu0 %v6796_v26  ;;  %v2314_v26 = vld [vmem:[%s16019_s6 + $0x4b0] sm:$0xff]  ;;  %v6974_v6 = vpack.c.bf16 %v2223_v61, %v2217_v60  ;;  %v2264_v60 = vld [vmem:[%s16019_s6 + $0x320] sm:$0xff] }
 0x1e2   :  { %6861 = vmatpush1.bf16.msra.mxu1 %v6860_v27  ;;  %6799 = vmatprep.subr.bf16.mxu0 %v6798_v28  ;;  %v1889_v27 = vld [vmem:[%s16018_s2 + $0x508] sm:$0xff]  ;;  %v1895_v28 = vld [vmem:[%s16018_s2 + $0x538] sm:$0xff] }
 0x1e3   :  { %6863 = vmatprep.subr.bf16.mxu1 %v6862_v32  ;;  %v6880_v32 = vpack.c.bf16 %v2314_v26, %v2308_v23  ;;  %v6818_v33 = vpack.c.bf16 %v1895_v28, %v1889_v27  ;;  %v6896_v23 = vpack.c.bf16 %v2172_v14, %v2166_v13  ;;  %v2178_v27 = vld [vmem:[%s16019_s6 + $0x70] sm:$0xff]  ;;  %v2184_v28 = vld [vmem:[%s16019_s6 + $0xa0] sm:$0xff]  ;;  %v2229_v13 = vld [vmem:[%s16019_s6 + $0x208] sm:$0xff] }
 0x1e4   :  { %v2235_v14 = vld [vmem:[%s16019_s6 + $0x238] sm:$0xff] }
 0x1e5   :  { %6801 = vmatpush1.bf16.msra.mxu0 %v6800_v41  ;;  %v2326_v41 = vld [vmem:[%s16019_s6 + $0x510] sm:$0xff]  ;;  %v6978_v22 = vpack.c.bf16 %v2235_v14, %v2229_v13  ;;  %v2276_v13 = vld [vmem:[%s16019_s6 + $0x380] sm:$0xff] }
 0x1e6   :  { %6865 = vmatpush1.bf16.msra.mxu1 %v6864_v42  ;;  %6803 = vmatprep.subr.bf16.mxu0 %v6802_v44  ;;  %v1901_v42 = vld [vmem:[%s16018_s2 + $0x568] sm:$0xff]  ;;  %v1907_v44 = vld [vmem:[%s16018_s2 + $0x598] sm:$0xff] }
 0x1e7   :  { %6867 = vmatprep.subr.bf16.mxu1 %v6866_v48  ;;  %v6884_v48 = vpack.c.bf16 %v2326_v41, %v2320_v37  ;;  %v6822_v49 = vpack.c.bf16 %v1907_v44, %v1901_v42  ;;  %v6900_v37 = vpack.c.bf16 %v2184_v28, %v2178_v27  ;;  %v2190_v42 = vld [vmem:[%s16019_s6 + $0xd0] sm:$0xff]  ;;  %v2196_v44 = vld [vmem:[%s16019_s6 + $0x100] sm:$0xff]  ;;  %v2241_v27 = vld [vmem:[%s16019_s6 + $0x268] sm:$0xff] }
 0x1e8   :  { %v2247_v28 = vld [vmem:[%s16019_s6 + $0x298] sm:$0xff] }
 0x1e9   :  { %6805 = vmatpush1.bf16.msra.mxu0 %v6804_v16  ;;  %v2338_v16 = vld [vmem:[%s16019_s6 + $0x570] sm:$0xff]  ;;  %v6982_v36 = vpack.c.bf16 %v2247_v28, %v2241_v27  ;;  %v2288_v27 = vld [vmem:[%s16019_s6 + $0x3e0] sm:$0xff] }
 0x1ea   :  { %6869 = vmatpush1.bf16.msra.mxu1 %v6868_v54  ;;  %6807 = vmatprep.subr.bf16.mxu0 %v6806_v55  ;;  %v1913_v54 = vld [vmem:[%s16018_s2 + $0x5c8] sm:$0xff]  ;;  %v1919_v55 = vld [vmem:[%s16018_s2 + $0x5f8] sm:$0xff] }
 0x1eb   :  { %6871 = vmatprep.subr.bf16.mxu1 %v6870_v58  ;;  %v6888_v58 = vpack.c.bf16 %v2338_v16, %v2332_v52  ;;  %v6826_v59 = vpack.c.bf16 %v1919_v55, %v1913_v54  ;;  %v6904_v52 = vpack.c.bf16 %v2196_v44, %v2190_v42  ;;  %v2202_v54 = vld [vmem:[%s16019_s6 + $0x130] sm:$0xff]  ;;  %v2208_v55 = vld [vmem:[%s16019_s6 + $0x160] sm:$0xff]  ;;  %v2253_v42 = vld [vmem:[%s16019_s6 + $0x2c8] sm:$0xff] }
 0x1ec   :  { %v2259_v44 = vld [vmem:[%s16019_s6 + $0x2f8] sm:$0xff] }
 0x1ed   :  { %6809 = vmatpush1.bf16.msra.mxu0 %v6808_v0  ;;  %v2350_v0 = vld [vmem:[%s16019_s6 + $0x5d0] sm:$0xff]  ;;  %v6986_v51 = vpack.c.bf16 %v2259_v44, %v2253_v42  ;;  %v2300_v42 = vld [vmem:[%s16019_s6 + $0x440] sm:$0xff] }
 0x1ee   :  { %6873 = vmatpush1.bf16.msra.mxu1 %v6872_v3  ;;  %6811 = vmatprep.subr.bf16.mxu0 %v6810_v4  ;;  %v2167_v3 = vld [vmem:[%s16019_s6 + $0x18] sm:$0xff]  ;;  %v2173_v4 = vld [vmem:[%s16019_s6 + $0x48] sm:$0xff] }
 0x1ef   :  { %6875 = vmatprep.subr.bf16.mxu1 %v6874_v10  ;;  %v6892_v10 = vpack.c.bf16 %v2350_v0, %v2344_v62  ;;  %v6894_v12 = vpack.c.bf16 %v2173_v4, %v2167_v3  ;;  %v6908_v62 = vpack.c.bf16 %v2208_v55, %v2202_v54  ;;  %v2214_v3 = vld [vmem:[%s16019_s6 + $0x190] sm:$0xff]  ;;  %v2220_v4 = vld [vmem:[%s16019_s6 + $0x1c0] sm:$0xff]  ;;  %v2265_v54 = vld [vmem:[%s16019_s6 + $0x328] sm:$0xff] }
 0x1f0   :  { %v2271_v55 = vld [vmem:[%s16019_s6 + $0x358] sm:$0xff] }
 0x1f1   :  { %6813 = vmatpush1.bf16.msra.mxu0 %v6812_v18  ;;  %v2174_v18 = vld [vmem:[%s16019_s6 + $0x50] sm:$0xff]  ;;  %v6990_v61 = vpack.c.bf16 %v2271_v55, %v2265_v54  ;;  %v2312_v54 = vld [vmem:[%s16019_s6 + $0x4a0] sm:$0xff] }
 0x1f2   :  { %6877 = vmatpush1.bf16.msra.mxu1 %v6876_v19  ;;  %6815 = vmatprep.subr.bf16.mxu0 %v6814_v20  ;;  %v2179_v19 = vld [vmem:[%s16019_s6 + $0x78] sm:$0xff]  ;;  %v2185_v20 = vld [vmem:[%s16019_s6 + $0xa8] sm:$0xff] }
 0x1f3   :  { %6879 = vmatprep.subr.bf16.mxu1 %v6878_v25  ;;  %v6960_v25 = vpack.c.bf16 %v2174_v18, %v2168_v15  ;;  %v6898_v26 = vpack.c.bf16 %v2185_v20, %v2179_v19  ;;  %v6912_v15 = vpack.c.bf16 %v2220_v4, %v2214_v3  ;;  %v2226_v19 = vld [vmem:[%s16019_s6 + $0x1f0] sm:$0xff]  ;;  %v2232_v20 = vld [vmem:[%s16019_s6 + $0x220] sm:$0xff]  ;;  %v2277_v3 = vld [vmem:[%s16019_s6 + $0x388] sm:$0xff] }
 0x1f4   :  { %v2283_v4 = vld [vmem:[%s16019_s6 + $0x3b8] sm:$0xff] }
 0x1f5   :  { %6817 = vmatpush1.bf16.msra.mxu0 %v6816_v31  ;;  %v2186_v31 = vld [vmem:[%s16019_s6 + $0xb0] sm:$0xff]  ;;  %v6994_v14 = vpack.c.bf16 %v2283_v4, %v2277_v3  ;;  %v2324_v3 = vld [vmem:[%s16019_s6 + $0x500] sm:$0xff] }
 0x1f6   :  { %6881 = vmatpush1.bf16.msra.mxu1 %v6880_v32  ;;  %6819 = vmatprep.subr.bf16.mxu0 %v6818_v33  ;;  %v2191_v32 = vld [vmem:[%s16019_s6 + $0xd8] sm:$0xff]  ;;  %v2197_v33 = vld [vmem:[%s16019_s6 + $0x108] sm:$0xff] }
 0x1f7   :  { %6883 = vmatprep.subr.bf16.mxu1 %v6882_v38  ;;  %v6964_v38 = vpack.c.bf16 %v2186_v31, %v2180_v29  ;;  %v6902_v41 = vpack.c.bf16 %v2197_v33, %v2191_v32  ;;  %v6916_v29 = vpack.c.bf16 %v2232_v20, %v2226_v19  ;;  %v2238_v32 = vld [vmem:[%s16019_s6 + $0x250] sm:$0xff]  ;;  %v2244_v33 = vld [vmem:[%s16019_s6 + $0x280] sm:$0xff]  ;;  %v2289_v19 = vld [vmem:[%s16019_s6 + $0x3e8] sm:$0xff] }
 0x1f8   :  { %v2295_v20 = vld [vmem:[%s16019_s6 + $0x418] sm:$0xff] }
 0x1f9   :  { %6821 = vmatpush1.bf16.msra.mxu0 %v6820_v47  ;;  %v2198_v47 = vld [vmem:[%s16019_s6 + $0x110] sm:$0xff]  ;;  %v6998_v28 = vpack.c.bf16 %v2295_v20, %v2289_v19  ;;  %v2336_v19 = vld [vmem:[%s16019_s6 + $0x560] sm:$0xff] }
 0x1fa   :  { %6885 = vmatpush1.bf16.msra.mxu1 %v6884_v48  ;;  %6823 = vmatprep.subr.bf16.mxu0 %v6822_v49  ;;  %v2203_v48 = vld [vmem:[%s16019_s6 + $0x138] sm:$0xff]  ;;  %v2209_v49 = vld [vmem:[%s16019_s6 + $0x168] sm:$0xff] }
 0x1fb   :  { %6887 = vmatprep.subr.bf16.mxu1 %v6886_v53  ;;  %v6968_v53 = vpack.c.bf16 %v2198_v47, %v2192_v45  ;;  %v6906_v16 = vpack.c.bf16 %v2209_v49, %v2203_v48  ;;  %v6920_v45 = vpack.c.bf16 %v2244_v33, %v2238_v32  ;;  %v2250_v48 = vld [vmem:[%s16019_s6 + $0x2b0] sm:$0xff]  ;;  %v2256_v49 = vld [vmem:[%s16019_s6 + $0x2e0] sm:$0xff]  ;;  %v2301_v32 = vld [vmem:[%s16019_s6 + $0x448] sm:$0xff] }
 0x1fc   :  { %v2307_v33 = vld [vmem:[%s16019_s6 + $0x478] sm:$0xff] }
 0x1fd   :  { %6825 = vmatpush1.bf16.msra.mxu0 %v6824_v57  ;;  %v2210_v57 = vld [vmem:[%s16019_s6 + $0x170] sm:$0xff]  ;;  %v7002_v44 = vpack.c.bf16 %v2307_v33, %v2301_v32  ;;  %v2348_v32 = vld [vmem:[%s16019_s6 + $0x5c0] sm:$0xff] }
 0x1fe   :  { %6889 = vmatpush1.bf16.msra.mxu1 %v6888_v58  ;;  %6827 = vmatprep.subr.bf16.mxu0 %v6826_v59  ;;  %v2215_v58 = vld [vmem:[%s16019_s6 + $0x198] sm:$0xff]  ;;  %v2221_v59 = vld [vmem:[%s16019_s6 + $0x1c8] sm:$0xff] }
 0x1ff   :  { %6891 = vmatprep.subr.bf16.mxu1 %v6890_v63  ;;  %v6972_v63 = vpack.c.bf16 %v2210_v57, %v2204_v56  ;;  %v6910_v0 = vpack.c.bf16 %v2221_v59, %v2215_v58  ;;  %v6924_v56 = vpack.c.bf16 %v2256_v49, %v2250_v48  ;;  %v2262_v58 = vld [vmem:[%s16019_s6 + $0x310] sm:$0xff]  ;;  %v2268_v59 = vld [vmem:[%s16019_s6 + $0x340] sm:$0xff]  ;;  %v2313_v48 = vld [vmem:[%s16019_s6 + $0x4a8] sm:$0xff] }
 0x200   :  { %v2319_v49 = vld [vmem:[%s16019_s6 + $0x4d8] sm:$0xff] }
 0x201   :  { %6829 = vmatpush1.bf16.msra.mxu0 %v6828_v9  ;;  %v2222_v9 = vld [vmem:[%s16019_s6 + $0x1d0] sm:$0xff]  ;;  %v7006_v55 = vpack.c.bf16 %v2319_v49, %v2313_v48 }
 0x202   :  { %6893 = vmatpush1.bf16.msra.mxu1 %v6892_v10  ;;  %6895 = vmatprep.subr.bf16.mxu0 %v6894_v12  ;;  %v2227_v10 = vld [vmem:[%s16019_s6 + $0x1f8] sm:$0xff]  ;;  %v2233_v12 = vld [vmem:[%s16019_s6 + $0x228] sm:$0xff]  ;;  %v2708_v48 = vld [vmem:[%s16018_s2 + $0x10] sm:$0xff] }
 0x203   :  { %6959 = vmatprep.subr.bf16.mxu1 %v6958_v17  ;;  %v6976_v17 = vpack.c.bf16 %v2222_v9, %v2216_v5  ;;  %v6914_v18 = vpack.c.bf16 %v2233_v12, %v2227_v10  ;;  %v6928_v5 = vpack.c.bf16 %v2268_v59, %v2262_v58  ;;  %v2274_v10 = vld [vmem:[%s16019_s6 + $0x370] sm:$0xff]  ;;  %v2280_v12 = vld [vmem:[%s16019_s6 + $0x3a0] sm:$0xff]  ;;  %v2325_v58 = vld [vmem:[%s16019_s6 + $0x508] sm:$0xff] }
 0x204   :  { %2158 = vmatmul.mubr.f32.vlgmr.msra.gmra.mrb[8].mxu0 %v8429_v1  ;;  %v2331_v59 = vld [vmem:[%s16019_s6 + $0x538] sm:$0xff] }
 0x205   :  { %2452 = vmatmul.mubr.f32.vlgmr.msra.gmra.mrb[8].mxu1 %v8429_v1  ;;  %6897 = vmatpush1.bf16.msra.mxu0 %v6896_v23  ;;  %v2234_v23 = vld [vmem:[%s16019_s6 + $0x230] sm:$0xff]  ;;  %v7010_v4 = vpack.c.bf16 %v2331_v59, %v2325_v58 }
 0x206   :  { %6961 = vmatpush1.bf16.msra.mxu1 %v6960_v25  ;;  %6899 = vmatprep.subr.bf16.mxu0 %v6898_v26  ;;  %v2239_v25 = vld [vmem:[%s16019_s6 + $0x258] sm:$0xff]  ;;  %v2245_v26 = vld [vmem:[%s16019_s6 + $0x288] sm:$0xff]  ;;  %v2720_v58 = vld [vmem:[%s16018_s2 + $0x70] sm:$0xff] }
 0x207   :  { %6963 = vmatprep.subr.bf16.mxu1 %v6962_v30  ;;  %2522 = vmatprep.mubr.f32.mxu0 %v8429_v1  ;;  %v6980_v30 = vpack.c.bf16 %v2234_v23, %v2228_v21  ;;  %v6918_v31 = vpack.c.bf16 %v2245_v26, %v2239_v25  ;;  %v6932_v21 = vpack.c.bf16 %v2280_v12, %v2274_v10  ;;  %v2286_v25 = vld [vmem:[%s16019_s6 + $0x3d0] sm:$0xff]  ;;  %v2292_v26 = vld [vmem:[%s16019_s6 + $0x400] sm:$0xff]  ;;  %v2337_v10 = vld [vmem:[%s16019_s6 + $0x568] sm:$0xff] }
 0x208   :  { %2593 = vmatprep.mubr.f32.mxu1 %v8429_v1  ;;  %v2343_v12 = vld [vmem:[%s16019_s6 + $0x598] sm:$0xff] }
 0x209   :  { %6901 = vmatpush1.bf16.msra.mxu0 %v6900_v37  ;;  %v2246_v37 = vld [vmem:[%s16019_s6 + $0x290] sm:$0xff]  ;;  %v7014_v20 = vpack.c.bf16 %v2343_v12, %v2337_v10  ;;  %v2738_v12 = vld [vmem:[%s16018_s2 + $0x100] sm:$0xff] }
 0x20a   :  { %6965 = vmatpush1.bf16.msra.mxu1 %v6964_v38  ;;  %6903 = vmatprep.subr.bf16.mxu0 %v6902_v41  ;;  %v2251_v38 = vld [vmem:[%s16019_s6 + $0x2b8] sm:$0xff]  ;;  %v2257_v41 = vld [vmem:[%s16019_s6 + $0x2e8] sm:$0xff]  ;;  %v2732_v10 = vld [vmem:[%s16018_s2 + $0xd0] sm:$0xff] }
 0x20b   :  { %6967 = vmatprep.subr.bf16.mxu1 %v6966_v46  ;;  %v6984_v46 = vpack.c.bf16 %v2246_v37, %v2240_v35  ;;  %v6922_v47 = vpack.c.bf16 %v2257_v41, %v2251_v38  ;;  %v6936_v35 = vpack.c.bf16 %v2292_v26, %v2286_v25  ;;  %v2298_v38 = vld [vmem:[%s16019_s6 + $0x430] sm:$0xff]  ;;  %v2304_v41 = vld [vmem:[%s16019_s6 + $0x460] sm:$0xff]  ;;  %v2349_v25 = vld [vmem:[%s16019_s6 + $0x5c8] sm:$0xff] }
 0x20c   :  { %v2355_v26 = vld [vmem:[%s16019_s6 + $0x5f8] sm:$0xff] }
 0x20d   :  { %6905 = vmatpush1.bf16.msra.mxu0 %v6904_v52  ;;  %v2258_v52 = vld [vmem:[%s16019_s6 + $0x2f0] sm:$0xff]  ;;  %v7018_v33 = vpack.c.bf16 %v2355_v26, %v2349_v25  ;;  %v2750_v26 = vld [vmem:[%s16018_s2 + $0x160] sm:$0xff] }
 0x20e   :  { %6969 = vmatpush1.bf16.msra.mxu1 %v6968_v53  ;;  %6907 = vmatprep.subr.bf16.mxu0 %v6906_v16  ;;  %v2263_v53 = vld [vmem:[%s16019_s6 + $0x318] sm:$0xff]  ;;  %v2269_v16 = vld [vmem:[%s16019_s6 + $0x348] sm:$0xff] }
 0x20f   :  { %6971 = vmatprep.subr.bf16.mxu1 %v6970_v24  ;;  %v6988_v24 = vpack.c.bf16 %v2258_v52, %v2252_v50  ;;  %v6926_v57 = vpack.c.bf16 %v2269_v16, %v2263_v53  ;;  %v6940_v50 = vpack.c.bf16 %v2304_v41, %v2298_v38  ;;  %v2310_v53 = vld [vmem:[%s16019_s6 + $0x490] sm:$0xff]  ;;  %v2316_v16 = vld [vmem:[%s16019_s6 + $0x4c0] sm:$0xff]  ;;  %v2709_v38 = vld [vmem:[%s16018_s2 + $0x18] sm:$0xff] }
 0x210   :  { %v2715_v41 = vld [vmem:[%s16018_s2 + $0x48] sm:$0xff] }
 0x211   :  { %6909 = vmatpush1.bf16.msra.mxu0 %v6908_v62  ;;  %v2270_v62 = vld [vmem:[%s16019_s6 + $0x350] sm:$0xff]  ;;  %v7086_v49 = vpack.c.bf16 %v2715_v41, %v2709_v38  ;;  %v2762_v41 = vld [vmem:[%s16018_s2 + $0x1c0] sm:$0xff] }
 0x212   :  { %6973 = vmatpush1.bf16.msra.mxu1 %v6972_v63  ;;  %6911 = vmatprep.subr.bf16.mxu0 %v6910_v0  ;;  %v2275_v63 = vld [vmem:[%s16019_s6 + $0x378] sm:$0xff]  ;;  %v2281_v0 = vld [vmem:[%s16019_s6 + $0x3a8] sm:$0xff] }
 0x213   :  { %6975 = vmatprep.subr.bf16.mxu1 %v6974_v6  ;;  %v6992_v6 = vpack.c.bf16 %v2270_v62, %v2264_v60  ;;  %v6930_v9 = vpack.c.bf16 %v2281_v0, %v2275_v63  ;;  %v6944_v60 = vpack.c.bf16 %v2316_v16, %v2310_v53  ;;  %v2322_v63 = vld [vmem:[%s16019_s6 + $0x4f0] sm:$0xff]  ;;  %v2328_v0 = vld [vmem:[%s16019_s6 + $0x520] sm:$0xff]  ;;  %v2721_v53 = vld [vmem:[%s16018_s2 + $0x78] sm:$0xff] }
 0x214   :  { %v2727_v16 = vld [vmem:[%s16018_s2 + $0xa8] sm:$0xff] }
 0x215   :  { %6913 = vmatpush1.bf16.msra.mxu0 %v6912_v15  ;;  %v2282_v15 = vld [vmem:[%s16019_s6 + $0x3b0] sm:$0xff]  ;;  %v7090_v59 = vpack.c.bf16 %v2727_v16, %v2721_v53  ;;  %v2774_v16 = vld [vmem:[%s16018_s2 + $0x220] sm:$0xff] }
 0x216   :  { %6977 = vmatpush1.bf16.msra.mxu1 %v6976_v17  ;;  %6915 = vmatprep.subr.bf16.mxu0 %v6914_v18  ;;  %v2287_v17 = vld [vmem:[%s16019_s6 + $0x3d8] sm:$0xff]  ;;  %v2293_v18 = vld [vmem:[%s16019_s6 + $0x408] sm:$0xff] }
 0x217   :  { %6979 = vmatprep.subr.bf16.mxu1 %v6978_v22  ;;  %v6996_v22 = vpack.c.bf16 %v2282_v15, %v2276_v13  ;;  %v6934_v23 = vpack.c.bf16 %v2293_v18, %v2287_v17  ;;  %v6948_v13 = vpack.c.bf16 %v2328_v0, %v2322_v63  ;;  %v2334_v17 = vld [vmem:[%s16019_s6 + $0x550] sm:$0xff]  ;;  %v2340_v18 = vld [vmem:[%s16019_s6 + $0x580] sm:$0xff]  ;;  %v2733_v63 = vld [vmem:[%s16018_s2 + $0xd8] sm:$0xff] }
 0x218   :  { %v2739_v0 = vld [vmem:[%s16018_s2 + $0x108] sm:$0xff] }
 0x219   :  { %6917 = vmatpush1.bf16.msra.mxu0 %v6916_v29  ;;  %v2294_v29 = vld [vmem:[%s16019_s6 + $0x410] sm:$0xff] }
 0x21a   :  { %6981 = vmatpush1.bf16.msra.mxu1 %v6980_v30  ;;  %6919 = vmatprep.subr.bf16.mxu0 %v6918_v31  ;;  %v2299_v30 = vld [vmem:[%s16019_s6 + $0x438] sm:$0xff]  ;;  %v2305_v31 = vld [vmem:[%s16019_s6 + $0x468] sm:$0xff] }
 0x21b   :  { %6983 = vmatprep.subr.bf16.mxu1 %v6982_v36  ;;  %v7000_v36 = vpack.c.bf16 %v2294_v29, %v2288_v27  ;;  %v6938_v37 = vpack.c.bf16 %v2305_v31, %v2299_v30  ;;  %v6952_v27 = vpack.c.bf16 %v2340_v18, %v2334_v17  ;;  %v2346_v30 = vld [vmem:[%s16019_s6 + $0x5b0] sm:$0xff]  ;;  %v2352_v31 = vld [vmem:[%s16019_s6 + $0x5e0] sm:$0xff]  ;;  %v2751_v17 = vld [vmem:[%s16018_s2 + $0x168] sm:$0xff] }
 0x21d   :  { %6921 = vmatpush1.bf16.msra.mxu0 %v6920_v45  ;;  %v2306_v45 = vld [vmem:[%s16019_s6 + $0x470] sm:$0xff] }
 0x21e   :  { %6985 = vmatpush1.bf16.msra.mxu1 %v6984_v46  ;;  %6923 = vmatprep.subr.bf16.mxu0 %v6922_v47  ;;  %v2311_v46 = vld [vmem:[%s16019_s6 + $0x498] sm:$0xff]  ;;  %v2317_v47 = vld [vmem:[%s16019_s6 + $0x4c8] sm:$0xff] }
 0x21f   :  { %6987 = vmatprep.subr.bf16.mxu1 %v6986_v51  ;;  %v7004_v51 = vpack.c.bf16 %v2306_v45, %v2300_v42  ;;  %v6942_v52 = vpack.c.bf16 %v2317_v47, %v2311_v46  ;;  %v6956_v42 = vpack.c.bf16 %v2352_v31, %v2346_v30  ;;  %v2706_v46 = vld [vmem:[%s16018_s2] sm:$0xff]  ;;  %v2712_v47 = vld [vmem:[%s16018_s2 + $0x30] sm:$0xff]  ;;  %v2763_v30 = vld [vmem:[%s16018_s2 + $0x1c8] sm:$0xff] }
 0x221   :  { %6925 = vmatpush1.bf16.msra.mxu0 %v6924_v56  ;;  %v2318_v56 = vld [vmem:[%s16019_s6 + $0x4d0] sm:$0xff] }
 0x222   :  { %6989 = vmatpush1.bf16.msra.mxu1 %v6988_v24  ;;  %6927 = vmatprep.subr.bf16.mxu0 %v6926_v57  ;;  %v2323_v24 = vld [vmem:[%s16019_s6 + $0x4f8] sm:$0xff]  ;;  %v2329_v57 = vld [vmem:[%s16019_s6 + $0x528] sm:$0xff] }
 0x223   :  { %6991 = vmatprep.subr.bf16.mxu1 %v6990_v61  ;;  %v7008_v61 = vpack.c.bf16 %v2318_v56, %v2312_v54  ;;  %v6946_v62 = vpack.c.bf16 %v2329_v57, %v2323_v24  ;;  %v7024_v54 = vpack.c.bf16 %v2712_v47, %v2706_v46  ;;  %v2718_v24 = vld [vmem:[%s16018_s2 + $0x60] sm:$0xff]  ;;  %v2724_v57 = vld [vmem:[%s16018_s2 + $0x90] sm:$0xff]  ;;  %v2775_v46 = vld [vmem:[%s16018_s2 + $0x228] sm:$0xff] }
 0x225   :  { %6929 = vmatpush1.bf16.msra.mxu0 %v6928_v5  ;;  %v2330_v5 = vld [vmem:[%s16019_s6 + $0x530] sm:$0xff] }
 0x226   :  { %6993 = vmatpush1.bf16.msra.mxu1 %v6992_v6  ;;  %6931 = vmatprep.subr.bf16.mxu0 %v6930_v9  ;;  %v2335_v6 = vld [vmem:[%s16019_s6 + $0x558] sm:$0xff]  ;;  %v2341_v9 = vld [vmem:[%s16019_s6 + $0x588] sm:$0xff] }
 0x227   :  { %6995 = vmatprep.subr.bf16.mxu1 %v6994_v14  ;;  %v7012_v14 = vpack.c.bf16 %v2330_v5, %v2324_v3  ;;  %v6950_v15 = vpack.c.bf16 %v2341_v9, %v2335_v6  ;;  %v7028_v3 = vpack.c.bf16 %v2724_v57, %v2718_v24  ;;  %v2730_v6 = vld [vmem:[%s16018_s2 + $0xc0] sm:$0xff]  ;;  %v2736_v9 = vld [vmem:[%s16018_s2 + $0xf0] sm:$0xff]  ;;  %v2787_v24 = vld [vmem:[%s16018_s2 + $0x288] sm:$0xff] }
 0x228   :  { %v7032_v18 = vpack.c.bf16 %v2736_v9, %v2730_v6 }
 0x229   :  { %6933 = vmatpush1.bf16.msra.mxu0 %v6932_v21  ;;  %v2342_v21 = vld [vmem:[%s16019_s6 + $0x590] sm:$0xff] }
 0x22a   :  { %6997 = vmatpush1.bf16.msra.mxu1 %v6996_v22  ;;  %6935 = vmatprep.subr.bf16.mxu0 %v6934_v23  ;;  %v2347_v22 = vld [vmem:[%s16019_s6 + $0x5b8] sm:$0xff]  ;;  %v2353_v23 = vld [vmem:[%s16019_s6 + $0x5e8] sm:$0xff] }
 0x22b   :  { %6999 = vmatprep.subr.bf16.mxu1 %v6998_v28  ;;  %v7016_v28 = vpack.c.bf16 %v2342_v21, %v2336_v19  ;;  %v6954_v29 = vpack.c.bf16 %v2353_v23, %v2347_v22  ;;  %v7096_v19 = vpack.c.bf16 %v2738_v12, %v2732_v10  ;;  %v2742_v21 = vld [vmem:[%s16018_s2 + $0x120] sm:$0xff]  ;;  %v2748_v22 = vld [vmem:[%s16018_s2 + $0x150] sm:$0xff]  ;;  %v2793_v10 = vld [vmem:[%s16018_s2 + $0x2b8] sm:$0xff] }
 0x22c   :  { %v2744_v23 = vld [vmem:[%s16018_s2 + $0x130] sm:$0xff]  ;;  %v7036_v31 = vpack.c.bf16 %v2748_v22, %v2742_v21  ;;  %v2798_v21 = vld [vmem:[%s16018_s2 + $0x2e0] sm:$0xff]  ;;  %v2803_v22 = vld [vmem:[%s16018_s2 + $0x308] sm:$0xff] }
 0x22d   :  { %6937 = vmatpush1.bf16.msra.mxu0 %v6936_v35  ;;  %v2354_v35 = vld [vmem:[%s16019_s6 + $0x5f0] sm:$0xff] }
 0x22e   :  { %7001 = vmatpush1.bf16.msra.mxu1 %v7000_v36  ;;  %6939 = vmatprep.subr.bf16.mxu0 %v6938_v37  ;;  %v2707_v36 = vld [vmem:[%s16018_s2 + $0x8] sm:$0xff]  ;;  %v2713_v37 = vld [vmem:[%s16018_s2 + $0x38] sm:$0xff] }
 0x22f   :  { %7003 = vmatprep.subr.bf16.mxu1 %v7002_v44  ;;  %v7020_v44 = vpack.c.bf16 %v2354_v35, %v2348_v32  ;;  %v7022_v45 = vpack.c.bf16 %v2713_v37, %v2707_v36  ;;  %v7100_v32 = vpack.c.bf16 %v2750_v26, %v2744_v23  ;;  %v2754_v35 = vld [vmem:[%s16018_s2 + $0x180] sm:$0xff]  ;;  %v2760_v36 = vld [vmem:[%s16018_s2 + $0x1b0] sm:$0xff]  ;;  %v2809_v23 = vld [vmem:[%s16018_s2 + $0x338] sm:$0xff] }
 0x230   :  { %v2756_v37 = vld [vmem:[%s16018_s2 + $0x190] sm:$0xff]  ;;  %v7040_v47 = vpack.c.bf16 %v2760_v36, %v2754_v35  ;;  %v2811_v26 = vld [vmem:[%s16018_s2 + $0x348] sm:$0xff]  ;;  %v2810_v35 = vld [vmem:[%s16018_s2 + $0x340] sm:$0xff] }
 0x231   :  { %6941 = vmatpush1.bf16.msra.mxu0 %v6940_v50  ;;  %v2714_v50 = vld [vmem:[%s16018_s2 + $0x40] sm:$0xff]  ;;  %v2815_v36 = vld [vmem:[%s16018_s2 + $0x368] sm:$0xff] }
 0x232   :  { %7005 = vmatpush1.bf16.msra.mxu1 %v7004_v51  ;;  %6943 = vmatprep.subr.bf16.mxu0 %v6942_v52  ;;  %v2719_v51 = vld [vmem:[%s16018_s2 + $0x68] sm:$0xff]  ;;  %v2725_v52 = vld [vmem:[%s16018_s2 + $0x98] sm:$0xff] }
 0x233   :  { %7007 = vmatprep.subr.bf16.mxu1 %v7006_v55  ;;  %v7088_v55 = vpack.c.bf16 %v2714_v50, %v2708_v48  ;;  %v7026_v56 = vpack.c.bf16 %v2725_v52, %v2719_v51  ;;  %v7104_v48 = vpack.c.bf16 %v2762_v41, %v2756_v37  ;;  %v2766_v50 = vld [vmem:[%s16018_s2 + $0x1e0] sm:$0xff]  ;;  %v2772_v51 = vld [vmem:[%s16018_s2 + $0x210] sm:$0xff]  ;;  %v2821_v37 = vld [vmem:[%s16018_s2 + $0x398] sm:$0xff] }
 0x234   :  { %v2768_v52 = vld [vmem:[%s16018_s2 + $0x1f0] sm:$0xff]  ;;  %v7044_v57 = vpack.c.bf16 %v2772_v51, %v2766_v50  ;;  %v2823_v41 = vld [vmem:[%s16018_s2 + $0x3a8] sm:$0xff]  ;;  %v2822_v50 = vld [vmem:[%s16018_s2 + $0x3a0] sm:$0xff] }
 0x235   :  { %6945 = vmatpush1.bf16.msra.mxu0 %v6944_v60  ;;  %v2726_v60 = vld [vmem:[%s16018_s2 + $0xa0] sm:$0xff]  ;;  %v2827_v51 = vld [vmem:[%s16018_s2 + $0x3c8] sm:$0xff] }
 0x236   :  { %7009 = vmatpush1.bf16.msra.mxu1 %v7008_v61  ;;  %6947 = vmatprep.subr.bf16.mxu0 %v6946_v62  ;;  %v2731_v61 = vld [vmem:[%s16018_s2 + $0xc8] sm:$0xff]  ;;  %v2737_v62 = vld [vmem:[%s16018_s2 + $0xf8] sm:$0xff] }
 0x237   :  { %7011 = vmatprep.subr.bf16.mxu1 %v7010_v4  ;;  %v7092_v4 = vpack.c.bf16 %v2726_v60, %v2720_v58  ;;  %v7030_v5 = vpack.c.bf16 %v2737_v62, %v2731_v61  ;;  %v7108_v58 = vpack.c.bf16 %v2774_v16, %v2768_v52  ;;  %v2778_v60 = vld [vmem:[%s16018_s2 + $0x240] sm:$0xff]  ;;  %v2784_v61 = vld [vmem:[%s16018_s2 + $0x270] sm:$0xff]  ;;  %v2833_v52 = vld [vmem:[%s16018_s2 + $0x3f8] sm:$0xff] }
 0x238   :  { %v2780_v62 = vld [vmem:[%s16018_s2 + $0x250] sm:$0xff]  ;;  %v2835_v16 = vld [vmem:[%s16018_s2 + $0x408] sm:$0xff] }
 0x239   :  { %6949 = vmatpush1.bf16.msra.mxu0 %v6948_v13  ;;  %v2743_v13 = vld [vmem:[%s16018_s2 + $0x128] sm:$0xff] }
 0x23a   :  { %7013 = vmatpush1.bf16.msra.mxu1 %v7012_v14  ;;  %6951 = vmatprep.subr.bf16.mxu0 %v6950_v15  ;;  %v2749_v14 = vld [vmem:[%s16018_s2 + $0x158] sm:$0xff] }
 0x23b   :  { %7015 = vmatprep.subr.bf16.mxu1 %v7014_v20  ;;  %v2745_v15 = vld [vmem:[%s16018_s2 + $0x138] sm:$0xff]  ;;  %v7034_v20 = vpack.c.bf16 %v2749_v14, %v2743_v13  ;;  %v7048_v13 = vpack.c.bf16 %v2784_v61, %v2778_v60  ;;  %v2834_v60 = vld [vmem:[%s16018_s2 + $0x400] sm:$0xff]  ;;  %v2839_v61 = vld [vmem:[%s16018_s2 + $0x428] sm:$0xff] }
 0x23c   :  { %v7098_v25 = vpack.c.bf16 %v2751_v17, %v2745_v15  ;;  %v2790_v17 = vld [vmem:[%s16018_s2 + $0x2a0] sm:$0xff] }
 0x23d   :  { %6953 = vmatpush1.bf16.msra.mxu0 %v6952_v27  ;;  %v2755_v27 = vld [vmem:[%s16018_s2 + $0x188] sm:$0xff] }
 0x23e   :  { %7017 = vmatpush1.bf16.msra.mxu1 %v7016_v28  ;;  %6955 = vmatprep.subr.bf16.mxu0 %v6954_v29  ;;  %v2761_v28 = vld [vmem:[%s16018_s2 + $0x1b8] sm:$0xff] }
 0x23f   :  { %7019 = vmatprep.subr.bf16.mxu1 %v7018_v33  ;;  %v2757_v29 = vld [vmem:[%s16018_s2 + $0x198] sm:$0xff]  ;;  %v7038_v33 = vpack.c.bf16 %v2761_v28, %v2755_v27 }
 0x240   :  { %v7102_v38 = vpack.c.bf16 %v2763_v30, %v2757_v29  ;;  %v7054_v29 = vpack.c.bf16 %v2809_v23, %v2803_v22  ;;  %v2802_v30 = vld [vmem:[%s16018_s2 + $0x300] sm:$0xff] }
 0x241   :  { %6957 = vmatpush1.bf16.msra.mxu0 %v6956_v42  ;;  %v2767_v42 = vld [vmem:[%s16018_s2 + $0x1e8] sm:$0xff] }
 0x242   :  { %7021 = vmatpush1.bf16.msra.mxu1 %v7020_v44  ;;  %7023 = vmatprep.subr.bf16.mxu0 %v7022_v45  ;;  %v2773_v44 = vld [vmem:[%s16018_s2 + $0x218] sm:$0xff] }
 0x243   :  { %7087 = vmatprep.subr.bf16.mxu1 %v7086_v49  ;;  %v2769_v45 = vld [vmem:[%s16018_s2 + $0x1f8] sm:$0xff]  ;;  %v7042_v49 = vpack.c.bf16 %v2773_v44, %v2767_v42 }
 0x244   :  { %2523 = vmatmul.mubr.f32.vlgmr.msra.gmra.mrb[10].mxu0 %v8429_v1  ;;  %v7106_v53 = vpack.c.bf16 %v2775_v46, %v2769_v45  ;;  %v7058_v45 = vpack.c.bf16 %v2821_v37, %v2815_v36  ;;  %v2814_v46 = vld [vmem:[%s16018_s2 + $0x360] sm:$0xff] }
 0x245   :  { %2594 = vmatmul.mubr.f32.vlgmr.msra.gmra.mrb[10].mxu1 %v8429_v1  ;;  %7025 = vmatpush1.bf16.msra.mxu0 %v7024_v54  ;;  %v7094_v1 = vpack.c.bf16 %v2739_v0, %v2733_v63  ;;  %v2779_v54 = vld [vmem:[%s16018_s2 + $0x248] sm:$0xff] }
 0x246   :  { %7089 = vmatpush1.bf16.msra.mxu1 %v7088_v55  ;;  %7027 = vmatprep.subr.bf16.mxu0 %v7026_v56  ;;  %v2785_v55 = vld [vmem:[%s16018_s2 + $0x278] sm:$0xff] }
 0x247   :  { %7091 = vmatprep.subr.bf16.mxu1 %v7090_v59  ;;  %v2781_v56 = vld [vmem:[%s16018_s2 + $0x258] sm:$0xff]  ;;  %v7046_v59 = vpack.c.bf16 %v2785_v55, %v2779_v54 }
 0x248   :  { %v7110_v0 = vpack.c.bf16 %v2787_v24, %v2781_v56  ;;  %v7062_v56 = vpack.c.bf16 %v2833_v52, %v2827_v51  ;;  %v2826_v24 = vld [vmem:[%s16018_s2 + $0x3c0] sm:$0xff] }
 0x249   :  { %7029 = vmatpush1.bf16.msra.mxu0 %v7028_v3  ;;  %v2786_v3 = vld [vmem:[%s16018_s2 + $0x280] sm:$0xff] }
 0x24a   :  { %7093 = vmatpush1.bf16.msra.mxu1 %v7092_v4  ;;  %7031 = vmatprep.subr.bf16.mxu0 %v7030_v5  ;;  %v2791_v4 = vld [vmem:[%s16018_s2 + $0x2a8] sm:$0xff]  ;;  %v2797_v5 = vld [vmem:[%s16018_s2 + $0x2d8] sm:$0xff]  ;;  %v7112_v14 = vpack.c.bf16 %v2786_v3, %v2780_v62 }
 0x24b   :  { %7095 = vmatprep.subr.bf16.mxu1 %v7094_v1  ;;  %v2799_v1 = vld [vmem:[%s16018_s2 + $0x2e8] sm:$0xff]  ;;  %v7050_v15 = vpack.c.bf16 %v2797_v5, %v2791_v4  ;;  %v2845_v62 = vld [vmem:[%s16018_s2 + $0x458] sm:$0xff] }
 0x24c   :  { %v2847_v3 = vld [vmem:[%s16018_s2 + $0x468] sm:$0xff] }
 0x24d   :  { %7033 = vmatpush1.bf16.msra.mxu0 %v7032_v18  ;;  %v2796_v18 = vld [vmem:[%s16018_s2 + $0x2d0] sm:$0xff] }
 0x24e   :  { %7097 = vmatpush1.bf16.msra.mxu1 %v7096_v19  ;;  %7035 = vmatprep.subr.bf16.mxu0 %v7034_v20  ;;  %v2792_v19 = vld [vmem:[%s16018_s2 + $0x2b0] sm:$0xff]  ;;  %v7114_v20 = vpack.c.bf16 %v2799_v1, %v2793_v10  ;;  %v7052_v27 = vpack.c.bf16 %v2796_v18, %v2790_v17  ;;  %v7066_v10 = vpack.c.bf16 %v2845_v62, %v2839_v61  ;;  %v2838_v1 = vld [vmem:[%s16018_s2 + $0x420] sm:$0xff]  ;;  %v2851_v18 = vld [vmem:[%s16018_s2 + $0x488] sm:$0xff] }
 0x24f   :  { %7099 = vmatprep.subr.bf16.mxu1 %v7098_v25  ;;  %v2805_v25 = vld [vmem:[%s16018_s2 + $0x318] sm:$0xff]  ;;  %v7116_v28 = vpack.c.bf16 %v2798_v21, %v2792_v19  ;;  %v2846_v17 = vld [vmem:[%s16018_s2 + $0x460] sm:$0xff]  ;;  %v2859_v21 = vld [vmem:[%s16018_s2 + $0x4c8] sm:$0xff] }
 0x250   :  { %v2857_v19 = vld [vmem:[%s16018_s2 + $0x4b8] sm:$0xff] }
 0x251   :  { %7037 = vmatpush1.bf16.msra.mxu0 %v7036_v31  ;;  %v2808_v31 = vld [vmem:[%s16018_s2 + $0x330] sm:$0xff] }
 0x252   :  { %7101 = vmatpush1.bf16.msra.mxu1 %v7100_v32  ;;  %7039 = vmatprep.subr.bf16.mxu0 %v7038_v33  ;;  %v2804_v32 = vld [vmem:[%s16018_s2 + $0x310] sm:$0xff]  ;;  %v7118_v33 = vpack.c.bf16 %v2811_v26, %v2805_v25  ;;  %v7056_v42 = vpack.c.bf16 %v2808_v31, %v2802_v30  ;;  %v7070_v25 = vpack.c.bf16 %v2857_v19, %v2851_v18  ;;  %v2850_v26 = vld [vmem:[%s16018_s2 + $0x480] sm:$0xff]  ;;  %v2863_v31 = vld [vmem:[%s16018_s2 + $0x4e8] sm:$0xff] }
 0x253   :  { %7103 = vmatprep.subr.bf16.mxu1 %v7102_v38  ;;  %v2817_v38 = vld [vmem:[%s16018_s2 + $0x378] sm:$0xff]  ;;  %v7120_v44 = vpack.c.bf16 %v2810_v35, %v2804_v32  ;;  %v2858_v30 = vld [vmem:[%s16018_s2 + $0x4c0] sm:$0xff]  ;;  %v2871_v35 = vld [vmem:[%s16018_s2 + $0x528] sm:$0xff] }
 0x254   :  { %v2869_v32 = vld [vmem:[%s16018_s2 + $0x518] sm:$0xff]  ;;  %v3112_v19 = vld [vmem:[%s16019_s6 + $0x8] sm:$0xff] }
 0x255   :  { %7041 = vmatpush1.bf16.msra.mxu0 %v7040_v47  ;;  %v2820_v47 = vld [vmem:[%s16018_s2 + $0x390] sm:$0xff] }
 0x256   :  { %7105 = vmatpush1.bf16.msra.mxu1 %v7104_v48  ;;  %7043 = vmatprep.subr.bf16.mxu0 %v7042_v49  ;;  %v2816_v48 = vld [vmem:[%s16018_s2 + $0x370] sm:$0xff]  ;;  %v7122_v49 = vpack.c.bf16 %v2823_v41, %v2817_v38  ;;  %v7060_v54 = vpack.c.bf16 %v2820_v47, %v2814_v46  ;;  %v7074_v38 = vpack.c.bf16 %v2869_v32, %v2863_v31  ;;  %v2862_v41 = vld [vmem:[%s16018_s2 + $0x4e0] sm:$0xff]  ;;  %v2875_v47 = vld [vmem:[%s16018_s2 + $0x548] sm:$0xff] }
 0x257   :  { %v12181_v63 = vpop.f32.mrb[4].mxu0  ;;  %7107 = vmatprep.subr.bf16.mxu1 %v7106_v53  ;;  %v2829_v53 = vld [vmem:[%s16018_s2 + $0x3d8] sm:$0xff]  ;;  %v7124_v55 = vpack.c.bf16 %v2822_v50, %v2816_v48  ;;  %v2870_v46 = vld [vmem:[%s16018_s2 + $0x520] sm:$0xff]  ;;  %v2883_v50 = vld [vmem:[%s16018_s2 + $0x588] sm:$0xff] }
 0x258   :  { %v12192_v6 = vpop.f32.mrb[4].mxu1  ;;  %v12194_v9 = vpop.f32.mrb[5].mxu0  ;;  %v2881_v48 = vld [vmem:[%s16018_s2 + $0x578] sm:$0xff]  ;;  %v426_v31 = vld [vmem:[%s16021_s3] sm:$0x3f] }
 0x259   :  { %v12202_v12 = vpop.f32.mrb[5].mxu1  ;;  %7045 = vmatpush1.bf16.msra.mxu0 %v7044_v57  ;;  %v2832_v57 = vld [vmem:[%s16018_s2 + $0x3f0] sm:$0xff] }
 0x25a   :  { %7109 = vmatpush1.bf16.msra.mxu1 %v7108_v58  ;;  %7047 = vmatprep.subr.bf16.mxu0 %v7046_v59  ;;  %v2828_v58 = vld [vmem:[%s16018_s2 + $0x3d0] sm:$0xff]  ;;  %v7126_v59 = vpack.c.bf16 %v2835_v16, %v2829_v53  ;;  %v7064_v4 = vpack.c.bf16 %v2832_v57, %v2826_v24  ;;  %v7078_v53 = vpack.c.bf16 %v2881_v48, %v2875_v47  ;;  %v2874_v16 = vld [vmem:[%s16018_s2 + $0x540] sm:$0xff]  ;;  %v2887_v57 = vld [vmem:[%s16018_s2 + $0x5a8] sm:$0xff] }
 0x25b   :  { %7111 = vmatprep.subr.bf16.mxu1 %v7110_v0  ;;  %v2841_v0 = vld [vmem:[%s16018_s2 + $0x438] sm:$0xff]  ;;  %v7128_v5 = vpack.c.bf16 %v2834_v60, %v2828_v58  ;;  %v2882_v24 = vld [vmem:[%s16018_s2 + $0x580] sm:$0xff]  ;;  %v2895_v60 = vld [vmem:[%s16018_s2 + $0x5e8] sm:$0xff] }
 0x25c   :  { %v2893_v58 = vld [vmem:[%s16018_s2 + $0x5d8] sm:$0xff] }
 0x25d   :  { %7049 = vmatpush1.bf16.msra.mxu0 %v7048_v13  ;;  %v2844_v13 = vld [vmem:[%s16018_s2 + $0x450] sm:$0xff] }
 0x25e   :  { %7113 = vmatpush1.bf16.msra.mxu1 %v7112_v14  ;;  %7051 = vmatprep.subr.bf16.mxu0 %v7050_v15  ;;  %v2840_v14 = vld [vmem:[%s16018_s2 + $0x430] sm:$0xff]  ;;  %v7130_v15 = vpack.c.bf16 %v2847_v3, %v2841_v0  ;;  %v7068_v22 = vpack.c.bf16 %v2844_v13, %v2838_v1  ;;  %v7082_v0 = vpack.c.bf16 %v2893_v58, %v2887_v57  ;;  %v2886_v3 = vld [vmem:[%s16018_s2 + $0x5a0] sm:$0xff]  ;;  %v2711_v13 = vld [vmem:[%s16018_s2 + $0x28] sm:$0xff] }
 0x25f   :  { %7115 = vmatprep.subr.bf16.mxu1 %v7114_v20  ;;  %v2853_v20 = vld [vmem:[%s16018_s2 + $0x498] sm:$0xff]  ;;  %v7132_v23 = vpack.c.bf16 %v2846_v17, %v2840_v14  ;;  %v2894_v1 = vld [vmem:[%s16018_s2 + $0x5e0] sm:$0xff] }
 0x260   :  { %v2717_v14 = vld [vmem:[%s16018_s2 + $0x58] sm:$0xff] }
 0x261   :  { %7053 = vmatpush1.bf16.msra.mxu0 %v7052_v27  ;;  %v2856_v27 = vld [vmem:[%s16018_s2 + $0x4b0] sm:$0xff]  ;;  %v7150_v18 = vpack.c.bf16 %v2717_v14, %v2711_v13 }
 0x262   :  { %7117 = vmatpush1.bf16.msra.mxu1 %v7116_v28  ;;  %7055 = vmatprep.subr.bf16.mxu0 %v7054_v29  ;;  %v2852_v28 = vld [vmem:[%s16018_s2 + $0x490] sm:$0xff]  ;;  %v7134_v29 = vpack.c.bf16 %v2859_v21, %v2853_v20  ;;  %v7072_v36 = vpack.c.bf16 %v2856_v27, %v2850_v26  ;;  %v3118_v20 = vld [vmem:[%s16019_s6 + $0x38] sm:$0xff]  ;;  %v428_v27 = vlaneseq }
 0x263   :  { %7119 = vmatprep.subr.bf16.mxu1 %v7118_v33  ;;  %v2865_v33 = vld [vmem:[%s16018_s2 + $0x4f8] sm:$0xff]  ;;  %v7136_v37 = vpack.c.bf16 %v2858_v30, %v2852_v28  ;;  %v7214_v21 = vpack.c.bf16 %v3118_v20, %v3112_v19 }
 0x264   :  { %v429_v28 = vshrl.u32 %v428_v27, 7 }
 0x265   :  { %7057 = vmatpush1.bf16.msra.mxu0 %v7056_v42  ;;  %v2868_v42 = vld [vmem:[%s16018_s2 + $0x510] sm:$0xff] }
 0x266   :  { %7121 = vmatpush1.bf16.msra.mxu1 %v7120_v44  ;;  %7059 = vmatprep.subr.bf16.mxu0 %v7058_v45  ;;  %v2864_v44 = vld [vmem:[%s16018_s2 + $0x4f0] sm:$0xff]  ;;  %v7138_v45 = vpack.c.bf16 %v2871_v35, %v2865_v33  ;;  %v7076_v51 = vpack.c.bf16 %v2868_v42, %v2862_v41  ;;  %v12423_v30 = vsub.s32 0, %v429_v28  ;;  %v12428_v32 = vsub.s32 1, %v429_v28 }
 0x267   :  { %7123 = vmatprep.subr.bf16.mxu1 %v7122_v49  ;;  %v2877_v49 = vld [vmem:[%s16018_s2 + $0x558] sm:$0xff]  ;;  %v7140_v52 = vpack.c.bf16 %v2870_v46, %v2864_v44  ;;  %v12447_v46 = vsub.s32 2, %v429_v28  ;;  %v12450_v48 = vsub.s32 3, %v429_v28 }
 0x269   :  { %7061 = vmatpush1.bf16.msra.mxu0 %v7060_v54  ;;  %v2880_v54 = vld [vmem:[%s16018_s2 + $0x570] sm:$0xff] }
 0x26a   :  { %7125 = vmatpush1.bf16.msra.mxu1 %v7124_v55  ;;  %7063 = vmatprep.subr.bf16.mxu0 %v7062_v56  ;;  %v2876_v55 = vld [vmem:[%s16018_s2 + $0x550] sm:$0xff]  ;;  %v7142_v56 = vpack.c.bf16 %v2883_v50, %v2877_v49  ;;  %v7080_v61 = vpack.c.bf16 %v2880_v54, %v2874_v16 }
 0x26b   :  { %7127 = vmatprep.subr.bf16.mxu1 %v7126_v59  ;;  %v2889_v59 = vld [vmem:[%s16018_s2 + $0x5b8] sm:$0xff]  ;;  %v7144_v62 = vpack.c.bf16 %v2882_v24, %v2876_v55 }
 0x26d   :  { %7065 = vmatpush1.bf16.msra.mxu0 %v7064_v4  ;;  %v2892_v4 = vld [vmem:[%s16018_s2 + $0x5d0] sm:$0xff] }
 0x26e   :  { %7129 = vmatpush1.bf16.msra.mxu1 %v7128_v5  ;;  %7067 = vmatprep.subr.bf16.mxu0 %v7066_v10  ;;  %v2888_v5 = vld [vmem:[%s16018_s2 + $0x5b0] sm:$0xff]  ;;  %v7146_v10 = vpack.c.bf16 %v2895_v60, %v2889_v59 }
 0x26f   :  { %7131 = vmatprep.subr.bf16.mxu1 %v7130_v15  ;;  %v7084_v15 = vpack.c.bf16 %v2892_v4, %v2886_v3  ;;  %v7148_v17 = vpack.c.bf16 %v2894_v1, %v2888_v5  ;;  %v12472_v3 = vsub.s32 5, %v429_v28 }
 0x271   :  { %7069 = vmatpush1.bf16.msra.mxu0 %v7068_v22  ;;  %v451_v13 = vrot.slane %v426_v31, %v12472_v3 }
 0x272   :  { %7133 = vmatpush1.bf16.msra.mxu1 %v7132_v23  ;;  %7071 = vmatprep.subr.bf16.mxu0 %v7070_v25 }
 0x273   :  { %7135 = vmatprep.subr.bf16.mxu1 %v7134_v29  ;;  %v1726_v29 = vld [vmem:[%s16020_s4] sm:$0x3f]  ;;  %v12492_v27 = vadd.f32 %v11412_v8, %v451_v13  ;;  %v2735_v13 = vld [vmem:[%s16018_s2 + $0xe8] sm:$0xff] }
 0x274   :  { %v12431_v33 = vrot.slane %v1726_v29, %v12423_v30  ;;  %v12434_v35 = vrot.slane %v1726_v29, %v12428_v32  ;;  %v12453_v49 = vrot.slane %v1726_v29, %v12447_v46  ;;  %v12478_v5 = vrot.slane %v1726_v29, %v12472_v3 }
 0x275   :  { %7073 = vmatpush1.bf16.msra.mxu0 %v7072_v36  ;;  %v431_v36 = vrot.slane %v426_v31, %v12423_v30 }
 0x276   :  { %7137 = vmatpush1.bf16.msra.mxu1 %v7136_v37  ;;  %7075 = vmatprep.subr.bf16.mxu0 %v7074_v38  ;;  %v435_v37 = vrot.slane %v426_v31, %v12428_v32 }
 0x277   :  { %7139 = vmatprep.subr.bf16.mxu1 %v7138_v45  ;;  %v12441_v42 = vadd.f32 %v10614_v34, %v431_v36  ;;  %v439_v34 = vrot.slane %v426_v31, %v12447_v46 }
 0x278   :  { %v12444_v44 = vadd.f32 %v10627_v40, %v435_v37  ;;  %v443_v40 = vrot.slane %v426_v31, %v12450_v48 }
 0x279   :  { %7077 = vmatpush1.bf16.msra.mxu0 %v7076_v51  ;;  %v12456_v51 = vrot.slane %v1726_v29, %v12450_v48  ;;  %v12463_v54 = vadd.f32 %v10625_v39, %v439_v34  ;;  %v12470_v39 = vsub.s32 4, %v429_v28  ;;  %v2710_v34 = vld [vmem:[%s16018_s2 + $0x20] sm:$0xff] }
 0x27a   :  { %7141 = vmatpush1.bf16.msra.mxu1 %v7140_v52  ;;  %7079 = vmatprep.subr.bf16.mxu0 %v7078_v53  ;;  %v12466_v55 = vadd.f32 %v10635_v43, %v443_v40  ;;  %v2723_v40 = vld [vmem:[%s16018_s2 + $0x88] sm:$0xff] }
 0x27b   :  { %7143 = vmatprep.subr.bf16.mxu1 %v7142_v56  ;;  %v12475_v4 = vrot.slane %v1726_v29, %v12470_v39 }
 0x27d   :  { %7081 = vmatpush1.bf16.msra.mxu0 %v7080_v61 }
 0x27e   :  { %7145 = vmatpush1.bf16.msra.mxu1 %v7144_v62  ;;  %7083 = vmatprep.subr.bf16.mxu0 %v7082_v0 }
 0x27f   :  { %7147 = vmatprep.subr.bf16.mxu1 %v7146_v10  ;;  %v447_v10 = vrot.slane %v426_v31, %v12470_v39 }
 0x281   :  { %7085 = vmatpush1.bf16.msra.mxu0 %v7084_v15 }
 0x282   :  { %7149 = vmatpush1.bf16.msra.mxu1 %v7148_v17  ;;  %7151 = vmatprep.subr.bf16.mxu0 %v7150_v18 }
 0x283   :  { %7215 = vmatprep.subr.bf16.mxu1 %v7214_v21 }
 0x297   :  { %v2017_v22 = vpop.f32.mrb[6].mxu0 }
 0x298   :  { %v2088_v23 = vpop.f32.mrb[6].mxu1  ;;  %v2019_v25 = vpop.f32.mrb[7].mxu0  ;;  %v2018_v38 = vadd.f32 %v2017_v22, %v12431_v33 }
 0x299   :  { %v2090_v26 = vpop.f32.mrb[7].mxu1  ;;  %v2020_v41 = vadd.f32 %v2019_v25, %v12434_v35  ;;  %v2089_v53 = vadd.f32 %v2088_v23, %v12453_v49  ;;  %v12489_v25 = vadd.f32 %v11399_v2, %v447_v10  ;;  %v12499_v2 = vld [vmem:[%s16022_s8] sm:$0x3f] }
 0x29a   :  { %v2600_v45 = vadd.f32 %v12441_v42, %v2018_v38  ;;  %v2091_v16 = vadd.f32 %v2090_v26, %v12456_v51  ;;  %v2722_v10 = vld [vmem:[%s16018_s2 + $0x80] sm:$0xff] }
 0x29b   :  { %v2601_v47 = vadd.f32 %v12444_v44, %v2020_v41  ;;  %v2614_v56 = vadd.f32 %v12463_v54, %v2089_v53 }
 0x29c   :  { %v5767_v50 = vmul.f32 -1.442695, %v2600_v45  ;;  %v2615_v24 = vadd.f32 %v12466_v55, %v2091_v16 }
 0x29d   :  { %v5768_v52 = vmul.f32 -1.442695, %v2601_v47  ;;  %v5769_v57 = vmul.f32 -1.442695, %v2614_v56  ;;  %v2729_v56 = vld [vmem:[%s16018_s2 + $0xb8] sm:$0xff] }
 0x29e   :  { %8263 = vpow2.f32 %v5767_v50  ;;  %v5770_v58 = vmul.f32 -1.442695, %v2615_v24  ;;  %v3111_v24 = vld [vmem:[%s16019_s6] sm:$0xff] }
 0x29f   :  { %8265 = vpow2.f32 %v5768_v52  ;;  %v2716_v52 = vld [vmem:[%s16018_s2 + $0x50] sm:$0xff] }
 0x2a0   :  { %8267 = vpow2.f32 %v5769_v57  ;;  %v3117_v57 = vld [vmem:[%s16019_s6 + $0x30] sm:$0xff] }
 0x2a1   :  { %8269 = vpow2.f32 %v5770_v58 }
 0x2a8   :  { %v8264_v59 = vpop.eup %8263 }
 0x2a9   :  { %v8266_v60 = vpop.eup %8265  ;;  %v2608_v61 = vadd.f32 1.0, %v8264_v59  ;;  %v3124_v59 = vld [vmem:[%s16019_s6 + $0x68] sm:$0xff] }
 0x2aa   :  { %v2609_v62 = vadd.f32 1.0, %v8266_v60  ;;  %v8268_v0 = vpop.eup %8267  ;;  %v3130_v60 = vld [vmem:[%s16019_s6 + $0x98] sm:$0xff] }
 0x2ab   :  { %8271 = vrcp.f32 %v2608_v61  ;;  %v8270_v43 = vpop.eup %8269  ;;  %v2622_v1 = vadd.f32 1.0, %v8268_v0  ;;  %v12531_v0 = vrot.slane %v12499_v2, %v12423_v30 }
 0x2ac   :  { %8273 = vrcp.f32 %v2609_v62  ;;  %v2623_v14 = vadd.f32 1.0, %v8270_v43  ;;  %v7152_v62 = vpack.c.bf16 %v2716_v52, %v2710_v34  ;;  %v7154_v43 = vpack.c.bf16 %v2729_v56, %v2723_v40  ;;  %v3141_v34 = vld [vmem:[%s16019_s6 + $0xf0] sm:$0xff]  ;;  %v3154_v40 = vld [vmem:[%s16019_s6 + $0x158] sm:$0xff] }
 0x2ad   :  { %8275 = vrcp.f32 %v2622_v1  ;;  %v2728_v1 = vld [vmem:[%s16018_s2 + $0xb0] sm:$0xff] }
 0x2ae   :  { %8277 = vrcp.f32 %v2623_v14  ;;  %v7216_v14 = vpack.c.bf16 %v3117_v57, %v3111_v24  ;;  %v2752_v57 = vld [vmem:[%s16018_s2 + $0x170] sm:$0xff] }
 0x2b5   :  { %v8272_v20 = vpop.eup %8271 }
 0x2b6   :  { %v8274_v23 = vpop.eup %8273 }
 0x2b7   :  { %v8276_v36 = vpop.eup %8275 }
 0x2b8   :  { %v8278_v37 = vpop.eup %8277  ;;  %v2634_v38 = vsub.f32 1.0, %v8276_v36  ;;  %v2638_v50 = vmul.f32 0.0, %v8276_v36 }
 0x2b9   :  { %v2635_v45 = vsub.f32 1.0, %v8278_v37  ;;  %v2639_v16 = vmul.f32 0.0, %v8278_v37  ;;  %v2734_v37 = vld [vmem:[%s16018_s2 + $0xe0] sm:$0xff] }
 0x2d7   :  { %v2159_v15 = vpop.f32.mrb[8].mxu0 }
 0x2d8   :  { %v2160_v17 = vadd.f32 %v2159_v15, %v12475_v4  ;;  %v12483_v18 = vpop.f32.mrb[8].mxu1  ;;  %v2161_v19 = vpop.f32.mrb[9].mxu0  ;;  %v12545_v15 = vrot.slane %v12499_v2, %v12428_v32 }
 0x2d9   :  { %v2162_v21 = vadd.f32 %v2161_v19, %v12478_v5  ;;  %v12486_v22 = vpop.f32.mrb[9].mxu1  ;;  %v7218_v19 = vpack.c.bf16 %v3130_v60, %v3124_v59  ;;  %v2759_v59 = vld [vmem:[%s16018_s2 + $0x1a8] sm:$0xff] }
 0x2da   :  { %v2628_v26 = vmul.f32 %v8272_v20, %v2160_v17  ;;  %v2741_v17 = vld [vmem:[%s16018_s2 + $0x118] sm:$0xff]  ;;  %v3123_v20 = vld [vmem:[%s16019_s6 + $0x60] sm:$0xff] }
 0x2db   :  { %v2629_v28 = vmul.f32 %v8274_v23, %v2162_v21  ;;  %v3129_v21 = vld [vmem:[%s16019_s6 + $0x90] sm:$0xff]  ;;  %v3136_v23 = vld [vmem:[%s16019_s6 + $0xc8] sm:$0xff]  ;;  %v7158_v36 = vpack.c.bf16 %v2741_v17, %v2735_v13  ;;  %v3166_v17 = vld [vmem:[%s16019_s6 + $0x1b8] sm:$0xff] }
 0x2dc   :  { %v2630_v29 = vadd.f32 %v12489_v25, %v2628_v26  ;;  %v3142_v26 = vld [vmem:[%s16019_s6 + $0xf8] sm:$0xff] }
 0x2dd   :  { %v2631_v31 = vadd.f32 %v12492_v27, %v2629_v28  ;;  %v12570_v28 = vld [vmem:[%s16023_s7] sm:$0x3f] }
 0x2de   :  { %8279 = vtanh.f32 %v2630_v29  ;;  %v7156_v29 = vpack.c.bf16 %v2728_v1, %v2722_v10  ;;  %v1273_v52 = vrot.slane %v12570_v28, %v12423_v30  ;;  %v2746_v30 = vld [vmem:[%s16018_s2 + $0x140] sm:$0xff]  ;;  %v3153_v1 = vld [vmem:[%s16019_s6 + $0x150] sm:$0xff] }
 0x2df   :  { %8281 = vtanh.f32 %v2631_v31  ;;  %v2454_v31 = vadd.f32 %v12483_v18, %v12531_v0  ;;  %v2753_v18 = vld [vmem:[%s16018_s2 + $0x178] sm:$0xff]  ;;  %v3147_v10 = vld [vmem:[%s16019_s6 + $0x120] sm:$0xff] }
 0x2e0   :  { %v12624_v13 = vadd.f32 %v11410_v7, %v1273_v52  ;;  %v2758_v7 = vld [vmem:[%s16018_s2 + $0x1a0] sm:$0xff]  ;;  %v2776_v52 = vld [vmem:[%s16018_s2 + $0x230] sm:$0xff] }
 0x2e1   :  { %v2644_v56 = vrot.slane %v2454_v31, 2 }
 0x2e8   :  { %v8280_v41 = vpop.eup %8279 }
 0x2e9   :  { %v8282_v8 = vpop.eup %8281  ;;  %v2636_v47 = vmul.f32 %v8280_v41, %v2634_v38  ;;  %v2740_v38 = vld [vmem:[%s16018_s2 + $0x110] sm:$0xff]  ;;  %v2747_v41 = vld [vmem:[%s16018_s2 + $0x148] sm:$0xff] }
 0x2ea   :  { %v2637_v53 = vmul.f32 %v8282_v8, %v2635_v45  ;;  %v7220_v45 = vpack.c.bf16 %v3129_v21, %v3123_v20  ;;  %v2456_v8 = vadd.f32 %v12486_v22, %v12545_v15  ;;  %v3148_v22 = vld [vmem:[%s16019_s6 + $0x128] sm:$0xff]  ;;  %v7162_v24 = vpack.c.bf16 %v2753_v18, %v2747_v41  ;;  %v3165_v41 = vld [vmem:[%s16019_s6 + $0x1b0] sm:$0xff] }
 0x2eb   :  { %v12519_v58 = vadd.f32 %v2638_v50, %v2636_v47  ;;  %v7222_v47 = vpack.c.bf16 %v3142_v26, %v3136_v23  ;;  %v3135_v50 = vld [vmem:[%s16019_s6 + $0xc0] sm:$0xff]  ;;  %v7164_v20 = vpack.c.bf16 %v2752_v57, %v2746_v30  ;;  %v2648_v21 = vadd.f32 %v12624_v13, %v2644_v56  ;;  %v2764_v26 = vld [vmem:[%s16018_s2 + $0x1d0] sm:$0xff]  ;;  %v3184_v57 = vld [vmem:[%s16019_s6 + $0x248] sm:$0xff] }
 0x2ec   :  { %v12527_v61 = vadd.f32 %v2639_v16, %v2637_v53  ;;  %v1277_v53 = vrot.slane %v12570_v28, %v12428_v32  ;;  %v7160_v16 = vpack.c.bf16 %v2740_v38, %v2734_v37  ;;  %v7224_v60 = vpack.c.bf16 %v3141_v34, %v3135_v50  ;;  %v3159_v38 = vld [vmem:[%s16019_s6 + $0x180] sm:$0xff]  ;;  %v3177_v30 = vld [vmem:[%s16019_s6 + $0x210] sm:$0xff] }
 0x2ed   :  { %2702 = vst [vmem:[#allocation2] sm:$0x3] %v12519_v58  ;;  %v2645_v32 = vrot.slane %v2456_v8, 2  ;;  %v3178_v8 = vld [vmem:[%s16019_s6 + $0x218] sm:$0xff]  ;;  %v7168_v18 = vpack.c.bf16 %v2764_v26, %v2758_v7  ;;  %v2770_v34 = vld [vmem:[%s16018_s2 + $0x200] sm:$0xff] }
 0x2ee   :  { %2703 = vst [vmem:[#allocation2 + $0x8] sm:$0x3] %v12527_v61  ;;  %2962 = vmatprep.mubr.f32.mxu0 %v12527_v61  ;;  %3033 = vmatprep.mubr.f32.mxu1 %v12527_v61  ;;  %v3202_v7 = vld [vmem:[%s16019_s6 + $0x2d8] sm:$0xff] }
 0x2ef   :  { %2963 = vmatmul.mubr.f32.vlgmr.msra.gmra.mrb[12].mxu0 %v12519_v58  ;;  %3034 = vmatmul.mubr.f32.vlgmr.msra.gmra.mrb[12].mxu1 %v12519_v58 }
 0x2f0   :  { %7153 = vmatpush1.bf16.msra.mxu0 %v7152_v62  ;;  %3104 = vmatprep.mubr.f32.mxu0 %v12527_v61  ;;  %v2765_v62 = vld [vmem:[%s16018_s2 + $0x1d8] sm:$0xff] }
 0x2f1   :  { %7155 = vmatprep.subr.bf16.mxu0 %v7154_v43  ;;  %7217 = vmatpush1.bf16.msra.mxu1 %v7216_v14  ;;  %v7226_v43 = vpack.c.bf16 %v3154_v40, %v3148_v22  ;;  %v3160_v14 = vld [vmem:[%s16019_s6 + $0x188] sm:$0xff]  ;;  %v7166_v23 = vpack.c.bf16 %v2765_v62, %v2759_v59  ;;  %v7232_v40 = vpack.c.bf16 %v3165_v41, %v3159_v38  ;;  %v3190_v59 = vld [vmem:[%s16019_s6 + $0x278] sm:$0xff]  ;;  %v2782_v62 = vld [vmem:[%s16018_s2 + $0x260] sm:$0xff] }
 0x2f2   :  { %7219 = vmatprep.subr.bf16.mxu1 %v7218_v19  ;;  %v12633_v19 = vadd.f32 %v11420_v11, %v1277_v53  ;;  %v7228_v11 = vpack.c.bf16 %v3153_v1, %v3147_v10  ;;  %v7230_v37 = vpack.c.bf16 %v3166_v17, %v3160_v14  ;;  %v2783_v22 = vld [vmem:[%s16018_s2 + $0x268] sm:$0xff]  ;;  %v2801_v14 = vld [vmem:[%s16018_s2 + $0x2f8] sm:$0xff]  ;;  %v7238_v17 = vpack.c.bf16 %v3190_v59, %v3184_v57 }
 0x2f3   :  { %v2795_v10 = vld [vmem:[%s16018_s2 + $0x2c8] sm:$0xff]  ;;  %v2813_v38 = vld [vmem:[%s16018_s2 + $0x358] sm:$0xff] }
 0x2f4   :  { %7157 = vmatpush1.bf16.msra.mxu0 %v7156_v29  ;;  %v2771_v29 = vld [vmem:[%s16018_s2 + $0x208] sm:$0xff]  ;;  %v2649_v31 = vadd.f32 %v12633_v19, %v2645_v32 }
 0x2f5   :  { %7159 = vmatprep.subr.bf16.mxu0 %v7158_v36  ;;  %7221 = vmatpush1.bf16.msra.mxu1 %v7220_v45  ;;  %v2777_v36 = vld [vmem:[%s16018_s2 + $0x238] sm:$0xff]  ;;  %v3172_v45 = vld [vmem:[%s16019_s6 + $0x1e8] sm:$0xff] }
 0x2f6   :  { %7223 = vmatprep.subr.bf16.mxu1 %v7222_v47  ;;  %v5771_v47 = vmul.f32 -1.442695, %v2648_v21  ;;  %v7170_v50 = vpack.c.bf16 %v2777_v36, %v2771_v29  ;;  %v5772_v53 = vmul.f32 -1.442695, %v2649_v31  ;;  %v7234_v56 = vpack.c.bf16 %v3178_v8, %v3172_v45  ;;  %v3189_v21 = vld [vmem:[%s16019_s6 + $0x270] sm:$0xff]  ;;  %v2807_v36 = vld [vmem:[%s16018_s2 + $0x328] sm:$0xff] }
 0x2f7   :  { %v7178_v29 = vpack.c.bf16 %v2801_v14, %v2795_v10  ;;  %v2800_v31 = vld [vmem:[%s16018_s2 + $0x2f0] sm:$0xff]  ;;  %v3195_v45 = vld [vmem:[%s16019_s6 + $0x2a0] sm:$0xff]  ;;  %v3220_v59 = vld [vmem:[%s16019_s6 + $0x368] sm:$0xff] }
 0x2f8   :  { %7161 = vmatpush1.bf16.msra.mxu0 %v7160_v16  ;;  %v2789_v16 = vld [vmem:[%s16018_s2 + $0x298] sm:$0xff]  ;;  %8283 = vpow2.f32 %v5771_v47  ;;  %v3201_v8 = vld [vmem:[%s16019_s6 + $0x2d0] sm:$0xff]  ;;  %v2818_v10 = vld [vmem:[%s16018_s2 + $0x380] sm:$0xff] }
 0x2f9   :  { %7163 = vmatprep.subr.bf16.mxu0 %v7162_v24  ;;  %7225 = vmatpush1.bf16.msra.mxu1 %v7224_v60  ;;  %v3171_v24 = vld [vmem:[%s16019_s6 + $0x1e0] sm:$0xff]  ;;  %v7172_v60 = vpack.c.bf16 %v2776_v52, %v2770_v34  ;;  %v7174_v32 = vpack.c.bf16 %v2789_v16, %v2783_v22  ;;  %8285 = vpow2.f32 %v5772_v53  ;;  %v3214_v47 = vld [vmem:[%s16019_s6 + $0x338] sm:$0xff]  ;;  %v7182_v34 = vpack.c.bf16 %v2813_v38, %v2807_v36  ;;  %v2812_v22 = vld [vmem:[%s16018_s2 + $0x350] sm:$0xff] }
 0x2fa   :  { %7227 = vmatprep.subr.bf16.mxu1 %v7226_v43  ;;  %v2788_v43 = vld [vmem:[%s16018_s2 + $0x290] sm:$0xff]  ;;  %v7236_v1 = vpack.c.bf16 %v3177_v30, %v3171_v24  ;;  %v2806_v52 = vld [vmem:[%s16018_s2 + $0x320] sm:$0xff]  ;;  %v7244_v53 = vpack.c.bf16 %v3201_v8, %v3195_v45  ;;  %v2825_v16 = vld [vmem:[%s16018_s2 + $0x3b8] sm:$0xff] }
 0x2fb   :  { %v7176_v26 = vpack.c.bf16 %v2788_v43, %v2782_v62  ;;  %v3207_v24 = vld [vmem:[%s16019_s6 + $0x300] sm:$0xff]  ;;  %v3213_v30 = vld [vmem:[%s16019_s6 + $0x330] sm:$0xff]  ;;  %v7184_v62 = vpack.c.bf16 %v2812_v22, %v2806_v52  ;;  %v2831_v14 = vld [vmem:[%s16018_s2 + $0x3e8] sm:$0xff] }
 0x2fc   :  { %7165 = vmatpush1.bf16.msra.mxu0 %v7164_v20  ;;  %v3183_v20 = vld [vmem:[%s16019_s6 + $0x240] sm:$0xff]  ;;  %v2843_v45 = vld [vmem:[%s16018_s2 + $0x448] sm:$0xff]  ;;  %v3250_v22 = vld [vmem:[%s16019_s6 + $0x458] sm:$0xff] }
 0x2fd   :  { %7167 = vmatprep.subr.bf16.mxu0 %v7166_v23  ;;  %7229 = vmatpush1.bf16.msra.mxu1 %v7228_v11  ;;  %v3196_v23 = vld [vmem:[%s16019_s6 + $0x2a8] sm:$0xff]  ;;  %v2794_v11 = vld [vmem:[%s16018_s2 + $0x2c0] sm:$0xff] }
 0x2fe   :  { %7231 = vmatprep.subr.bf16.mxu1 %v7230_v37  ;;  %v7240_v37 = vpack.c.bf16 %v3189_v21, %v3183_v20  ;;  %v7242_v41 = vpack.c.bf16 %v3202_v7, %v3196_v23  ;;  %v2837_v21 = vld [vmem:[%s16018_s2 + $0x418] sm:$0xff]  ;;  %v3219_v7 = vld [vmem:[%s16019_s6 + $0x360] sm:$0xff]  ;;  %v3244_v52 = vld [vmem:[%s16019_s6 + $0x428] sm:$0xff] }
 0x2ff   :  { %v2830_v38 = vld [vmem:[%s16018_s2 + $0x3e0] sm:$0xff] }
 0x300   :  { %7169 = vmatpush1.bf16.msra.mxu0 %v7168_v18  ;;  %v3208_v18 = vld [vmem:[%s16019_s6 + $0x308] sm:$0xff] }
 0x301   :  { %7171 = vmatprep.subr.bf16.mxu0 %v7170_v50  ;;  %7233 = vmatpush1.bf16.msra.mxu1 %v7232_v40  ;;  %v7180_v50 = vpack.c.bf16 %v2800_v31, %v2794_v11  ;;  %v2819_v40 = vld [vmem:[%s16018_s2 + $0x388] sm:$0xff]  ;;  %v3238_v31 = vld [vmem:[%s16019_s6 + $0x3f8] sm:$0xff] }
 0x302   :  { %7235 = vmatprep.subr.bf16.mxu1 %v7234_v56  ;;  %v7246_v56 = vpack.c.bf16 %v3214_v47, %v3208_v18  ;;  %v8284_v57 = vpop.eup %8283  ;;  %v7186_v43 = vpack.c.bf16 %v2825_v16, %v2819_v40  ;;  %v3232_v11 = vld [vmem:[%s16019_s6 + $0x3c8] sm:$0xff]  ;;  %v2849_v18 = vld [vmem:[%s16018_s2 + $0x478] sm:$0xff]  ;;  %v12807_v40 = vrot.slane %v12499_v2, %v12447_v46 }
 0x303   :  { %v2656_v20 = vadd.f32 1.0, %v8284_v57  ;;  %v7254_v47 = vpack.c.bf16 %v3238_v31, %v3232_v11  ;;  %v2848_v57 = vld [vmem:[%s16018_s2 + $0x470] sm:$0xff] }
 0x304   :  { %7173 = vmatpush1.bf16.msra.mxu0 %v7172_v60  ;;  %v3226_v60 = vld [vmem:[%s16019_s6 + $0x398] sm:$0xff] }
 0x305   :  { %7175 = vmatprep.subr.bf16.mxu0 %v7174_v32  ;;  %7237 = vmatpush1.bf16.msra.mxu1 %v7236_v1  ;;  %v8286_v32 = vpop.eup %8285  ;;  %v2824_v1 = vld [vmem:[%s16018_s2 + $0x3b0] sm:$0xff]  ;;  %v7250_v23 = vpack.c.bf16 %v3226_v60, %v3220_v59  ;;  %8287 = vrcp.f32 %v2656_v20  ;;  %v2855_v59 = vld [vmem:[%s16018_s2 + $0x4a8] sm:$0xff]  ;;  %v2861_v60 = vld [vmem:[%s16018_s2 + $0x4d8] sm:$0xff] }
 0x306   :  { %7239 = vmatprep.subr.bf16.mxu1 %v7238_v17  ;;  %v7248_v17 = vpack.c.bf16 %v3213_v30, %v3207_v24  ;;  %v7188_v36 = vpack.c.bf16 %v2824_v1, %v2818_v10  ;;  %v12818_v24 = vrot.slane %v12499_v2, %v12450_v48  ;;  %v7194_v30 = vpack.c.bf16 %v2849_v18, %v2843_v45  ;;  %v3243_v1 = vld [vmem:[%s16019_s6 + $0x420] sm:$0xff] }
 0x307   :  { %v7258_v10 = vpack.c.bf16 %v3250_v22, %v3244_v52  ;;  %v3261_v52 = vld [vmem:[%s16019_s6 + $0x4b0] sm:$0xff] }
 0x308   :  { %7177 = vmatpush1.bf16.msra.mxu0 %v7176_v26  ;;  %v3225_v26 = vld [vmem:[%s16019_s6 + $0x390] sm:$0xff] }
 0x309   :  { %7179 = vmatprep.subr.bf16.mxu0 %v7178_v29  ;;  %7241 = vmatpush1.bf16.msra.mxu1 %v7240_v37  ;;  %v2657_v29 = vadd.f32 1.0, %v8286_v32  ;;  %v7190_v37 = vpack.c.bf16 %v2837_v21, %v2831_v14  ;;  %v7252_v8 = vpack.c.bf16 %v3225_v26, %v3219_v7  ;;  %v3249_v14 = vld [vmem:[%s16019_s6 + $0x450] sm:$0xff] }
 0x30a   :  { %7243 = vmatprep.subr.bf16.mxu1 %v7242_v41  ;;  %v2836_v41 = vld [vmem:[%s16018_s2 + $0x410] sm:$0xff]  ;;  %v7260_v45 = vpack.c.bf16 %v3249_v14, %v3243_v1  ;;  %v2866_v14 = vld [vmem:[%s16018_s2 + $0x500] sm:$0xff] }
 0x30b   :  { %8289 = vrcp.f32 %v2657_v29  ;;  %v7192_v16 = vpack.c.bf16 %v2836_v41, %v2830_v38  ;;  %v7198_v29 = vpack.c.bf16 %v2861_v60, %v2855_v59  ;;  %v2867_v38 = vld [vmem:[%s16018_s2 + $0x508] sm:$0xff]  ;;  %v2873_v41 = vld [vmem:[%s16018_s2 + $0x538] sm:$0xff] }
 0x30c   :  { %7181 = vmatpush1.bf16.msra.mxu0 %v7180_v50  ;;  %v3231_v50 = vld [vmem:[%s16019_s6 + $0x3c0] sm:$0xff] }
 0x30d   :  { %7183 = vmatprep.subr.bf16.mxu0 %v7182_v34  ;;  %7245 = vmatpush1.bf16.msra.mxu1 %v7244_v53  ;;  %v3237_v34 = vld [vmem:[%s16019_s6 + $0x3f0] sm:$0xff]  ;;  %v12811_v53 = vrot.slane %v12499_v2, %v12470_v39 }
 0x30e   :  { %7247 = vmatprep.subr.bf16.mxu1 %v7246_v56  ;;  %v2842_v56 = vld [vmem:[%s16018_s2 + $0x440] sm:$0xff]  ;;  %v7256_v32 = vpack.c.bf16 %v3237_v34, %v3231_v50 }
 0x30f   :  { %v7196_v26 = vpack.c.bf16 %v2848_v57, %v2842_v56  ;;  %v3255_v34 = vld [vmem:[%s16019_s6 + $0x480] sm:$0xff]  ;;  %v8288_v57 = vpop.eup %8287 }
 0x310   :  { %7185 = vmatpush1.bf16.msra.mxu0 %v7184_v62  ;;  %v1281_v62 = vrot.slane %v12570_v28, %v12447_v46  ;;  %v3256_v46 = vld [vmem:[%s16019_s6 + $0x488] sm:$0xff] }
 0x311   :  { %7187 = vmatprep.subr.bf16.mxu0 %v7186_v43  ;;  %7249 = vmatpush1.bf16.msra.mxu1 %v7248_v17  ;;  %v12833_v43 = vrot.slane %v12499_v2, %v12472_v3  ;;  %v1285_v17 = vrot.slane %v12570_v28, %v12450_v48  ;;  %v3262_v2 = vld [vmem:[%s16019_s6 + $0x4b8] sm:$0xff]  ;;  %v2854_v48 = vld [vmem:[%s16018_s2 + $0x4a0] sm:$0xff] }
 0x312   :  { %7251 = vmatprep.subr.bf16.mxu1 %v7250_v23  ;;  %v7262_v50 = vpack.c.bf16 %v3262_v2, %v3256_v46  ;;  %v7264_v46 = vpack.c.bf16 %v3261_v52, %v3255_v34  ;;  %v3279_v34 = vld [vmem:[%s16019_s6 + $0x540] sm:$0xff]  ;;  %v3285_v52 = vld [vmem:[%s16019_s6 + $0x570] sm:$0xff] }
 0x313   :  { %v12875_v22 = vadd.f32 %v12194_v9, %v1285_v17  ;;  %v2872_v17 = vld [vmem:[%s16018_s2 + $0x530] sm:$0xff] }
 0x314   :  { %7189 = vmatpush1.bf16.msra.mxu0 %v7188_v36 }
 0x315   :  { %7191 = vmatprep.subr.bf16.mxu0 %v7190_v37  ;;  %7253 = vmatpush1.bf16.msra.mxu1 %v7252_v8  ;;  %v2860_v37 = vld [vmem:[%s16018_s2 + $0x4d0] sm:$0xff]  ;;  %v12865_v8 = vadd.f32 %v12181_v63, %v1281_v62  ;;  %v3268_v63 = vld [vmem:[%s16019_s6 + $0x4e8] sm:$0xff]  ;;  %v7202_v62 = vpack.c.bf16 %v2873_v41, %v2867_v38  ;;  %v2878_v38 = vld [vmem:[%s16018_s2 + $0x560] sm:$0xff] }
 0x316   :  { %7255 = vmatprep.subr.bf16.mxu1 %v7254_v47  ;;  %v2884_v41 = vld [vmem:[%s16018_s2 + $0x590] sm:$0xff] }
 0x317   :  { %v2524_v20 = vpop.f32.mrb[10].mxu0 }
 0x318   :  { %v2525_v21 = vadd.f32 %v2524_v20, %v12807_v40  ;;  %v2595_v23 = vpop.f32.mrb[10].mxu1  ;;  %7193 = vmatpush1.bf16.msra.mxu0 %v7192_v16  ;;  %v2526_v7 = vpop.f32.mrb[11].mxu0  ;;  %v2879_v20 = vld [vmem:[%s16018_s2 + $0x568] sm:$0xff] }
 0x319   :  { %v2596_v11 = vadd.f32 %v2595_v23, %v12811_v53  ;;  %v2527_v31 = vadd.f32 %v2526_v7, %v12818_v24  ;;  %v2597_v36 = vpop.f32.mrb[11].mxu1  ;;  %7195 = vmatprep.subr.bf16.mxu0 %v7194_v30  ;;  %7257 = vmatpush1.bf16.msra.mxu1 %v7256_v32  ;;  %v3274_v30 = vld [vmem:[%s16019_s6 + $0x518] sm:$0xff]  ;;  %v7200_v32 = vpack.c.bf16 %v2860_v37, %v2854_v48 }
 0x31a   :  { %v2664_v18 = vrot.slane %v2525_v21, 2  ;;  %v2598_v47 = vadd.f32 %v2597_v36, %v12833_v43  ;;  %7259 = vmatprep.subr.bf16.mxu1 %v7258_v10  ;;  %v8290_v10 = vpop.eup %8289  ;;  %v2885_v23 = vld [vmem:[%s16018_s2 + $0x598] sm:$0xff]  ;;  %v7266_v7 = vpack.c.bf16 %v3274_v30, %v3268_v63  ;;  %v7204_v36 = vpack.c.bf16 %v2872_v17, %v2866_v14  ;;  %v3297_v14 = vld [vmem:[%s16019_s6 + $0x5d0] sm:$0xff] }
 0x31b   :  { %v2684_v16 = vrot.slane %v2596_v11, 2  ;;  %v2665_v56 = vrot.slane %v2527_v31, 2  ;;  %v3280_v11 = vld [vmem:[%s16019_s6 + $0x548] sm:$0xff]  ;;  %v3286_v31 = vld [vmem:[%s16019_s6 + $0x578] sm:$0xff]  ;;  %v7206_v37 = vpack.c.bf16 %v2885_v23, %v2879_v20  ;;  %v1289_v63 = vrot.slane %v12570_v28, %v12470_v39 }
 0x31c   :  { %v2668_v59 = vadd.f32 %v12865_v8, %v2664_v18  ;;  %v2685_v60 = vrot.slane %v2598_v47, 2  ;;  %7197 = vmatpush1.bf16.msra.mxu0 %v7196_v26  ;;  %v3267_v26 = vld [vmem:[%s16019_s6 + $0x4e0] sm:$0xff]  ;;  %v2897_v47 = vld [vmem:[%s16018_s2 + $0x5f8] sm:$0xff]  ;;  %v7208_v30 = vpack.c.bf16 %v2884_v41, %v2878_v38  ;;  %v3120_v39 = vld [vmem:[%s16019_s6 + $0x48] sm:$0xff]  ;;  %v1293_v17 = vrot.slane %v12570_v28, %v12472_v3 }
 0x31d   :  { %v12884_v9 = vmul.f32 %v8288_v57, %v2684_v16  ;;  %v2669_v1 = vadd.f32 %v12875_v22, %v2665_v56  ;;  %7199 = vmatprep.subr.bf16.mxu0 %v7198_v29  ;;  %7261 = vmatpush1.bf16.msra.mxu1 %v7260_v45  ;;  %v3273_v29 = vld [vmem:[%s16019_s6 + $0x510] sm:$0xff]  ;;  %v2891_v45 = vld [vmem:[%s16018_s2 + $0x5c8] sm:$0xff]  ;;  %v3298_v56 = vld [vmem:[%s16019_s6 + $0x5d8] sm:$0xff] }
 0x31e   :  { %v5773_v2 = vmul.f32 -1.442695, %v2668_v59  ;;  %v12896_v21 = vmul.f32 %v8290_v10, %v2685_v60  ;;  %7263 = vmatprep.subr.bf16.mxu1 %v7262_v50  ;;  %v7268_v18 = vpack.c.bf16 %v3273_v29, %v3267_v26  ;;  %v7270_v50 = vpack.c.bf16 %v3286_v31, %v3280_v11  ;;  %v3292_v16 = vld [vmem:[%s16019_s6 + $0x5a8] sm:$0xff]  ;;  %v2890_v59 = vld [vmem:[%s16018_s2 + $0x5c0] sm:$0xff]  ;;  %v2896_v60 = vld [vmem:[%s16018_s2 + $0x5f0] sm:$0xff] }
 0x31f   :  { %v5774_v48 = vmul.f32 -1.442695, %v2669_v1  ;;  %v7210_v57 = vpack.c.bf16 %v2897_v47, %v2891_v45  ;;  %v7274_v10 = vpack.c.bf16 %v3298_v56, %v3292_v16  ;;  %v3291_v1 = vld [vmem:[%s16019_s6 + $0x5a0] sm:$0xff]  ;;  %v3116_v20 = vld [vmem:[%s16019_s6 + $0x28] sm:$0xff]  ;;  %v7212_v23 = vpack.c.bf16 %v2896_v60, %v2890_v59  ;;  %v3113_v26 = vld [vmem:[%s16019_s6 + $0x10] sm:$0xff] }
 0x320   :  { %8291 = vpow2.f32 %v5773_v2  ;;  %7201 = vmatpush1.bf16.msra.mxu0 %v7200_v32  ;;  %v3114_v32 = vld [vmem:[%s16019_s6 + $0x18] sm:$0xff]  ;;  %v12966_v2 = vadd.f32 %v12192_v6, %v1289_v63  ;;  %v3119_v3 = vld [vmem:[%s16019_s6 + $0x40] sm:$0xff]  ;;  %v7276_v28 = vpack.c.bf16 %v3297_v14, %v3291_v1  ;;  %v3132_v11 = vld [vmem:[%s16019_s6 + $0xa8] sm:$0xff] }
 0x321   :  { %7203 = vmatprep.subr.bf16.mxu0 %v7202_v62  ;;  %7265 = vmatpush1.bf16.msra.mxu1 %v7264_v46  ;;  %8293 = vpow2.f32 %v5774_v48  ;;  %v7272_v62 = vpack.c.bf16 %v3285_v52, %v3279_v34  ;;  %v3122_v46 = vld [vmem:[%s16019_s6 + $0x58] sm:$0xff]  ;;  %v7280_v41 = vpack.c.bf16 %v3119_v3, %v3113_v26  ;;  %v3125_v47 = vld [vmem:[%s16019_s6 + $0x70] sm:$0xff]  ;;  %v3143_v56 = vld [vmem:[%s16019_s6 + $0x100] sm:$0xff] }
 0x322   :  { %7267 = vmatprep.subr.bf16.mxu1 %v7266_v7  ;;  %v7278_v7 = vpack.c.bf16 %v3120_v39, %v3114_v32  ;;  %v2690_v48 = vadd.f32 %v12966_v2, %v12884_v9  ;;  %v3126_v6 = vld [vmem:[%s16019_s6 + $0x78] sm:$0xff]  ;;  %v7342_v31 = vpack.c.bf16 %v3122_v46, %v3116_v20  ;;  %v3137_v16 = vld [vmem:[%s16019_s6 + $0xd0] sm:$0xff]  ;;  %v3155_v32 = vld [vmem:[%s16019_s6 + $0x160] sm:$0xff] }
 0x323   :  { %v3150_v63 = vld [vmem:[%s16019_s6 + $0x138] sm:$0xff]  ;;  %v3149_v60 = vld [vmem:[%s16019_s6 + $0x130] sm:$0xff]  ;;  %v3168_v39 = vld [vmem:[%s16019_s6 + $0x1c8] sm:$0xff] }
 0x324   :  { %7205 = vmatpush1.bf16.msra.mxu0 %v7204_v36  ;;  %v12983_v36 = vadd.f32 %v12202_v12, %v1293_v17  ;;  %v3131_v12 = vld [vmem:[%s16019_s6 + $0xa0] sm:$0xff]  ;;  %v7292_v14 = vpack.c.bf16 %v3155_v32, %v3149_v60  ;;  %v3185_v32 = vld [vmem:[%s16019_s6 + $0x250] sm:$0xff] }
 0x325   :  { %7207 = vmatprep.subr.bf16.mxu0 %v7206_v37  ;;  %7269 = vmatpush1.bf16.msra.mxu1 %v7268_v18  ;;  %v7282_v18 = vpack.c.bf16 %v3132_v11, %v3126_v6  ;;  %v7284_v34 = vpack.c.bf16 %v3131_v12, %v3125_v47  ;;  %v3179_v47 = vld [vmem:[%s16019_s6 + $0x220] sm:$0xff] }
 0x326   :  { %7271 = vmatprep.subr.bf16.mxu1 %v7270_v50  ;;  %v2691_v9 = vadd.f32 %v12983_v36, %v12896_v21  ;;  %v3138_v50 = vld [vmem:[%s16019_s6 + $0xd8] sm:$0xff]  ;;  %v3144_v21 = vld [vmem:[%s16019_s6 + $0x108] sm:$0xff] }
 0x327   :  { %v7286_v52 = vpack.c.bf16 %v3144_v21, %v3138_v50  ;;  %v3128_v50 = vld [vmem:[%s16019_s6 + $0x88] sm:$0xff]  ;;  %v3134_v21 = vld [vmem:[%s16019_s6 + $0xb8] sm:$0xff] }
 0x328   :  { %7209 = vmatpush1.bf16.msra.mxu0 %v7208_v30  ;;  %v3156_v30 = vld [vmem:[%s16019_s6 + $0x168] sm:$0xff]  ;;  %v7346_v60 = vpack.c.bf16 %v3134_v21, %v3128_v50  ;;  %v3209_v50 = vld [vmem:[%s16019_s6 + $0x310] sm:$0xff]  ;;  %v3215_v21 = vld [vmem:[%s16019_s6 + $0x340] sm:$0xff] }
 0x329   :  { %7211 = vmatprep.subr.bf16.mxu0 %v7210_v57  ;;  %7273 = vmatpush1.bf16.msra.mxu1 %v7272_v62  ;;  %v7288_v57 = vpack.c.bf16 %v3143_v56, %v3137_v16  ;;  %v7290_v59 = vpack.c.bf16 %v3156_v30, %v3150_v63  ;;  %v3162_v62 = vld [vmem:[%s16019_s6 + $0x198] sm:$0xff]  ;;  %v3127_v30 = vld [vmem:[%s16019_s6 + $0x80] sm:$0xff] }
 0x32a   :  { %v8292_v29 = vpop.eup %8291  ;;  %7275 = vmatprep.subr.bf16.mxu1 %v7274_v10  ;;  %v7294_v46 = vpack.c.bf16 %v3168_v39, %v3162_v62  ;;  %v3191_v62 = vld [vmem:[%s16019_s6 + $0x280] sm:$0xff]  ;;  %v3140_v39 = vld [vmem:[%s16019_s6 + $0xe8] sm:$0xff] }
 0x32b   :  { %v2676_v37 = vadd.f32 1.0, %v8292_v29  ;;  %v8294_v38 = vpop.eup %8293  ;;  %v3174_v29 = vld [vmem:[%s16019_s6 + $0x1f8] sm:$0xff] }
 0x32c   :  { %7213 = vmatpush1.bf16.msra.mxu0 %v7212_v23  ;;  %v2677_v45 = vadd.f32 1.0, %v8294_v38  ;;  %v3161_v23 = vld [vmem:[%s16019_s6 + $0x190] sm:$0xff] }
 0x32d   :  { %8295 = vrcp.f32 %v2676_v37  ;;  %7279 = vmatprep.subr.bf16.mxu0 %v7278_v7  ;;  %7277 = vmatpush1.bf16.msra.mxu1 %v7276_v28  ;;  %v3167_v7 = vld [vmem:[%s16019_s6 + $0x1c0] sm:$0xff] }
 0x32e   :  { %8297 = vtanh.f32 %v2690_v48  ;;  %7343 = vmatprep.subr.bf16.mxu1 %v7342_v31  ;;  %v3180_v48 = vld [vmem:[%s16019_s6 + $0x228] sm:$0xff]  ;;  %v7296_v11 = vpack.c.bf16 %v3167_v7, %v3161_v23  ;;  %v3139_v23 = vld [vmem:[%s16019_s6 + $0xe0] sm:$0xff]  ;;  %v3145_v7 = vld [vmem:[%s16019_s6 + $0x110] sm:$0xff] }
 0x32f   :  { %8299 = vrcp.f32 %v2677_v45  ;;  %3105 = vmatmul.mubr.f32.vlgmr.msra.gmra.mrb[14].mxu0 %v12519_v58  ;;  %v7298_v45 = vpack.c.bf16 %v3180_v48, %v3174_v29  ;;  %v3203_v29 = vld [vmem:[%s16019_s6 + $0x2e0] sm:$0xff]  ;;  %v3152_v48 = vld [vmem:[%s16019_s6 + $0x148] sm:$0xff] }
 0x330   :  { %7281 = vmatpush1.bf16.msra.mxu0 %v7280_v41  ;;  %8301 = vtanh.f32 %v2691_v9  ;;  %v3115_v41 = vld [vmem:[%s16019_s6 + $0x20] sm:$0xff]  ;;  %v3121_v9 = vld [vmem:[%s16019_s6 + $0x50] sm:$0xff] }
 0x331   :  { %7283 = vmatprep.subr.bf16.mxu0 %v7282_v18  ;;  %v3173_v18 = vld [vmem:[%s16019_s6 + $0x1f0] sm:$0xff]  ;;  %v7344_v56 = vpack.c.bf16 %v3121_v9, %v3115_v41 }
 0x332   :  { %v7300_v63 = vpack.c.bf16 %v3179_v47, %v3173_v18  ;;  %v3157_v9 = vld [vmem:[%s16019_s6 + $0x170] sm:$0xff] }
 0x334   :  { %7285 = vmatpush1.bf16.msra.mxu0 %v7284_v34  ;;  %v3186_v34 = vld [vmem:[%s16019_s6 + $0x258] sm:$0xff] }
 0x335   :  { %7287 = vmatprep.subr.bf16.mxu0 %v7286_v52  ;;  %v3192_v52 = vld [vmem:[%s16019_s6 + $0x288] sm:$0xff] }
 0x337   :  { %v8296_v10 = vpop.eup %8295 }
 0x338   :  { %v8298_v1 = vpop.eup %8297  ;;  %7289 = vmatpush1.bf16.msra.mxu0 %v7288_v57  ;;  %v2694_v17 = vsub.f32 1.0, %v8296_v10  ;;  %v2698_v28 = vmul.f32 0.0, %v8296_v10  ;;  %v3133_v57 = vld [vmem:[%s16019_s6 + $0xb0] sm:$0xff]  ;;  %v7302_v10 = vpack.c.bf16 %v3192_v52, %v3186_v34  ;;  %v3164_v34 = vld [vmem:[%s16019_s6 + $0x1a8] sm:$0xff]  ;;  %v3170_v52 = vld [vmem:[%s16019_s6 + $0x1d8] sm:$0xff] }
 0x339   :  { %v8300_v20 = vpop.eup %8299  ;;  %7291 = vmatprep.subr.bf16.mxu0 %v7290_v59 }
 0x33a   :  { %v2695_v26 = vsub.f32 1.0, %v8300_v20  ;;  %v2696_v3 = vmul.f32 %v8298_v1, %v2694_v17  ;;  %v8302_v6 = vpop.eup %8301  ;;  %v2699_v37 = vmul.f32 0.0, %v8300_v20  ;;  %v3146_v1 = vld [vmem:[%s16019_s6 + $0x118] sm:$0xff]  ;;  %v3204_v17 = vld [vmem:[%s16019_s6 + $0x2e8] sm:$0xff]  ;;  %v7348_v20 = vpack.c.bf16 %v3133_v57, %v3127_v30  ;;  %v3163_v57 = vld [vmem:[%s16019_s6 + $0x1a0] sm:$0xff] }
 0x33b   :  { %v7312_v30 = vpack.c.bf16 %v3215_v21, %v3209_v50  ;;  %v3245_v21 = vld [vmem:[%s16019_s6 + $0x430] sm:$0xff] }
 0x33c   :  { %7293 = vmatpush1.bf16.msra.mxu0 %v7292_v14  ;;  %v2697_v31 = vmul.f32 %v8302_v6, %v2695_v26  ;;  %v13036_v38 = vadd.f32 %v2698_v28, %v2696_v3  ;;  %v3198_v14 = vld [vmem:[%s16019_s6 + $0x2b8] sm:$0xff]  ;;  %v7350_v26 = vpack.c.bf16 %v3146_v1, %v3140_v39  ;;  %v3197_v28 = vld [vmem:[%s16019_s6 + $0x2b0] sm:$0xff]  ;;  %v3176_v1 = vld [vmem:[%s16019_s6 + $0x208] sm:$0xff] }
 0x33d   :  { %7295 = vmatprep.subr.bf16.mxu0 %v7294_v46  ;;  %v7304_v46 = vpack.c.bf16 %v3191_v62, %v3185_v32  ;;  %v7306_v3 = vpack.c.bf16 %v3204_v17, %v3198_v14  ;;  %v3158_v6 = vld [vmem:[%s16019_s6 + $0x178] sm:$0xff]  ;;  %v7308_v41 = vpack.c.bf16 %v3203_v29, %v3197_v28  ;;  %v7358_v32 = vpack.c.bf16 %v3170_v52, %v3164_v34  ;;  %v3221_v39 = vld [vmem:[%s16019_s6 + $0x370] sm:$0xff]  ;;  %v3251_v34 = vld [vmem:[%s16019_s6 + $0x460] sm:$0xff] }
 0x33e   :  { %v13050_v12 = vadd.f32 %v2699_v37, %v2697_v31  ;;  %2704 = vst [vmem:[#allocation2 + $0x10] sm:$0xc0] %v13036_v38  ;;  %v13074_v59 = vrot.slane %v13036_v38, 6  ;;  %v3216_v31 = vld [vmem:[%s16019_s6 + $0x348] sm:$0xff]  ;;  %v7352_v37 = vpack.c.bf16 %v3145_v7, %v3139_v23  ;;  %v7354_v18 = vpack.c.bf16 %v3158_v6, %v3152_v48  ;;  %v3182_v14 = vld [vmem:[%s16019_s6 + $0x238] sm:$0xff]  ;;  %v3175_v7 = vld [vmem:[%s16019_s6 + $0x200] sm:$0xff] }
 0x33f   :  { %v3234_v17 = vld [vmem:[%s16019_s6 + $0x3d8] sm:$0xff]  ;;  %v3233_v29 = vld [vmem:[%s16019_s6 + $0x3d0] sm:$0xff]  ;;  %v3239_v48 = vld [vmem:[%s16019_s6 + $0x400] sm:$0xff] }
 0x340   :  { %7297 = vmatpush1.bf16.msra.mxu0 %v7296_v11  ;;  %2705 = vst [vmem:[#allocation2 + $0x18] sm:$0xc0] %v13050_v12  ;;  %v3306_v16 = vrot.slane %v13050_v12, 6  ;;  %v3210_v11 = vld [vmem:[%s16019_s6 + $0x318] sm:$0xff]  ;;  %v3188_v6 = vld [vmem:[%s16019_s6 + $0x268] sm:$0xff] }
 0x341   :  { %7299 = vmatprep.subr.bf16.mxu0 %v7298_v45  ;;  %v3151_v45 = vld [vmem:[%s16019_s6 + $0x140] sm:$0xff]  ;;  %v7310_v47 = vpack.c.bf16 %v3216_v31, %v3210_v11  ;;  %v3194_v11 = vld [vmem:[%s16019_s6 + $0x298] sm:$0xff]  ;;  %v3200_v52 = vld [vmem:[%s16019_s6 + $0x2c8] sm:$0xff] }
 0x342   :  { %3373 = vmatprep.mubr.f32.mxu1 %v3306_v16  ;;  %3444 = vmatprep.mubr.f32.mxu0 %v3306_v16  ;;  %v3246_v31 = vld [vmem:[%s16019_s6 + $0x438] sm:$0xff] }
 0x343   :  { %3374 = vmatmul.mubr.f32.vlgmr.msra.gmra.mrb[14].mxu1 %v13074_v59 }
 0x344   :  { %7345 = vmatpush1.bf16.msra.mxu1 %v7344_v56  ;;  %7301 = vmatpush1.bf16.msra.mxu0 %v7300_v63  ;;  %v3228_v56 = vld [vmem:[%s16019_s6 + $0x3a8] sm:$0xff]  ;;  %v7356_v63 = vpack.c.bf16 %v3157_v9, %v3151_v45  ;;  %v7320_v45 = vpack.c.bf16 %v3239_v48, %v3233_v29  ;;  %v3187_v9 = vld [vmem:[%s16019_s6 + $0x260] sm:$0xff]  ;;  %v3269_v48 = vld [vmem:[%s16019_s6 + $0x4f0] sm:$0xff] }
 0x345   :  { %3515 = vmatprep.mubr.f32.mxu1 %v3306_v16  ;;  %7347 = vmatprep.subr.bf16.mxu1 %v7346_v60  ;;  %v3222_v16 = vld [vmem:[%s16019_s6 + $0x378] sm:$0xff]  ;;  %v3169_v60 = vld [vmem:[%s16019_s6 + $0x1d0] sm:$0xff] }
 0x346   :  { %7303 = vmatprep.subr.bf16.mxu0 %v7302_v10  ;;  %v7314_v62 = vpack.c.bf16 %v3228_v56, %v3222_v16  ;;  %v3227_v10 = vld [vmem:[%s16019_s6 + $0x3a0] sm:$0xff]  ;;  %v3206_v16 = vld [vmem:[%s16019_s6 + $0x2f8] sm:$0xff] }
 0x347   :  { %v7316_v23 = vpack.c.bf16 %v3227_v10, %v3221_v39  ;;  %v3258_v56 = vld [vmem:[%s16019_s6 + $0x498] sm:$0xff]  ;;  %v3257_v10 = vld [vmem:[%s16019_s6 + $0x490] sm:$0xff] }
 0x348   :  { %7349 = vmatpush1.bf16.msra.mxu1 %v7348_v20  ;;  %7305 = vmatpush1.bf16.msra.mxu0 %v7304_v46  ;;  %v3240_v20 = vld [vmem:[%s16019_s6 + $0x408] sm:$0xff]  ;;  %v7360_v46 = vpack.c.bf16 %v3169_v60, %v3163_v57  ;;  %v7324_v57 = vpack.c.bf16 %v3251_v34, %v3245_v21  ;;  %v3199_v60 = vld [vmem:[%s16019_s6 + $0x2c0] sm:$0xff]  ;;  %v3281_v34 = vld [vmem:[%s16019_s6 + $0x550] sm:$0xff] }
 0x349   :  { %7351 = vmatprep.subr.bf16.mxu1 %v7350_v26  ;;  %7307 = vmatprep.subr.bf16.mxu0 %v7306_v3  ;;  %v3181_v26 = vld [vmem:[%s16019_s6 + $0x230] sm:$0xff]  ;;  %v7362_v3 = vpack.c.bf16 %v3182_v14, %v3176_v1  ;;  %v7318_v28 = vpack.c.bf16 %v3240_v20, %v3234_v17  ;;  %v3263_v1 = vld [vmem:[%s16019_s6 + $0x4c0] sm:$0xff]  ;;  %v3212_v14 = vld [vmem:[%s16019_s6 + $0x328] sm:$0xff] }
 0x34a   :  { %v3218_v17 = vld [vmem:[%s16019_s6 + $0x358] sm:$0xff] }
 0x34b   :  { %v3270_v20 = vld [vmem:[%s16019_s6 + $0x4f8] sm:$0xff] }
 0x34c   :  { %7353 = vmatpush1.bf16.msra.mxu1 %v7352_v37  ;;  %7309 = vmatpush1.bf16.msra.mxu0 %v7308_v41  ;;  %v3252_v37 = vld [vmem:[%s16019_s6 + $0x468] sm:$0xff]  ;;  %v7364_v41 = vpack.c.bf16 %v3181_v26, %v3175_v7  ;;  %v7328_v7 = vpack.c.bf16 %v3263_v1, %v3257_v10  ;;  %v3211_v26 = vld [vmem:[%s16019_s6 + $0x320] sm:$0xff]  ;;  %v3293_v1 = vld [vmem:[%s16019_s6 + $0x5b0] sm:$0xff] }
 0x34d   :  { %7355 = vmatprep.subr.bf16.mxu1 %v7354_v18  ;;  %7311 = vmatprep.subr.bf16.mxu0 %v7310_v47  ;;  %v3193_v18 = vld [vmem:[%s16019_s6 + $0x290] sm:$0xff]  ;;  %v7366_v47 = vpack.c.bf16 %v3194_v11, %v3188_v6  ;;  %v7322_v50 = vpack.c.bf16 %v3252_v37, %v3246_v31  ;;  %v3275_v6 = vld [vmem:[%s16019_s6 + $0x520] sm:$0xff]  ;;  %v3224_v11 = vld [vmem:[%s16019_s6 + $0x388] sm:$0xff] }
 0x34e   :  { %v3230_v31 = vld [vmem:[%s16019_s6 + $0x3b8] sm:$0xff] }
 0x34f   :  { %v3282_v37 = vld [vmem:[%s16019_s6 + $0x558] sm:$0xff] }
 0x350   :  { %7357 = vmatpush1.bf16.msra.mxu1 %v7356_v63  ;;  %7313 = vmatpush1.bf16.msra.mxu0 %v7312_v30  ;;  %v3264_v63 = vld [vmem:[%s16019_s6 + $0x4c8] sm:$0xff]  ;;  %v7368_v30 = vpack.c.bf16 %v3193_v18, %v3187_v9  ;;  %v7332_v9 = vpack.c.bf16 %v3275_v6, %v3269_v48  ;;  %v3223_v18 = vld [vmem:[%s16019_s6 + $0x380] sm:$0xff] }
 0x351   :  { %7359 = vmatprep.subr.bf16.mxu1 %v7358_v32  ;;  %7315 = vmatprep.subr.bf16.mxu0 %v7314_v62  ;;  %v3205_v32 = vld [vmem:[%s16019_s6 + $0x2f0] sm:$0xff]  ;;  %v7370_v62 = vpack.c.bf16 %v3206_v16, %v3200_v52  ;;  %v7326_v39 = vpack.c.bf16 %v3264_v63, %v3258_v56  ;;  %v3287_v52 = vld [vmem:[%s16019_s6 + $0x580] sm:$0xff]  ;;  %v3236_v16 = vld [vmem:[%s16019_s6 + $0x3e8] sm:$0xff] }
 0x352   :  { %v3242_v56 = vld [vmem:[%s16019_s6 + $0x418] sm:$0xff]  ;;  %v3260_v48 = vld [vmem:[%s16019_s6 + $0x4a8] sm:$0xff] }
 0x353   :  { %v3294_v63 = vld [vmem:[%s16019_s6 + $0x5b8] sm:$0xff] }
 0x354   :  { %7361 = vmatpush1.bf16.msra.mxu1 %v7360_v46  ;;  %7317 = vmatpush1.bf16.msra.mxu0 %v7316_v23  ;;  %v3276_v46 = vld [vmem:[%s16019_s6 + $0x528] sm:$0xff]  ;;  %v7372_v23 = vpack.c.bf16 %v3205_v32, %v3199_v60  ;;  %v7336_v60 = vpack.c.bf16 %v3287_v52, %v3281_v34  ;;  %v3235_v32 = vld [vmem:[%s16019_s6 + $0x3e0] sm:$0xff] }
 0x355   :  { %7363 = vmatprep.subr.bf16.mxu1 %v7362_v3  ;;  %7319 = vmatprep.subr.bf16.mxu0 %v7318_v28  ;;  %v3217_v3 = vld [vmem:[%s16019_s6 + $0x350] sm:$0xff]  ;;  %v7374_v28 = vpack.c.bf16 %v3218_v17, %v3212_v14  ;;  %v7330_v29 = vpack.c.bf16 %v3276_v46, %v3270_v20  ;;  %v3299_v14 = vld [vmem:[%s16019_s6 + $0x5e0] sm:$0xff]  ;;  %v3248_v17 = vld [vmem:[%s16019_s6 + $0x448] sm:$0xff] }
 0x356   :  { %v3254_v20 = vld [vmem:[%s16019_s6 + $0x478] sm:$0xff]  ;;  %v3657_v46 = vld [vmem:[%s16018_s2 + $0x8] sm:$0xff] }
 0x357   :  { %v3272_v34 = vld [vmem:[%s16019_s6 + $0x508] sm:$0xff] }
 0x358   :  { %7365 = vmatpush1.bf16.msra.mxu1 %v7364_v41  ;;  %7321 = vmatpush1.bf16.msra.mxu0 %v7320_v45  ;;  %v3288_v41 = vld [vmem:[%s16019_s6 + $0x588] sm:$0xff]  ;;  %v7376_v45 = vpack.c.bf16 %v3217_v3, %v3211_v26  ;;  %v7340_v26 = vpack.c.bf16 %v3299_v14, %v3293_v1  ;;  %v3247_v3 = vld [vmem:[%s16019_s6 + $0x440] sm:$0xff] }
 0x359   :  { %7367 = vmatprep.subr.bf16.mxu1 %v7366_v47  ;;  %7323 = vmatprep.subr.bf16.mxu0 %v7322_v50  ;;  %v3229_v47 = vld [vmem:[%s16019_s6 + $0x3b0] sm:$0xff]  ;;  %v7378_v50 = vpack.c.bf16 %v3230_v31, %v3224_v11  ;;  %v7334_v21 = vpack.c.bf16 %v3288_v41, %v3282_v37  ;;  %v3656_v11 = vld [vmem:[%s16018_s2] sm:$0xff]  ;;  %v3266_v37 = vld [vmem:[%s16019_s6 + $0x4d8] sm:$0xff] }
 0x35a   :  { %v3662_v31 = vld [vmem:[%s16018_s2 + $0x30] sm:$0xff]  ;;  %v3669_v41 = vld [vmem:[%s16018_s2 + $0x68] sm:$0xff] }
 0x35b   :  { %v3284_v1 = vld [vmem:[%s16019_s6 + $0x568] sm:$0xff] }
 0x35c   :  { %7369 = vmatpush1.bf16.msra.mxu1 %v7368_v30  ;;  %7325 = vmatpush1.bf16.msra.mxu0 %v7324_v57  ;;  %v3300_v30 = vld [vmem:[%s16019_s6 + $0x5e8] sm:$0xff]  ;;  %v7380_v57 = vpack.c.bf16 %v3229_v47, %v3223_v18  ;;  %v3259_v18 = vld [vmem:[%s16019_s6 + $0x4a0] sm:$0xff]  ;;  %v3265_v47 = vld [vmem:[%s16019_s6 + $0x4d0] sm:$0xff] }
 0x35d   :  { %7371 = vmatprep.subr.bf16.mxu1 %v7370_v62  ;;  %7327 = vmatprep.subr.bf16.mxu0 %v7326_v39  ;;  %v3241_v62 = vld [vmem:[%s16019_s6 + $0x410] sm:$0xff]  ;;  %v7382_v39 = vpack.c.bf16 %v3242_v56, %v3236_v16  ;;  %v7338_v10 = vpack.c.bf16 %v3300_v30, %v3294_v63  ;;  %v3668_v16 = vld [vmem:[%s16018_s2 + $0x60] sm:$0xff]  ;;  %v3278_v63 = vld [vmem:[%s16019_s6 + $0x538] sm:$0xff] }
 0x35e   :  { %v3674_v56 = vld [vmem:[%s16018_s2 + $0x90] sm:$0xff]  ;;  %v3681_v30 = vld [vmem:[%s16018_s2 + $0xc8] sm:$0xff] }
 0x360   :  { %7373 = vmatpush1.bf16.msra.mxu1 %v7372_v23  ;;  %7329 = vmatpush1.bf16.msra.mxu0 %v7328_v7  ;;  %v3663_v23 = vld [vmem:[%s16018_s2 + $0x38] sm:$0xff]  ;;  %v7384_v7 = vpack.c.bf16 %v3241_v62, %v3235_v32  ;;  %v3271_v32 = vld [vmem:[%s16019_s6 + $0x500] sm:$0xff]  ;;  %v3277_v62 = vld [vmem:[%s16019_s6 + $0x530] sm:$0xff] }
 0x361   :  { %7375 = vmatprep.subr.bf16.mxu1 %v7374_v28  ;;  %7331 = vmatprep.subr.bf16.mxu0 %v7330_v29  ;;  %v3253_v28 = vld [vmem:[%s16019_s6 + $0x470] sm:$0xff]  ;;  %v7386_v29 = vpack.c.bf16 %v3254_v20, %v3248_v17  ;;  %v7406_v6 = vpack.c.bf16 %v3663_v23, %v3657_v46  ;;  %v3680_v17 = vld [vmem:[%s16018_s2 + $0xc0] sm:$0xff]  ;;  %v3290_v46 = vld [vmem:[%s16019_s6 + $0x598] sm:$0xff] }
 0x362   :  { %v3686_v20 = vld [vmem:[%s16018_s2 + $0xf0] sm:$0xff]  ;;  %v3693_v23 = vld [vmem:[%s16018_s2 + $0x128] sm:$0xff] }
 0x364   :  { %7377 = vmatpush1.bf16.msra.mxu1 %v7376_v45  ;;  %7333 = vmatpush1.bf16.msra.mxu0 %v7332_v9  ;;  %v3675_v45 = vld [vmem:[%s16018_s2 + $0x98] sm:$0xff]  ;;  %v7388_v9 = vpack.c.bf16 %v3253_v28, %v3247_v3  ;;  %v3283_v3 = vld [vmem:[%s16019_s6 + $0x560] sm:$0xff]  ;;  %v3289_v28 = vld [vmem:[%s16019_s6 + $0x590] sm:$0xff] }
 0x365   :  { %7379 = vmatprep.subr.bf16.mxu1 %v7378_v50  ;;  %7335 = vmatprep.subr.bf16.mxu0 %v7334_v21  ;;  %v7408_v50 = vpack.c.bf16 %v3662_v31, %v3656_v11  ;;  %v7390_v21 = vpack.c.bf16 %v3266_v37, %v3260_v48  ;;  %v7410_v52 = vpack.c.bf16 %v3675_v45, %v3669_v41  ;;  %v3692_v31 = vld [vmem:[%s16018_s2 + $0x120] sm:$0xff]  ;;  %v3698_v37 = vld [vmem:[%s16018_s2 + $0x150] sm:$0xff]  ;;  %v3302_v41 = vld [vmem:[%s16019_s6 + $0x5f8] sm:$0xff] }
 0x366   :  { %v7398_v48 = vpack.c.bf16 %v3290_v46, %v3284_v1  ;;  %v3705_v45 = vld [vmem:[%s16018_s2 + $0x188] sm:$0xff]  ;;  %v3722_v46 = vld [vmem:[%s16018_s2 + $0x210] sm:$0xff] }
 0x368   :  { %7381 = vmatpush1.bf16.msra.mxu1 %v7380_v57  ;;  %7337 = vmatpush1.bf16.msra.mxu0 %v7336_v60  ;;  %v3687_v57 = vld [vmem:[%s16018_s2 + $0xf8] sm:$0xff]  ;;  %v7392_v60 = vpack.c.bf16 %v3265_v47, %v3259_v18  ;;  %v7400_v18 = vpack.c.bf16 %v3289_v28, %v3283_v3  ;;  %v3295_v47 = vld [vmem:[%s16019_s6 + $0x5c0] sm:$0xff]  ;;  %v3670_v28 = vld [vmem:[%s16018_s2 + $0x70] sm:$0xff] }
 0x369   :  { %7383 = vmatprep.subr.bf16.mxu1 %v7382_v39  ;;  %7339 = vmatprep.subr.bf16.mxu0 %v7338_v10  ;;  %v7412_v39 = vpack.c.bf16 %v3674_v56, %v3668_v16  ;;  %v7394_v10 = vpack.c.bf16 %v3278_v63, %v3272_v34  ;;  %v7414_v14 = vpack.c.bf16 %v3687_v57, %v3681_v30  ;;  %v3704_v56 = vld [vmem:[%s16018_s2 + $0x180] sm:$0xff]  ;;  %v3710_v63 = vld [vmem:[%s16018_s2 + $0x1b0] sm:$0xff]  ;;  %v3665_v30 = vld [vmem:[%s16018_s2 + $0x48] sm:$0xff] }
 0x36a   :  { %v3717_v57 = vld [vmem:[%s16018_s2 + $0x1e8] sm:$0xff] }
 0x36c   :  { %7385 = vmatpush1.bf16.msra.mxu1 %v7384_v7  ;;  %7341 = vmatpush1.bf16.msra.mxu0 %v7340_v26  ;;  %v3699_v7 = vld [vmem:[%s16018_s2 + $0x158] sm:$0xff]  ;;  %v7396_v26 = vpack.c.bf16 %v3277_v62, %v3271_v32  ;;  %v3658_v62 = vld [vmem:[%s16018_s2 + $0x10] sm:$0xff] }
 0x36d   :  { %7387 = vmatprep.subr.bf16.mxu1 %v7386_v29  ;;  %7407 = vmatprep.subr.bf16.mxu0 %v7406_v6  ;;  %v7416_v29 = vpack.c.bf16 %v3686_v20, %v3680_v17  ;;  %v3296_v6 = vld [vmem:[%s16019_s6 + $0x5c8] sm:$0xff]  ;;  %v7418_v11 = vpack.c.bf16 %v3699_v7, %v3693_v23  ;;  %v3716_v20 = vld [vmem:[%s16018_s2 + $0x1e0] sm:$0xff] }
 0x36e   :  { %v7402_v34 = vpack.c.bf16 %v3302_v41, %v3296_v6  ;;  %v3677_v23 = vld [vmem:[%s16018_s2 + $0xa8] sm:$0xff]  ;;  %v3734_v41 = vld [vmem:[%s16018_s2 + $0x270] sm:$0xff] }
 0x36f   :  { %3445 = vmatmul.mubr.f32.vlgmr.msra.gmra.mrb[16].mxu0 %v13074_v59  ;;  %v3729_v7 = vld [vmem:[%s16018_s2 + $0x248] sm:$0xff] }
 0x370   :  { %7389 = vmatpush1.bf16.msra.mxu1 %v7388_v9  ;;  %7409 = vmatpush1.bf16.msra.mxu0 %v7408_v50  ;;  %v3711_v9 = vld [vmem:[%s16018_s2 + $0x1b8] sm:$0xff]  ;;  %v3301_v50 = vld [vmem:[%s16019_s6 + $0x5f0] sm:$0xff] }
 0x371   :  { %7391 = vmatprep.subr.bf16.mxu1 %v7390_v21  ;;  %7411 = vmatprep.subr.bf16.mxu0 %v7410_v52  ;;  %v7420_v21 = vpack.c.bf16 %v3698_v37, %v3692_v31  ;;  %v3659_v52 = vld [vmem:[%s16018_s2 + $0x18] sm:$0xff]  ;;  %v7422_v16 = vpack.c.bf16 %v3711_v9, %v3705_v45  ;;  %v7404_v32 = vpack.c.bf16 %v3301_v50, %v3295_v47  ;;  %v3728_v37 = vld [vmem:[%s16018_s2 + $0x240] sm:$0xff]  ;;  %v3689_v45 = vld [vmem:[%s16018_s2 + $0x108] sm:$0xff] }
 0x372   :  { %v7470_v1 = vpack.c.bf16 %v3665_v30, %v3659_v52  ;;  %v3741_v9 = vld [vmem:[%s16018_s2 + $0x2a8] sm:$0xff]  ;;  %v3682_v50 = vld [vmem:[%s16018_s2 + $0xd0] sm:$0xff] }
 0x373   :  { %v3701_v30 = vld [vmem:[%s16018_s2 + $0x168] sm:$0xff] }
 0x374   :  { %7393 = vmatpush1.bf16.msra.mxu1 %v7392_v60  ;;  %7413 = vmatpush1.bf16.msra.mxu0 %v7412_v39  ;;  %v3723_v60 = vld [vmem:[%s16018_s2 + $0x218] sm:$0xff]  ;;  %v3664_v39 = vld [vmem:[%s16018_s2 + $0x40] sm:$0xff] }
 0x375   :  { %7395 = vmatprep.subr.bf16.mxu1 %v7394_v10  ;;  %7415 = vmatprep.subr.bf16.mxu0 %v7414_v14  ;;  %v7424_v10 = vpack.c.bf16 %v3710_v63, %v3704_v56  ;;  %v3671_v14 = vld [vmem:[%s16018_s2 + $0x78] sm:$0xff]  ;;  %v7426_v17 = vpack.c.bf16 %v3723_v60, %v3717_v57  ;;  %v7472_v3 = vpack.c.bf16 %v3664_v39, %v3658_v62  ;;  %v3740_v56 = vld [vmem:[%s16018_s2 + $0x2a0] sm:$0xff]  ;;  %v3746_v63 = vld [vmem:[%s16018_s2 + $0x2d0] sm:$0xff] }
 0x376   :  { %v7474_v6 = vpack.c.bf16 %v3677_v23, %v3671_v14  ;;  %v3753_v57 = vld [vmem:[%s16018_s2 + $0x308] sm:$0xff]  ;;  %v3759_v60 = vld [vmem:[%s16018_s2 + $0x338] sm:$0xff]  ;;  %v3694_v62 = vld [vmem:[%s16018_s2 + $0x130] sm:$0xff] }
 0x377   :  { %v3700_v39 = vld [vmem:[%s16018_s2 + $0x160] sm:$0xff]  ;;  %v3707_v14 = vld [vmem:[%s16018_s2 + $0x198] sm:$0xff]  ;;  %v3713_v23 = vld [vmem:[%s16018_s2 + $0x1c8] sm:$0xff] }
 0x378   :  { %7397 = vmatpush1.bf16.msra.mxu1 %v7396_v26  ;;  %7417 = vmatpush1.bf16.msra.mxu0 %v7416_v29  ;;  %v3735_v26 = vld [vmem:[%s16018_s2 + $0x278] sm:$0xff]  ;;  %v3676_v29 = vld [vmem:[%s16018_s2 + $0xa0] sm:$0xff] }
 0x379   :  { %7399 = vmatprep.subr.bf16.mxu1 %v7398_v48  ;;  %7419 = vmatprep.subr.bf16.mxu0 %v7418_v11  ;;  %v7428_v48 = vpack.c.bf16 %v3722_v46, %v3716_v20  ;;  %v3683_v11 = vld [vmem:[%s16018_s2 + $0xd8] sm:$0xff]  ;;  %v7430_v31 = vpack.c.bf16 %v3735_v26, %v3729_v7  ;;  %v7476_v47 = vpack.c.bf16 %v3676_v29, %v3670_v28  ;;  %v3752_v20 = vld [vmem:[%s16018_s2 + $0x300] sm:$0xff]  ;;  %v3758_v46 = vld [vmem:[%s16018_s2 + $0x330] sm:$0xff] }
 0x37a   :  { %v7478_v52 = vpack.c.bf16 %v3689_v45, %v3683_v11  ;;  %v3765_v7 = vld [vmem:[%s16018_s2 + $0x368] sm:$0xff]  ;;  %v3771_v26 = vld [vmem:[%s16018_s2 + $0x398] sm:$0xff]  ;;  %v3706_v28 = vld [vmem:[%s16018_s2 + $0x190] sm:$0xff] }
 0x37b   :  { %v3712_v29 = vld [vmem:[%s16018_s2 + $0x1c0] sm:$0xff]  ;;  %v3719_v11 = vld [vmem:[%s16018_s2 + $0x1f8] sm:$0xff]  ;;  %v3725_v45 = vld [vmem:[%s16018_s2 + $0x228] sm:$0xff] }
 0x37c   :  { %7401 = vmatpush1.bf16.msra.mxu1 %v7400_v18  ;;  %7421 = vmatpush1.bf16.msra.mxu0 %v7420_v21  ;;  %v3747_v18 = vld [vmem:[%s16018_s2 + $0x2d8] sm:$0xff]  ;;  %v3688_v21 = vld [vmem:[%s16018_s2 + $0x100] sm:$0xff] }
 0x37d   :  { %7403 = vmatprep.subr.bf16.mxu1 %v7402_v34  ;;  %7423 = vmatprep.subr.bf16.mxu0 %v7422_v16  ;;  %v7432_v34 = vpack.c.bf16 %v3734_v41, %v3728_v37  ;;  %v3695_v16 = vld [vmem:[%s16018_s2 + $0x138] sm:$0xff]  ;;  %v3764_v37 = vld [vmem:[%s16018_s2 + $0x360] sm:$0xff]  ;;  %v3770_v41 = vld [vmem:[%s16018_s2 + $0x390] sm:$0xff] }
 0x380   :  { %7405 = vmatpush1.bf16.msra.mxu1 %v7404_v32  ;;  %7425 = vmatpush1.bf16.msra.mxu0 %v7424_v10  ;;  %v7480_v32 = vpack.c.bf16 %v3688_v21, %v3682_v50  ;;  %v7436_v10 = vpack.c.bf16 %v3746_v63, %v3740_v56  ;;  %v3718_v50 = vld [vmem:[%s16018_s2 + $0x1f0] sm:$0xff]  ;;  %v3724_v21 = vld [vmem:[%s16018_s2 + $0x220] sm:$0xff] }
 0x381   :  { %7471 = vmatprep.subr.bf16.mxu1 %v7470_v1  ;;  %7427 = vmatprep.subr.bf16.mxu0 %v7426_v17  ;;  %v7482_v1 = vpack.c.bf16 %v3701_v30, %v3695_v16  ;;  %v7438_v17 = vpack.c.bf16 %v3759_v60, %v3753_v57  ;;  %v3731_v16 = vld [vmem:[%s16018_s2 + $0x258] sm:$0xff]  ;;  %v3776_v56 = vld [vmem:[%s16018_s2 + $0x3c0] sm:$0xff]  ;;  %v3782_v63 = vld [vmem:[%s16018_s2 + $0x3f0] sm:$0xff] }
 0x382   :  { %v3737_v30 = vld [vmem:[%s16018_s2 + $0x288] sm:$0xff]  ;;  %v3795_v60 = vld [vmem:[%s16018_s2 + $0x458] sm:$0xff] }
 0x383   :  { %3516 = vmatmul.mubr.f32.vlgmr.msra.gmra.mrb[16].mxu1 %v13074_v59  ;;  %v7434_v59 = vpack.c.bf16 %v3747_v18, %v3741_v9  ;;  %v3777_v9 = vld [vmem:[%s16018_s2 + $0x3c8] sm:$0xff]  ;;  %v3783_v18 = vld [vmem:[%s16018_s2 + $0x3f8] sm:$0xff] }
 0x384   :  { %7473 = vmatpush1.bf16.msra.mxu1 %v7472_v3  ;;  %7429 = vmatpush1.bf16.msra.mxu0 %v7428_v48  ;;  %v7484_v3 = vpack.c.bf16 %v3700_v39, %v3694_v62  ;;  %v7440_v48 = vpack.c.bf16 %v3758_v46, %v3752_v20  ;;  %v3789_v57 = vld [vmem:[%s16018_s2 + $0x428] sm:$0xff]  ;;  %v3730_v62 = vld [vmem:[%s16018_s2 + $0x250] sm:$0xff]  ;;  %v3736_v39 = vld [vmem:[%s16018_s2 + $0x280] sm:$0xff] }
 0x385   :  { %7475 = vmatprep.subr.bf16.mxu1 %v7474_v6  ;;  %7431 = vmatprep.subr.bf16.mxu0 %v7430_v31  ;;  %v7486_v6 = vpack.c.bf16 %v3713_v23, %v3707_v14  ;;  %v7442_v31 = vpack.c.bf16 %v3771_v26, %v3765_v7  ;;  %v3743_v14 = vld [vmem:[%s16018_s2 + $0x2b8] sm:$0xff]  ;;  %v3788_v20 = vld [vmem:[%s16018_s2 + $0x420] sm:$0xff]  ;;  %v3794_v46 = vld [vmem:[%s16018_s2 + $0x450] sm:$0xff] }
 0x386   :  { %v3749_v23 = vld [vmem:[%s16018_s2 + $0x2e8] sm:$0xff]  ;;  %v3807_v26 = vld [vmem:[%s16018_s2 + $0x4b8] sm:$0xff] }
 0x387   :  { %v3801_v7 = vld [vmem:[%s16018_s2 + $0x488] sm:$0xff] }
 0x388   :  { %7477 = vmatpush1.bf16.msra.mxu1 %v7476_v47  ;;  %7433 = vmatpush1.bf16.msra.mxu0 %v7432_v34  ;;  %v7488_v47 = vpack.c.bf16 %v3712_v29, %v3706_v28  ;;  %v7444_v34 = vpack.c.bf16 %v3770_v41, %v3764_v37  ;;  %v3742_v28 = vld [vmem:[%s16018_s2 + $0x2b0] sm:$0xff]  ;;  %v3748_v29 = vld [vmem:[%s16018_s2 + $0x2e0] sm:$0xff] }
 0x389   :  { %7479 = vmatprep.subr.bf16.mxu1 %v7478_v52  ;;  %7435 = vmatprep.subr.bf16.mxu0 %v7434_v59  ;;  %v7490_v52 = vpack.c.bf16 %v3725_v45, %v3719_v11  ;;  %v7446_v59 = vpack.c.bf16 %v3783_v18, %v3777_v9  ;;  %v3755_v11 = vld [vmem:[%s16018_s2 + $0x318] sm:$0xff]  ;;  %v3800_v37 = vld [vmem:[%s16018_s2 + $0x480] sm:$0xff]  ;;  %v3806_v41 = vld [vmem:[%s16018_s2 + $0x4b0] sm:$0xff] }
 0x38a   :  { %v3761_v45 = vld [vmem:[%s16018_s2 + $0x348] sm:$0xff]  ;;  %v3819_v18 = vld [vmem:[%s16018_s2 + $0x518] sm:$0xff] }
 0x38b   :  { %v3813_v9 = vld [vmem:[%s16018_s2 + $0x4e8] sm:$0xff] }
 0x38c   :  { %7481 = vmatpush1.bf16.msra.mxu1 %v7480_v32  ;;  %7437 = vmatpush1.bf16.msra.mxu0 %v7436_v10  ;;  %v7492_v32 = vpack.c.bf16 %v3724_v21, %v3718_v50  ;;  %v7448_v10 = vpack.c.bf16 %v3782_v63, %v3776_v56  ;;  %v3754_v50 = vld [vmem:[%s16018_s2 + $0x310] sm:$0xff]  ;;  %v3760_v21 = vld [vmem:[%s16018_s2 + $0x340] sm:$0xff] }
 0x38d   :  { %7483 = vmatprep.subr.bf16.mxu1 %v7482_v1  ;;  %7439 = vmatprep.subr.bf16.mxu0 %v7438_v17  ;;  %v7494_v1 = vpack.c.bf16 %v3737_v30, %v3731_v16  ;;  %v7450_v17 = vpack.c.bf16 %v3795_v60, %v3789_v57  ;;  %v3767_v16 = vld [vmem:[%s16018_s2 + $0x378] sm:$0xff]  ;;  %v3812_v56 = vld [vmem:[%s16018_s2 + $0x4e0] sm:$0xff]  ;;  %v3818_v63 = vld [vmem:[%s16018_s2 + $0x510] sm:$0xff] }
 0x38e   :  { %v3773_v30 = vld [vmem:[%s16018_s2 + $0x3a8] sm:$0xff]  ;;  %v3831_v60 = vld [vmem:[%s16018_s2 + $0x578] sm:$0xff] }
 0x38f   :  { %v3825_v57 = vld [vmem:[%s16018_s2 + $0x548] sm:$0xff] }
 0x390   :  { %7485 = vmatpush1.bf16.msra.mxu1 %v7484_v3  ;;  %7441 = vmatpush1.bf16.msra.mxu0 %v7440_v48  ;;  %v7496_v3 = vpack.c.bf16 %v3736_v39, %v3730_v62  ;;  %v7452_v48 = vpack.c.bf16 %v3794_v46, %v3788_v20  ;;  %v3766_v62 = vld [vmem:[%s16018_s2 + $0x370] sm:$0xff]  ;;  %v3772_v39 = vld [vmem:[%s16018_s2 + $0x3a0] sm:$0xff] }
 0x391   :  { %7487 = vmatprep.subr.bf16.mxu1 %v7486_v6  ;;  %7443 = vmatprep.subr.bf16.mxu0 %v7442_v31  ;;  %v7498_v6 = vpack.c.bf16 %v3749_v23, %v3743_v14  ;;  %v7454_v31 = vpack.c.bf16 %v3807_v26, %v3801_v7  ;;  %v3779_v14 = vld [vmem:[%s16018_s2 + $0x3d8] sm:$0xff]  ;;  %v3824_v20 = vld [vmem:[%s16018_s2 + $0x540] sm:$0xff]  ;;  %v3830_v46 = vld [vmem:[%s16018_s2 + $0x570] sm:$0xff] }
 0x392   :  { %v3785_v23 = vld [vmem:[%s16018_s2 + $0x408] sm:$0xff]  ;;  %v3843_v26 = vld [vmem:[%s16018_s2 + $0x5d8] sm:$0xff] }
 0x393   :  { %v3837_v7 = vld [vmem:[%s16018_s2 + $0x5a8] sm:$0xff] }
 0x394   :  { %7489 = vmatpush1.bf16.msra.mxu1 %v7488_v47  ;;  %7445 = vmatpush1.bf16.msra.mxu0 %v7444_v34  ;;  %v7500_v47 = vpack.c.bf16 %v3748_v29, %v3742_v28  ;;  %v7456_v34 = vpack.c.bf16 %v3806_v41, %v3800_v37  ;;  %v3778_v28 = vld [vmem:[%s16018_s2 + $0x3d0] sm:$0xff]  ;;  %v3784_v29 = vld [vmem:[%s16018_s2 + $0x400] sm:$0xff] }
 0x395   :  { %7491 = vmatprep.subr.bf16.mxu1 %v7490_v52  ;;  %7447 = vmatprep.subr.bf16.mxu0 %v7446_v59  ;;  %v7502_v52 = vpack.c.bf16 %v3761_v45, %v3755_v11  ;;  %v7458_v59 = vpack.c.bf16 %v3819_v18, %v3813_v9  ;;  %v3791_v11 = vld [vmem:[%s16018_s2 + $0x438] sm:$0xff]  ;;  %v3836_v37 = vld [vmem:[%s16018_s2 + $0x5a0] sm:$0xff]  ;;  %v3842_v41 = vld [vmem:[%s16018_s2 + $0x5d0] sm:$0xff] }
 0x396   :  { %v3797_v45 = vld [vmem:[%s16018_s2 + $0x468] sm:$0xff]  ;;  %v3667_v18 = vld [vmem:[%s16018_s2 + $0x58] sm:$0xff] }
 0x397   :  { %v3661_v9 = vld [vmem:[%s16018_s2 + $0x28] sm:$0xff] }
 0x398   :  { %7493 = vmatpush1.bf16.msra.mxu1 %v7492_v32  ;;  %7449 = vmatpush1.bf16.msra.mxu0 %v7448_v10  ;;  %v7504_v32 = vpack.c.bf16 %v3760_v21, %v3754_v50  ;;  %v7460_v10 = vpack.c.bf16 %v3818_v63, %v3812_v56  ;;  %v7468_v50 = vpack.c.bf16 %v3842_v41, %v3836_v37  ;;  %v3809_v56 = vld [vmem:[%s16018_s2 + $0x4c8] sm:$0xff]  ;;  %v4074_v37 = vld [vmem:[%s16019_s6 + $0x38] sm:$0xff] }
 0x399   :  { %7495 = vmatprep.subr.bf16.mxu1 %v7494_v1  ;;  %7451 = vmatprep.subr.bf16.mxu0 %v7450_v17  ;;  %v7506_v1 = vpack.c.bf16 %v3773_v30, %v3767_v16  ;;  %v7462_v17 = vpack.c.bf16 %v3831_v60, %v3825_v57  ;;  %v7514_v21 = vpack.c.bf16 %v3797_v45, %v3791_v11  ;;  %v3802_v57 = vld [vmem:[%s16018_s2 + $0x490] sm:$0xff]  ;;  %v3808_v60 = vld [vmem:[%s16018_s2 + $0x4c0] sm:$0xff] }
 0x39a   :  { %v7534_v16 = vpack.c.bf16 %v3667_v18, %v3661_v9  ;;  %v3844_v11 = vld [vmem:[%s16018_s2 + $0x5e0] sm:$0xff] }
 0x39c   :  { %7497 = vmatpush1.bf16.msra.mxu1 %v7496_v3  ;;  %7453 = vmatpush1.bf16.msra.mxu0 %v7452_v48  ;;  %v7508_v3 = vpack.c.bf16 %v3772_v39, %v3766_v62  ;;  %v7464_v48 = vpack.c.bf16 %v3830_v46, %v3824_v20  ;;  %v3821_v62 = vld [vmem:[%s16018_s2 + $0x528] sm:$0xff]  ;;  %v7520_v39 = vpack.c.bf16 %v3808_v60, %v3802_v57 }
 0x39d   :  { %7499 = vmatprep.subr.bf16.mxu1 %v7498_v6  ;;  %7455 = vmatprep.subr.bf16.mxu0 %v7454_v31  ;;  %v7510_v6 = vpack.c.bf16 %v3785_v23, %v3779_v14  ;;  %v7466_v31 = vpack.c.bf16 %v3843_v26, %v3837_v7  ;;  %v3820_v14 = vld [vmem:[%s16018_s2 + $0x520] sm:$0xff]  ;;  %v3833_v20 = vld [vmem:[%s16018_s2 + $0x588] sm:$0xff]  ;;  %v3826_v7 = vld [vmem:[%s16018_s2 + $0x550] sm:$0xff] }
 0x39e   :  { %v3832_v26 = vld [vmem:[%s16018_s2 + $0x580] sm:$0xff] }
 0x3a0   :  { %7501 = vmatpush1.bf16.msra.mxu1 %v7500_v47  ;;  %7457 = vmatpush1.bf16.msra.mxu0 %v7456_v34  ;;  %v7512_v47 = vpack.c.bf16 %v3784_v29, %v3778_v28  ;;  %v3790_v34 = vld [vmem:[%s16018_s2 + $0x430] sm:$0xff]  ;;  %v3845_v28 = vld [vmem:[%s16018_s2 + $0x5e8] sm:$0xff]  ;;  %v7528_v29 = vpack.c.bf16 %v3832_v26, %v3826_v7 }
 0x3a1   :  { %7503 = vmatprep.subr.bf16.mxu1 %v7502_v52  ;;  %7459 = vmatprep.subr.bf16.mxu0 %v7458_v59  ;;  %v3796_v52 = vld [vmem:[%s16018_s2 + $0x460] sm:$0xff]  ;;  %v3803_v59 = vld [vmem:[%s16018_s2 + $0x498] sm:$0xff] }
 0x3a2   :  { %v7516_v63 = vpack.c.bf16 %v3796_v52, %v3790_v34  ;;  %v7518_v30 = vpack.c.bf16 %v3809_v56, %v3803_v59 }
 0x3a4   :  { %7505 = vmatpush1.bf16.msra.mxu1 %v7504_v32  ;;  %7461 = vmatpush1.bf16.msra.mxu0 %v7460_v10  ;;  %v3815_v32 = vld [vmem:[%s16018_s2 + $0x4f8] sm:$0xff] }
 0x3a5   :  { %7507 = vmatprep.subr.bf16.mxu1 %v7506_v1  ;;  %7463 = vmatprep.subr.bf16.mxu0 %v7462_v17  ;;  %v7522_v10 = vpack.c.bf16 %v3821_v62, %v3815_v32  ;;  %v3814_v1 = vld [vmem:[%s16018_s2 + $0x4f0] sm:$0xff]  ;;  %v3827_v17 = vld [vmem:[%s16018_s2 + $0x558] sm:$0xff] }
 0x3a6   :  { %v7524_v46 = vpack.c.bf16 %v3820_v14, %v3814_v1  ;;  %v7526_v23 = vpack.c.bf16 %v3833_v20, %v3827_v17 }
 0x3a8   :  { %7509 = vmatpush1.bf16.msra.mxu1 %v7508_v3  ;;  %7465 = vmatpush1.bf16.msra.mxu0 %v7464_v48  ;;  %v3839_v3 = vld [vmem:[%s16018_s2 + $0x5b8] sm:$0xff] }
 0x3a9   :  { %7511 = vmatprep.subr.bf16.mxu1 %v7510_v6  ;;  %7467 = vmatprep.subr.bf16.mxu0 %v7466_v31  ;;  %v7530_v48 = vpack.c.bf16 %v3845_v28, %v3839_v3  ;;  %v3838_v6 = vld [vmem:[%s16018_s2 + $0x5b0] sm:$0xff]  ;;  %v4068_v31 = vld [vmem:[%s16019_s6 + $0x8] sm:$0xff] }
 0x3aa   :  { %v7532_v41 = vpack.c.bf16 %v3844_v11, %v3838_v6  ;;  %v7598_v45 = vpack.c.bf16 %v4074_v37, %v4068_v31 }
 0x3ac   :  { %7513 = vmatpush1.bf16.msra.mxu1 %v7512_v47  ;;  %7469 = vmatpush1.bf16.msra.mxu0 %v7468_v50 }
 0x3ad   :  { %7515 = vmatprep.subr.bf16.mxu1 %v7514_v21  ;;  %7535 = vmatprep.subr.bf16.mxu0 %v7534_v16 }
 0x3b0   :  { %7517 = vmatpush1.bf16.msra.mxu1 %v7516_v63 }
 0x3b1   :  { %7519 = vmatprep.subr.bf16.mxu1 %v7518_v30 }
 0x3b4   :  { %7521 = vmatpush1.bf16.msra.mxu1 %v7520_v39  ;;  %v3581_v39 = vrot.slane %v12527_v61, 6 }
 0x3b5   :  { %7523 = vmatprep.subr.bf16.mxu1 %v7522_v10 }
 0x3b8   :  { %7525 = vmatpush1.bf16.msra.mxu1 %v7524_v46 }
 0x3b9   :  { %7527 = vmatprep.subr.bf16.mxu1 %v7526_v23 }
 0x3bc   :  { %7529 = vmatpush1.bf16.msra.mxu1 %v7528_v29 }
 0x3bd   :  { %7531 = vmatprep.subr.bf16.mxu1 %v7530_v48 }
 0x3c0   :  { %7533 = vmatpush1.bf16.msra.mxu1 %v7532_v41 }
 0x3c1   :  { %7599 = vmatprep.subr.bf16.mxu1 %v7598_v45 }
 0x3c2   :  { %v2964_v9 = vpop.f32.mrb[12].mxu0  ;;  %v3035_v18 = vpop.f32.mrb[12].mxu1 }
 0x3c3   :  { %v2966_v47 = vpop.f32.mrb[13].mxu0  ;;  %v3037_v50 = vpop.f32.mrb[13].mxu1  ;;  %v2965_v63 = vadd.f32 %v2964_v9, %v12431_v33  ;;  %v3036_v1 = vadd.f32 %v3035_v18, %v12453_v49 }
 0x3c4   :  { %v3038_v21 = vadd.f32 %v3037_v50, %v12456_v51  ;;  %v2967_v30 = vadd.f32 %v2966_v47, %v12434_v35 }
 0x3c5   :  { %v3524_v57 = vrot.slane %v2965_v63, 6  ;;  %v3544_v46 = vrot.slane %v3036_v1, 6 }
 0x3c6   :  { %v3545_v34 = vrot.slane %v3038_v21, 6  ;;  %v3525_v60 = vrot.slane %v2967_v30, 6 }
 0x3c7   :  { %v3528_v32 = vadd.f32 %v12441_v42, %v3524_v57  ;;  %v3548_v23 = vadd.f32 %v12463_v54, %v3544_v46  ;;  %v3679_v46 = vld [vmem:[%s16018_s2 + $0xb8] sm:$0xff] }
 0x3c8   :  { %v3549_v52 = vadd.f32 %v12466_v55, %v3545_v34  ;;  %v3529_v62 = vadd.f32 %v12444_v44, %v3525_v60 }
 0x3c9   :  { %v5775_v17 = vmul.f32 -1.442695, %v3528_v32  ;;  %v5777_v7 = vmul.f32 -1.442695, %v3548_v23  ;;  %v4067_v23 = vld [vmem:[%s16019_s6] sm:$0xff] }
 0x3ca   :  { %v5778_v16 = vmul.f32 -1.442695, %v3549_v52  ;;  %v5776_v20 = vmul.f32 -1.442695, %v3529_v62 }
 0x3cc   :  { %8303 = vpow2.f32 %v5778_v16 }
 0x3d6   :  { %v8304_v59 = vpop.eup %8303 }
 0x3d7   :  { %v3557_v56 = vadd.f32 1.0, %v8304_v59  ;;  %v3580_v59 = vrot.slane %v12519_v58, 6  ;;  %v3666_v58 = vld [vmem:[%s16018_s2 + $0x50] sm:$0xff] }
 0x3d9   :  { %8305 = vrcp.f32 %v3557_v56 }
 0x3da   :  { %8307 = vpow2.f32 %v5775_v17  ;;  %v3660_v17 = vld [vmem:[%s16018_s2 + $0x20] sm:$0xff] }
 0x3db   :  { %8309 = vpow2.f32 %v5776_v20 }
 0x3dc   :  { %8311 = vpow2.f32 %v5777_v7  ;;  %v4073_v7 = vld [vmem:[%s16019_s6 + $0x30] sm:$0xff] }
 0x3e3   :  { %v8306_v10 = vpop.eup %8305 }
 0x3e4   :  { %v3585_v14 = vmul.f32 %v8306_v10, %v3581_v39  ;;  %v8308_v26 = vpop.eup %8307  ;;  %v3575_v63 = vsub.f32 1.0, %v8306_v10  ;;  %v3673_v10 = vld [vmem:[%s16018_s2 + $0x88] sm:$0xff] }
 0x3e5   :  { %v8310_v3 = vpop.eup %8309  ;;  %v3536_v28 = vadd.f32 1.0, %v8308_v26  ;;  %v4080_v26 = vld [vmem:[%s16019_s6 + $0x68] sm:$0xff] }
 0x3e6   :  { %v3537_v29 = vadd.f32 1.0, %v8310_v3  ;;  %v8312_v61 = vpop.eup %8311 }
 0x3e7   :  { %8313 = vrcp.f32 %v3536_v28  ;;  %v3556_v6 = vadd.f32 1.0, %v8312_v61  ;;  %v7536_v28 = vpack.c.bf16 %v3666_v58, %v3660_v17  ;;  %v7538_v61 = vpack.c.bf16 %v3679_v46, %v3673_v10  ;;  %v3696_v10 = vld [vmem:[%s16018_s2 + $0x140] sm:$0xff]  ;;  %v3702_v46 = vld [vmem:[%s16018_s2 + $0x170] sm:$0xff] }
 0x3e8   :  { %8315 = vrcp.f32 %v3537_v29 }
 0x3e9   :  { %8317 = vrcp.f32 %v3556_v6  ;;  %v3678_v6 = vld [vmem:[%s16018_s2 + $0xb0] sm:$0xff] }
 0x3f1   :  { %v8314_v45 = vpop.eup %8313 }
 0x3f2   :  { %v8316_v18 = vpop.eup %8315 }
 0x3f3   :  { %v8318_v52 = vpop.eup %8317 }
 0x3f4   :  { %v3574_v16 = vsub.f32 1.0, %v8318_v52  ;;  %v3584_v32 = vmul.f32 %v8318_v52, %v3580_v59  ;;  %v3690_v52 = vld [vmem:[%s16018_s2 + $0x110] sm:$0xff] }
 0x402   :  { %v3106_v48 = vpop.f32.mrb[14].mxu0 }
 0x403   :  { %v3107_v11 = vadd.f32 %v3106_v48, %v12475_v4  ;;  %v3108_v31 = vpop.f32.mrb[15].mxu0  ;;  %v3672_v48 = vld [vmem:[%s16018_s2 + $0x80] sm:$0xff] }
 0x404   :  { %v3109_v37 = vadd.f32 %v3108_v31, %v12478_v5  ;;  %v7600_v31 = vpack.c.bf16 %v4073_v7, %v4067_v23  ;;  %v3709_v23 = vld [vmem:[%s16018_s2 + $0x1a8] sm:$0xff] }
 0x405   :  { %v3564_v41 = vrot.slane %v3107_v11, 6  ;;  %v3685_v11 = vld [vmem:[%s16018_s2 + $0xe8] sm:$0xff] }
 0x406   :  { %v3565_v9 = vrot.slane %v3109_v37, 6  ;;  %v3691_v37 = vld [vmem:[%s16018_s2 + $0x118] sm:$0xff] }
 0x407   :  { %v3568_v47 = vmul.f32 %v8314_v45, %v3564_v41  ;;  %v4079_v45 = vld [vmem:[%s16019_s6 + $0x60] sm:$0xff] }
 0x408   :  { %v3569_v50 = vmul.f32 %v8316_v18, %v3565_v9  ;;  %v4085_v9 = vld [vmem:[%s16019_s6 + $0x90] sm:$0xff]  ;;  %v4092_v18 = vld [vmem:[%s16019_s6 + $0xc8] sm:$0xff] }
 0x409   :  { %v3570_v21 = vadd.f32 %v12489_v25, %v3568_v47  ;;  %v4098_v47 = vld [vmem:[%s16019_s6 + $0xf8] sm:$0xff]  ;;  %v7604_v59 = vpack.c.bf16 %v4085_v9, %v4079_v45 }
 0x40a   :  { %v3571_v34 = vadd.f32 %v12492_v27, %v3569_v50  ;;  %v7540_v50 = vpack.c.bf16 %v3678_v6, %v3672_v48  ;;  %v4122_v48 = vld [vmem:[%s16019_s6 + $0x1b8] sm:$0xff]  ;;  %v7548_v6 = vpack.c.bf16 %v3702_v46, %v3696_v10 }
 0x40b   :  { %8319 = vtanh.f32 %v3570_v21  ;;  %v7542_v21 = vpack.c.bf16 %v3691_v37, %v3685_v11  ;;  %v3714_v37 = vld [vmem:[%s16018_s2 + $0x1d0] sm:$0xff]  ;;  %v3727_v9 = vld [vmem:[%s16018_s2 + $0x238] sm:$0xff] }
 0x40c   :  { %8321 = vtanh.f32 %v3571_v34  ;;  %v3684_v34 = vld [vmem:[%s16018_s2 + $0xe0] sm:$0xff]  ;;  %v4146_v10 = vld [vmem:[%s16019_s6 + $0x278] sm:$0xff] }
 0x40d   :  { %v7544_v17 = vpack.c.bf16 %v3690_v52, %v3684_v34  ;;  %v4134_v34 = vld [vmem:[%s16019_s6 + $0x218] sm:$0xff] }
 0x415   :  { %v8320_v56 = vpop.eup %8319 }
 0x416   :  { %v8322_v30 = vpop.eup %8321  ;;  %v13771_v57 = vpop.f32.mrb[14].mxu1  ;;  %v3576_v60 = vmul.f32 %v8320_v56, %v3574_v16  ;;  %v3697_v16 = vld [vmem:[%s16018_s2 + $0x148] sm:$0xff]  ;;  %v3703_v56 = vld [vmem:[%s16018_s2 + $0x178] sm:$0xff] }
 0x417   :  { %v13773_v62 = vpop.f32.mrb[15].mxu1  ;;  %v3577_v39 = vmul.f32 %v8322_v30, %v3575_v63  ;;  %v7606_v63 = vpack.c.bf16 %v4098_v47, %v4092_v18  ;;  %v4091_v30 = vld [vmem:[%s16019_s6 + $0xc0] sm:$0xff]  ;;  %v7546_v58 = vpack.c.bf16 %v3703_v56, %v3697_v16  ;;  %v3726_v56 = vld [vmem:[%s16018_s2 + $0x230] sm:$0xff]  ;;  %v3376_v46 = vadd.f32 %v13771_v57, %v12531_v0 }
 0x418   :  { %v13775_v1 = vadd.f32 %v3584_v32, %v3576_v60  ;;  %v4097_v60 = vld [vmem:[%s16019_s6 + $0xf0] sm:$0xff]  ;;  %v4104_v32 = vld [vmem:[%s16019_s6 + $0x128] sm:$0xff]  ;;  %v4115_v47 = vld [vmem:[%s16019_s6 + $0x180] sm:$0xff] }
 0x419   :  { %v13786_v20 = vadd.f32 %v3585_v14, %v3577_v39  ;;  %v4086_v14 = vld [vmem:[%s16019_s6 + $0x98] sm:$0xff]  ;;  %v7608_v7 = vpack.c.bf16 %v4097_v60, %v4091_v30 }
 0x41a   :  { %3652 = vst [vmem:[#allocation2] sm:$0xc] %v13775_v1  ;;  %v13807_v29 = vrot.slane %v13775_v1, 2  ;;  %v7602_v41 = vpack.c.bf16 %v4086_v14, %v4080_v26  ;;  %v4110_v39 = vld [vmem:[%s16019_s6 + $0x158] sm:$0xff] }
 0x41b   :  { %3653 = vst [vmem:[#allocation2 + $0x8] sm:$0xc] %v13786_v20  ;;  %v3851_v3 = vrot.slane %v13786_v20, 2  ;;  %v3715_v26 = vld [vmem:[%s16018_s2 + $0x1d8] sm:$0xff]  ;;  %v7610_v14 = vpack.c.bf16 %v4110_v39, %v4104_v32  ;;  %v4127_v39 = vld [vmem:[%s16019_s6 + $0x1e0] sm:$0xff] }
 0x41c   :  { %v7550_v11 = vpack.c.bf16 %v3715_v26, %v3709_v23  ;;  %v3739_v60 = vld [vmem:[%s16018_s2 + $0x298] sm:$0xff] }
 0x41d   :  { %3918 = vmatprep.mubr.f32.mxu0 %v3851_v3  ;;  %3989 = vmatprep.mubr.f32.mxu1 %v3851_v3 }
 0x41e   :  { %3919 = vmatmul.mubr.f32.vlgmr.msra.gmra.mrb[18].mxu0 %v13807_v29  ;;  %3990 = vmatmul.mubr.f32.vlgmr.msra.gmra.mrb[18].mxu1 %v13807_v29 }
 0x41f   :  { %7537 = vmatpush1.bf16.msra.mxu0 %v7536_v28  ;;  %4060 = vmatprep.mubr.f32.mxu0 %v3851_v3  ;;  %v4103_v3 = vld [vmem:[%s16019_s6 + $0x120] sm:$0xff]  ;;  %v4109_v28 = vld [vmem:[%s16019_s6 + $0x150] sm:$0xff] }
 0x420   :  { %7539 = vmatprep.subr.bf16.mxu0 %v7538_v61  ;;  %7601 = vmatpush1.bf16.msra.mxu1 %v7600_v31  ;;  %v4116_v61 = vld [vmem:[%s16019_s6 + $0x188] sm:$0xff]  ;;  %v3708_v31 = vld [vmem:[%s16018_s2 + $0x1a0] sm:$0xff]  ;;  %v7612_v45 = vpack.c.bf16 %v4109_v28, %v4103_v3  ;;  %v3738_v3 = vld [vmem:[%s16018_s2 + $0x290] sm:$0xff] }
 0x421   :  { %7603 = vmatprep.subr.bf16.mxu1 %v7602_v41  ;;  %v3721_v41 = vld [vmem:[%s16018_s2 + $0x208] sm:$0xff]  ;;  %v7614_v18 = vpack.c.bf16 %v4122_v48, %v4116_v61  ;;  %v7552_v52 = vpack.c.bf16 %v3714_v37, %v3708_v31  ;;  %v4139_v48 = vld [vmem:[%s16019_s6 + $0x240] sm:$0xff]  ;;  %v4158_v31 = vld [vmem:[%s16019_s6 + $0x2d8] sm:$0xff]  ;;  %v3590_v37 = vrot.slane %v3376_v46, 4 }
 0x422   :  { %v7554_v16 = vpack.c.bf16 %v3727_v9, %v3721_v41  ;;  %v3745_v28 = vld [vmem:[%s16018_s2 + $0x2c8] sm:$0xff] }
 0x423   :  { %7541 = vmatpush1.bf16.msra.mxu0 %v7540_v50  ;;  %v4121_v50 = vld [vmem:[%s16019_s6 + $0x1b0] sm:$0xff] }
 0x424   :  { %7543 = vmatprep.subr.bf16.mxu0 %v7542_v21  ;;  %7605 = vmatpush1.bf16.msra.mxu1 %v7604_v59  ;;  %v4128_v21 = vld [vmem:[%s16019_s6 + $0x1e8] sm:$0xff]  ;;  %v3720_v59 = vld [vmem:[%s16018_s2 + $0x200] sm:$0xff]  ;;  %v7616_v30 = vpack.c.bf16 %v4121_v50, %v4115_v47  ;;  %v3750_v47 = vld [vmem:[%s16018_s2 + $0x2f0] sm:$0xff] }
 0x425   :  { %7607 = vmatprep.subr.bf16.mxu1 %v7606_v63  ;;  %v3733_v63 = vld [vmem:[%s16018_s2 + $0x268] sm:$0xff]  ;;  %v7618_v32 = vpack.c.bf16 %v4134_v34, %v4128_v21  ;;  %v7556_v23 = vpack.c.bf16 %v3726_v56, %v3720_v59  ;;  %v3763_v34 = vld [vmem:[%s16018_s2 + $0x358] sm:$0xff]  ;;  %v4157_v59 = vld [vmem:[%s16019_s6 + $0x2d0] sm:$0xff] }
 0x426   :  { %v7558_v26 = vpack.c.bf16 %v3739_v60, %v3733_v63  ;;  %v3757_v50 = vld [vmem:[%s16018_s2 + $0x328] sm:$0xff]  ;;  %v4170_v63 = vld [vmem:[%s16019_s6 + $0x338] sm:$0xff] }
 0x427   :  { %7545 = vmatpush1.bf16.msra.mxu0 %v7544_v17  ;;  %v4133_v17 = vld [vmem:[%s16019_s6 + $0x210] sm:$0xff]  ;;  %v4164_v56 = vld [vmem:[%s16019_s6 + $0x308] sm:$0xff] }
 0x428   :  { %7547 = vmatprep.subr.bf16.mxu0 %v7546_v58  ;;  %7609 = vmatpush1.bf16.msra.mxu1 %v7608_v7  ;;  %v4140_v58 = vld [vmem:[%s16019_s6 + $0x248] sm:$0xff]  ;;  %v3378_v7 = vadd.f32 %v13773_v62, %v12545_v15  ;;  %v7620_v57 = vpack.c.bf16 %v4133_v17, %v4127_v39  ;;  %v3751_v62 = vld [vmem:[%s16018_s2 + $0x2f8] sm:$0xff]  ;;  %v7566_v39 = vpack.c.bf16 %v3763_v34, %v3757_v50  ;;  %v3756_v17 = vld [vmem:[%s16018_s2 + $0x320] sm:$0xff] }
 0x429   :  { %7611 = vmatprep.subr.bf16.mxu1 %v7610_v14  ;;  %v3732_v14 = vld [vmem:[%s16018_s2 + $0x260] sm:$0xff]  ;;  %v7622_v61 = vpack.c.bf16 %v4146_v10, %v4140_v58  ;;  %v7562_v9 = vpack.c.bf16 %v3751_v62, %v3745_v28  ;;  %v3762_v58 = vld [vmem:[%s16018_s2 + $0x350] sm:$0xff]  ;;  %v3769_v10 = vld [vmem:[%s16018_s2 + $0x388] sm:$0xff] }
 0x42a   :  { %v7560_v41 = vpack.c.bf16 %v3738_v3, %v3732_v14  ;;  %v4169_v14 = vld [vmem:[%s16019_s6 + $0x330] sm:$0xff]  ;;  %v4176_v3 = vld [vmem:[%s16019_s6 + $0x368] sm:$0xff]  ;;  %v4182_v28 = vld [vmem:[%s16019_s6 + $0x398] sm:$0xff]  ;;  %v7568_v62 = vpack.c.bf16 %v3762_v58, %v3756_v17 }
 0x42b   :  { %7549 = vmatpush1.bf16.msra.mxu0 %v7548_v6  ;;  %v4145_v6 = vld [vmem:[%s16019_s6 + $0x270] sm:$0xff]  ;;  %v4194_v50 = vld [vmem:[%s16019_s6 + $0x3f8] sm:$0xff]  ;;  %v4200_v17 = vld [vmem:[%s16019_s6 + $0x428] sm:$0xff] }
 0x42c   :  { %7551 = vmatprep.subr.bf16.mxu0 %v7550_v11  ;;  %7613 = vmatpush1.bf16.msra.mxu1 %v7612_v45  ;;  %v4152_v11 = vld [vmem:[%s16019_s6 + $0x2a8] sm:$0xff]  ;;  %v3591_v45 = vrot.slane %v3378_v7, 4  ;;  %v7624_v21 = vpack.c.bf16 %v4145_v6, %v4139_v48  ;;  %v7630_v7 = vpack.c.bf16 %v4170_v63, %v4164_v56  ;;  %v3768_v6 = vld [vmem:[%s16018_s2 + $0x380] sm:$0xff]  ;;  %v3799_v63 = vld [vmem:[%s16018_s2 + $0x478] sm:$0xff] }
 0x42d   :  { %7615 = vmatprep.subr.bf16.mxu1 %v7614_v18  ;;  %v3744_v18 = vld [vmem:[%s16018_s2 + $0x2c0] sm:$0xff]  ;;  %v4206_v58 = vld [vmem:[%s16019_s6 + $0x458] sm:$0xff] }
 0x42e   :  { %v7564_v60 = vpack.c.bf16 %v3750_v47, %v3744_v18  ;;  %v4181_v18 = vld [vmem:[%s16019_s6 + $0x390] sm:$0xff]  ;;  %v4188_v47 = vld [vmem:[%s16019_s6 + $0x3c8] sm:$0xff] }
 0x42f   :  { %7553 = vmatpush1.bf16.msra.mxu0 %v7552_v52  ;;  %v7626_v52 = vpack.c.bf16 %v4158_v31, %v4152_v11  ;;  %v3774_v11 = vld [vmem:[%s16018_s2 + $0x3b0] sm:$0xff]  ;;  %v3781_v31 = vld [vmem:[%s16018_s2 + $0x3e8] sm:$0xff] }
 0x430   :  { %7555 = vmatprep.subr.bf16.mxu0 %v7554_v16  ;;  %7617 = vmatpush1.bf16.msra.mxu1 %v7616_v30  ;;  %v4151_v16 = vld [vmem:[%s16019_s6 + $0x2a0] sm:$0xff]  ;;  %v3594_v30 = vadd.f32 %v12624_v13, %v3590_v37 }
 0x431   :  { %7619 = vmatprep.subr.bf16.mxu1 %v7618_v32  ;;  %v3595_v32 = vadd.f32 %v12633_v19, %v3591_v45  ;;  %v7628_v46 = vpack.c.bf16 %v4157_v59, %v4151_v16  ;;  %v7634_v45 = vpack.c.bf16 %v4182_v28, %v4176_v3  ;;  %v3786_v16 = vld [vmem:[%s16018_s2 + $0x410] sm:$0xff]  ;;  %v3793_v59 = vld [vmem:[%s16018_s2 + $0x448] sm:$0xff] }
 0x432   :  { %v3798_v3 = vld [vmem:[%s16018_s2 + $0x470] sm:$0xff]  ;;  %v3805_v28 = vld [vmem:[%s16018_s2 + $0x4a8] sm:$0xff] }
 0x433   :  { %7557 = vmatpush1.bf16.msra.mxu0 %v7556_v23  ;;  %v3775_v23 = vld [vmem:[%s16018_s2 + $0x3b8] sm:$0xff] }
 0x434   :  { %7559 = vmatprep.subr.bf16.mxu0 %v7558_v26  ;;  %7621 = vmatpush1.bf16.msra.mxu1 %v7620_v57  ;;  %v4163_v26 = vld [vmem:[%s16019_s6 + $0x300] sm:$0xff]  ;;  %v5779_v57 = vmul.f32 -1.442695, %v3594_v30  ;;  %v7570_v48 = vpack.c.bf16 %v3775_v23, %v3769_v10  ;;  %v7638_v30 = vpack.c.bf16 %v4194_v50, %v4188_v47 }
 0x435   :  { %7623 = vmatprep.subr.bf16.mxu1 %v7622_v61  ;;  %v5780_v61 = vmul.f32 -1.442695, %v3595_v32  ;;  %v7632_v37 = vpack.c.bf16 %v4169_v14, %v4163_v26  ;;  %v4193_v32 = vld [vmem:[%s16019_s6 + $0x3f0] sm:$0xff]  ;;  %v7578_v26 = vpack.c.bf16 %v3799_v63, %v3793_v59  ;;  %v3792_v14 = vld [vmem:[%s16018_s2 + $0x440] sm:$0xff] }
 0x436   :  { %8323 = vpow2.f32 %v5779_v57  ;;  %v3804_v50 = vld [vmem:[%s16018_s2 + $0x4a0] sm:$0xff] }
 0x437   :  { %7561 = vmatpush1.bf16.msra.mxu0 %v7560_v41  ;;  %v3787_v41 = vld [vmem:[%s16018_s2 + $0x418] sm:$0xff]  ;;  %8325 = vpow2.f32 %v5780_v61 }
 0x438   :  { %7563 = vmatprep.subr.bf16.mxu0 %v7562_v9  ;;  %7625 = vmatpush1.bf16.msra.mxu1 %v7624_v21  ;;  %v4175_v9 = vld [vmem:[%s16019_s6 + $0x360] sm:$0xff]  ;;  %v7572_v21 = vpack.c.bf16 %v3774_v11, %v3768_v6  ;;  %v7574_v34 = vpack.c.bf16 %v3787_v41, %v3781_v31  ;;  %v3811_v61 = vld [vmem:[%s16018_s2 + $0x4d8] sm:$0xff]  ;;  %v4205_v11 = vld [vmem:[%s16019_s6 + $0x450] sm:$0xff] }
 0x439   :  { %7627 = vmatprep.subr.bf16.mxu1 %v7626_v52  ;;  %v3780_v52 = vld [vmem:[%s16018_s2 + $0x3e0] sm:$0xff]  ;;  %v7636_v56 = vpack.c.bf16 %v4181_v18, %v4175_v9  ;;  %v4218_v41 = vld [vmem:[%s16019_s6 + $0x4b8] sm:$0xff]  ;;  %v7580_v9 = vpack.c.bf16 %v3798_v3, %v3792_v14  ;;  %v7582_v47 = vpack.c.bf16 %v3811_v61, %v3805_v28  ;;  %v3829_v14 = vld [vmem:[%s16018_s2 + $0x568] sm:$0xff] }
 0x43a   :  { %v7576_v23 = vpack.c.bf16 %v3786_v16, %v3780_v52  ;;  %v4199_v6 = vld [vmem:[%s16019_s6 + $0x420] sm:$0xff] }
 0x43b   :  { %7565 = vmatpush1.bf16.msra.mxu0 %v7564_v60  ;;  %v4187_v60 = vld [vmem:[%s16019_s6 + $0x3c0] sm:$0xff]  ;;  %v7644_v52 = vpack.c.bf16 %v4205_v11, %v4199_v6  ;;  %v4236_v6 = vld [vmem:[%s16019_s6 + $0x548] sm:$0xff]  ;;  %v4242_v11 = vld [vmem:[%s16019_s6 + $0x578] sm:$0xff] }
 0x43c   :  { %7567 = vmatprep.subr.bf16.mxu0 %v7566_v39  ;;  %7629 = vmatpush1.bf16.msra.mxu1 %v7628_v46  ;;  %v7640_v57 = vpack.c.bf16 %v4193_v32, %v4187_v60  ;;  %v4217_v60 = vld [vmem:[%s16019_s6 + $0x4b0] sm:$0xff]  ;;  %v4223_v61 = vld [vmem:[%s16019_s6 + $0x4e0] sm:$0xff] }
 0x43d   :  { %7631 = vmatprep.subr.bf16.mxu1 %v7630_v7 }
 0x43f   :  { %7569 = vmatpush1.bf16.msra.mxu0 %v7568_v62 }
 0x440   :  { %7571 = vmatprep.subr.bf16.mxu0 %v7570_v48  ;;  %7633 = vmatpush1.bf16.msra.mxu1 %v7632_v37  ;;  %v7642_v48 = vpack.c.bf16 %v4206_v58, %v4200_v17  ;;  %v4212_v37 = vld [vmem:[%s16019_s6 + $0x488] sm:$0xff]  ;;  %v8324_v16 = vpop.eup %8323  ;;  %v4230_v58 = vld [vmem:[%s16019_s6 + $0x518] sm:$0xff] }
 0x441   :  { %7635 = vmatprep.subr.bf16.mxu1 %v7634_v45  ;;  %v7646_v63 = vpack.c.bf16 %v4218_v41, %v4212_v37  ;;  %v8326_v32 = vpop.eup %8325  ;;  %v4224_v17 = vld [vmem:[%s16019_s6 + $0x4e8] sm:$0xff]  ;;  %v3828_v41 = vld [vmem:[%s16018_s2 + $0x560] sm:$0xff] }
 0x442   :  { %v3446_v39 = vpop.f32.mrb[16].mxu0  ;;  %v3603_v28 = vadd.f32 1.0, %v8326_v32 }
 0x443   :  { %v3447_v10 = vadd.f32 %v3446_v39, %v12807_v40  ;;  %7573 = vmatpush1.bf16.msra.mxu0 %v7572_v21  ;;  %v3448_v46 = vpop.f32.mrb[17].mxu0  ;;  %v3810_v21 = vld [vmem:[%s16018_s2 + $0x4d0] sm:$0xff] }
 0x444   :  { %v3449_v7 = vadd.f32 %v3448_v46, %v12818_v24  ;;  %7575 = vmatprep.subr.bf16.mxu0 %v7574_v34  ;;  %7637 = vmatpush1.bf16.msra.mxu1 %v7636_v56  ;;  %v3817_v34 = vld [vmem:[%s16018_s2 + $0x508] sm:$0xff]  ;;  %v3823_v56 = vld [vmem:[%s16018_s2 + $0x538] sm:$0xff]  ;;  %v3602_v46 = vadd.f32 1.0, %v8324_v16 }
 0x445   :  { %v3610_v62 = vrot.slane %v3447_v10, 4  ;;  %7639 = vmatprep.subr.bf16.mxu1 %v7638_v30  ;;  %v4211_v30 = vld [vmem:[%s16019_s6 + $0x480] sm:$0xff]  ;;  %v7584_v10 = vpack.c.bf16 %v3810_v21, %v3804_v50  ;;  %v7654_v50 = vpack.c.bf16 %v4242_v11, %v4236_v6  ;;  %v4254_v16 = vld [vmem:[%s16019_s6 + $0x5d8] sm:$0xff]  ;;  %v4069_v11 = vld [vmem:[%s16019_s6 + $0x10] sm:$0xff] }
 0x446   :  { %v3611_v31 = vrot.slane %v3449_v7, 4  ;;  %v3816_v7 = vld [vmem:[%s16018_s2 + $0x500] sm:$0xff]  ;;  %v7648_v3 = vpack.c.bf16 %v4217_v60, %v4211_v30  ;;  %v3846_v30 = vld [vmem:[%s16018_s2 + $0x5f0] sm:$0xff]  ;;  %v4070_v60 = vld [vmem:[%s16019_s6 + $0x18] sm:$0xff] }
 0x447   :  { %v3614_v45 = vadd.f32 %v12865_v8, %v3610_v62  ;;  %7577 = vmatpush1.bf16.msra.mxu0 %v7576_v23  ;;  %v7586_v23 = vpack.c.bf16 %v3823_v56, %v3817_v34  ;;  %v7650_v62 = vpack.c.bf16 %v4230_v58, %v4224_v17  ;;  %v4235_v21 = vld [vmem:[%s16019_s6 + $0x540] sm:$0xff]  ;;  %v4241_v34 = vld [vmem:[%s16019_s6 + $0x570] sm:$0xff]  ;;  %v4076_v17 = vld [vmem:[%s16019_s6 + $0x48] sm:$0xff] }
 0x448   :  { %v3615_v18 = vadd.f32 %v12875_v22, %v3611_v31  ;;  %7579 = vmatprep.subr.bf16.mxu0 %v7578_v26  ;;  %7641 = vmatpush1.bf16.msra.mxu1 %v7640_v57  ;;  %v3822_v26 = vld [vmem:[%s16018_s2 + $0x530] sm:$0xff]  ;;  %v3835_v57 = vld [vmem:[%s16018_s2 + $0x598] sm:$0xff]  ;;  %v7656_v32 = vpack.c.bf16 %v4241_v34, %v4235_v21  ;;  %v7662_v6 = vpack.c.bf16 %v4076_v17, %v4070_v60 }
 0x449   :  { %v5781_v59 = vmul.f32 -1.442695, %v3614_v45  ;;  %7643 = vmatprep.subr.bf16.mxu1 %v7642_v48  ;;  %v4229_v48 = vld [vmem:[%s16019_s6 + $0x510] sm:$0xff]  ;;  %v7588_v31 = vpack.c.bf16 %v3822_v26, %v3816_v7  ;;  %v7590_v37 = vpack.c.bf16 %v3835_v57, %v3829_v14  ;;  %v4072_v14 = vld [vmem:[%s16019_s6 + $0x28] sm:$0xff]  ;;  %v4094_v60 = vld [vmem:[%s16019_s6 + $0xd8] sm:$0xff] }
 0x44a   :  { %v5782_v39 = vmul.f32 -1.442695, %v3615_v18  ;;  %v3834_v45 = vld [vmem:[%s16018_s2 + $0x590] sm:$0xff]  ;;  %v7652_v18 = vpack.c.bf16 %v4229_v48, %v4223_v61 }
 0x44b   :  { %8327 = vpow2.f32 %v5781_v59  ;;  %7581 = vmatpush1.bf16.msra.mxu0 %v7580_v9  ;;  %v3841_v9 = vld [vmem:[%s16018_s2 + $0x5c8] sm:$0xff]  ;;  %v7592_v59 = vpack.c.bf16 %v3834_v45, %v3828_v41  ;;  %v4082_v45 = vld [vmem:[%s16019_s6 + $0x78] sm:$0xff] }
 0x44c   :  { %8329 = vpow2.f32 %v5782_v39  ;;  %7583 = vmatprep.subr.bf16.mxu0 %v7582_v47  ;;  %7645 = vmatpush1.bf16.msra.mxu1 %v7644_v52  ;;  %v3847_v47 = vld [vmem:[%s16018_s2 + $0x5f8] sm:$0xff]  ;;  %v4248_v52 = vld [vmem:[%s16019_s6 + $0x5a8] sm:$0xff] }
 0x44d   :  { %7647 = vmatprep.subr.bf16.mxu1 %v7646_v63  ;;  %8331 = vrcp.f32 %v3602_v46  ;;  %v7594_v56 = vpack.c.bf16 %v3847_v47, %v3841_v9  ;;  %v3840_v63 = vld [vmem:[%s16018_s2 + $0x5c0] sm:$0xff]  ;;  %v7658_v58 = vpack.c.bf16 %v4254_v16, %v4248_v52  ;;  %v4253_v46 = vld [vmem:[%s16019_s6 + $0x5d0] sm:$0xff]  ;;  %v4088_v9 = vld [vmem:[%s16019_s6 + $0xa8] sm:$0xff] }
 0x44e   :  { %8333 = vrcp.f32 %v3603_v28  ;;  %v7596_v61 = vpack.c.bf16 %v3846_v30, %v3840_v63  ;;  %v4087_v63 = vld [vmem:[%s16019_s6 + $0xa0] sm:$0xff] }
 0x44f   :  { %7585 = vmatpush1.bf16.msra.mxu0 %v7584_v10  ;;  %v4247_v10 = vld [vmem:[%s16019_s6 + $0x5a0] sm:$0xff] }
 0x450   :  { %7587 = vmatprep.subr.bf16.mxu0 %v7586_v23  ;;  %7649 = vmatpush1.bf16.msra.mxu1 %v7648_v3  ;;  %v4078_v3 = vld [vmem:[%s16019_s6 + $0x58] sm:$0xff] }
 0x451   :  { %7651 = vmatprep.subr.bf16.mxu1 %v7650_v62 }
 0x453   :  { %7589 = vmatpush1.bf16.msra.mxu0 %v7588_v31  ;;  %v4075_v31 = vld [vmem:[%s16019_s6 + $0x40] sm:$0xff] }
 0x454   :  { %7591 = vmatprep.subr.bf16.mxu0 %v7590_v37  ;;  %7653 = vmatpush1.bf16.msra.mxu1 %v7652_v18  ;;  %v7660_v37 = vpack.c.bf16 %v4253_v46, %v4247_v10  ;;  %v7726_v18 = vpack.c.bf16 %v4078_v3, %v4072_v14  ;;  %v7664_v52 = vpack.c.bf16 %v4075_v31, %v4069_v11  ;;  %v4093_v10 = vld [vmem:[%s16019_s6 + $0xd0] sm:$0xff]  ;;  %v4099_v46 = vld [vmem:[%s16019_s6 + $0x100] sm:$0xff]  ;;  %v3645_v14 = vrot.slane %v13050_v12, 2  ;;  %v4124_v12 = vld [vmem:[%s16019_s6 + $0x1c8] sm:$0xff] }
 0x455   :  { %v8328_v39 = vpop.eup %8327  ;;  %7655 = vmatprep.subr.bf16.mxu1 %v7654_v50 }
 0x456   :  { %v8330_v23 = vpop.eup %8329  ;;  %v3622_v7 = vadd.f32 1.0, %v8328_v39  ;;  %v3517_v26 = vpop.f32.mrb[16].mxu1 }
 0x457   :  { %v3623_v28 = vadd.f32 1.0, %v8330_v23  ;;  %v3518_v57 = vadd.f32 %v3517_v26, %v12811_v53  ;;  %v3519_v62 = vpop.f32.mrb[17].mxu1  ;;  %7593 = vmatpush1.bf16.msra.mxu0 %v7592_v59  ;;  %v8332_v47 = vpop.eup %8331  ;;  %v7666_v59 = vpack.c.bf16 %v4088_v9, %v4082_v45  ;;  %v4106_v23 = vld [vmem:[%s16019_s6 + $0x138] sm:$0xff] }
 0x458   :  { %8335 = vrcp.f32 %v3622_v7  ;;  %v3520_v48 = vadd.f32 %v3519_v62, %v12833_v43  ;;  %7595 = vmatprep.subr.bf16.mxu0 %v7594_v56  ;;  %7657 = vmatpush1.bf16.msra.mxu1 %v7656_v32  ;;  %v8334_v21 = vpop.eup %8333  ;;  %v4081_v56 = vld [vmem:[%s16019_s6 + $0x70] sm:$0xff]  ;;  %v4100_v32 = vld [vmem:[%s16019_s6 + $0x108] sm:$0xff]  ;;  %v3644_v7 = vrot.slane %v13036_v38, 2  ;;  %v4118_v38 = vld [vmem:[%s16019_s6 + $0x198] sm:$0xff] }
 0x459   :  { %8337 = vrcp.f32 %v3623_v28  ;;  %v3630_v41 = vrot.slane %v3518_v57, 4  ;;  %7659 = vmatprep.subr.bf16.mxu1 %v7658_v58  ;;  %v7668_v17 = vpack.c.bf16 %v4087_v63, %v4081_v56  ;;  %v7670_v58 = vpack.c.bf16 %v4100_v32, %v4094_v60  ;;  %v4129_v60 = vld [vmem:[%s16019_s6 + $0x1f0] sm:$0xff]  ;;  %v4135_v32 = vld [vmem:[%s16019_s6 + $0x220] sm:$0xff] }
 0x45a   :  { %v3631_v50 = vrot.slane %v3520_v48, 4  ;;  %v7672_v28 = vpack.c.bf16 %v4099_v46, %v4093_v10  ;;  %v4111_v48 = vld [vmem:[%s16019_s6 + $0x160] sm:$0xff]  ;;  %v7678_v31 = vpack.c.bf16 %v4124_v12, %v4118_v38  ;;  %v4142_v10 = vld [vmem:[%s16019_s6 + $0x258] sm:$0xff]  ;;  %v4148_v46 = vld [vmem:[%s16019_s6 + $0x288] sm:$0xff] }
 0x45b   :  { %v3634_v34 = vmul.f32 %v8332_v47, %v3630_v41  ;;  %7597 = vmatpush1.bf16.msra.mxu0 %v7596_v61  ;;  %v4105_v61 = vld [vmem:[%s16019_s6 + $0x130] sm:$0xff]  ;;  %v4123_v41 = vld [vmem:[%s16019_s6 + $0x1c0] sm:$0xff]  ;;  %v4130_v47 = vld [vmem:[%s16019_s6 + $0x1f8] sm:$0xff] }
 0x45c   :  { %v3635_v16 = vmul.f32 %v8334_v21, %v3631_v50  ;;  %7663 = vmatprep.subr.bf16.mxu0 %v7662_v6  ;;  %7661 = vmatpush1.bf16.msra.mxu1 %v7660_v37  ;;  %v7676_v11 = vpack.c.bf16 %v4111_v48, %v4105_v61  ;;  %v4117_v37 = vld [vmem:[%s16019_s6 + $0x190] sm:$0xff]  ;;  %v4136_v50 = vld [vmem:[%s16019_s6 + $0x228] sm:$0xff]  ;;  %v7686_v48 = vpack.c.bf16 %v4148_v46, %v4142_v10  ;;  %v4154_v38 = vld [vmem:[%s16019_s6 + $0x2b8] sm:$0xff] }
 0x45d   :  { %v3636_v30 = vadd.f32 %v12966_v2, %v3634_v34  ;;  %7727 = vmatprep.subr.bf16.mxu1 %v7726_v18  ;;  %v7682_v63 = vpack.c.bf16 %v4136_v50, %v4130_v47  ;;  %v4096_v61 = vld [vmem:[%s16019_s6 + $0xe8] sm:$0xff]  ;;  %v4159_v47 = vld [vmem:[%s16019_s6 + $0x2e0] sm:$0xff]  ;;  %v4126_v46 = vld [vmem:[%s16019_s6 + $0x1d8] sm:$0xff] }
 0x45e   :  { %v3637_v39 = vadd.f32 %v12983_v36, %v3635_v16  ;;  %4061 = vmatmul.mubr.f32.vlgmr.msra.gmra.mrb[20].mxu0 %v13807_v29  ;;  %v4112_v29 = vld [vmem:[%s16019_s6 + $0x168] sm:$0xff] }
 0x45f   :  { %8339 = vtanh.f32 %v3636_v30  ;;  %7665 = vmatpush1.bf16.msra.mxu0 %v7664_v52  ;;  %v7674_v62 = vpack.c.bf16 %v4112_v29, %v4106_v23  ;;  %v7680_v52 = vpack.c.bf16 %v4123_v41, %v4117_v37  ;;  %v4077_v30 = vld [vmem:[%s16019_s6 + $0x50] sm:$0xff]  ;;  %v4160_v12 = vld [vmem:[%s16019_s6 + $0x2e8] sm:$0xff]  ;;  %v4095_v37 = vld [vmem:[%s16019_s6 + $0xe0] sm:$0xff] }
 0x460   :  { %8341 = vtanh.f32 %v3637_v39  ;;  %7667 = vmatprep.subr.bf16.mxu0 %v7666_v59  ;;  %v4071_v59 = vld [vmem:[%s16019_s6 + $0x20] sm:$0xff]  ;;  %v4101_v41 = vld [vmem:[%s16019_s6 + $0x110] sm:$0xff]  ;;  %v4108_v50 = vld [vmem:[%s16019_s6 + $0x148] sm:$0xff] }
 0x461   :  { %v7728_v29 = vpack.c.bf16 %v4077_v30, %v4071_v59  ;;  %v4113_v30 = vld [vmem:[%s16019_s6 + $0x170] sm:$0xff]  ;;  %v4120_v10 = vld [vmem:[%s16019_s6 + $0x1a8] sm:$0xff] }
 0x462   :  { %v8336_v26 = vpop.eup %8335 }
 0x463   :  { %v8338_v3 = vpop.eup %8337  ;;  %7669 = vmatpush1.bf16.msra.mxu0 %v7668_v17  ;;  %v3648_v57 = vmul.f32 %v8336_v26, %v3644_v7  ;;  %v3640_v45 = vsub.f32 1.0, %v8336_v26  ;;  %v4084_v17 = vld [vmem:[%s16019_s6 + $0x88] sm:$0xff]  ;;  %v7684_v7 = vpack.c.bf16 %v4135_v32, %v4129_v60  ;;  %v4083_v26 = vld [vmem:[%s16019_s6 + $0x80] sm:$0xff] }
 0x464   :  { %7671 = vmatprep.subr.bf16.mxu0 %v7670_v58  ;;  %v3649_v6 = vmul.f32 %v8338_v3, %v3645_v14  ;;  %v3641_v18 = vsub.f32 1.0, %v8338_v3  ;;  %v4090_v58 = vld [vmem:[%s16019_s6 + $0xb8] sm:$0xff]  ;;  %v4089_v14 = vld [vmem:[%s16019_s6 + $0xb0] sm:$0xff] }
 0x467   :  { %7673 = vmatpush1.bf16.msra.mxu0 %v7672_v28  ;;  %v7730_v28 = vpack.c.bf16 %v4090_v58, %v4084_v17  ;;  %v4165_v17 = vld [vmem:[%s16019_s6 + $0x310] sm:$0xff]  ;;  %v4171_v58 = vld [vmem:[%s16019_s6 + $0x340] sm:$0xff] }
 0x468   :  { %7675 = vmatprep.subr.bf16.mxu0 %v7674_v62  ;;  %v4147_v62 = vld [vmem:[%s16019_s6 + $0x280] sm:$0xff] }
 0x469   :  { %v8340_v9 = vpop.eup %8339 }
 0x46a   :  { %v8342_v21 = vpop.eup %8341  ;;  %v3642_v34 = vmul.f32 %v8340_v9, %v3640_v45  ;;  %v7690_v9 = vpack.c.bf16 %v4160_v12, %v4154_v38  ;;  %v4138_v38 = vld [vmem:[%s16019_s6 + $0x238] sm:$0xff] }
 0x46b   :  { %7677 = vmatpush1.bf16.msra.mxu0 %v7676_v11  ;;  %v3643_v16 = vmul.f32 %v8342_v21, %v3641_v18  ;;  %v7732_v11 = vpack.c.bf16 %v4089_v14, %v4083_v26  ;;  %v4153_v18 = vld [vmem:[%s16019_s6 + $0x2b0] sm:$0xff]  ;;  %v4114_v21 = vld [vmem:[%s16019_s6 + $0x178] sm:$0xff]  ;;  %v7696_v26 = vpack.c.bf16 %v4171_v58, %v4165_v17  ;;  %v4119_v14 = vld [vmem:[%s16019_s6 + $0x1a0] sm:$0xff] }
 0x46c   :  { %7679 = vmatprep.subr.bf16.mxu0 %v7678_v31  ;;  %v14251_v56 = vadd.f32 %v3648_v57, %v3642_v34  ;;  %v4141_v57 = vld [vmem:[%s16019_s6 + $0x250] sm:$0xff]  ;;  %v4166_v34 = vld [vmem:[%s16019_s6 + $0x318] sm:$0xff]  ;;  %v7692_v59 = vpack.c.bf16 %v4159_v47, %v4153_v18  ;;  %v7738_v60 = vpack.c.bf16 %v4114_v21, %v4108_v50  ;;  %v4195_v50 = vld [vmem:[%s16019_s6 + $0x400] sm:$0xff] }
 0x46d   :  { %v14262_v39 = vadd.f32 %v3649_v6, %v3643_v16  ;;  %v4102_v6 = vld [vmem:[%s16019_s6 + $0x118] sm:$0xff]  ;;  %v7688_v31 = vpack.c.bf16 %v4147_v62, %v4141_v57  ;;  %v7736_v16 = vpack.c.bf16 %v4101_v41, %v4095_v37  ;;  %v7742_v57 = vpack.c.bf16 %v4126_v46, %v4120_v10  ;;  %v4131_v41 = vld [vmem:[%s16019_s6 + $0x200] sm:$0xff]  ;;  %v4189_v47 = vld [vmem:[%s16019_s6 + $0x3d0] sm:$0xff] }
 0x46e   :  { %3654 = vst [vmem:[#allocation2 + $0x10] sm:$0x30] %v14251_v56  ;;  %v14286_v3 = vrot.slane %v14251_v56, 4  ;;  %v7734_v45 = vpack.c.bf16 %v4102_v6, %v4096_v61  ;;  %v4177_v61 = vld [vmem:[%s16019_s6 + $0x370] sm:$0xff]  ;;  %v4132_v6 = vld [vmem:[%s16019_s6 + $0x208] sm:$0xff]  ;;  %v4190_v12 = vld [vmem:[%s16019_s6 + $0x3d8] sm:$0xff] }
 0x46f   :  { %7681 = vmatpush1.bf16.msra.mxu0 %v7680_v52  ;;  %3655 = vst [vmem:[#allocation2 + $0x18] sm:$0x30] %v14262_v39  ;;  %v4262_v23 = vrot.slane %v14262_v39, 4  ;;  %v4172_v52 = vld [vmem:[%s16019_s6 + $0x348] sm:$0xff]  ;;  %v4201_v58 = vld [vmem:[%s16019_s6 + $0x430] sm:$0xff]  ;;  %v4207_v10 = vld [vmem:[%s16019_s6 + $0x460] sm:$0xff] }
 0x470   :  { %7683 = vmatprep.subr.bf16.mxu0 %v7682_v63  ;;  %v4107_v63 = vld [vmem:[%s16019_s6 + $0x140] sm:$0xff]  ;;  %v7694_v32 = vpack.c.bf16 %v4172_v52, %v4166_v34  ;;  %v4144_v21 = vld [vmem:[%s16019_s6 + $0x268] sm:$0xff]  ;;  %v4150_v34 = vld [vmem:[%s16019_s6 + $0x298] sm:$0xff] }
 0x471   :  { %4329 = vmatprep.mubr.f32.mxu1 %v4262_v23  ;;  %4400 = vmatprep.mubr.f32.mxu0 %v4262_v23  ;;  %v4202_v52 = vld [vmem:[%s16019_s6 + $0x438] sm:$0xff]  ;;  %v4156_v46 = vld [vmem:[%s16019_s6 + $0x2c8] sm:$0xff] }
 0x472   :  { %4330 = vmatmul.mubr.f32.vlgmr.msra.gmra.mrb[20].mxu1 %v14286_v3 }
 0x473   :  { %7729 = vmatpush1.bf16.msra.mxu1 %v7728_v29  ;;  %7685 = vmatpush1.bf16.msra.mxu0 %v7684_v7  ;;  %v4184_v29 = vld [vmem:[%s16019_s6 + $0x3a8] sm:$0xff]  ;;  %v7740_v7 = vpack.c.bf16 %v4113_v30, %v4107_v63  ;;  %v7704_v63 = vpack.c.bf16 %v4195_v50, %v4189_v47  ;;  %v4143_v30 = vld [vmem:[%s16019_s6 + $0x260] sm:$0xff]  ;;  %v4225_v50 = vld [vmem:[%s16019_s6 + $0x4f0] sm:$0xff] }
 0x474   :  { %4471 = vmatprep.mubr.f32.mxu1 %v4262_v23  ;;  %7731 = vmatprep.subr.bf16.mxu1 %v7730_v28  ;;  %v4178_v23 = vld [vmem:[%s16019_s6 + $0x378] sm:$0xff]  ;;  %v4125_v28 = vld [vmem:[%s16019_s6 + $0x1d0] sm:$0xff] }
 0x475   :  { %7687 = vmatprep.subr.bf16.mxu0 %v7686_v48  ;;  %v7698_v62 = vpack.c.bf16 %v4184_v29, %v4178_v23  ;;  %v4183_v48 = vld [vmem:[%s16019_s6 + $0x3a0] sm:$0xff]  ;;  %v4162_v23 = vld [vmem:[%s16019_s6 + $0x2f8] sm:$0xff] }
 0x476   :  { %v7700_v37 = vpack.c.bf16 %v4183_v48, %v4177_v61  ;;  %v4214_v29 = vld [vmem:[%s16019_s6 + $0x498] sm:$0xff]  ;;  %v4213_v48 = vld [vmem:[%s16019_s6 + $0x490] sm:$0xff] }
 0x477   :  { %7733 = vmatpush1.bf16.msra.mxu1 %v7732_v11  ;;  %7689 = vmatpush1.bf16.msra.mxu0 %v7688_v31  ;;  %v4196_v11 = vld [vmem:[%s16019_s6 + $0x408] sm:$0xff]  ;;  %v7744_v31 = vpack.c.bf16 %v4125_v28, %v4119_v14  ;;  %v7708_v14 = vpack.c.bf16 %v4207_v10, %v4201_v58  ;;  %v4155_v28 = vld [vmem:[%s16019_s6 + $0x2c0] sm:$0xff]  ;;  %v4237_v10 = vld [vmem:[%s16019_s6 + $0x550] sm:$0xff] }
 0x478   :  { %7735 = vmatprep.subr.bf16.mxu1 %v7734_v45  ;;  %7691 = vmatprep.subr.bf16.mxu0 %v7690_v9  ;;  %v4137_v45 = vld [vmem:[%s16019_s6 + $0x230] sm:$0xff]  ;;  %v7746_v9 = vpack.c.bf16 %v4138_v38, %v4132_v6  ;;  %v7702_v18 = vpack.c.bf16 %v4196_v11, %v4190_v12  ;;  %v4219_v6 = vld [vmem:[%s16019_s6 + $0x4c0] sm:$0xff]  ;;  %v4168_v38 = vld [vmem:[%s16019_s6 + $0x328] sm:$0xff] }
 0x479   :  { %v4174_v12 = vld [vmem:[%s16019_s6 + $0x358] sm:$0xff] }
 0x47a   :  { %v4226_v11 = vld [vmem:[%s16019_s6 + $0x4f8] sm:$0xff] }
 0x47b   :  { %7737 = vmatpush1.bf16.msra.mxu1 %v7736_v16  ;;  %7693 = vmatpush1.bf16.msra.mxu0 %v7692_v59  ;;  %v4208_v16 = vld [vmem:[%s16019_s6 + $0x468] sm:$0xff]  ;;  %v7748_v59 = vpack.c.bf16 %v4137_v45, %v4131_v41  ;;  %v7712_v41 = vpack.c.bf16 %v4219_v6, %v4213_v48  ;;  %v4167_v45 = vld [vmem:[%s16019_s6 + $0x320] sm:$0xff]  ;;  %v4249_v6 = vld [vmem:[%s16019_s6 + $0x5b0] sm:$0xff] }
 0x47c   :  { %7739 = vmatprep.subr.bf16.mxu1 %v7738_v60  ;;  %7695 = vmatprep.subr.bf16.mxu0 %v7694_v32  ;;  %v4149_v60 = vld [vmem:[%s16019_s6 + $0x290] sm:$0xff]  ;;  %v7750_v32 = vpack.c.bf16 %v4150_v34, %v4144_v21  ;;  %v7706_v17 = vpack.c.bf16 %v4208_v16, %v4202_v52  ;;  %v4231_v21 = vld [vmem:[%s16019_s6 + $0x520] sm:$0xff]  ;;  %v4180_v34 = vld [vmem:[%s16019_s6 + $0x388] sm:$0xff] }
 0x47d   :  { %v4186_v52 = vld [vmem:[%s16019_s6 + $0x3b8] sm:$0xff] }
 0x47e   :  { %v4238_v16 = vld [vmem:[%s16019_s6 + $0x558] sm:$0xff] }
 0x47f   :  { %7741 = vmatpush1.bf16.msra.mxu1 %v7740_v7  ;;  %7697 = vmatpush1.bf16.msra.mxu0 %v7696_v26  ;;  %v4220_v7 = vld [vmem:[%s16019_s6 + $0x4c8] sm:$0xff]  ;;  %v7752_v26 = vpack.c.bf16 %v4149_v60, %v4143_v30  ;;  %v7716_v30 = vpack.c.bf16 %v4231_v21, %v4225_v50  ;;  %v4179_v60 = vld [vmem:[%s16019_s6 + $0x380] sm:$0xff] }
 0x480   :  { %7743 = vmatprep.subr.bf16.mxu1 %v7742_v57  ;;  %7699 = vmatprep.subr.bf16.mxu0 %v7698_v62  ;;  %v4161_v57 = vld [vmem:[%s16019_s6 + $0x2f0] sm:$0xff]  ;;  %v7754_v62 = vpack.c.bf16 %v4162_v23, %v4156_v46  ;;  %v7710_v61 = vpack.c.bf16 %v4220_v7, %v4214_v29  ;;  %v4243_v46 = vld [vmem:[%s16019_s6 + $0x580] sm:$0xff]  ;;  %v4192_v23 = vld [vmem:[%s16019_s6 + $0x3e8] sm:$0xff] }
 0x481   :  { %v4198_v29 = vld [vmem:[%s16019_s6 + $0x418] sm:$0xff]  ;;  %v4216_v50 = vld [vmem:[%s16019_s6 + $0x4a8] sm:$0xff] }
 0x482   :  { %v4250_v7 = vld [vmem:[%s16019_s6 + $0x5b8] sm:$0xff] }
 0x483   :  { %7745 = vmatpush1.bf16.msra.mxu1 %v7744_v31  ;;  %7701 = vmatpush1.bf16.msra.mxu0 %v7700_v37  ;;  %v4232_v31 = vld [vmem:[%s16019_s6 + $0x528] sm:$0xff]  ;;  %v7756_v37 = vpack.c.bf16 %v4161_v57, %v4155_v28  ;;  %v7720_v28 = vpack.c.bf16 %v4243_v46, %v4237_v10  ;;  %v4191_v57 = vld [vmem:[%s16019_s6 + $0x3e0] sm:$0xff] }
 0x484   :  { %7747 = vmatprep.subr.bf16.mxu1 %v7746_v9  ;;  %7703 = vmatprep.subr.bf16.mxu0 %v7702_v18  ;;  %v4173_v9 = vld [vmem:[%s16019_s6 + $0x350] sm:$0xff]  ;;  %v7758_v18 = vpack.c.bf16 %v4174_v12, %v4168_v38  ;;  %v7714_v47 = vpack.c.bf16 %v4232_v31, %v4226_v11  ;;  %v4255_v38 = vld [vmem:[%s16019_s6 + $0x5e0] sm:$0xff]  ;;  %v4204_v12 = vld [vmem:[%s16019_s6 + $0x448] sm:$0xff] }
 0x485   :  { %v4210_v11 = vld [vmem:[%s16019_s6 + $0x478] sm:$0xff]  ;;  %v4611_v31 = vld [vmem:[%s16018_s2 + $0x8] sm:$0xff] }
 0x486   :  { %v4228_v10 = vld [vmem:[%s16019_s6 + $0x508] sm:$0xff] }
 0x487   :  { %7749 = vmatpush1.bf16.msra.mxu1 %v7748_v59  ;;  %7705 = vmatpush1.bf16.msra.mxu0 %v7704_v63  ;;  %v4244_v59 = vld [vmem:[%s16019_s6 + $0x588] sm:$0xff]  ;;  %v7760_v63 = vpack.c.bf16 %v4173_v9, %v4167_v45  ;;  %v7724_v45 = vpack.c.bf16 %v4255_v38, %v4249_v6  ;;  %v4203_v9 = vld [vmem:[%s16019_s6 + $0x440] sm:$0xff] }
 0x488   :  { %7751 = vmatprep.subr.bf16.mxu1 %v7750_v32  ;;  %7707 = vmatprep.subr.bf16.mxu0 %v7706_v17  ;;  %v4185_v32 = vld [vmem:[%s16019_s6 + $0x3b0] sm:$0xff]  ;;  %v7762_v17 = vpack.c.bf16 %v4186_v52, %v4180_v34  ;;  %v7718_v58 = vpack.c.bf16 %v4244_v59, %v4238_v16  ;;  %v4610_v34 = vld [vmem:[%s16018_s2] sm:$0xff]  ;;  %v4222_v16 = vld [vmem:[%s16019_s6 + $0x4d8] sm:$0xff] }
 0x489   :  { %v4616_v52 = vld [vmem:[%s16018_s2 + $0x30] sm:$0xff]  ;;  %v4623_v59 = vld [vmem:[%s16018_s2 + $0x68] sm:$0xff] }
 0x48a   :  { %v4240_v6 = vld [vmem:[%s16019_s6 + $0x568] sm:$0xff] }
 0x48b   :  { %7753 = vmatpush1.bf16.msra.mxu1 %v7752_v26  ;;  %7709 = vmatpush1.bf16.msra.mxu0 %v7708_v14  ;;  %v4256_v26 = vld [vmem:[%s16019_s6 + $0x5e8] sm:$0xff]  ;;  %v7764_v14 = vpack.c.bf16 %v4185_v32, %v4179_v60  ;;  %v4215_v60 = vld [vmem:[%s16019_s6 + $0x4a0] sm:$0xff]  ;;  %v4221_v32 = vld [vmem:[%s16019_s6 + $0x4d0] sm:$0xff] }
 0x48c   :  { %7755 = vmatprep.subr.bf16.mxu1 %v7754_v62  ;;  %7711 = vmatprep.subr.bf16.mxu0 %v7710_v61  ;;  %v4197_v62 = vld [vmem:[%s16019_s6 + $0x410] sm:$0xff]  ;;  %v7766_v61 = vpack.c.bf16 %v4198_v29, %v4192_v23  ;;  %v7722_v48 = vpack.c.bf16 %v4256_v26, %v4250_v7  ;;  %v4622_v23 = vld [vmem:[%s16018_s2 + $0x60] sm:$0xff]  ;;  %v4234_v7 = vld [vmem:[%s16019_s6 + $0x538] sm:$0xff] }
 0x48d   :  { %v4628_v29 = vld [vmem:[%s16018_s2 + $0x90] sm:$0xff]  ;;  %v4635_v26 = vld [vmem:[%s16018_s2 + $0xc8] sm:$0xff] }
 0x48f   :  { %7757 = vmatpush1.bf16.msra.mxu1 %v7756_v37  ;;  %7713 = vmatpush1.bf16.msra.mxu0 %v7712_v41  ;;  %v4617_v37 = vld [vmem:[%s16018_s2 + $0x38] sm:$0xff]  ;;  %v7768_v41 = vpack.c.bf16 %v4197_v62, %v4191_v57  ;;  %v4227_v57 = vld [vmem:[%s16019_s6 + $0x500] sm:$0xff]  ;;  %v4233_v62 = vld [vmem:[%s16019_s6 + $0x530] sm:$0xff] }
 0x490   :  { %7759 = vmatprep.subr.bf16.mxu1 %v7758_v18  ;;  %7715 = vmatprep.subr.bf16.mxu0 %v7714_v47  ;;  %v4209_v18 = vld [vmem:[%s16019_s6 + $0x470] sm:$0xff]  ;;  %v7770_v47 = vpack.c.bf16 %v4210_v11, %v4204_v12  ;;  %v7790_v21 = vpack.c.bf16 %v4617_v37, %v4611_v31  ;;  %v4634_v12 = vld [vmem:[%s16018_s2 + $0xc0] sm:$0xff]  ;;  %v4246_v31 = vld [vmem:[%s16019_s6 + $0x598] sm:$0xff] }
 0x491   :  { %v4640_v11 = vld [vmem:[%s16018_s2 + $0xf0] sm:$0xff]  ;;  %v4647_v37 = vld [vmem:[%s16018_s2 + $0x128] sm:$0xff] }
 0x493   :  { %7761 = vmatpush1.bf16.msra.mxu1 %v7760_v63  ;;  %7717 = vmatpush1.bf16.msra.mxu0 %v7716_v30  ;;  %v4629_v63 = vld [vmem:[%s16018_s2 + $0x98] sm:$0xff]  ;;  %v7772_v30 = vpack.c.bf16 %v4209_v18, %v4203_v9  ;;  %v4239_v9 = vld [vmem:[%s16019_s6 + $0x560] sm:$0xff]  ;;  %v4245_v18 = vld [vmem:[%s16019_s6 + $0x590] sm:$0xff] }
 0x494   :  { %7763 = vmatprep.subr.bf16.mxu1 %v7762_v17  ;;  %7719 = vmatprep.subr.bf16.mxu0 %v7718_v58  ;;  %v7792_v17 = vpack.c.bf16 %v4616_v52, %v4610_v34  ;;  %v7774_v58 = vpack.c.bf16 %v4222_v16, %v4216_v50  ;;  %v7794_v46 = vpack.c.bf16 %v4629_v63, %v4623_v59  ;;  %v4646_v52 = vld [vmem:[%s16018_s2 + $0x120] sm:$0xff]  ;;  %v4652_v16 = vld [vmem:[%s16018_s2 + $0x150] sm:$0xff]  ;;  %v4258_v59 = vld [vmem:[%s16019_s6 + $0x5f8] sm:$0xff] }
 0x495   :  { %v7782_v50 = vpack.c.bf16 %v4246_v31, %v4240_v6  ;;  %v4659_v63 = vld [vmem:[%s16018_s2 + $0x188] sm:$0xff]  ;;  %v4676_v31 = vld [vmem:[%s16018_s2 + $0x210] sm:$0xff] }
 0x497   :  { %7765 = vmatpush1.bf16.msra.mxu1 %v7764_v14  ;;  %7721 = vmatpush1.bf16.msra.mxu0 %v7720_v28  ;;  %v4641_v14 = vld [vmem:[%s16018_s2 + $0xf8] sm:$0xff]  ;;  %v7776_v28 = vpack.c.bf16 %v4221_v32, %v4215_v60  ;;  %v7784_v60 = vpack.c.bf16 %v4245_v18, %v4239_v9  ;;  %v4251_v32 = vld [vmem:[%s16019_s6 + $0x5c0] sm:$0xff]  ;;  %v4624_v18 = vld [vmem:[%s16018_s2 + $0x70] sm:$0xff] }
 0x498   :  { %7767 = vmatprep.subr.bf16.mxu1 %v7766_v61  ;;  %7723 = vmatprep.subr.bf16.mxu0 %v7722_v48  ;;  %v7796_v61 = vpack.c.bf16 %v4628_v29, %v4622_v23  ;;  %v7778_v48 = vpack.c.bf16 %v4234_v7, %v4228_v10  ;;  %v7798_v38 = vpack.c.bf16 %v4641_v14, %v4635_v26  ;;  %v4658_v29 = vld [vmem:[%s16018_s2 + $0x180] sm:$0xff]  ;;  %v4664_v7 = vld [vmem:[%s16018_s2 + $0x1b0] sm:$0xff]  ;;  %v4619_v26 = vld [vmem:[%s16018_s2 + $0x48] sm:$0xff] }
 0x499   :  { %v4671_v14 = vld [vmem:[%s16018_s2 + $0x1e8] sm:$0xff] }
 0x49b   :  { %7769 = vmatpush1.bf16.msra.mxu1 %v7768_v41  ;;  %7725 = vmatpush1.bf16.msra.mxu0 %v7724_v45  ;;  %v4653_v41 = vld [vmem:[%s16018_s2 + $0x158] sm:$0xff]  ;;  %v7780_v45 = vpack.c.bf16 %v4233_v62, %v4227_v57  ;;  %v4612_v62 = vld [vmem:[%s16018_s2 + $0x10] sm:$0xff] }
 0x49c   :  { %7771 = vmatprep.subr.bf16.mxu1 %v7770_v47  ;;  %7791 = vmatprep.subr.bf16.mxu0 %v7790_v21  ;;  %v7800_v47 = vpack.c.bf16 %v4640_v11, %v4634_v12  ;;  %v4252_v21 = vld [vmem:[%s16019_s6 + $0x5c8] sm:$0xff]  ;;  %v7802_v34 = vpack.c.bf16 %v4653_v41, %v4647_v37  ;;  %v4670_v11 = vld [vmem:[%s16018_s2 + $0x1e0] sm:$0xff] }
 0x49d   :  { %v7786_v10 = vpack.c.bf16 %v4258_v59, %v4252_v21  ;;  %v4631_v37 = vld [vmem:[%s16018_s2 + $0xa8] sm:$0xff]  ;;  %v4688_v59 = vld [vmem:[%s16018_s2 + $0x270] sm:$0xff] }
 0x49e   :  { %4401 = vmatmul.mubr.f32.vlgmr.msra.gmra.mrb[22].mxu0 %v14286_v3  ;;  %v4683_v41 = vld [vmem:[%s16018_s2 + $0x248] sm:$0xff] }
 0x49f   :  { %7773 = vmatpush1.bf16.msra.mxu1 %v7772_v30  ;;  %7793 = vmatpush1.bf16.msra.mxu0 %v7792_v17  ;;  %v4665_v30 = vld [vmem:[%s16018_s2 + $0x1b8] sm:$0xff]  ;;  %v4257_v17 = vld [vmem:[%s16019_s6 + $0x5f0] sm:$0xff] }
 0x4a0   :  { %7775 = vmatprep.subr.bf16.mxu1 %v7774_v58  ;;  %7795 = vmatprep.subr.bf16.mxu0 %v7794_v46  ;;  %v7804_v58 = vpack.c.bf16 %v4652_v16, %v4646_v52  ;;  %v4613_v46 = vld [vmem:[%s16018_s2 + $0x18] sm:$0xff]  ;;  %v7806_v23 = vpack.c.bf16 %v4665_v30, %v4659_v63  ;;  %v7788_v57 = vpack.c.bf16 %v4257_v17, %v4251_v32  ;;  %v4682_v16 = vld [vmem:[%s16018_s2 + $0x240] sm:$0xff]  ;;  %v4643_v63 = vld [vmem:[%s16018_s2 + $0x108] sm:$0xff] }
 0x4a1   :  { %v7854_v6 = vpack.c.bf16 %v4619_v26, %v4613_v46  ;;  %v4695_v30 = vld [vmem:[%s16018_s2 + $0x2a8] sm:$0xff]  ;;  %v4636_v17 = vld [vmem:[%s16018_s2 + $0xd0] sm:$0xff] }
 0x4a2   :  { %v4655_v26 = vld [vmem:[%s16018_s2 + $0x168] sm:$0xff] }
 0x4a3   :  { %7777 = vmatpush1.bf16.msra.mxu1 %v7776_v28  ;;  %7797 = vmatpush1.bf16.msra.mxu0 %v7796_v61  ;;  %v4677_v28 = vld [vmem:[%s16018_s2 + $0x218] sm:$0xff]  ;;  %v4618_v61 = vld [vmem:[%s16018_s2 + $0x40] sm:$0xff] }
 0x4a4   :  { %7779 = vmatprep.subr.bf16.mxu1 %v7778_v48  ;;  %7799 = vmatprep.subr.bf16.mxu0 %v7798_v38  ;;  %v7808_v48 = vpack.c.bf16 %v4664_v7, %v4658_v29  ;;  %v4625_v38 = vld [vmem:[%s16018_s2 + $0x78] sm:$0xff]  ;;  %v7810_v12 = vpack.c.bf16 %v4677_v28, %v4671_v14  ;;  %v7856_v9 = vpack.c.bf16 %v4618_v61, %v4612_v62  ;;  %v4694_v29 = vld [vmem:[%s16018_s2 + $0x2a0] sm:$0xff]  ;;  %v4700_v7 = vld [vmem:[%s16018_s2 + $0x2d0] sm:$0xff] }
 0x4a5   :  { %v7858_v21 = vpack.c.bf16 %v4631_v37, %v4625_v38  ;;  %v4707_v14 = vld [vmem:[%s16018_s2 + $0x308] sm:$0xff]  ;;  %v4713_v28 = vld [vmem:[%s16018_s2 + $0x338] sm:$0xff]  ;;  %v4648_v62 = vld [vmem:[%s16018_s2 + $0x130] sm:$0xff] }
 0x4a6   :  { %v4654_v61 = vld [vmem:[%s16018_s2 + $0x160] sm:$0xff]  ;;  %v4661_v38 = vld [vmem:[%s16018_s2 + $0x198] sm:$0xff]  ;;  %v4667_v37 = vld [vmem:[%s16018_s2 + $0x1c8] sm:$0xff] }
 0x4a7   :  { %7781 = vmatpush1.bf16.msra.mxu1 %v7780_v45  ;;  %7801 = vmatpush1.bf16.msra.mxu0 %v7800_v47  ;;  %v4689_v45 = vld [vmem:[%s16018_s2 + $0x278] sm:$0xff]  ;;  %v4630_v47 = vld [vmem:[%s16018_s2 + $0xa0] sm:$0xff] }
 0x4a8   :  { %7783 = vmatprep.subr.bf16.mxu1 %v7782_v50  ;;  %7803 = vmatprep.subr.bf16.mxu0 %v7802_v34  ;;  %v7812_v50 = vpack.c.bf16 %v4676_v31, %v4670_v11  ;;  %v4637_v34 = vld [vmem:[%s16018_s2 + $0xd8] sm:$0xff]  ;;  %v7814_v52 = vpack.c.bf16 %v4689_v45, %v4683_v41  ;;  %v7860_v32 = vpack.c.bf16 %v4630_v47, %v4624_v18  ;;  %v4706_v11 = vld [vmem:[%s16018_s2 + $0x300] sm:$0xff]  ;;  %v4712_v31 = vld [vmem:[%s16018_s2 + $0x330] sm:$0xff] }
 0x4a9   :  { %v7862_v46 = vpack.c.bf16 %v4643_v63, %v4637_v34  ;;  %v4719_v41 = vld [vmem:[%s16018_s2 + $0x368] sm:$0xff]  ;;  %v4725_v45 = vld [vmem:[%s16018_s2 + $0x398] sm:$0xff]  ;;  %v4660_v18 = vld [vmem:[%s16018_s2 + $0x190] sm:$0xff] }
 0x4aa   :  { %v4666_v47 = vld [vmem:[%s16018_s2 + $0x1c0] sm:$0xff]  ;;  %v4673_v34 = vld [vmem:[%s16018_s2 + $0x1f8] sm:$0xff]  ;;  %v4679_v63 = vld [vmem:[%s16018_s2 + $0x228] sm:$0xff] }
 0x4ab   :  { %7785 = vmatpush1.bf16.msra.mxu1 %v7784_v60  ;;  %7805 = vmatpush1.bf16.msra.mxu0 %v7804_v58  ;;  %v4701_v60 = vld [vmem:[%s16018_s2 + $0x2d8] sm:$0xff]  ;;  %v4642_v58 = vld [vmem:[%s16018_s2 + $0x100] sm:$0xff] }
 0x4ac   :  { %7787 = vmatprep.subr.bf16.mxu1 %v7786_v10  ;;  %7807 = vmatprep.subr.bf16.mxu0 %v7806_v23  ;;  %v7816_v10 = vpack.c.bf16 %v4688_v59, %v4682_v16  ;;  %v4649_v23 = vld [vmem:[%s16018_s2 + $0x138] sm:$0xff]  ;;  %v4718_v16 = vld [vmem:[%s16018_s2 + $0x360] sm:$0xff]  ;;  %v4724_v59 = vld [vmem:[%s16018_s2 + $0x390] sm:$0xff] }
 0x4af   :  { %7789 = vmatpush1.bf16.msra.mxu1 %v7788_v57  ;;  %7809 = vmatpush1.bf16.msra.mxu0 %v7808_v48  ;;  %v7864_v57 = vpack.c.bf16 %v4642_v58, %v4636_v17  ;;  %v7820_v48 = vpack.c.bf16 %v4700_v7, %v4694_v29  ;;  %v4672_v17 = vld [vmem:[%s16018_s2 + $0x1f0] sm:$0xff]  ;;  %v4678_v58 = vld [vmem:[%s16018_s2 + $0x220] sm:$0xff] }
 0x4b0   :  { %7855 = vmatprep.subr.bf16.mxu1 %v7854_v6  ;;  %7811 = vmatprep.subr.bf16.mxu0 %v7810_v12  ;;  %v7866_v6 = vpack.c.bf16 %v4655_v26, %v4649_v23  ;;  %v7822_v12 = vpack.c.bf16 %v4713_v28, %v4707_v14  ;;  %v4685_v23 = vld [vmem:[%s16018_s2 + $0x258] sm:$0xff]  ;;  %v4730_v29 = vld [vmem:[%s16018_s2 + $0x3c0] sm:$0xff]  ;;  %v4736_v7 = vld [vmem:[%s16018_s2 + $0x3f0] sm:$0xff] }
 0x4b1   :  { %v4691_v26 = vld [vmem:[%s16018_s2 + $0x288] sm:$0xff]  ;;  %v4749_v28 = vld [vmem:[%s16018_s2 + $0x458] sm:$0xff] }
 0x4b2   :  { %4472 = vmatmul.mubr.f32.vlgmr.msra.gmra.mrb[22].mxu1 %v14286_v3  ;;  %v7818_v3 = vpack.c.bf16 %v4701_v60, %v4695_v30  ;;  %v4731_v30 = vld [vmem:[%s16018_s2 + $0x3c8] sm:$0xff]  ;;  %v4737_v60 = vld [vmem:[%s16018_s2 + $0x3f8] sm:$0xff] }
 0x4b3   :  { %7857 = vmatpush1.bf16.msra.mxu1 %v7856_v9  ;;  %7813 = vmatpush1.bf16.msra.mxu0 %v7812_v50  ;;  %v7868_v9 = vpack.c.bf16 %v4654_v61, %v4648_v62  ;;  %v7824_v50 = vpack.c.bf16 %v4712_v31, %v4706_v11  ;;  %v4743_v14 = vld [vmem:[%s16018_s2 + $0x428] sm:$0xff]  ;;  %v4684_v62 = vld [vmem:[%s16018_s2 + $0x250] sm:$0xff]  ;;  %v4690_v61 = vld [vmem:[%s16018_s2 + $0x280] sm:$0xff] }
 0x4b4   :  { %7859 = vmatprep.subr.bf16.mxu1 %v7858_v21  ;;  %7815 = vmatprep.subr.bf16.mxu0 %v7814_v52  ;;  %v7870_v21 = vpack.c.bf16 %v4667_v37, %v4661_v38  ;;  %v7826_v52 = vpack.c.bf16 %v4725_v45, %v4719_v41  ;;  %v4697_v38 = vld [vmem:[%s16018_s2 + $0x2b8] sm:$0xff]  ;;  %v4742_v11 = vld [vmem:[%s16018_s2 + $0x420] sm:$0xff]  ;;  %v4748_v31 = vld [vmem:[%s16018_s2 + $0x450] sm:$0xff] }
 0x4b5   :  { %v4703_v37 = vld [vmem:[%s16018_s2 + $0x2e8] sm:$0xff]  ;;  %v4761_v45 = vld [vmem:[%s16018_s2 + $0x4b8] sm:$0xff] }
 0x4b6   :  { %v4755_v41 = vld [vmem:[%s16018_s2 + $0x488] sm:$0xff] }
 0x4b7   :  { %7861 = vmatpush1.bf16.msra.mxu1 %v7860_v32  ;;  %7817 = vmatpush1.bf16.msra.mxu0 %v7816_v10  ;;  %v7872_v32 = vpack.c.bf16 %v4666_v47, %v4660_v18  ;;  %v7828_v10 = vpack.c.bf16 %v4724_v59, %v4718_v16  ;;  %v4696_v18 = vld [vmem:[%s16018_s2 + $0x2b0] sm:$0xff]  ;;  %v4702_v47 = vld [vmem:[%s16018_s2 + $0x2e0] sm:$0xff] }
 0x4b8   :  { %7863 = vmatprep.subr.bf16.mxu1 %v7862_v46  ;;  %7819 = vmatprep.subr.bf16.mxu0 %v7818_v3  ;;  %v7874_v46 = vpack.c.bf16 %v4679_v63, %v4673_v34  ;;  %v7830_v3 = vpack.c.bf16 %v4737_v60, %v4731_v30  ;;  %v4709_v34 = vld [vmem:[%s16018_s2 + $0x318] sm:$0xff]  ;;  %v4754_v16 = vld [vmem:[%s16018_s2 + $0x480] sm:$0xff]  ;;  %v4760_v59 = vld [vmem:[%s16018_s2 + $0x4b0] sm:$0xff] }
 0x4b9   :  { %v4715_v63 = vld [vmem:[%s16018_s2 + $0x348] sm:$0xff]  ;;  %v4773_v60 = vld [vmem:[%s16018_s2 + $0x518] sm:$0xff] }
 0x4ba   :  { %v4767_v30 = vld [vmem:[%s16018_s2 + $0x4e8] sm:$0xff] }
 0x4bb   :  { %7865 = vmatpush1.bf16.msra.mxu1 %v7864_v57  ;;  %7821 = vmatpush1.bf16.msra.mxu0 %v7820_v48  ;;  %v7876_v57 = vpack.c.bf16 %v4678_v58, %v4672_v17  ;;  %v7832_v48 = vpack.c.bf16 %v4736_v7, %v4730_v29  ;;  %v4708_v17 = vld [vmem:[%s16018_s2 + $0x310] sm:$0xff]  ;;  %v4714_v58 = vld [vmem:[%s16018_s2 + $0x340] sm:$0xff] }
 0x4bc   :  { %7867 = vmatprep.subr.bf16.mxu1 %v7866_v6  ;;  %7823 = vmatprep.subr.bf16.mxu0 %v7822_v12  ;;  %v7878_v6 = vpack.c.bf16 %v4691_v26, %v4685_v23  ;;  %v7834_v12 = vpack.c.bf16 %v4749_v28, %v4743_v14  ;;  %v4721_v23 = vld [vmem:[%s16018_s2 + $0x378] sm:$0xff]  ;;  %v4766_v29 = vld [vmem:[%s16018_s2 + $0x4e0] sm:$0xff]  ;;  %v4772_v7 = vld [vmem:[%s16018_s2 + $0x510] sm:$0xff] }
 0x4bd   :  { %v4727_v26 = vld [vmem:[%s16018_s2 + $0x3a8] sm:$0xff]  ;;  %v4785_v28 = vld [vmem:[%s16018_s2 + $0x578] sm:$0xff] }
 0x4be   :  { %v4779_v14 = vld [vmem:[%s16018_s2 + $0x548] sm:$0xff] }
 0x4bf   :  { %7869 = vmatpush1.bf16.msra.mxu1 %v7868_v9  ;;  %7825 = vmatpush1.bf16.msra.mxu0 %v7824_v50  ;;  %v7880_v9 = vpack.c.bf16 %v4690_v61, %v4684_v62  ;;  %v7836_v50 = vpack.c.bf16 %v4748_v31, %v4742_v11  ;;  %v4720_v62 = vld [vmem:[%s16018_s2 + $0x370] sm:$0xff]  ;;  %v4726_v61 = vld [vmem:[%s16018_s2 + $0x3a0] sm:$0xff] }
 0x4c0   :  { %7871 = vmatprep.subr.bf16.mxu1 %v7870_v21  ;;  %7827 = vmatprep.subr.bf16.mxu0 %v7826_v52  ;;  %v7882_v21 = vpack.c.bf16 %v4703_v37, %v4697_v38  ;;  %v7838_v52 = vpack.c.bf16 %v4761_v45, %v4755_v41  ;;  %v4733_v38 = vld [vmem:[%s16018_s2 + $0x3d8] sm:$0xff]  ;;  %v4778_v11 = vld [vmem:[%s16018_s2 + $0x540] sm:$0xff]  ;;  %v4784_v31 = vld [vmem:[%s16018_s2 + $0x570] sm:$0xff] }
 0x4c1   :  { %v4739_v37 = vld [vmem:[%s16018_s2 + $0x408] sm:$0xff]  ;;  %v4797_v45 = vld [vmem:[%s16018_s2 + $0x5d8] sm:$0xff] }
 0x4c2   :  { %v4791_v41 = vld [vmem:[%s16018_s2 + $0x5a8] sm:$0xff] }
 0x4c3   :  { %7873 = vmatpush1.bf16.msra.mxu1 %v7872_v32  ;;  %7829 = vmatpush1.bf16.msra.mxu0 %v7828_v10  ;;  %v7884_v32 = vpack.c.bf16 %v4702_v47, %v4696_v18  ;;  %v7840_v10 = vpack.c.bf16 %v4760_v59, %v4754_v16  ;;  %v4732_v18 = vld [vmem:[%s16018_s2 + $0x3d0] sm:$0xff]  ;;  %v4738_v47 = vld [vmem:[%s16018_s2 + $0x400] sm:$0xff] }
 0x4c4   :  { %7875 = vmatprep.subr.bf16.mxu1 %v7874_v46  ;;  %7831 = vmatprep.subr.bf16.mxu0 %v7830_v3  ;;  %v7886_v46 = vpack.c.bf16 %v4715_v63, %v4709_v34  ;;  %v7842_v3 = vpack.c.bf16 %v4773_v60, %v4767_v30  ;;  %v4745_v34 = vld [vmem:[%s16018_s2 + $0x438] sm:$0xff]  ;;  %v4790_v16 = vld [vmem:[%s16018_s2 + $0x5a0] sm:$0xff]  ;;  %v4796_v59 = vld [vmem:[%s16018_s2 + $0x5d0] sm:$0xff] }
 0x4c5   :  { %v4751_v63 = vld [vmem:[%s16018_s2 + $0x468] sm:$0xff]  ;;  %v4621_v60 = vld [vmem:[%s16018_s2 + $0x58] sm:$0xff] }
 0x4c6   :  { %v4615_v30 = vld [vmem:[%s16018_s2 + $0x28] sm:$0xff] }
 0x4c7   :  { %7877 = vmatpush1.bf16.msra.mxu1 %v7876_v57  ;;  %7833 = vmatpush1.bf16.msra.mxu0 %v7832_v48  ;;  %v7888_v57 = vpack.c.bf16 %v4714_v58, %v4708_v17  ;;  %v7844_v48 = vpack.c.bf16 %v4772_v7, %v4766_v29  ;;  %v7852_v17 = vpack.c.bf16 %v4796_v59, %v4790_v16  ;;  %v4763_v29 = vld [vmem:[%s16018_s2 + $0x4c8] sm:$0xff]  ;;  %v5028_v16 = vld [vmem:[%s16019_s6 + $0x38] sm:$0xff] }
 0x4c8   :  { %7879 = vmatprep.subr.bf16.mxu1 %v7878_v6  ;;  %7835 = vmatprep.subr.bf16.mxu0 %v7834_v12  ;;  %v7890_v6 = vpack.c.bf16 %v4727_v26, %v4721_v23  ;;  %v7846_v12 = vpack.c.bf16 %v4785_v28, %v4779_v14  ;;  %v7898_v58 = vpack.c.bf16 %v4751_v63, %v4745_v34  ;;  %v4756_v14 = vld [vmem:[%s16018_s2 + $0x490] sm:$0xff]  ;;  %v4762_v28 = vld [vmem:[%s16018_s2 + $0x4c0] sm:$0xff] }
 0x4c9   :  { %v7918_v23 = vpack.c.bf16 %v4621_v60, %v4615_v30  ;;  %v4798_v34 = vld [vmem:[%s16018_s2 + $0x5e0] sm:$0xff] }
 0x4cb   :  { %7881 = vmatpush1.bf16.msra.mxu1 %v7880_v9  ;;  %7837 = vmatpush1.bf16.msra.mxu0 %v7836_v50  ;;  %v7892_v9 = vpack.c.bf16 %v4726_v61, %v4720_v62  ;;  %v7848_v50 = vpack.c.bf16 %v4784_v31, %v4778_v11  ;;  %v4775_v62 = vld [vmem:[%s16018_s2 + $0x528] sm:$0xff]  ;;  %v7904_v61 = vpack.c.bf16 %v4762_v28, %v4756_v14 }
 0x4cc   :  { %7883 = vmatprep.subr.bf16.mxu1 %v7882_v21  ;;  %7839 = vmatprep.subr.bf16.mxu0 %v7838_v52  ;;  %v7894_v21 = vpack.c.bf16 %v4739_v37, %v4733_v38  ;;  %v7850_v52 = vpack.c.bf16 %v4797_v45, %v4791_v41  ;;  %v4774_v38 = vld [vmem:[%s16018_s2 + $0x520] sm:$0xff]  ;;  %v4787_v11 = vld [vmem:[%s16018_s2 + $0x588] sm:$0xff]  ;;  %v4780_v41 = vld [vmem:[%s16018_s2 + $0x550] sm:$0xff] }
 0x4cd   :  { %v4786_v45 = vld [vmem:[%s16018_s2 + $0x580] sm:$0xff] }
 0x4cf   :  { %7885 = vmatpush1.bf16.msra.mxu1 %v7884_v32  ;;  %7841 = vmatpush1.bf16.msra.mxu0 %v7840_v10  ;;  %v7896_v32 = vpack.c.bf16 %v4738_v47, %v4732_v18  ;;  %v4744_v10 = vld [vmem:[%s16018_s2 + $0x430] sm:$0xff]  ;;  %v4799_v18 = vld [vmem:[%s16018_s2 + $0x5e8] sm:$0xff]  ;;  %v7912_v47 = vpack.c.bf16 %v4786_v45, %v4780_v41  ;;  %v4535_v41 = vrot.slane %v13786_v20, 6 }
 0x4d0   :  { %7887 = vmatprep.subr.bf16.mxu1 %v7886_v46  ;;  %7843 = vmatprep.subr.bf16.mxu0 %v7842_v3  ;;  %v4750_v46 = vld [vmem:[%s16018_s2 + $0x460] sm:$0xff]  ;;  %v4757_v3 = vld [vmem:[%s16018_s2 + $0x498] sm:$0xff] }
 0x4d1   :  { %v7900_v7 = vpack.c.bf16 %v4750_v46, %v4744_v10  ;;  %v7902_v26 = vpack.c.bf16 %v4763_v29, %v4757_v3 }
 0x4d3   :  { %7889 = vmatpush1.bf16.msra.mxu1 %v7888_v57  ;;  %7845 = vmatpush1.bf16.msra.mxu0 %v7844_v48  ;;  %v4769_v57 = vld [vmem:[%s16018_s2 + $0x4f8] sm:$0xff] }
 0x4d4   :  { %7891 = vmatprep.subr.bf16.mxu1 %v7890_v6  ;;  %7847 = vmatprep.subr.bf16.mxu0 %v7846_v12  ;;  %v7906_v48 = vpack.c.bf16 %v4775_v62, %v4769_v57  ;;  %v4768_v6 = vld [vmem:[%s16018_s2 + $0x4f0] sm:$0xff]  ;;  %v4781_v12 = vld [vmem:[%s16018_s2 + $0x558] sm:$0xff] }
 0x4d5   :  { %v7908_v31 = vpack.c.bf16 %v4774_v38, %v4768_v6  ;;  %v7910_v37 = vpack.c.bf16 %v4787_v11, %v4781_v12  ;;  %v4534_v12 = vrot.slane %v13775_v1, 6 }
 0x4d7   :  { %7893 = vmatpush1.bf16.msra.mxu1 %v7892_v9  ;;  %7849 = vmatpush1.bf16.msra.mxu0 %v7848_v50  ;;  %v4793_v9 = vld [vmem:[%s16018_s2 + $0x5b8] sm:$0xff] }
 0x4d8   :  { %7895 = vmatprep.subr.bf16.mxu1 %v7894_v21  ;;  %7851 = vmatprep.subr.bf16.mxu0 %v7850_v52  ;;  %v7914_v50 = vpack.c.bf16 %v4799_v18, %v4793_v9  ;;  %v4792_v21 = vld [vmem:[%s16018_s2 + $0x5b0] sm:$0xff]  ;;  %v5022_v52 = vld [vmem:[%s16019_s6 + $0x8] sm:$0xff] }
 0x4d9   :  { %v7916_v59 = vpack.c.bf16 %v4798_v34, %v4792_v21  ;;  %v7982_v63 = vpack.c.bf16 %v5028_v16, %v5022_v52 }
 0x4db   :  { %7897 = vmatpush1.bf16.msra.mxu1 %v7896_v32  ;;  %7853 = vmatpush1.bf16.msra.mxu0 %v7852_v17 }
 0x4dc   :  { %7899 = vmatprep.subr.bf16.mxu1 %v7898_v58  ;;  %7919 = vmatprep.subr.bf16.mxu0 %v7918_v23 }
 0x4df   :  { %7901 = vmatpush1.bf16.msra.mxu1 %v7900_v7 }
 0x4e0   :  { %7903 = vmatprep.subr.bf16.mxu1 %v7902_v26 }
 0x4e3   :  { %7905 = vmatpush1.bf16.msra.mxu1 %v7904_v61 }
 0x4e4   :  { %7907 = vmatprep.subr.bf16.mxu1 %v7906_v48 }
 0x4e7   :  { %7909 = vmatpush1.bf16.msra.mxu1 %v7908_v31 }
 0x4e8   :  { %7911 = vmatprep.subr.bf16.mxu1 %v7910_v37 }
 0x4eb   :  { %7913 = vmatpush1.bf16.msra.mxu1 %v7912_v47 }
 0x4ec   :  { %7915 = vmatprep.subr.bf16.mxu1 %v7914_v50 }
 0x4ef   :  { %7917 = vmatpush1.bf16.msra.mxu1 %v7916_v59 }
 0x4f0   :  { %7983 = vmatprep.subr.bf16.mxu1 %v7982_v63 }
 0x4f1   :  { %v3920_v30 = vpop.f32.mrb[18].mxu0  ;;  %v3991_v60 = vpop.f32.mrb[18].mxu1 }
 0x4f2   :  { %v3992_v32 = vadd.f32 %v3991_v60, %v12453_v49  ;;  %v3922_v17 = vpop.f32.mrb[19].mxu0  ;;  %v3993_v58 = vpop.f32.mrb[19].mxu1  ;;  %v3921_v61 = vadd.f32 %v3920_v30, %v12431_v33 }
 0x4f3   :  { %v3994_v10 = vadd.f32 %v3993_v58, %v12456_v51  ;;  %v3923_v48 = vadd.f32 %v3922_v17, %v12434_v35 }
 0x4f4   :  { %v4500_v46 = vrot.slane %v3992_v32, 4  ;;  %v4480_v6 = vrot.slane %v3921_v61, 4 }
 0x4f5   :  { %v4501_v23 = vrot.slane %v3994_v10, 4  ;;  %v4481_v38 = vrot.slane %v3923_v48, 4  ;;  %v4614_v48 = vld [vmem:[%s16018_s2 + $0x20] sm:$0xff] }
 0x4f6   :  { %v4504_v3 = vadd.f32 %v12463_v54, %v4500_v46  ;;  %v4484_v31 = vadd.f32 %v12441_v42, %v4480_v6  ;;  %v4620_v6 = vld [vmem:[%s16018_s2 + $0x50] sm:$0xff] }
 0x4f7   :  { %v4505_v29 = vadd.f32 %v12466_v55, %v4501_v23  ;;  %v4485_v37 = vadd.f32 %v12444_v44, %v4481_v38  ;;  %v4627_v38 = vld [vmem:[%s16018_s2 + $0x88] sm:$0xff] }
 0x4f8   :  { %v5785_v7 = vmul.f32 -1.442695, %v4504_v3  ;;  %v5783_v47 = vmul.f32 -1.442695, %v4484_v31  ;;  %v5021_v31 = vld [vmem:[%s16019_s6] sm:$0xff] }
 0x4f9   :  { %v5786_v26 = vmul.f32 -1.442695, %v4505_v29  ;;  %v5784_v50 = vmul.f32 -1.442695, %v4485_v37  ;;  %v5027_v37 = vld [vmem:[%s16019_s6 + $0x30] sm:$0xff] }
 0x4fa   :  { %8343 = vpow2.f32 %v5785_v7 }
 0x4fb   :  { %8345 = vpow2.f32 %v5786_v26 }
 0x504   :  { %v8344_v14 = vpop.eup %8343 }
 0x505   :  { %v4512_v28 = vadd.f32 1.0, %v8344_v14  ;;  %v8346_v57 = vpop.eup %8345 }
 0x506   :  { %v4513_v62 = vadd.f32 1.0, %v8346_v57 }
 0x507   :  { %8347 = vrcp.f32 %v4512_v28 }
 0x508   :  { %8349 = vrcp.f32 %v4513_v62 }
 0x509   :  { %8351 = vpow2.f32 %v5783_v47 }
 0x50a   :  { %8353 = vpow2.f32 %v5784_v50 }
 0x511   :  { %v8348_v11 = vpop.eup %8347 }
 0x512   :  { %v4538_v45 = vmul.f32 %v8348_v11, %v4534_v12  ;;  %v8350_v9 = vpop.eup %8349  ;;  %v4530_v3 = vsub.f32 1.0, %v8348_v11  ;;  %v4633_v11 = vld [vmem:[%s16018_s2 + $0xb8] sm:$0xff] }
 0x513   :  { %v4539_v18 = vmul.f32 %v8350_v9, %v4535_v41  ;;  %v8352_v21 = vpop.eup %8351  ;;  %v4531_v7 = vsub.f32 1.0, %v8350_v9  ;;  %v5034_v41 = vld [vmem:[%s16019_s6 + $0x68] sm:$0xff]  ;;  %v7922_v50 = vpack.c.bf16 %v4633_v11, %v4627_v38  ;;  %v4650_v38 = vld [vmem:[%s16018_s2 + $0x140] sm:$0xff]  ;;  %v4656_v11 = vld [vmem:[%s16018_s2 + $0x170] sm:$0xff] }
 0x514   :  { %v8354_v34 = vpop.eup %8353  ;;  %v4492_v52 = vadd.f32 1.0, %v8352_v21  ;;  %v4626_v21 = vld [vmem:[%s16018_s2 + $0x80] sm:$0xff] }
 0x515   :  { %v4493_v16 = vadd.f32 1.0, %v8354_v34  ;;  %v4632_v34 = vld [vmem:[%s16018_s2 + $0xb0] sm:$0xff] }
 0x516   :  { %8355 = vrcp.f32 %v4492_v52  ;;  %v4639_v52 = vld [vmem:[%s16018_s2 + $0xe8] sm:$0xff] }
 0x517   :  { %8357 = vrcp.f32 %v4493_v16  ;;  %v7984_v16 = vpack.c.bf16 %v5027_v37, %v5021_v31  ;;  %v4663_v31 = vld [vmem:[%s16018_s2 + $0x1a8] sm:$0xff] }
 0x520   :  { %v8356_v60 = vpop.eup %8355 }
 0x521   :  { %v8358_v17 = vpop.eup %8357 }
 0x531   :  { %v4062_v1 = vpop.f32.mrb[20].mxu0 }
 0x532   :  { %v4063_v59 = vadd.f32 %v4062_v1, %v12475_v4  ;;  %v4064_v63 = vpop.f32.mrb[21].mxu0  ;;  %v4645_v1 = vld [vmem:[%s16018_s2 + $0x118] sm:$0xff] }
 0x533   :  { %v4065_v30 = vadd.f32 %v4064_v63, %v12478_v5  ;;  %v5033_v63 = vld [vmem:[%s16019_s6 + $0x60] sm:$0xff] }
 0x534   :  { %v4520_v20 = vrot.slane %v4063_v59, 4 }
 0x535   :  { %v4521_v32 = vrot.slane %v4065_v30, 4  ;;  %v5039_v30 = vld [vmem:[%s16019_s6 + $0x90] sm:$0xff] }
 0x536   :  { %v4524_v58 = vmul.f32 %v8356_v60, %v4520_v20  ;;  %v5046_v20 = vld [vmem:[%s16019_s6 + $0xc8] sm:$0xff]  ;;  %v5052_v60 = vld [vmem:[%s16019_s6 + $0xf8] sm:$0xff] }
 0x537   :  { %v4525_v10 = vmul.f32 %v8358_v17, %v4521_v32  ;;  %v7924_v32 = vpack.c.bf16 %v4632_v34, %v4626_v21  ;;  %v7926_v17 = vpack.c.bf16 %v4645_v1, %v4639_v52  ;;  %v5076_v21 = vld [vmem:[%s16019_s6 + $0x1b8] sm:$0xff]  ;;  %v7932_v34 = vpack.c.bf16 %v4656_v11, %v4650_v38  ;;  %v4668_v1 = vld [vmem:[%s16018_s2 + $0x1d0] sm:$0xff] }
 0x538   :  { %v4526_v46 = vadd.f32 %v12489_v25, %v4524_v58  ;;  %v4638_v58 = vld [vmem:[%s16018_s2 + $0xe0] sm:$0xff]  ;;  %v5100_v38 = vld [vmem:[%s16019_s6 + $0x278] sm:$0xff] }
 0x539   :  { %v4527_v23 = vadd.f32 %v12492_v27, %v4525_v10  ;;  %v4644_v10 = vld [vmem:[%s16018_s2 + $0x110] sm:$0xff] }
 0x53a   :  { %8359 = vtanh.f32 %v4526_v46  ;;  %v4651_v46 = vld [vmem:[%s16018_s2 + $0x148] sm:$0xff] }
 0x53b   :  { %8361 = vtanh.f32 %v4527_v23  ;;  %v7988_v23 = vpack.c.bf16 %v5039_v30, %v5033_v63  ;;  %v4681_v30 = vld [vmem:[%s16018_s2 + $0x238] sm:$0xff] }
 0x544   :  { %v8360_v29 = vpop.eup %8359 }
 0x545   :  { %v8362_v26 = vpop.eup %8361  ;;  %v14983_v14 = vpop.f32.mrb[20].mxu1  ;;  %v4532_v28 = vmul.f32 %v8360_v29, %v4530_v3  ;;  %v4657_v3 = vld [vmem:[%s16018_s2 + $0x178] sm:$0xff]  ;;  %v7990_v29 = vpack.c.bf16 %v5052_v60, %v5046_v20  ;;  %v5069_v60 = vld [vmem:[%s16019_s6 + $0x180] sm:$0xff] }
 0x546   :  { %v14985_v57 = vpop.f32.mrb[21].mxu1  ;;  %v4533_v62 = vmul.f32 %v8362_v26, %v4531_v7  ;;  %v5045_v7 = vld [vmem:[%s16019_s6 + $0xc0] sm:$0xff]  ;;  %v5051_v26 = vld [vmem:[%s16019_s6 + $0xf0] sm:$0xff]  ;;  %v4332_v11 = vadd.f32 %v14983_v14, %v12531_v0 }
 0x547   :  { %v14987_v61 = vadd.f32 %v4538_v45, %v4532_v28  ;;  %v5040_v45 = vld [vmem:[%s16019_s6 + $0x98] sm:$0xff]  ;;  %v5058_v28 = vld [vmem:[%s16019_s6 + $0x128] sm:$0xff]  ;;  %v7992_v37 = vpack.c.bf16 %v5051_v26, %v5045_v7 }
 0x548   :  { %v14998_v12 = vadd.f32 %v4539_v18, %v4533_v62  ;;  %v7920_v18 = vpack.c.bf16 %v4620_v6, %v4614_v48  ;;  %v7986_v59 = vpack.c.bf16 %v5040_v45, %v5034_v41  ;;  %v5064_v62 = vld [vmem:[%s16019_s6 + $0x158] sm:$0xff]  ;;  %v7928_v48 = vpack.c.bf16 %v4644_v10, %v4638_v58 }
 0x549   :  { %4606 = vst [vmem:[#allocation2] sm:$0x30] %v14987_v61  ;;  %v15019_v47 = vrot.slane %v14987_v61, 4  ;;  %v7930_v6 = vpack.c.bf16 %v4657_v3, %v4651_v46  ;;  %v4669_v41 = vld [vmem:[%s16018_s2 + $0x1d8] sm:$0xff]  ;;  %v7994_v45 = vpack.c.bf16 %v5064_v62, %v5058_v28  ;;  %v4680_v3 = vld [vmem:[%s16018_s2 + $0x230] sm:$0xff]  ;;  %v5081_v62 = vld [vmem:[%s16019_s6 + $0x1e0] sm:$0xff] }
 0x54a   :  { %4607 = vst [vmem:[#allocation2 + $0x8] sm:$0x30] %v14998_v12  ;;  %v4805_v9 = vrot.slane %v14998_v12, 4  ;;  %v7934_v52 = vpack.c.bf16 %v4669_v41, %v4663_v31  ;;  %v5088_v58 = vld [vmem:[%s16019_s6 + $0x218] sm:$0xff] }
 0x54b   :  { %v4693_v26 = vld [vmem:[%s16018_s2 + $0x298] sm:$0xff] }
 0x54c   :  { %4872 = vmatprep.mubr.f32.mxu0 %v4805_v9  ;;  %4943 = vmatprep.mubr.f32.mxu1 %v4805_v9 }
 0x54d   :  { %4873 = vmatmul.mubr.f32.vlgmr.msra.gmra.mrb[24].mxu0 %v15019_v47  ;;  %4944 = vmatmul.mubr.f32.vlgmr.msra.gmra.mrb[24].mxu1 %v15019_v47 }
 0x54e   :  { %7921 = vmatpush1.bf16.msra.mxu0 %v7920_v18  ;;  %5014 = vmatprep.mubr.f32.mxu0 %v4805_v9  ;;  %v5057_v9 = vld [vmem:[%s16019_s6 + $0x120] sm:$0xff]  ;;  %v5063_v18 = vld [vmem:[%s16019_s6 + $0x150] sm:$0xff] }
 0x54f   :  { %7923 = vmatprep.subr.bf16.mxu0 %v7922_v50  ;;  %7985 = vmatpush1.bf16.msra.mxu1 %v7984_v16  ;;  %v5070_v50 = vld [vmem:[%s16019_s6 + $0x188] sm:$0xff]  ;;  %v4662_v16 = vld [vmem:[%s16018_s2 + $0x1a0] sm:$0xff]  ;;  %v7996_v63 = vpack.c.bf16 %v5063_v18, %v5057_v9  ;;  %v4692_v9 = vld [vmem:[%s16018_s2 + $0x290] sm:$0xff] }
 0x550   :  { %7987 = vmatprep.subr.bf16.mxu1 %v7986_v59  ;;  %v4675_v59 = vld [vmem:[%s16018_s2 + $0x208] sm:$0xff]  ;;  %v7998_v20 = vpack.c.bf16 %v5076_v21, %v5070_v50  ;;  %v7936_v10 = vpack.c.bf16 %v4668_v1, %v4662_v16  ;;  %v5093_v21 = vld [vmem:[%s16019_s6 + $0x240] sm:$0xff]  ;;  %v5112_v16 = vld [vmem:[%s16019_s6 + $0x2d8] sm:$0xff]  ;;  %v4544_v1 = vrot.slane %v4332_v11, 6 }
 0x551   :  { %v7938_v46 = vpack.c.bf16 %v4681_v30, %v4675_v59  ;;  %v4699_v18 = vld [vmem:[%s16018_s2 + $0x2c8] sm:$0xff] }
 0x552   :  { %7925 = vmatpush1.bf16.msra.mxu0 %v7924_v32  ;;  %v5075_v32 = vld [vmem:[%s16019_s6 + $0x1b0] sm:$0xff] }
 0x553   :  { %7927 = vmatprep.subr.bf16.mxu0 %v7926_v17  ;;  %7989 = vmatpush1.bf16.msra.mxu1 %v7988_v23  ;;  %v5082_v17 = vld [vmem:[%s16019_s6 + $0x1e8] sm:$0xff]  ;;  %v4674_v23 = vld [vmem:[%s16018_s2 + $0x200] sm:$0xff]  ;;  %v8000_v7 = vpack.c.bf16 %v5075_v32, %v5069_v60  ;;  %v4704_v60 = vld [vmem:[%s16018_s2 + $0x2f0] sm:$0xff] }
 0x554   :  { %7991 = vmatprep.subr.bf16.mxu1 %v7990_v29  ;;  %v4687_v29 = vld [vmem:[%s16018_s2 + $0x268] sm:$0xff]  ;;  %v8002_v28 = vpack.c.bf16 %v5088_v58, %v5082_v17  ;;  %v7940_v31 = vpack.c.bf16 %v4680_v3, %v4674_v23  ;;  %v4717_v58 = vld [vmem:[%s16018_s2 + $0x358] sm:$0xff]  ;;  %v5111_v23 = vld [vmem:[%s16019_s6 + $0x2d0] sm:$0xff] }
 0x555   :  { %v7942_v41 = vpack.c.bf16 %v4693_v26, %v4687_v29  ;;  %v4711_v32 = vld [vmem:[%s16018_s2 + $0x328] sm:$0xff]  ;;  %v5124_v29 = vld [vmem:[%s16019_s6 + $0x338] sm:$0xff] }
 0x556   :  { %7929 = vmatpush1.bf16.msra.mxu0 %v7928_v48  ;;  %v5087_v48 = vld [vmem:[%s16019_s6 + $0x210] sm:$0xff]  ;;  %v5118_v3 = vld [vmem:[%s16019_s6 + $0x308] sm:$0xff] }
 0x557   :  { %7931 = vmatprep.subr.bf16.mxu0 %v7930_v6  ;;  %7993 = vmatpush1.bf16.msra.mxu1 %v7992_v37  ;;  %v5094_v6 = vld [vmem:[%s16019_s6 + $0x248] sm:$0xff]  ;;  %v4334_v37 = vadd.f32 %v14985_v57, %v12545_v15  ;;  %v8004_v14 = vpack.c.bf16 %v5087_v48, %v5081_v62  ;;  %v4705_v57 = vld [vmem:[%s16018_s2 + $0x2f8] sm:$0xff]  ;;  %v7950_v62 = vpack.c.bf16 %v4717_v58, %v4711_v32  ;;  %v4710_v48 = vld [vmem:[%s16018_s2 + $0x320] sm:$0xff] }
 0x558   :  { %7995 = vmatprep.subr.bf16.mxu1 %v7994_v45  ;;  %v4686_v45 = vld [vmem:[%s16018_s2 + $0x260] sm:$0xff]  ;;  %v8006_v50 = vpack.c.bf16 %v5100_v38, %v5094_v6  ;;  %v7946_v30 = vpack.c.bf16 %v4705_v57, %v4699_v18  ;;  %v4716_v6 = vld [vmem:[%s16018_s2 + $0x350] sm:$0xff]  ;;  %v4723_v38 = vld [vmem:[%s16018_s2 + $0x388] sm:$0xff] }
 0x559   :  { %v7944_v59 = vpack.c.bf16 %v4692_v9, %v4686_v45  ;;  %v5123_v45 = vld [vmem:[%s16019_s6 + $0x330] sm:$0xff]  ;;  %v5130_v9 = vld [vmem:[%s16019_s6 + $0x368] sm:$0xff]  ;;  %v5136_v18 = vld [vmem:[%s16019_s6 + $0x398] sm:$0xff]  ;;  %v7952_v57 = vpack.c.bf16 %v4716_v6, %v4710_v48 }
 0x55a   :  { %7933 = vmatpush1.bf16.msra.mxu0 %v7932_v34  ;;  %v5099_v34 = vld [vmem:[%s16019_s6 + $0x270] sm:$0xff]  ;;  %v5148_v32 = vld [vmem:[%s16019_s6 + $0x3f8] sm:$0xff]  ;;  %v5154_v48 = vld [vmem:[%s16019_s6 + $0x428] sm:$0xff] }
 0x55b   :  { %7935 = vmatprep.subr.bf16.mxu0 %v7934_v52  ;;  %7997 = vmatpush1.bf16.msra.mxu1 %v7996_v63  ;;  %v5106_v52 = vld [vmem:[%s16019_s6 + $0x2a8] sm:$0xff]  ;;  %v4545_v63 = vrot.slane %v4334_v37, 6  ;;  %v8008_v17 = vpack.c.bf16 %v5099_v34, %v5093_v21  ;;  %v8014_v37 = vpack.c.bf16 %v5124_v29, %v5118_v3  ;;  %v4722_v34 = vld [vmem:[%s16018_s2 + $0x380] sm:$0xff]  ;;  %v4753_v29 = vld [vmem:[%s16018_s2 + $0x478] sm:$0xff] }
 0x55c   :  { %7999 = vmatprep.subr.bf16.mxu1 %v7998_v20  ;;  %v4698_v20 = vld [vmem:[%s16018_s2 + $0x2c0] sm:$0xff]  ;;  %v5160_v6 = vld [vmem:[%s16019_s6 + $0x458] sm:$0xff] }
 0x55d   :  { %v7948_v26 = vpack.c.bf16 %v4704_v60, %v4698_v20  ;;  %v5135_v20 = vld [vmem:[%s16019_s6 + $0x390] sm:$0xff]  ;;  %v5142_v60 = vld [vmem:[%s16019_s6 + $0x3c8] sm:$0xff] }
 0x55e   :  { %7937 = vmatpush1.bf16.msra.mxu0 %v7936_v10  ;;  %v8010_v10 = vpack.c.bf16 %v5112_v16, %v5106_v52  ;;  %v4728_v52 = vld [vmem:[%s16018_s2 + $0x3b0] sm:$0xff]  ;;  %v4735_v16 = vld [vmem:[%s16018_s2 + $0x3e8] sm:$0xff] }
 0x55f   :  { %7939 = vmatprep.subr.bf16.mxu0 %v7938_v46  ;;  %8001 = vmatpush1.bf16.msra.mxu1 %v8000_v7  ;;  %v5105_v46 = vld [vmem:[%s16019_s6 + $0x2a0] sm:$0xff]  ;;  %v4548_v7 = vadd.f32 %v12624_v13, %v4544_v1 }
 0x560   :  { %8003 = vmatprep.subr.bf16.mxu1 %v8002_v28  ;;  %v4549_v28 = vadd.f32 %v12633_v19, %v4545_v63  ;;  %v8012_v11 = vpack.c.bf16 %v5111_v23, %v5105_v46  ;;  %v8018_v63 = vpack.c.bf16 %v5136_v18, %v5130_v9  ;;  %v4740_v46 = vld [vmem:[%s16018_s2 + $0x410] sm:$0xff]  ;;  %v4747_v23 = vld [vmem:[%s16018_s2 + $0x448] sm:$0xff] }
 0x561   :  { %v4752_v9 = vld [vmem:[%s16018_s2 + $0x470] sm:$0xff]  ;;  %v4759_v18 = vld [vmem:[%s16018_s2 + $0x4a8] sm:$0xff] }
 0x562   :  { %7941 = vmatpush1.bf16.msra.mxu0 %v7940_v31  ;;  %v4729_v31 = vld [vmem:[%s16018_s2 + $0x3b8] sm:$0xff] }
 0x563   :  { %7943 = vmatprep.subr.bf16.mxu0 %v7942_v41  ;;  %8005 = vmatpush1.bf16.msra.mxu1 %v8004_v14  ;;  %v5117_v41 = vld [vmem:[%s16019_s6 + $0x300] sm:$0xff]  ;;  %v5787_v14 = vmul.f32 -1.442695, %v4548_v7  ;;  %v7954_v21 = vpack.c.bf16 %v4729_v31, %v4723_v38  ;;  %v8022_v7 = vpack.c.bf16 %v5148_v32, %v5142_v60 }
 0x564   :  { %8007 = vmatprep.subr.bf16.mxu1 %v8006_v50  ;;  %v5788_v50 = vmul.f32 -1.442695, %v4549_v28  ;;  %v8016_v1 = vpack.c.bf16 %v5123_v45, %v5117_v41  ;;  %v5147_v28 = vld [vmem:[%s16019_s6 + $0x3f0] sm:$0xff]  ;;  %v7962_v41 = vpack.c.bf16 %v4753_v29, %v4747_v23  ;;  %v4746_v45 = vld [vmem:[%s16018_s2 + $0x440] sm:$0xff] }
 0x565   :  { %8363 = vpow2.f32 %v5787_v14  ;;  %v4758_v32 = vld [vmem:[%s16018_s2 + $0x4a0] sm:$0xff] }
 0x566   :  { %7945 = vmatpush1.bf16.msra.mxu0 %v7944_v59  ;;  %v4741_v59 = vld [vmem:[%s16018_s2 + $0x418] sm:$0xff]  ;;  %8365 = vpow2.f32 %v5788_v50 }
 0x567   :  { %7947 = vmatprep.subr.bf16.mxu0 %v7946_v30  ;;  %8009 = vmatpush1.bf16.msra.mxu1 %v8008_v17  ;;  %v5129_v30 = vld [vmem:[%s16019_s6 + $0x360] sm:$0xff]  ;;  %v7956_v17 = vpack.c.bf16 %v4728_v52, %v4722_v34  ;;  %v7958_v58 = vpack.c.bf16 %v4741_v59, %v4735_v16  ;;  %v4765_v50 = vld [vmem:[%s16018_s2 + $0x4d8] sm:$0xff]  ;;  %v5159_v52 = vld [vmem:[%s16019_s6 + $0x450] sm:$0xff] }
 0x568   :  { %8011 = vmatprep.subr.bf16.mxu1 %v8010_v10  ;;  %v4734_v10 = vld [vmem:[%s16018_s2 + $0x3e0] sm:$0xff]  ;;  %v8020_v3 = vpack.c.bf16 %v5135_v20, %v5129_v30  ;;  %v5172_v59 = vld [vmem:[%s16019_s6 + $0x4b8] sm:$0xff]  ;;  %v7964_v30 = vpack.c.bf16 %v4752_v9, %v4746_v45  ;;  %v7966_v60 = vpack.c.bf16 %v4765_v50, %v4759_v18  ;;  %v4783_v45 = vld [vmem:[%s16018_s2 + $0x568] sm:$0xff] }
 0x569   :  { %v7960_v31 = vpack.c.bf16 %v4740_v46, %v4734_v10  ;;  %v5153_v34 = vld [vmem:[%s16019_s6 + $0x420] sm:$0xff] }
 0x56a   :  { %7949 = vmatpush1.bf16.msra.mxu0 %v7948_v26  ;;  %v5141_v26 = vld [vmem:[%s16019_s6 + $0x3c0] sm:$0xff]  ;;  %v8028_v10 = vpack.c.bf16 %v5159_v52, %v5153_v34  ;;  %v5190_v34 = vld [vmem:[%s16019_s6 + $0x548] sm:$0xff]  ;;  %v5196_v52 = vld [vmem:[%s16019_s6 + $0x578] sm:$0xff] }
 0x56b   :  { %7951 = vmatprep.subr.bf16.mxu0 %v7950_v62  ;;  %8013 = vmatpush1.bf16.msra.mxu1 %v8012_v11  ;;  %v8024_v14 = vpack.c.bf16 %v5147_v28, %v5141_v26  ;;  %v5171_v26 = vld [vmem:[%s16019_s6 + $0x4b0] sm:$0xff]  ;;  %v5177_v50 = vld [vmem:[%s16019_s6 + $0x4e0] sm:$0xff] }
 0x56c   :  { %8015 = vmatprep.subr.bf16.mxu1 %v8014_v37 }
 0x56e   :  { %7953 = vmatpush1.bf16.msra.mxu0 %v7952_v57 }
 0x56f   :  { %7955 = vmatprep.subr.bf16.mxu0 %v7954_v21  ;;  %8017 = vmatpush1.bf16.msra.mxu1 %v8016_v1  ;;  %v8026_v21 = vpack.c.bf16 %v5160_v6, %v5154_v48  ;;  %v5166_v1 = vld [vmem:[%s16019_s6 + $0x488] sm:$0xff]  ;;  %v8364_v46 = vpop.eup %8363  ;;  %v5184_v6 = vld [vmem:[%s16019_s6 + $0x518] sm:$0xff] }
 0x570   :  { %8019 = vmatprep.subr.bf16.mxu1 %v8018_v63  ;;  %v8030_v29 = vpack.c.bf16 %v5172_v59, %v5166_v1  ;;  %v8366_v28 = vpop.eup %8365  ;;  %v5178_v48 = vld [vmem:[%s16019_s6 + $0x4e8] sm:$0xff]  ;;  %v4782_v59 = vld [vmem:[%s16018_s2 + $0x560] sm:$0xff] }
 0x571   :  { %v4402_v62 = vpop.f32.mrb[22].mxu0  ;;  %v4557_v18 = vadd.f32 1.0, %v8366_v28 }
 0x572   :  { %v4403_v38 = vadd.f32 %v4402_v62, %v12807_v40  ;;  %7957 = vmatpush1.bf16.msra.mxu0 %v7956_v17  ;;  %v4404_v11 = vpop.f32.mrb[23].mxu0  ;;  %v4764_v17 = vld [vmem:[%s16018_s2 + $0x4d0] sm:$0xff] }
 0x573   :  { %v4405_v37 = vadd.f32 %v4404_v11, %v12818_v24  ;;  %7959 = vmatprep.subr.bf16.mxu0 %v7958_v58  ;;  %8021 = vmatpush1.bf16.msra.mxu1 %v8020_v3  ;;  %v4771_v58 = vld [vmem:[%s16018_s2 + $0x508] sm:$0xff]  ;;  %v4777_v3 = vld [vmem:[%s16018_s2 + $0x538] sm:$0xff]  ;;  %v4556_v11 = vadd.f32 1.0, %v8364_v46 }
 0x574   :  { %v4564_v57 = vrot.slane %v4403_v38, 6  ;;  %8023 = vmatprep.subr.bf16.mxu1 %v8022_v7  ;;  %v5165_v7 = vld [vmem:[%s16019_s6 + $0x480] sm:$0xff]  ;;  %v7968_v38 = vpack.c.bf16 %v4764_v17, %v4758_v32  ;;  %v8038_v32 = vpack.c.bf16 %v5196_v52, %v5190_v34  ;;  %v5208_v46 = vld [vmem:[%s16019_s6 + $0x5d8] sm:$0xff]  ;;  %v5023_v52 = vld [vmem:[%s16019_s6 + $0x10] sm:$0xff] }
 0x575   :  { %v4565_v16 = vrot.slane %v4405_v37, 6  ;;  %v4770_v37 = vld [vmem:[%s16018_s2 + $0x500] sm:$0xff]  ;;  %v8032_v9 = vpack.c.bf16 %v5171_v26, %v5165_v7  ;;  %v4800_v7 = vld [vmem:[%s16018_s2 + $0x5f0] sm:$0xff]  ;;  %v5024_v26 = vld [vmem:[%s16019_s6 + $0x18] sm:$0xff] }
 0x576   :  { %v4568_v63 = vadd.f32 %v12865_v8, %v4564_v57  ;;  %7961 = vmatpush1.bf16.msra.mxu0 %v7960_v31  ;;  %v7970_v31 = vpack.c.bf16 %v4777_v3, %v4771_v58  ;;  %v8034_v57 = vpack.c.bf16 %v5184_v6, %v5178_v48  ;;  %v5189_v17 = vld [vmem:[%s16019_s6 + $0x540] sm:$0xff]  ;;  %v5195_v58 = vld [vmem:[%s16019_s6 + $0x570] sm:$0xff]  ;;  %v5030_v48 = vld [vmem:[%s16019_s6 + $0x48] sm:$0xff] }
 0x577   :  { %v4569_v20 = vadd.f32 %v12875_v22, %v4565_v16  ;;  %7963 = vmatprep.subr.bf16.mxu0 %v7962_v41  ;;  %8025 = vmatpush1.bf16.msra.mxu1 %v8024_v14  ;;  %v4776_v41 = vld [vmem:[%s16018_s2 + $0x530] sm:$0xff]  ;;  %v4789_v14 = vld [vmem:[%s16018_s2 + $0x598] sm:$0xff]  ;;  %v8040_v28 = vpack.c.bf16 %v5195_v58, %v5189_v17  ;;  %v8046_v34 = vpack.c.bf16 %v5030_v48, %v5024_v26 }
 0x578   :  { %v5789_v23 = vmul.f32 -1.442695, %v4568_v63  ;;  %8027 = vmatprep.subr.bf16.mxu1 %v8026_v21  ;;  %v5183_v21 = vld [vmem:[%s16019_s6 + $0x510] sm:$0xff]  ;;  %v7972_v16 = vpack.c.bf16 %v4776_v41, %v4770_v37  ;;  %v7974_v1 = vpack.c.bf16 %v4789_v14, %v4783_v45  ;;  %v5026_v45 = vld [vmem:[%s16019_s6 + $0x28] sm:$0xff]  ;;  %v5048_v26 = vld [vmem:[%s16019_s6 + $0xd8] sm:$0xff] }
 0x579   :  { %v5790_v62 = vmul.f32 -1.442695, %v4569_v20  ;;  %v4788_v63 = vld [vmem:[%s16018_s2 + $0x590] sm:$0xff]  ;;  %v8036_v20 = vpack.c.bf16 %v5183_v21, %v5177_v50 }
 0x57a   :  { %8367 = vpow2.f32 %v5789_v23  ;;  %7965 = vmatpush1.bf16.msra.mxu0 %v7964_v30  ;;  %v4795_v30 = vld [vmem:[%s16018_s2 + $0x5c8] sm:$0xff]  ;;  %v7976_v23 = vpack.c.bf16 %v4788_v63, %v4782_v59  ;;  %v5036_v63 = vld [vmem:[%s16019_s6 + $0x78] sm:$0xff] }
 0x57b   :  { %8369 = vpow2.f32 %v5790_v62  ;;  %7967 = vmatprep.subr.bf16.mxu0 %v7966_v60  ;;  %8029 = vmatpush1.bf16.msra.mxu1 %v8028_v10  ;;  %v4801_v60 = vld [vmem:[%s16018_s2 + $0x5f8] sm:$0xff]  ;;  %v5202_v10 = vld [vmem:[%s16019_s6 + $0x5a8] sm:$0xff] }
 0x57c   :  { %8031 = vmatprep.subr.bf16.mxu1 %v8030_v29  ;;  %8371 = vrcp.f32 %v4556_v11  ;;  %v7978_v3 = vpack.c.bf16 %v4801_v60, %v4795_v30  ;;  %v4794_v29 = vld [vmem:[%s16018_s2 + $0x5c0] sm:$0xff]  ;;  %v8042_v6 = vpack.c.bf16 %v5208_v46, %v5202_v10  ;;  %v5207_v11 = vld [vmem:[%s16019_s6 + $0x5d0] sm:$0xff]  ;;  %v5042_v30 = vld [vmem:[%s16019_s6 + $0xa8] sm:$0xff] }
 0x57d   :  { %8373 = vrcp.f32 %v4557_v18  ;;  %v7980_v50 = vpack.c.bf16 %v4800_v7, %v4794_v29  ;;  %v5041_v29 = vld [vmem:[%s16019_s6 + $0xa0] sm:$0xff] }
 0x57e   :  { %7969 = vmatpush1.bf16.msra.mxu0 %v7968_v38  ;;  %v5201_v38 = vld [vmem:[%s16019_s6 + $0x5a0] sm:$0xff] }
 0x57f   :  { %7971 = vmatprep.subr.bf16.mxu0 %v7970_v31  ;;  %8033 = vmatpush1.bf16.msra.mxu1 %v8032_v9  ;;  %v5032_v9 = vld [vmem:[%s16019_s6 + $0x58] sm:$0xff] }
 0x580   :  { %8035 = vmatprep.subr.bf16.mxu1 %v8034_v57 }
 0x582   :  { %7973 = vmatpush1.bf16.msra.mxu0 %v7972_v16  ;;  %v5029_v16 = vld [vmem:[%s16019_s6 + $0x40] sm:$0xff] }
 0x583   :  { %7975 = vmatprep.subr.bf16.mxu0 %v7974_v1  ;;  %8037 = vmatpush1.bf16.msra.mxu1 %v8036_v20  ;;  %v8044_v1 = vpack.c.bf16 %v5207_v11, %v5201_v38  ;;  %v8110_v20 = vpack.c.bf16 %v5032_v9, %v5026_v45  ;;  %v8048_v10 = vpack.c.bf16 %v5029_v16, %v5023_v52  ;;  %v5047_v38 = vld [vmem:[%s16019_s6 + $0xd0] sm:$0xff]  ;;  %v5053_v11 = vld [vmem:[%s16019_s6 + $0x100] sm:$0xff]  ;;  %v4599_v45 = vrot.slane %v14262_v39, 2  ;;  %v5078_v39 = vld [vmem:[%s16019_s6 + $0x1c8] sm:$0xff] }
 0x584   :  { %v8368_v62 = vpop.eup %8367  ;;  %8039 = vmatprep.subr.bf16.mxu1 %v8038_v32 }
 0x585   :  { %v8370_v31 = vpop.eup %8369  ;;  %v4576_v37 = vadd.f32 1.0, %v8368_v62  ;;  %v4473_v41 = vpop.f32.mrb[22].mxu1 }
 0x586   :  { %v4577_v18 = vadd.f32 1.0, %v8370_v31  ;;  %v4474_v14 = vadd.f32 %v4473_v41, %v12811_v53  ;;  %v4475_v57 = vpop.f32.mrb[23].mxu1  ;;  %7977 = vmatpush1.bf16.msra.mxu0 %v7976_v23  ;;  %v8372_v60 = vpop.eup %8371  ;;  %v8050_v23 = vpack.c.bf16 %v5042_v30, %v5036_v63  ;;  %v5060_v31 = vld [vmem:[%s16019_s6 + $0x138] sm:$0xff] }
 0x587   :  { %8375 = vrcp.f32 %v4576_v37  ;;  %v4476_v21 = vadd.f32 %v4475_v57, %v12833_v43  ;;  %7979 = vmatprep.subr.bf16.mxu0 %v7978_v3  ;;  %8041 = vmatpush1.bf16.msra.mxu1 %v8040_v28  ;;  %v8374_v17 = vpop.eup %8373  ;;  %v5035_v3 = vld [vmem:[%s16019_s6 + $0x70] sm:$0xff]  ;;  %v5054_v28 = vld [vmem:[%s16019_s6 + $0x108] sm:$0xff]  ;;  %v4598_v37 = vrot.slane %v14251_v56, 2  ;;  %v5072_v56 = vld [vmem:[%s16019_s6 + $0x198] sm:$0xff] }
 0x588   :  { %8377 = vrcp.f32 %v4577_v18  ;;  %v4584_v59 = vrot.slane %v4474_v14, 6  ;;  %8043 = vmatprep.subr.bf16.mxu1 %v8042_v6  ;;  %v8052_v48 = vpack.c.bf16 %v5041_v29, %v5035_v3  ;;  %v8054_v6 = vpack.c.bf16 %v5054_v28, %v5048_v26  ;;  %v5083_v26 = vld [vmem:[%s16019_s6 + $0x1f0] sm:$0xff]  ;;  %v5089_v28 = vld [vmem:[%s16019_s6 + $0x220] sm:$0xff] }
 0x589   :  { %v4585_v32 = vrot.slane %v4476_v21, 6  ;;  %v8056_v18 = vpack.c.bf16 %v5053_v11, %v5047_v38  ;;  %v5065_v21 = vld [vmem:[%s16019_s6 + $0x160] sm:$0xff]  ;;  %v8062_v16 = vpack.c.bf16 %v5078_v39, %v5072_v56  ;;  %v5096_v38 = vld [vmem:[%s16019_s6 + $0x258] sm:$0xff]  ;;  %v5102_v11 = vld [vmem:[%s16019_s6 + $0x288] sm:$0xff] }
 0x58a   :  { %v4588_v58 = vmul.f32 %v8372_v60, %v4584_v59  ;;  %7981 = vmatpush1.bf16.msra.mxu0 %v7980_v50  ;;  %v5059_v50 = vld [vmem:[%s16019_s6 + $0x130] sm:$0xff]  ;;  %v5077_v59 = vld [vmem:[%s16019_s6 + $0x1c0] sm:$0xff]  ;;  %v5084_v60 = vld [vmem:[%s16019_s6 + $0x1f8] sm:$0xff] }
 0x58b   :  { %v4589_v46 = vmul.f32 %v8374_v17, %v4585_v32  ;;  %8047 = vmatprep.subr.bf16.mxu0 %v8046_v34  ;;  %8045 = vmatpush1.bf16.msra.mxu1 %v8044_v1  ;;  %v8060_v52 = vpack.c.bf16 %v5065_v21, %v5059_v50  ;;  %v5071_v1 = vld [vmem:[%s16019_s6 + $0x190] sm:$0xff]  ;;  %v5090_v32 = vld [vmem:[%s16019_s6 + $0x228] sm:$0xff]  ;;  %v8070_v21 = vpack.c.bf16 %v5102_v11, %v5096_v38  ;;  %v5108_v56 = vld [vmem:[%s16019_s6 + $0x2b8] sm:$0xff] }
 0x58c   :  { %v4590_v7 = vadd.f32 %v12966_v2, %v4588_v58  ;;  %8111 = vmatprep.subr.bf16.mxu1 %v8110_v20  ;;  %v8066_v29 = vpack.c.bf16 %v5090_v32, %v5084_v60  ;;  %v5050_v50 = vld [vmem:[%s16019_s6 + $0xe8] sm:$0xff]  ;;  %v5113_v60 = vld [vmem:[%s16019_s6 + $0x2e0] sm:$0xff]  ;;  %v5132_v38 = vld [vmem:[%s16019_s6 + $0x378] sm:$0xff] }
 0x58d   :  { %v4591_v62 = vadd.f32 %v12983_v36, %v4589_v46  ;;  %5015 = vmatmul.mubr.f32.vlgmr.msra.gmra.mrb[26].mxu0 %v15019_v47  ;;  %v5066_v47 = vld [vmem:[%s16019_s6 + $0x168] sm:$0xff] }
 0x58e   :  { %8379 = vtanh.f32 %v4590_v7  ;;  %8049 = vmatpush1.bf16.msra.mxu0 %v8048_v10  ;;  %v8058_v57 = vpack.c.bf16 %v5066_v47, %v5060_v31  ;;  %v8064_v10 = vpack.c.bf16 %v5077_v59, %v5071_v1  ;;  %v5031_v7 = vld [vmem:[%s16019_s6 + $0x50] sm:$0xff]  ;;  %v5114_v39 = vld [vmem:[%s16019_s6 + $0x2e8] sm:$0xff]  ;;  %v5049_v1 = vld [vmem:[%s16019_s6 + $0xe0] sm:$0xff] }
 0x58f   :  { %8381 = vtanh.f32 %v4591_v62  ;;  %8051 = vmatprep.subr.bf16.mxu0 %v8050_v23  ;;  %v5025_v23 = vld [vmem:[%s16019_s6 + $0x20] sm:$0xff]  ;;  %v5055_v59 = vld [vmem:[%s16019_s6 + $0x110] sm:$0xff]  ;;  %v5062_v32 = vld [vmem:[%s16019_s6 + $0x148] sm:$0xff] }
 0x590   :  { %v8112_v47 = vpack.c.bf16 %v5031_v7, %v5025_v23  ;;  %v5138_v11 = vld [vmem:[%s16019_s6 + $0x3a8] sm:$0xff] }
 0x591   :  { %v8376_v41 = vpop.eup %8375 }
 0x592   :  { %v8378_v9 = vpop.eup %8377  ;;  %8053 = vmatpush1.bf16.msra.mxu0 %v8052_v48  ;;  %v4602_v14 = vmul.f32 %v8376_v41, %v4598_v37  ;;  %v4594_v63 = vsub.f32 1.0, %v8376_v41  ;;  %v5038_v48 = vld [vmem:[%s16019_s6 + $0x88] sm:$0xff]  ;;  %v8068_v37 = vpack.c.bf16 %v5089_v28, %v5083_v26  ;;  %v5037_v41 = vld [vmem:[%s16019_s6 + $0x80] sm:$0xff]  ;;  %v5119_v28 = vld [vmem:[%s16019_s6 + $0x310] sm:$0xff] }
 0x593   :  { %8055 = vmatprep.subr.bf16.mxu0 %v8054_v6  ;;  %v4603_v34 = vmul.f32 %v8378_v9, %v4599_v45  ;;  %v4595_v20 = vsub.f32 1.0, %v8378_v9  ;;  %v5044_v6 = vld [vmem:[%s16019_s6 + $0xb8] sm:$0xff]  ;;  %v5043_v45 = vld [vmem:[%s16019_s6 + $0xb0] sm:$0xff] }
 0x596   :  { %8057 = vmatpush1.bf16.msra.mxu0 %v8056_v18  ;;  %v8114_v18 = vpack.c.bf16 %v5044_v6, %v5038_v48  ;;  %v5074_v48 = vld [vmem:[%s16019_s6 + $0x1a8] sm:$0xff]  ;;  %v5080_v6 = vld [vmem:[%s16019_s6 + $0x1d8] sm:$0xff] }
 0x597   :  { %8059 = vmatprep.subr.bf16.mxu0 %v8058_v57  ;;  %v5101_v57 = vld [vmem:[%s16019_s6 + $0x280] sm:$0xff] }
 0x598   :  { %v8380_v30 = vpop.eup %8379 }
 0x599   :  { %v8382_v17 = vpop.eup %8381  ;;  %v4596_v58 = vmul.f32 %v8380_v30, %v4594_v63  ;;  %v8074_v30 = vpack.c.bf16 %v5114_v39, %v5108_v56  ;;  %v5144_v56 = vld [vmem:[%s16019_s6 + $0x3d8] sm:$0xff]  ;;  %v5150_v39 = vld [vmem:[%s16019_s6 + $0x408] sm:$0xff] }
 0x59a   :  { %8061 = vmatpush1.bf16.msra.mxu0 %v8060_v52  ;;  %v4597_v46 = vmul.f32 %v8382_v17, %v4595_v20  ;;  %v8116_v52 = vpack.c.bf16 %v5043_v45, %v5037_v41  ;;  %v5107_v20 = vld [vmem:[%s16019_s6 + $0x2b0] sm:$0xff]  ;;  %v5068_v17 = vld [vmem:[%s16019_s6 + $0x178] sm:$0xff]  ;;  %v5073_v41 = vld [vmem:[%s16019_s6 + $0x1a0] sm:$0xff] }
 0x59b   :  { %8063 = vmatprep.subr.bf16.mxu0 %v8062_v16  ;;  %v4604_v3 = vadd.f32 %v4602_v14, %v4596_v58  ;;  %v5095_v14 = vld [vmem:[%s16019_s6 + $0x250] sm:$0xff]  ;;  %v5120_v58 = vld [vmem:[%s16019_s6 + $0x318] sm:$0xff]  ;;  %v8076_v23 = vpack.c.bf16 %v5113_v60, %v5107_v20  ;;  %v8122_v7 = vpack.c.bf16 %v5068_v17, %v5062_v32  ;;  %v5149_v60 = vld [vmem:[%s16019_s6 + $0x400] sm:$0xff] }
 0x59c   :  { %v4605_v62 = vadd.f32 %v4603_v34, %v4597_v46  ;;  %v5056_v34 = vld [vmem:[%s16019_s6 + $0x118] sm:$0xff]  ;;  %v8072_v16 = vpack.c.bf16 %v5101_v57, %v5095_v14  ;;  %v8120_v46 = vpack.c.bf16 %v5055_v59, %v5049_v1  ;;  %v5079_v45 = vld [vmem:[%s16019_s6 + $0x1d0] sm:$0xff]  ;;  %v8082_v14 = vpack.c.bf16 %v5138_v11, %v5132_v38  ;;  %v5085_v1 = vld [vmem:[%s16019_s6 + $0x200] sm:$0xff] }
 0x59d   :  { %4608 = vst [vmem:[#allocation2 + $0x10] sm:$0xc] %v4604_v3  ;;  %v15492_v9 = vrot.slane %v4604_v3, 2  ;;  %v8118_v63 = vpack.c.bf16 %v5056_v34, %v5050_v50  ;;  %v5061_v3 = vld [vmem:[%s16019_s6 + $0x140] sm:$0xff]  ;;  %v5131_v57 = vld [vmem:[%s16019_s6 + $0x370] sm:$0xff]  ;;  %v5092_v34 = vld [vmem:[%s16019_s6 + $0x238] sm:$0xff] }
 0x59e   :  { %8065 = vmatpush1.bf16.msra.mxu0 %v8064_v10  ;;  %4609 = vst [vmem:[#allocation2 + $0x18] sm:$0xc] %v4605_v62  ;;  %v15484_v31 = vrot.slane %v4605_v62, 2  ;;  %v5126_v10 = vld [vmem:[%s16019_s6 + $0x348] sm:$0xff]  ;;  %v5125_v62 = vld [vmem:[%s16019_s6 + $0x340] sm:$0xff]  ;;  %v5091_v59 = vld [vmem:[%s16019_s6 + $0x230] sm:$0xff] }
 0x59f   :  { %8067 = vmatprep.subr.bf16.mxu0 %v8066_v29  ;;  %v5067_v29 = vld [vmem:[%s16019_s6 + $0x170] sm:$0xff]  ;;  %v8078_v26 = vpack.c.bf16 %v5126_v10, %v5120_v58  ;;  %v5137_v50 = vld [vmem:[%s16019_s6 + $0x3a0] sm:$0xff]  ;;  %v5098_v32 = vld [vmem:[%s16019_s6 + $0x268] sm:$0xff] }
 0x5a0   :  { %5283 = vmatprep.mubr.f32.mxu1 %v15484_v31  ;;  %5354 = vmatprep.mubr.f32.mxu0 %v15484_v31  ;;  %v5143_v20 = vld [vmem:[%s16019_s6 + $0x3d0] sm:$0xff]  ;;  %v5104_v17 = vld [vmem:[%s16019_s6 + $0x298] sm:$0xff]  ;;  %v5162_v10 = vld [vmem:[%s16019_s6 + $0x468] sm:$0xff] }
 0x5a1   :  { %5284 = vmatmul.mubr.f32.vlgmr.msra.gmra.mrb[26].mxu1 %v15492_v9  ;;  %v5156_v58 = vld [vmem:[%s16019_s6 + $0x438] sm:$0xff]  ;;  %v5174_v11 = vld [vmem:[%s16019_s6 + $0x4c8] sm:$0xff] }
 0x5a2   :  { %8113 = vmatpush1.bf16.msra.mxu1 %v8112_v47  ;;  %8069 = vmatpush1.bf16.msra.mxu0 %v8068_v37  ;;  %v8124_v47 = vpack.c.bf16 %v5067_v29, %v5061_v3  ;;  %v8080_v37 = vpack.c.bf16 %v5125_v62, %v5119_v28  ;;  %v5097_v3 = vld [vmem:[%s16019_s6 + $0x260] sm:$0xff]  ;;  %v5103_v29 = vld [vmem:[%s16019_s6 + $0x290] sm:$0xff]  ;;  %v5168_v38 = vld [vmem:[%s16019_s6 + $0x498] sm:$0xff] }
 0x5a3   :  { %5425 = vmatprep.mubr.f32.mxu1 %v15484_v31  ;;  %8115 = vmatprep.subr.bf16.mxu1 %v8114_v18  ;;  %v8126_v18 = vpack.c.bf16 %v5080_v6, %v5074_v48  ;;  %v5155_v28 = vld [vmem:[%s16019_s6 + $0x430] sm:$0xff]  ;;  %v5161_v62 = vld [vmem:[%s16019_s6 + $0x460] sm:$0xff]  ;;  %v5110_v48 = vld [vmem:[%s16019_s6 + $0x2c8] sm:$0xff] }
 0x5a4   :  { %8071 = vmatprep.subr.bf16.mxu0 %v8070_v21  ;;  %v5086_v21 = vld [vmem:[%s16019_s6 + $0x208] sm:$0xff]  ;;  %v5116_v6 = vld [vmem:[%s16019_s6 + $0x2f8] sm:$0xff] }
 0x5a6   :  { %8117 = vmatpush1.bf16.msra.mxu1 %v8116_v52  ;;  %8073 = vmatpush1.bf16.msra.mxu0 %v8072_v16  ;;  %v8128_v52 = vpack.c.bf16 %v5079_v45, %v5073_v41  ;;  %v8084_v16 = vpack.c.bf16 %v5137_v50, %v5131_v57  ;;  %v5109_v41 = vld [vmem:[%s16019_s6 + $0x2c0] sm:$0xff]  ;;  %v5115_v45 = vld [vmem:[%s16019_s6 + $0x2f0] sm:$0xff] }
 0x5a7   :  { %8119 = vmatprep.subr.bf16.mxu1 %v8118_v63  ;;  %8075 = vmatprep.subr.bf16.mxu0 %v8074_v30  ;;  %v8130_v63 = vpack.c.bf16 %v5092_v34, %v5086_v21  ;;  %v8086_v30 = vpack.c.bf16 %v5150_v39, %v5144_v56  ;;  %v5167_v57 = vld [vmem:[%s16019_s6 + $0x490] sm:$0xff]  ;;  %v5173_v50 = vld [vmem:[%s16019_s6 + $0x4c0] sm:$0xff]  ;;  %v5122_v21 = vld [vmem:[%s16019_s6 + $0x328] sm:$0xff] }
 0x5a8   :  { %v5128_v34 = vld [vmem:[%s16019_s6 + $0x358] sm:$0xff]  ;;  %v5186_v39 = vld [vmem:[%s16019_s6 + $0x528] sm:$0xff] }
 0x5a9   :  { %v5180_v56 = vld [vmem:[%s16019_s6 + $0x4f8] sm:$0xff] }
 0x5aa   :  { %8121 = vmatpush1.bf16.msra.mxu1 %v8120_v46  ;;  %8077 = vmatpush1.bf16.msra.mxu0 %v8076_v23  ;;  %v8132_v46 = vpack.c.bf16 %v5091_v59, %v5085_v1  ;;  %v8088_v23 = vpack.c.bf16 %v5149_v60, %v5143_v20  ;;  %v5121_v1 = vld [vmem:[%s16019_s6 + $0x320] sm:$0xff]  ;;  %v5127_v59 = vld [vmem:[%s16019_s6 + $0x350] sm:$0xff] }
 0x5ab   :  { %8123 = vmatprep.subr.bf16.mxu1 %v8122_v7  ;;  %8079 = vmatprep.subr.bf16.mxu0 %v8078_v26  ;;  %v8134_v7 = vpack.c.bf16 %v5104_v17, %v5098_v32  ;;  %v8090_v26 = vpack.c.bf16 %v5162_v10, %v5156_v58  ;;  %v5179_v20 = vld [vmem:[%s16019_s6 + $0x4f0] sm:$0xff]  ;;  %v5185_v60 = vld [vmem:[%s16019_s6 + $0x520] sm:$0xff]  ;;  %v5134_v32 = vld [vmem:[%s16019_s6 + $0x388] sm:$0xff] }
 0x5ac   :  { %v5140_v17 = vld [vmem:[%s16019_s6 + $0x3b8] sm:$0xff]  ;;  %v5198_v10 = vld [vmem:[%s16019_s6 + $0x588] sm:$0xff] }
 0x5ad   :  { %v5192_v58 = vld [vmem:[%s16019_s6 + $0x558] sm:$0xff] }
 0x5ae   :  { %8125 = vmatpush1.bf16.msra.mxu1 %v8124_v47  ;;  %8081 = vmatpush1.bf16.msra.mxu0 %v8080_v37  ;;  %v8136_v47 = vpack.c.bf16 %v5103_v29, %v5097_v3  ;;  %v8092_v37 = vpack.c.bf16 %v5161_v62, %v5155_v28  ;;  %v5133_v3 = vld [vmem:[%s16019_s6 + $0x380] sm:$0xff]  ;;  %v5139_v29 = vld [vmem:[%s16019_s6 + $0x3b0] sm:$0xff] }
 0x5af   :  { %8127 = vmatprep.subr.bf16.mxu1 %v8126_v18  ;;  %8083 = vmatprep.subr.bf16.mxu0 %v8082_v14  ;;  %v8138_v18 = vpack.c.bf16 %v5116_v6, %v5110_v48  ;;  %v8094_v14 = vpack.c.bf16 %v5174_v11, %v5168_v38  ;;  %v5191_v28 = vld [vmem:[%s16019_s6 + $0x550] sm:$0xff]  ;;  %v5197_v62 = vld [vmem:[%s16019_s6 + $0x580] sm:$0xff]  ;;  %v5146_v48 = vld [vmem:[%s16019_s6 + $0x3e8] sm:$0xff] }
 0x5b0   :  { %v5152_v6 = vld [vmem:[%s16019_s6 + $0x418] sm:$0xff]  ;;  %v5210_v11 = vld [vmem:[%s16019_s6 + $0x5e8] sm:$0xff] }
 0x5b1   :  { %v5204_v38 = vld [vmem:[%s16019_s6 + $0x5b8] sm:$0xff] }
 0x5b2   :  { %8129 = vmatpush1.bf16.msra.mxu1 %v8128_v52  ;;  %8085 = vmatpush1.bf16.msra.mxu0 %v8084_v16  ;;  %v8140_v52 = vpack.c.bf16 %v5115_v45, %v5109_v41  ;;  %v8096_v16 = vpack.c.bf16 %v5173_v50, %v5167_v57  ;;  %v5145_v41 = vld [vmem:[%s16019_s6 + $0x3e0] sm:$0xff]  ;;  %v8150_v45 = vpack.c.bf16 %v5152_v6, %v5146_v48  ;;  %v5203_v57 = vld [vmem:[%s16019_s6 + $0x5b0] sm:$0xff]  ;;  %v5206_v6 = vld [vmem:[%s16019_s6 + $0x5c8] sm:$0xff] }
 0x5b3   :  { %8131 = vmatprep.subr.bf16.mxu1 %v8130_v63  ;;  %8087 = vmatprep.subr.bf16.mxu0 %v8086_v30  ;;  %v8142_v63 = vpack.c.bf16 %v5128_v34, %v5122_v21  ;;  %v8098_v30 = vpack.c.bf16 %v5186_v39, %v5180_v56  ;;  %v5209_v50 = vld [vmem:[%s16019_s6 + $0x5e0] sm:$0xff]  ;;  %v5158_v21 = vld [vmem:[%s16019_s6 + $0x448] sm:$0xff]  ;;  %v5164_v34 = vld [vmem:[%s16019_s6 + $0x478] sm:$0xff] }
 0x5b4   :  { %v8108_v39 = vpack.c.bf16 %v5209_v50, %v5203_v57  ;;  %v5199_v48 = vld [vmem:[%s16019_s6 + $0x590] sm:$0xff]  ;;  %v5546_v50 = vld [vmem:[%s16024_s9] sm:$0xff] }
 0x5b6   :  { %8133 = vmatpush1.bf16.msra.mxu1 %v8132_v46  ;;  %8089 = vmatpush1.bf16.msra.mxu0 %v8088_v23  ;;  %v8144_v46 = vpack.c.bf16 %v5127_v59, %v5121_v1  ;;  %v8100_v23 = vpack.c.bf16 %v5185_v60, %v5179_v20  ;;  %v5163_v1 = vld [vmem:[%s16019_s6 + $0x470] sm:$0xff]  ;;  %v5170_v59 = vld [vmem:[%s16019_s6 + $0x4a8] sm:$0xff]  ;;  %v5169_v60 = vld [vmem:[%s16019_s6 + $0x4a0] sm:$0xff] }
 0x5b7   :  { %8135 = vmatprep.subr.bf16.mxu1 %v8134_v7  ;;  %8091 = vmatprep.subr.bf16.mxu0 %v8090_v26  ;;  %v8146_v7 = vpack.c.bf16 %v5140_v17, %v5134_v32  ;;  %v8102_v26 = vpack.c.bf16 %v5198_v10, %v5192_v58  ;;  %v5175_v32 = vld [vmem:[%s16019_s6 + $0x4d0] sm:$0xff]  ;;  %v5182_v17 = vld [vmem:[%s16019_s6 + $0x508] sm:$0xff]  ;;  %v5188_v58 = vld [vmem:[%s16019_s6 + $0x538] sm:$0xff] }
 0x5b8   :  { %v8160_v10 = vpack.c.bf16 %v5175_v32, %v5169_v60  ;;  %v5550_v60 = vld [vmem:[%s16024_s9 + $0x20] sm:$0xff]  ;;  %v5551_v32 = vld [vmem:[%s16024_s9 + $0x28] sm:$0xff] }
 0x5ba   :  { %8137 = vmatpush1.bf16.msra.mxu1 %v8136_v47  ;;  %8093 = vmatpush1.bf16.msra.mxu0 %v8092_v37  ;;  %v8148_v47 = vpack.c.bf16 %v5139_v29, %v5133_v3  ;;  %v8104_v37 = vpack.c.bf16 %v5197_v62, %v5191_v28  ;;  %v5187_v3 = vld [vmem:[%s16019_s6 + $0x530] sm:$0xff]  ;;  %v5194_v29 = vld [vmem:[%s16019_s6 + $0x568] sm:$0xff]  ;;  %v5193_v62 = vld [vmem:[%s16019_s6 + $0x560] sm:$0xff] }
 0x5bb   :  { %8139 = vmatprep.subr.bf16.mxu1 %v8138_v18  ;;  %8095 = vmatprep.subr.bf16.mxu0 %v8094_v14  ;;  %v8106_v18 = vpack.c.bf16 %v5210_v11, %v5204_v38  ;;  %v5151_v14 = vld [vmem:[%s16019_s6 + $0x410] sm:$0xff]  ;;  %v5212_v38 = vld [vmem:[%s16019_s6 + $0x5f8] sm:$0xff]  ;;  %v8168_v11 = vpack.c.bf16 %v5199_v48, %v5193_v62  ;;  %v5554_v62 = vld [vmem:[%s16024_s9 + $0x40] sm:$0xff] }
 0x5bc   :  { %v8152_v56 = vpack.c.bf16 %v5151_v14, %v5145_v41  ;;  %v5211_v41 = vld [vmem:[%s16019_s6 + $0x5f0] sm:$0xff]  ;;  %v5563_v14 = vld [vmem:[%s16024_s9 + $0x88] sm:$0xff] }
 0x5bd   :  { %v5555_v48 = vld [vmem:[%s16024_s9 + $0x48] sm:$0xff] }
 0x5be   :  { %8141 = vmatpush1.bf16.msra.mxu1 %v8140_v52  ;;  %8097 = vmatpush1.bf16.msra.mxu0 %v8096_v16  ;;  %v8154_v52 = vpack.c.bf16 %v5164_v34, %v5158_v21  ;;  %v5157_v16 = vld [vmem:[%s16019_s6 + $0x440] sm:$0xff]  ;;  %v5547_v21 = vld [vmem:[%s16024_s9 + $0x8] sm:$0xff] }
 0x5bf   :  { %8143 = vmatprep.subr.bf16.mxu1 %v8142_v63  ;;  %8099 = vmatprep.subr.bf16.mxu0 %v8098_v30  ;;  %v5176_v63 = vld [vmem:[%s16019_s6 + $0x4d8] sm:$0xff]  ;;  %v8156_v30 = vpack.c.bf16 %v5163_v1, %v5157_v16  ;;  %v8176_v34 = vpack.c.bf16 %v5547_v21, %v5546_v50  ;;  %v5548_v16 = vld [vmem:[%s16024_s9 + $0x10] sm:$0xff]  ;;  %v5558_v50 = vld [vmem:[%s16024_s9 + $0x60] sm:$0xff] }
 0x5c0   :  { %v8158_v20 = vpack.c.bf16 %v5176_v63, %v5170_v59  ;;  %v5549_v1 = vld [vmem:[%s16024_s9 + $0x18] sm:$0xff]  ;;  %v5566_v63 = vld [vmem:[%s16024_s9 + $0xa0] sm:$0xff]  ;;  %v5559_v21 = vld [vmem:[%s16024_s9 + $0x68] sm:$0xff] }
 0x5c1   :  { %v8180_v59 = vpack.c.bf16 %v5549_v1, %v5548_v16  ;;  %v5560_v16 = vld [vmem:[%s16024_s9 + $0x70] sm:$0xff]  ;;  %v5561_v1 = vld [vmem:[%s16024_s9 + $0x78] sm:$0xff] }
 0x5c2   :  { %8145 = vmatpush1.bf16.msra.mxu1 %v8144_v46  ;;  %8101 = vmatpush1.bf16.msra.mxu0 %v8100_v23  ;;  %v8162_v46 = vpack.c.bf16 %v5188_v58, %v5182_v17  ;;  %v5181_v23 = vld [vmem:[%s16019_s6 + $0x500] sm:$0xff]  ;;  %v8184_v17 = vpack.c.bf16 %v5551_v32, %v5550_v60  ;;  %v5568_v58 = vld [vmem:[%s16024_s9 + $0xb0] sm:$0xff] }
 0x5c3   :  { %8147 = vmatprep.subr.bf16.mxu1 %v8146_v7  ;;  %8103 = vmatprep.subr.bf16.mxu0 %v8102_v26  ;;  %v5200_v7 = vld [vmem:[%s16019_s6 + $0x598] sm:$0xff]  ;;  %v8164_v26 = vpack.c.bf16 %v5187_v3, %v5181_v23  ;;  %v5552_v23 = vld [vmem:[%s16024_s9 + $0x30] sm:$0xff] }
 0x5c4   :  { %v8166_v28 = vpack.c.bf16 %v5200_v7, %v5194_v29  ;;  %v5553_v3 = vld [vmem:[%s16024_s9 + $0x38] sm:$0xff]  ;;  %v5570_v7 = vld [vmem:[%s16024_s9 + $0xc0] sm:$0xff] }
 0x5c5   :  { %v8188_v29 = vpack.c.bf16 %v5553_v3, %v5552_v23 }
 0x5c6   :  { %8149 = vmatpush1.bf16.msra.mxu1 %v8148_v47  ;;  %8105 = vmatpush1.bf16.msra.mxu0 %v8104_v37  ;;  %v8170_v47 = vpack.c.bf16 %v5212_v38, %v5206_v6  ;;  %v5205_v37 = vld [vmem:[%s16019_s6 + $0x5c0] sm:$0xff]  ;;  %v8192_v6 = vpack.c.bf16 %v5555_v48, %v5554_v62  ;;  %v5572_v38 = vld [vmem:[%s16024_s9 + $0xd0] sm:$0xff] }
 0x5c7   :  { %8151 = vmatprep.subr.bf16.mxu1 %v8150_v45  ;;  %8107 = vmatprep.subr.bf16.mxu0 %v8106_v18  ;;  %v8172_v45 = vpack.c.bf16 %v5211_v41, %v5205_v37  ;;  %v5562_v18 = vld [vmem:[%s16024_s9 + $0x80] sm:$0xff]  ;;  %v5556_v37 = vld [vmem:[%s16024_s9 + $0x50] sm:$0xff]  ;;  %v5557_v41 = vld [vmem:[%s16024_s9 + $0x58] sm:$0xff] }
 0x5c8   :  { %v8174_v57 = vpack.c.bf16 %v5563_v14, %v5562_v18  ;;  %v5574_v18 = vld [vmem:[%s16024_s9 + $0xe0] sm:$0xff]  ;;  %v5575_v14 = vld [vmem:[%s16024_s9 + $0xe8] sm:$0xff]  ;;  %v5596_v48 = vld [vmem:[%s16024_s9 + $0x190] sm:$0xff] }
 0x5ca   :  { %8153 = vmatpush1.bf16.msra.mxu1 %v8152_v56  ;;  %8109 = vmatpush1.bf16.msra.mxu0 %v8108_v39  ;;  %v5564_v56 = vld [vmem:[%s16024_s9 + $0x90] sm:$0xff]  ;;  %v5565_v39 = vld [vmem:[%s16024_s9 + $0x98] sm:$0xff] }
 0x5cb   :  { %8155 = vmatprep.subr.bf16.mxu1 %v8154_v52  ;;  %8175 = vmatprep.subr.bf16.mxu0 %v8174_v57  ;;  %v8178_v52 = vpack.c.bf16 %v5565_v39, %v5564_v56  ;;  %v8198_v57 = vpack.c.bf16 %v5575_v14, %v5574_v18  ;;  %v5576_v56 = vld [vmem:[%s16024_s9 + $0xf0] sm:$0xff]  ;;  %v5577_v39 = vld [vmem:[%s16024_s9 + $0xf8] sm:$0xff]  ;;  %v5598_v14 = vld [vmem:[%s16024_s9 + $0x1a0] sm:$0xff] }
 0x5cd   :  { %5355 = vmatmul.mubr.f32.vlgmr.msra.gmra.mrb[28].mxu0 %v15492_v9 }
 0x5ce   :  { %8157 = vmatpush1.bf16.msra.mxu1 %v8156_v30  ;;  %8177 = vmatpush3.bf16.msra.mxu0 %v8176_v34  ;;  %v5567_v30 = vld [vmem:[%s16024_s9 + $0xa8] sm:$0xff]  ;;  %v8200_v34 = vpack.c.bf16 %v5559_v21, %v5558_v50 }
 0x5cf   :  { %8159 = vmatprep.subr.bf16.mxu1 %v8158_v20  ;;  %8179 = vmatprep.subr.bf16.mxu0 %v8178_v52  ;;  %v8182_v20 = vpack.c.bf16 %v5567_v30, %v5566_v63  ;;  %v8202_v52 = vpack.c.bf16 %v5577_v39, %v5576_v56 }
 0x5d2   :  { %8161 = vmatpush1.bf16.msra.mxu1 %v8160_v10  ;;  %8181 = vmatpush3.bf16.msra.mxu0 %v8180_v59  ;;  %v5569_v10 = vld [vmem:[%s16024_s9 + $0xb8] sm:$0xff]  ;;  %v8204_v59 = vpack.c.bf16 %v5561_v1, %v5560_v16 }
 0x5d3   :  { %8163 = vmatprep.subr.bf16.mxu1 %v8162_v46  ;;  %8183 = vmatprep.subr.bf16.mxu0 %v8182_v20  ;;  %v8186_v46 = vpack.c.bf16 %v5569_v10, %v5568_v58 }
 0x5d6   :  { %8165 = vmatpush1.bf16.msra.mxu1 %v8164_v26  ;;  %8185 = vmatpush3.bf16.msra.mxu0 %v8184_v17  ;;  %v5571_v26 = vld [vmem:[%s16024_s9 + $0xc8] sm:$0xff] }
 0x5d7   :  { %8167 = vmatprep.subr.bf16.mxu1 %v8166_v28  ;;  %8187 = vmatprep.subr.bf16.mxu0 %v8186_v46  ;;  %v8190_v28 = vpack.c.bf16 %v5571_v26, %v5570_v7  ;;  %v5594_v7 = vld [vmem:[%s16024_s9 + $0x180] sm:$0xff] }
 0x5da   :  { %8169 = vmatpush1.bf16.msra.mxu1 %v8168_v11  ;;  %8189 = vmatpush3.bf16.msra.mxu0 %v8188_v29  ;;  %v5573_v11 = vld [vmem:[%s16024_s9 + $0xd8] sm:$0xff] }
 0x5db   :  { %8171 = vmatprep.subr.bf16.mxu1 %v8170_v47  ;;  %8191 = vmatprep.subr.bf16.mxu0 %v8190_v28  ;;  %v8194_v47 = vpack.c.bf16 %v5573_v11, %v5572_v38 }
 0x5de   :  { %8173 = vmatpush1.bf16.msra.mxu1 %v8172_v45  ;;  %8193 = vmatpush3.bf16.msra.mxu0 %v8192_v6  ;;  %v8196_v45 = vpack.c.bf16 %v5557_v41, %v5556_v37  ;;  %v5597_v6 = vld [vmem:[%s16024_s9 + $0x198] sm:$0xff] }
 0x5df   :  { %8195 = vmatprep.subr.bf16.mxu0 %v8194_v47  ;;  %v8210_v11 = vpack.c.bf16 %v5597_v6, %v5596_v48  ;;  %v5580_v47 = vld [vmem:[%s16024_s9 + $0x110] sm:$0xff]  ;;  %v5581_v37 = vld [vmem:[%s16024_s9 + $0x118] sm:$0xff]  ;;  %v5606_v48 = vld [vmem:[%s16024_s9 + $0x1e0] sm:$0xff] }
 0x5e0   :  { %v5607_v6 = vld [vmem:[%s16024_s9 + $0x1e8] sm:$0xff] }
 0x5e1   :  { %5426 = vmatmul.mubr.f32.vlgmr.msra.gmra.mrb[28].mxu1 %v15492_v9 }
 0x5e2   :  { %8197 = vmatpush3.bf16.msra.mxu0 %v8196_v45  ;;  %v8212_v45 = vpack.c.bf16 %v5581_v37, %v5580_v47  ;;  %v5591_v47 = vld [vmem:[%s16024_s9 + $0x168] sm:$0xff] }
 0x5e3   :  { %8199 = vmatprep.subr.bf16.mxu0 %v8198_v57  ;;  %v5599_v57 = vld [vmem:[%s16024_s9 + $0x1a8] sm:$0xff] }
 0x5e4   :  { %v8214_v21 = vpack.c.bf16 %v5599_v57, %v5598_v14  ;;  %v5593_v57 = vld [vmem:[%s16024_s9 + $0x178] sm:$0xff] }
 0x5e6   :  { %8201 = vmatpush3.bf16.msra.mxu0 %v8200_v34  ;;  %v5582_v34 = vld [vmem:[%s16024_s9 + $0x120] sm:$0xff] }
 0x5e7   :  { %8203 = vmatprep.subr.bf16.mxu0 %v8202_v52  ;;  %v5600_v52 = vld [vmem:[%s16024_s9 + $0x1b0] sm:$0xff] }
 0x5ea   :  { %8205 = vmatpush3.bf16.msra.mxu0 %v8204_v59  ;;  %v5584_v59 = vld [vmem:[%s16024_s9 + $0x130] sm:$0xff] }
 0x620   :  { %v4874_v63 = vpop.f32.mrb[24].mxu0  ;;  %v4945_v30 = vpop.f32.mrb[24].mxu1 }
 0x621   :  { %v4946_v20 = vadd.f32 %v4945_v30, %v12453_v49  ;;  %v4876_v60 = vpop.f32.mrb[25].mxu0  ;;  %v4947_v32 = vpop.f32.mrb[25].mxu1  ;;  %v5595_v49 = vld [vmem:[%s16024_s9 + $0x188] sm:$0xff]  ;;  %v4875_v18 = vadd.f32 %v4874_v63, %v12431_v33  ;;  %v5585_v63 = vld [vmem:[%s16024_s9 + $0x138] sm:$0xff] }
 0x622   :  { %v4948_v17 = vadd.f32 %v4947_v32, %v12456_v51  ;;  %v8206_v26 = vpack.c.bf16 %v5595_v49, %v5594_v7  ;;  %v5578_v51 = vld [vmem:[%s16024_s9 + $0x100] sm:$0xff]  ;;  %v4877_v50 = vadd.f32 %v4876_v60, %v12434_v35  ;;  %v5583_v33 = vld [vmem:[%s16024_s9 + $0x128] sm:$0xff]  ;;  %v5601_v35 = vld [vmem:[%s16024_s9 + $0x1b8] sm:$0xff]  ;;  %v8220_v30 = vpack.c.bf16 %v5585_v63, %v5584_v59 }
 0x623   :  { %v5454_v58 = vrot.slane %v4946_v20, 2  ;;  %v8216_v56 = vpack.c.bf16 %v5583_v33, %v5582_v34  ;;  %v5434_v39 = vrot.slane %v4875_v18, 2  ;;  %v8218_v1 = vpack.c.bf16 %v5601_v35, %v5600_v52  ;;  %v5592_v18 = vld [vmem:[%s16024_s9 + $0x170] sm:$0xff] }
 0x624   :  { %v5455_v10 = vrot.slane %v4948_v17, 2  ;;  %8207 = vmatprep.subr.bf16.mxu1 %v8206_v26  ;;  %v5435_v16 = vrot.slane %v4877_v50, 2  ;;  %v5488_v20 = vrot.slane %v14987_v61, 6  ;;  %v5602_v17 = vld [vmem:[%s16024_s9 + $0x1c0] sm:$0xff]  ;;  %v8236_v50 = vpack.c.bf16 %v5593_v57, %v5592_v18 }
 0x625   :  { %v5458_v46 = vadd.f32 %v12463_v54, %v5454_v58  ;;  %v5579_v54 = vld [vmem:[%s16024_s9 + $0x108] sm:$0xff]  ;;  %v5438_v32 = vadd.f32 %v12441_v42, %v5434_v39  ;;  %v5586_v42 = vld [vmem:[%s16024_s9 + $0x140] sm:$0xff] }
 0x626   :  { %v5459_v23 = vadd.f32 %v12466_v55, %v5455_v10  ;;  %v8208_v55 = vpack.c.bf16 %v5579_v54, %v5578_v51  ;;  %v5603_v58 = vld [vmem:[%s16024_s9 + $0x1c8] sm:$0xff]  ;;  %v5489_v10 = vrot.slane %v14998_v12, 6  ;;  %v5439_v61 = vadd.f32 %v12444_v44, %v5435_v16  ;;  %v5604_v12 = vld [vmem:[%s16024_s9 + $0x1d0] sm:$0xff]  ;;  %v5605_v44 = vld [vmem:[%s16024_s9 + $0x1d8] sm:$0xff] }
 0x627   :  { %v5793_v3 = vmul.f32 -1.442695, %v5458_v46  ;;  %v5791_v26 = vmul.f32 -1.442695, %v5438_v32  ;;  %v8226_v54 = vpack.c.bf16 %v5605_v44, %v5604_v12 }
 0x628   :  { %v5794_v29 = vmul.f32 -1.442695, %v5459_v23  ;;  %8209 = vmatpush3.bf16.msra.mxu1 %v8208_v55  ;;  %v8222_v23 = vpack.c.bf16 %v5603_v58, %v5602_v17  ;;  %v5792_v51 = vmul.f32 -1.442695, %v5439_v61  ;;  %v5588_v55 = vld [vmem:[%s16024_s9 + $0x150] sm:$0xff] }
 0x629   :  { %8383 = vpow2.f32 %v5793_v3  ;;  %8211 = vmatprep.subr.bf16.mxu1 %v8210_v11  ;;  %v5587_v3 = vld [vmem:[%s16024_s9 + $0x148] sm:$0xff]  ;;  %v5590_v11 = vld [vmem:[%s16024_s9 + $0x160] sm:$0xff] }
 0x62a   :  { %8385 = vpow2.f32 %v5794_v29  ;;  %v8224_v7 = vpack.c.bf16 %v5587_v3, %v5586_v42  ;;  %v8232_v37 = vpack.c.bf16 %v5591_v47, %v5590_v11 }
 0x62c   :  { %8213 = vmatpush3.bf16.msra.mxu1 %v8212_v45  ;;  %v5609_v45 = vld [vmem:[%s16024_s9 + $0x1f8] sm:$0xff] }
 0x62d   :  { %8215 = vmatprep.subr.bf16.mxu1 %v8214_v21 }
 0x630   :  { %8217 = vmatpush3.bf16.msra.mxu1 %v8216_v56 }
 0x631   :  { %8219 = vmatprep.subr.bf16.mxu1 %v8218_v1 }
 0x633   :  { %v8384_v28 = vpop.eup %8383 }
 0x634   :  { %v5466_v62 = vadd.f32 1.0, %v8384_v28  ;;  %v8386_v38 = vpop.eup %8385  ;;  %8221 = vmatpush3.bf16.msra.mxu1 %v8220_v30  ;;  %v5589_v28 = vld [vmem:[%s16024_s9 + $0x158] sm:$0xff] }
 0x635   :  { %v5467_v41 = vadd.f32 1.0, %v8386_v38  ;;  %8223 = vmatprep.subr.bf16.mxu1 %v8222_v23  ;;  %v8230_v38 = vpack.c.bf16 %v5607_v6, %v5606_v48 }
 0x636   :  { %8387 = vrcp.f32 %v5466_v62  ;;  %v8228_v62 = vpack.c.bf16 %v5589_v28, %v5588_v55 }
 0x637   :  { %8389 = vrcp.f32 %v5467_v41  ;;  %v5608_v41 = vld [vmem:[%s16024_s9 + $0x1f0] sm:$0xff] }
 0x638   :  { %8225 = vmatpush3.bf16.msra.mxu1 %v8224_v7  ;;  %8391 = vpow2.f32 %v5791_v26  ;;  %v8234_v14 = vpack.c.bf16 %v5609_v45, %v5608_v41 }
 0x639   :  { %8227 = vmatprep.subr.bf16.mxu1 %v8226_v54  ;;  %8393 = vpow2.f32 %v5792_v51 }
 0x63c   :  { %8229 = vmatpush3.bf16.msra.mxu1 %v8228_v62 }
 0x63d   :  { %8231 = vmatprep.subr.bf16.mxu1 %v8230_v38 }
 0x640   :  { %v15933_v60 = vpop.eup %8387  ;;  %8233 = vmatpush3.bf16.msra.mxu1 %v8232_v37 }
 0x641   :  { %v15944_v46 = vmul.f32 %v15933_v60, %v5488_v20  ;;  %v8390_v29 = vpop.eup %8389  ;;  %8235 = vmatprep.subr.bf16.mxu1 %v8234_v14 }
 0x642   :  { %v5493_v49 = vmul.f32 %v8390_v29, %v5489_v10  ;;  %v8392_v21 = vpop.eup %8391  ;;  %v5484_v10 = vsub.f32 1.0, %v15933_v60  ;;  %v5485_v23 = vsub.f32 1.0, %v8390_v29 }
 0x643   :  { %v8394_v34 = vpop.eup %8393  ;;  %v5446_v33 = vadd.f32 1.0, %v8392_v21 }
 0x644   :  { %8237 = vmatpush3.bf16.msra.mxu1 %v8236_v50  ;;  %v5447_v56 = vadd.f32 1.0, %v8394_v34 }
 0x645   :  { %8395 = vrcp.f32 %v5446_v33 }
 0x646   :  { %8397 = vrcp.f32 %v5447_v56 }
 0x64f   :  { %v8396_v59 = vpop.eup %8395 }
 0x650   :  { %v8398_v30 = vpop.eup %8397 }
 0x660   :  { %v5016_v39 = vpop.f32.mrb[26].mxu0 }
 0x661   :  { %v5017_v52 = vadd.f32 %v5016_v39, %v12475_v4  ;;  %v5018_v35 = vpop.f32.mrb[27].mxu0 }
 0x662   :  { %v5019_v16 = vadd.f32 %v5018_v35, %v12478_v5 }
 0x663   :  { %v5474_v1 = vrot.slane %v5017_v52, 2 }
 0x664   :  { %v5475_v63 = vrot.slane %v5019_v16, 2 }
 0x665   :  { %v5478_v20 = vmul.f32 %v8396_v59, %v5474_v1 }
 0x666   :  { %v5479_v32 = vmul.f32 %v8398_v30, %v5475_v63 }
 0x667   :  { %v5480_v17 = vadd.f32 %v12489_v25, %v5478_v20 }
 0x668   :  { %v5481_v58 = vadd.f32 %v12492_v27, %v5479_v32 }
 0x669   :  { %8399 = vtanh.f32 %v5480_v17 }
 0x66a   :  { %8401 = vtanh.f32 %v5481_v58  ;;  %v5799_v58 = vld [vmem:[%s16025_s10] ss:$0 sm:$0xff] }
 0x673   :  { %v8400_v61 = vpop.eup %8399 }
 0x674   :  { %v8402_v4 = vpop.eup %8401  ;;  %v5486_v42 = vmul.f32 %v8400_v61, %v5484_v10  ;;  %v5285_v3 = vpop.f32.mrb[26].mxu1 }
 0x675   :  { %v5487_v5 = vmul.f32 %v8402_v4, %v5485_v23  ;;  %v5287_v7 = vpop.f32.mrb[27].mxu1  ;;  %v5286_v27 = vadd.f32 %v5285_v3, %v12531_v0 }
 0x676   :  { %v5494_v26 = vadd.f32 %v15944_v46, %v5486_v42  ;;  %v5288_v60 = vadd.f32 %v5287_v7, %v12545_v15 }
 0x677   :  { %v5495_v12 = vadd.f32 %v5493_v49, %v5487_v5  ;;  %v5496_v29 = vadd.f32 %v12624_v13, %v5286_v27 }
 0x678   :  { %5538 = vst [vmem:[#allocation2] sm:$0xc0] %v5494_v26  ;;  %v5497_v51 = vadd.f32 %v12633_v19, %v5288_v60 }
 0x679   :  { %5539 = vst [vmem:[#allocation2 + $0x8] sm:$0xc0] %v5495_v12  ;;  %v5795_v54 = vmul.f32 -1.442695, %v5496_v29 }
 0x67a   :  { %v5796_v55 = vmul.f32 -1.442695, %v5497_v51 }
 0x67b   :  { %8403 = vpow2.f32 %v5795_v54 }
 0x67c   :  { %8405 = vpow2.f32 %v5796_v55 }
 0x67f   :  { %v5542_v25 = vld [vmem:[#allocation2] sm:$0xff] }
 0x680   :  { %v5543_v44 = vld [vmem:[#allocation2 + $0x8] sm:$0xff] }
 0x681   :  { %5681 = vmatprep.mubr.f32.mxu0 %v5543_v44 }
 0x682   :  { %5682 = vmatmul.mubr.f32.vlgmr.msra.gmra.mrb[30].mxu0 %v5542_v25 }
 0x685   :  { %v8404_v6 = vpop.eup %8403 }
 0x686   :  { %v8406_v38 = vpop.eup %8405  ;;  %v5504_v19 = vadd.f32 1.0, %v8404_v6 }
 0x687   :  { %v5505_v11 = vadd.f32 1.0, %v8406_v38 }
 0x6a0   :  { %v5356_v46 = vpop.f32.mrb[28].mxu0 }
 0x6a1   :  { %v5357_v49 = vadd.f32 %v5356_v46, %v12807_v40  ;;  %v5358_v28 = vpop.f32.mrb[29].mxu0 }
 0x6a2   :  { %v5359_v62 = vadd.f32 %v5358_v28, %v12818_v24 }
 0x6a3   :  { %v5510_v48 = vadd.f32 %v12865_v8, %v5357_v49 }
 0x6a4   :  { %v5511_v0 = vadd.f32 %v12875_v22, %v5359_v62 }
 0x6a5   :  { %v5797_v15 = vmul.f32 -1.442695, %v5510_v48 }
 0x6a6   :  { %v5798_v13 = vmul.f32 -1.442695, %v5511_v0 }
 0x6a7   :  { %8407 = vpow2.f32 %v5797_v15 }
 0x6a8   :  { %8409 = vpow2.f32 %v5798_v13 }
 0x6a9   :  { %8411 = vrcp.f32 %v5504_v19 }
 0x6aa   :  { %8413 = vrcp.f32 %v5505_v11 }
 0x6b1   :  { %v8408_v47 = vpop.eup %8407 }
 0x6b2   :  { %v8410_v37 = vpop.eup %8409  ;;  %v5518_v40 = vadd.f32 1.0, %v8408_v47 }
 0x6b3   :  { %v5519_v41 = vadd.f32 1.0, %v8410_v37  ;;  %v8412_v18 = vpop.eup %8411 }
 0x6b4   :  { %v5427_v45 = vpop.f32.mrb[28].mxu1  ;;  %v8414_v14 = vpop.eup %8413  ;;  %8415 = vrcp.f32 %v5518_v40 }
 0x6b5   :  { %v5428_v24 = vadd.f32 %v5427_v45, %v12811_v53  ;;  %v5429_v8 = vpop.f32.mrb[29].mxu1  ;;  %8417 = vrcp.f32 %v5519_v41 }
 0x6b6   :  { %v5430_v22 = vadd.f32 %v5429_v8, %v12833_v43 }
 0x6b7   :  { %v5524_v57 = vmul.f32 %v8412_v18, %v5428_v24 }
 0x6b8   :  { %v5525_v50 = vmul.f32 %v8414_v14, %v5430_v22 }
 0x6b9   :  { %v5526_v21 = vadd.f32 %v12966_v2, %v5524_v57 }
 0x6ba   :  { %v5527_v34 = vadd.f32 %v12983_v36, %v5525_v50 }
 0x6bb   :  { %8419 = vtanh.f32 %v5526_v21 }
 0x6bc   :  { %8421 = vtanh.f32 %v5527_v34 }
 0x6be   :  { %v8416_v33 = vpop.eup %8415 }
 0x6bf   :  { %v8418_v56 = vpop.eup %8417  ;;  %v5530_v39 = vsub.f32 1.0, %v8416_v33  ;;  %v5534_v16 = vmul.f32 %v8416_v33, %v15492_v9 }
 0x6c0   :  { %v5531_v53 = vsub.f32 1.0, %v8418_v56  ;;  %v5535_v1 = vmul.f32 %v8418_v56, %v15484_v31 }
 0x6c5   :  { %v8420_v52 = vpop.eup %8419 }
 0x6c6   :  { %v8422_v35 = vpop.eup %8421  ;;  %v5532_v43 = vmul.f32 %v8420_v52, %v5530_v39 }
 0x6c7   :  { %v5533_v59 = vmul.f32 %v8422_v35, %v5531_v53 }
 0x6c8   :  { %v5536_v63 = vadd.f32 %v5534_v16, %v5532_v43 }
 0x6c9   :  { %v5537_v30 = vadd.f32 %v5535_v1, %v5533_v59 }
 0x6ca   :  { %5540 = vst [vmem:[#allocation2 + $0x10] sm:$0x3] %v5536_v63 }
 0x6cb   :  { %5541 = vst [vmem:[#allocation2 + $0x18] sm:$0x3] %v5537_v30 }
 0x6d1   :  { %v5544_v36 = vld [vmem:[#allocation2 + $0x10] sm:$0xff] }
 0x6d2   :  { %v5545_v2 = vld [vmem:[#allocation2 + $0x18] sm:$0xff] }
 0x6d3   :  { %5751 = vmatprep.mubr.f32.mxu1 %v5545_v2 }
 0x6d4   :  { %5752 = vmatmul.mubr.f32.vlgmr.msra.gmra.mrb[30].mxu1 %v5544_v36 }
 0x755   :  { %v5832_v20 = vpop.f32.mrb[30].mxu0 }
 0x756   :  { %v5833_v32 = vpop.f32.mrb[31].mxu0 }
 0x757   :  { %v5834_v17 = vadd.f32 %v5833_v32, %v5832_v20 }
 0x759   :  { %v5684_v61 = vadd.f32 %v5834_v17, %v5799_v58 }
 0x7a7   :  { %v5867_v9 = vpop.f32.mrb[30].mxu1 }
 0x7a8   :  { %v5868_v10 = vpop.f32.mrb[31].mxu1 }
 0x7a9   :  { %v5869_v31 = vadd.f32 %v5868_v10, %v5867_v9 }
 0x7ab   :  { %v5754_v23 = vadd.f32 %v5869_v31, %v5684_v61 }
 0x7ad   :  { %v5758_v4 = vand.u32 2147483647, %v5754_v23  ;;  %vm5757_vm0 = vcmp.eq.f32.partialorder %v5754_v23, %v5754_v23 }
 0x7af   :  { %vm5759_vm1 = vcmp.ne.f32.partialorder %v5758_v4, inf }
 0x7b0   :  { %vm5760_vm2 = vmand %vm5757_vm0, %vm5759_vm1 }
 0x7b1   :  { %v5761_v42 = vsel %vm5760_vm2, %v5754_v23, 0.0 }
 0x7b2   :  { %5762 = vst [vmem:[%s16026_s11] sm:$0xff] %v5761_v42 }

</bundles_post_ra>
